<compile_context>
chip_gen: v6e
topology: v6e:2x2x1
jax: 0.10.0
libtpu: 0.0.40
codegen_flags: <defaults>
</compile_context>

<pallas_src>
import jax
import jax.numpy as jnp
import numpy as np
from jax.experimental import pallas as pl
from jax.experimental.pallas import tpu as pltpu


def _round_up(x, m):
    return (x + m - 1) // m * m


# ----------------------------------------------------------------------------
# Hardware-aware knobs (all guarded: fall back to safe defaults if unsupported)
# ----------------------------------------------------------------------------
_VMEM_CACHE = {}


def _vmem_limit():
    """Generation-dependent scoped-VMEM limit: ~half of physical VMEM,
    clamped to [32 MiB, 96 MiB]  (v7x: 64 MiB -> 32 MiB; v5e/v6e: 128 -> 64)."""
    if "limit" not in _VMEM_CACHE:
        try:
            cap = int(pltpu.get_tpu_info().vmem_capacity_bytes)
        except Exception:
            cap = 64 << 20
        _VMEM_CACHE["limit"] = int(max(32 << 20, min(cap // 2, 96 << 20)))
    return _VMEM_CACHE["limit"]


_SINGLE_BUFFER = {"decided": False, "ok": False}


def _decide_single_buffering():
    """Probe (once, eagerly) whether pipeline_mode=pl.Buffered(1) works here,
    so resident weights can be single-buffered (halves their VMEM footprint)."""
    if _SINGLE_BUFFER["decided"]:
        return
    _SINGLE_BUFFER["decided"] = True

    def copy_kernel(x_ref, o_ref):
        o_ref[...] = x_ref[...]

    try:
        x = jnp.arange(8 * 128, dtype=jnp.float32).reshape(8, 128)
        out = pl.pallas_call(
            copy_kernel,
            out_shape=jax.ShapeDtypeStruct((16, 128), jnp.float32),
            grid=(2,),
            in_specs=[pl.BlockSpec((8, 128), lambda i: (0, 0),
                                   pipeline_mode=pl.Buffered(1))],
            out_specs=pl.BlockSpec((8, 128), lambda i: (i, 0)),
        )(x)
        out = jax.block_until_ready(out)
        _SINGLE_BUFFER["ok"] = (bool(jnp.all(out[:8] == x))
                                and bool(jnp.all(out[8:] == x)))
    except Exception:
        _SINGLE_BUFFER["ok"] = False


def _resident_spec(shape):
    """BlockSpec for an operand whose block never changes across the grid
    (weights / biases): keep it resident, single-buffer it when supported."""
    zeros = (0,) * len(shape)
    if _SINGLE_BUFFER["ok"]:
        return pl.BlockSpec(shape, lambda i: zeros, pipeline_mode=pl.Buffered(1))
    return pl.BlockSpec(shape, lambda i: zeros)


def _pick_m_tiling(m, max_tile):
    """Pick (tile, padded_M).  Tiles are multiples of 16 (bf16 sublane pairs);
    small M runs as ONE grid step, mid-size as two even steps (keeps both v7x
    TensorCores busy), large M as ceil(M/max_tile) steps."""
    m16 = _round_up(max(m, 1), 16)
    if m16 <= max_tile:
        if m16 >= 512:
            tile = _round_up(-(-m16 // 2), 16)
            return tile, 2 * tile
        return m16, m16
    n = -(-m16 // max_tile)
    tile = _round_up(-(-m16 // n), 16)
    return tile, tile * n


# ----------------------------------------------------------------------------
# Pallas kernel 1: fused  Y = relu(X @ W + b)   (used by all three convs)
# ----------------------------------------------------------------------------
def _matmul_bias_relu_kernel(x_ref, w_ref, b_ref, o_ref):
    acc = jnp.dot(x_ref[...], w_ref[...], preferred_element_type=jnp.float32)
    o_ref[...] = jnp.maximum(acc + b_ref[...], 0.0).astype(o_ref.dtype)


def matmul_bias_relu(x, w, b, *, max_m_tile=2048):
    """relu(x @ w + b). x: (M, K) bf16, w: (K, N) bf16, b: (1, N) f32 -> bf16."""
    M, K = x.shape
    Kw, N = w.shape
    assert K == Kw and b.shape == (1, N)
    tile, Mp = _pick_m_tiling(M, max_m_tile)
    if Mp != M:
        x = jnp.pad(x, ((0, Mp - M), (0, 0)))
    out = pl.pallas_call(
        _matmul_bias_relu_kernel,
        out_shape=jax.ShapeDtypeStruct((Mp, N), jnp.bfloat16),
        grid=(Mp // tile,),
        in_specs=[
            pl.BlockSpec((tile, K), lambda i: (i, 0)),  # streamed over M
            _resident_spec((K, N)),                     # weight stays resident
            _resident_spec((1, N)),                     # bias stays resident
        ],
        out_specs=pl.BlockSpec((tile, N), lambda i: (i, 0)),
        compiler_params=pltpu.CompilerParams(
            dimension_semantics=("parallel",),
            vmem_limit_bytes=_vmem_limit()),
    )(x, w, b)
    return out if Mp == M else out[:M]


# ----------------------------------------------------------------------------
# Pallas kernel 2: fused head  probs = softmax(relu(X @ W1 + b1) @ W2 + b2)
# (fc2 padded to 128 lanes; padded lanes carry bias -1e30 -> exp() == 0)
# ----------------------------------------------------------------------------
def _head_kernel(x_ref, w1_ref, b1_ref, w2_ref, b2_ref, o_ref):
    h = jnp.dot(x_ref[...], w1_ref[...], preferred_element_type=jnp.float32)
    h = jnp.maximum(h + b1_ref[...], 0.0).astype(jnp.bfloat16)          # fc1+ReLU
    logits = jnp.dot(h, w2_ref[...], preferred_element_type=jnp.float32)
    logits = logits + b2_ref[...]                                       # fc2
    m = jnp.max(logits, axis=-1, keepdims=True)
    e = jnp.exp(logits - m)
    denom = jnp.sum(e, axis=-1, keepdims=True)
    o_ref[...] = (e / denom).astype(o_ref.dtype)      # exact normalization


def head_fc_softmax(x, w1, b1, w2, b2, *, n_valid, max_m_tile=512):
    """x: (B, K) bf16, w1: (K, 512) bf16, w2: (512, 128) bf16 -> (B, n_valid) f32."""
    M, K = x.shape
    N1 = w1.shape[1]
    N2 = w2.shape[1]
    tile, Mp = _pick_m_tiling(M, max_m_tile)
    if Mp != M:
        x = jnp.pad(x, ((0, Mp - M), (0, 0)))
    out = pl.pallas_call(
        _head_kernel,
        out_shape=jax.ShapeDtypeStruct((Mp, N2), jnp.float32),
        grid=(Mp // tile,),
        in_specs=[
            pl.BlockSpec((tile, K), lambda i: (i, 0)),
            _resident_spec((K, N1)),
            _resident_spec((1, N1)),
            _resident_spec((N1, N2)),
            _resident_spec((1, N2)),
        ],
        out_specs=pl.BlockSpec((tile, N2), lambda i: (i, 0)),
        compiler_params=pltpu.CompilerParams(
            dimension_semantics=("parallel",),
            vmem_limit_bytes=_vmem_limit()),
    )(x, w1, b1, w2, b2)
    return out[:M, :n_valid]


# ----------------------------------------------------------------------------
# im2col glue (one XLA patches op per conv; guarded fallback to strided slices)
# ----------------------------------------------------------------------------
_IM2COL = {"mode": None}


def _patch_feature_perm(c, kh, kw):
    """Permutation mapping the canonical (kh, kw, c) im2col feature order to
    the feature order emitted by lax.conv_general_dilated_patches (NHWC)."""
    probe = jnp.arange(kh * kw * c, dtype=jnp.float32).reshape(1, kh, kw, c)
    pat = jax.lax.conv_general_dilated_patches(
        probe, (kh, kw), (1, 1), "VALID",
        dimension_numbers=("NHWC", "HWIO", "NHWC"))
    perm = np.rint(np.asarray(pat)).astype(np.int64).reshape(kh * kw * c)
    assert sorted(perm.tolist()) == list(range(kh * kw * c))
    return perm


def _decide_im2col_mode():
    if _IM2COL["mode"] is not None:
        return
    try:
        _patch_feature_perm(4, 8, 8)
        _IM2COL["mode"] = "patches"
    except Exception:
        _IM2COL["mode"] = "slices"


def _im2col_nhwc(x, kh, kw, stride):
    """x: (B,H,W,C) -> ((B*OH*OW, KH*KW*C), OH, OW)."""
    B, H, W, C = x.shape
    oh = (H - kh) // stride + 1
    ow = (W - kw) // stride + 1
    if _IM2COL["mode"] == "patches":
        p = jax.lax.conv_general_dilated_patches(
            x, (kh, kw), (stride, stride), "VALID",
            dimension_numbers=("NHWC", "HWIO", "NHWC"))
    else:
        # canonical (kh, kw, c) feature order via strided slices
        slabs = [x[:, i:i + stride * oh:stride, j:j + stride * ow:stride, :]
                 for i in range(kh) for j in range(kw)]
        p = jnp.stack(slabs, axis=3)
    return p.reshape(B * oh * ow, kh * kw * C), oh, ow


def conv2d_relu_nhwc(x, w2d, b2d, *, kh, kw, stride, out_channels):
    """PyTorch Conv2d + ReLU with NHWC activations.

    w2d: (Kp, 128) bf16 prepared weight (rows in the im2col feature order used
         by _im2col_nhwc, zero-padded to a multiple of 128; cols = OC padded to
         128 lanes).  b2d: (1, 128) f32.  Returns (B, OH, OW, out_channels)."""
    B = x.shape[0]
    cols, oh, ow = _im2col_nhwc(x, kh, kw, stride)
    k = cols.shape[1]
    kp = w2d.shape[0]
    if kp != k:
        cols = jnp.pad(cols, ((0, 0), (0, kp - k)))
    y = matmul_bias_relu(cols, w2d, b2d)                # (B*oh*ow, 128) bf16
    return y.reshape(B, oh, ow, -1)[..., :out_channels]


# ----------------------------------------------------------------------------
# Parameters: PyTorch-shaped init + one-time layout preparation
# ----------------------------------------------------------------------------
def init_params(key):
    """Same shapes / init scheme as the PyTorch module (OIHW conv weights,
    (out,in) fc weights)."""
    def uniform(k, shape, fan_in):
        bound = 1.0 / jnp.sqrt(jnp.float32(fan_in))
        return jax.random.uniform(k, shape, jnp.float32, -bound, bound)

    ks = jax.random.split(key, 10)
    return {
        "conv1_w": uniform(ks[0], (32, 4, 8, 8), 4 * 8 * 8),
        "conv1_b": uniform(ks[1], (32,), 4 * 8 * 8),
        "conv2_w": uniform(ks[2], (64, 32, 4, 4), 32 * 4 * 4),
        "conv2_b": uniform(ks[3], (64,), 32 * 4 * 4),
        "conv3_w": uniform(ks[4], (64, 64, 3, 3), 64 * 3 * 3),
        "conv3_b": uniform(ks[5], (64,), 64 * 3 * 3),
        "fc1_w": uniform(ks[6], (512, 9 * 9 * 64), 9 * 9 * 64),
        "fc1_b": uniform(ks[7], (512,), 9 * 9 * 64),
        "fc2_w": uniform(ks[8], (3, 512), 512),
        "fc2_b": uniform(ks[9], (3,), 512),
    }


def prepare_params(p):
    """One-time (eager, outside the hot path) weight layout prep."""
    _decide_im2col_mode()
    _decide_single_buffering()

    def prep_conv(w, b):
        oc, c, kh, kw = w.shape
        k = kh * kw * c
        w2 = jnp.transpose(w, (2, 3, 1, 0)).reshape(k, oc)   # canonical (kh,kw,c)
        if _IM2COL["mode"] == "patches":
            w2 = w2[_patch_feature_perm(c, kh, kw), :]       # match patches order
        kp = _round_up(k, 128)
        ocp = _round_up(oc, 128)
        w2 = jnp.pad(w2, ((0, kp - k), (0, ocp - oc))).astype(jnp.bfloat16)
        b2 = jnp.pad(b, (0, ocp - oc)).astype(jnp.float32).reshape(1, ocp)
        return w2, b2

    c1w, c1b = prep_conv(p["conv1_w"], p["conv1_b"])
    c2w, c2b = prep_conv(p["conv2_w"], p["conv2_b"])
    c3w, c3b = prep_conv(p["conv3_w"], p["conv3_b"])

    # fc1: permute input columns from NCHW (c,h,w) flatten order to the NHWC
    # (h,w,c) flatten order used here; K zero-padded to x128; bf16.
    k1 = 9 * 9 * 64
    k1p = _round_up(k1, 128)
    fc1 = (p["fc1_w"].reshape(512, 64, 9, 9)       # (out, c, h, w)
           .transpose(0, 2, 3, 1)                  # (out, h, w, c)
           .reshape(512, k1).T)                    # (k1, 512)
    fc1 = jnp.pad(fc1, ((0, k1p - k1), (0, 0))).astype(jnp.bfloat16)

    # fc2: padded to 128 output lanes (lane-dense stores); padded lanes get
    # zero weights and a -1e30 bias so they contribute exactly 0 to softmax.
    n2, n2p = 3, 128
    fc2w = jnp.pad(p["fc2_w"].T, ((0, 0), (0, n2p - n2))).astype(jnp.bfloat16)
    fc2b = jnp.concatenate(
        [p["fc2_b"].astype(jnp.float32),
         jnp.full((n2p - n2,), -1e30, jnp.float32)]).reshape(1, n2p)

    return {
        "conv1_w": c1w, "conv1_b": c1b,
        "conv2_w": c2w, "conv2_b": c2b,
        "conv3_w": c3w, "conv3_b": c3b,
        "fc1_w": fc1,
        "fc1_b": p["fc1_b"].astype(jnp.float32).reshape(1, 512),
        "fc2_w": fc2w,
        "fc2_b": fc2b,
    }


# ----------------------------------------------------------------------------
# Forward pass
# ----------------------------------------------------------------------------
@jax.jit
def policy_forward(prepared, x):
    """x: (B, 4, 100, 100) float32 NCHW (PyTorch layout). Returns (B, 3)."""
    x = jnp.transpose(x, (0, 2, 3, 1)).astype(jnp.bfloat16)     # NHWC bf16, once
    x = conv2d_relu_nhwc(x, prepared["conv1_w"], prepared["conv1_b"],
                         kh=8, kw=8, stride=4, out_channels=32)  # (B,24,24,32)
    x = conv2d_relu_nhwc(x, prepared["conv2_w"], prepared["conv2_b"],
                         kh=4, kw=4, stride=2, out_channels=64)  # (B,11,11,64)
    x = conv2d_relu_nhwc(x, prepared["conv3_w"], prepared["conv3_b"],
                         kh=3, kw=3, stride=1, out_channels=64)  # (B, 9, 9,64)
    B = x.shape[0]
    xf = x.reshape(B, 9 * 9 * 64)        # (h,w,c) flatten; fc1_w permuted to match
    k1p = prepared["fc1_w"].shape[0]
    xf = jnp.pad(xf, ((0, 0), (0, k1p - xf.shape[1])))
    return head_fc_softmax(xf, prepared["fc1_w"], prepared["fc1_b"],
                           prepared["fc2_w"], prepared["fc2_b"], n_valid=3)


if __name__ == "__main__":
    key = jax.random.PRNGKey(0)
    pkey, xkey = jax.random.split(key)
    params = init_params(pkey)
    prepared = prepare_params(params)    # one-time layout prep (outside jit)

    # Batch=2; spatial 100x100 is forced by the module's fc1 (9*9*64 flatten).
    x = jax.random.normal(xkey, (2, 4, 100, 100), jnp.float32)

    probs = jax.block_until_ready(policy_forward(prepared, x))

    assert probs.shape == (2, 3)
    assert bool(jnp.all(jnp.isfinite(probs)))
    assert bool(jnp.all(probs >= 0.0))
    assert bool(jnp.allclose(jnp.sum(probs, axis=-1), 1.0, atol=1e-3))

    print("KERNEL_OK")
</pallas_src>

<mosaic_0001>
module attributes {stable_mosaic.version = 11 : i64} {
  func.func @copy_kernel(%arg0: i32, %arg1: memref<8x128xf32, #tpu.memory_space<vmem>>, %arg2: memref<8x128xf32, #tpu.memory_space<vmem>>) attributes {dimension_semantics = [#tpu.dimension_semantics<arbitrary>], iteration_bounds = array<i64: 2>, scalar_prefetch = 0 : i64, scratch_operands = 0 : i64, tpu.core_type = #tpu.core_type<tc>, window_params = [{pipeline_mode = #tpu.pipeline_mode<synchronous>, transform_indices = @transform_0, window_bounds = array<i64: 8, 128>}, {transform_indices = @transform_1, window_bounds = array<i64: 8, 128>}]} {
    %c0 = arith.constant 0 : index
    %c0_0 = arith.constant 0 : index
    %0 = vector.load %arg1[%c0, %c0_0] : memref<8x128xf32, #tpu.memory_space<vmem>>, vector<8x128xf32>
    %c0_1 = arith.constant 0 : index
    %c0_2 = arith.constant 0 : index
    %1 = vector.load %arg2[%c0_1, %c0_2] : memref<8x128xf32, #tpu.memory_space<vmem>>, vector<8x128xf32>
    tpu.vector_store %arg2[%c0_1, %c0_2], %0 {strides = array<i32>} : memref<8x128xf32, #tpu.memory_space<vmem>>, vector<8x128xf32>,
    return
  }
  func.func @transform_0(%arg0: i32) -> (i32, i32) {
    %c0_i32 = arith.constant 0 : i32
    %c0_i32_0 = arith.constant 0 : i32
    %c0_i32_1 = arith.constant 0 : i32
    return %c0_i32, %c0_i32_0 : i32, i32
  }
  func.func @transform_1(%arg0: i32) -> (i32, i32) {
    %c0_i32 = arith.constant 0 : i32
    %c0_i32_0 = arith.constant 0 : i32
    return %arg0, %c0_i32 : i32, i32
  }
}

module attributes {stable_mosaic.version = 11 : i64} {
  func.func @_matmul_bias_relu_kernel(%arg0: i32, %arg1: memref<576x256xbf16, #tpu.memory_space<vmem>>, %arg2: memref<256x128xbf16, #tpu.memory_space<vmem>>, %arg3: memref<1x128xf32, #tpu.memory_space<vmem>>, %arg4: memref<576x128xbf16, #tpu.memory_space<vmem>>) attributes {dimension_semantics = [#tpu.dimension_semantics<parallel>], iteration_bounds = array<i64: 2>, scalar_prefetch = 0 : i64, scratch_operands = 0 : i64, tpu.core_type = #tpu.core_type<tc>, window_params = [{transform_indices = @transform_0, window_bounds = array<i64: 576, 256>}, {pipeline_mode = #tpu.pipeline_mode<synchronous>, transform_indices = @transform_1, window_bounds = array<i64: 256, 128>}, {pipeline_mode = #tpu.pipeline_mode<synchronous>, transform_indices = @transform_2, window_bounds = array<i64: 1, 128>}, {transform_indices = @transform_3, window_bounds = array<i64: 576, 128>}]} {
    %c0 = arith.constant 0 : index
    %c0_0 = arith.constant 0 : index
    %0 = vector.load %arg1[%c0, %c0_0] : memref<576x256xbf16, #tpu.memory_space<vmem>>, vector<576x256xbf16>
    %c0_1 = arith.constant 0 : index
    %c0_2 = arith.constant 0 : index
    %1 = vector.load %arg2[%c0_1, %c0_2] : memref<256x128xbf16, #tpu.memory_space<vmem>>, vector<256x128xbf16>
    %cst = arith.constant dense<0.000000e+00> : vector<576x128xf32>
    %2 = tpu.matmul %0, %1, %cst {dimension_numbers = #tpu.dot_dimension_numbers<[1], [0], [0], [1], [0, 0, 1, 1], [], []>} : vector<576x256xbf16>, vector<256x128xbf16>, vector<576x128xf32> -> vector<576x128xf32>
    %c0_3 = arith.constant 0 : index
    %c0_4 = arith.constant 0 : index
    %3 = vector.load %arg3[%c0_3, %c0_4] : memref<1x128xf32, #tpu.memory_space<vmem>>, vector<1x128xf32>
    %4 = vector.broadcast %3 : vector<1x128xf32> to vector<576x128xf32>
    %5 = arith.addf %2, %4 : vector<576x128xf32>
    %cst_5 = arith.constant 0.000000e+00 : f32
    %6 = vector.broadcast %cst_5 : f32 to vector<576x128xf32>
    %7 = arith.maximumf %5, %6 : vector<576x128xf32>
    %8 = arith.truncf %7 : vector<576x128xf32> to vector<576x128xbf16>
    %c0_6 = arith.constant 0 : index
    %c0_7 = arith.constant 0 : index
    %9 = vector.load %arg4[%c0_6, %c0_7] : memref<576x128xbf16, #tpu.memory_space<vmem>>, vector<576x128xbf16>
    tpu.vector_store %arg4[%c0_6, %c0_7], %8 {strides = array<i32>} : memref<576x128xbf16, #tpu.memory_space<vmem>>, vector<576x128xbf16>,
    return
  }
  func.func @transform_0(%arg0: i32) -> (i32, i32) {
    %c0_i32 = arith.constant 0 : i32
    %c0_i32_0 = arith.constant 0 : i32
    return %arg0, %c0_i32 : i32, i32
  }
  func.func @transform_1(%arg0: i32) -> (i32, i32) {
    %c0_i32 = arith.constant 0 : i32
    %c0_i32_0 = arith.constant 0 : i32
    %c0_i32_1 = arith.constant 0 : i32
    return %c0_i32, %c0_i32_0 : i32, i32
  }
  func.func @transform_2(%arg0: i32) -> (i32, i32) {
    %c0_i32 = arith.constant 0 : i32
    %c0_i32_0 = arith.constant 0 : i32
    %c0_i32_1 = arith.constant 0 : i32
    return %c0_i32, %c0_i32_0 : i32, i32
  }
  func.func @transform_3(%arg0: i32) -> (i32, i32) {
    %c0_i32 = arith.constant 0 : i32
    %c0_i32_0 = arith.constant 0 : i32
    return %arg0, %c0_i32 : i32, i32
  }
}

module attributes {stable_mosaic.version = 11 : i64} {
  func.func @_matmul_bias_relu_kernel(%arg0: i32, %arg1: memref<256x512xbf16, #tpu.memory_space<vmem>>, %arg2: memref<512x128xbf16, #tpu.memory_space<vmem>>, %arg3: memref<1x128xf32, #tpu.memory_space<vmem>>, %arg4: memref<256x128xbf16, #tpu.memory_space<vmem>>) attributes {dimension_semantics = [#tpu.dimension_semantics<parallel>], iteration_bounds = array<i64: 1>, scalar_prefetch = 0 : i64, scratch_operands = 0 : i64, tpu.core_type = #tpu.core_type<tc>, window_params = [{transform_indices = @transform_0, window_bounds = array<i64: 256, 512>}, {pipeline_mode = #tpu.pipeline_mode<synchronous>, transform_indices = @transform_1, window_bounds = array<i64: 512, 128>}, {pipeline_mode = #tpu.pipeline_mode<synchronous>, transform_indices = @transform_2, window_bounds = array<i64: 1, 128>}, {transform_indices = @transform_3, window_bounds = array<i64: 256, 128>}]} {
    %c0 = arith.constant 0 : index
    %c0_0 = arith.constant 0 : index
    %0 = vector.load %arg1[%c0, %c0_0] : memref<256x512xbf16, #tpu.memory_space<vmem>>, vector<256x512xbf16>
    %c0_1 = arith.constant 0 : index
    %c0_2 = arith.constant 0 : index
    %1 = vector.load %arg2[%c0_1, %c0_2] : memref<512x128xbf16, #tpu.memory_space<vmem>>, vector<512x128xbf16>
    %cst = arith.constant dense<0.000000e+00> : vector<256x128xf32>
    %2 = tpu.matmul %0, %1, %cst {dimension_numbers = #tpu.dot_dimension_numbers<[1], [0], [0], [1], [0, 0, 1, 1], [], []>} : vector<256x512xbf16>, vector<512x128xbf16>, vector<256x128xf32> -> vector<256x128xf32>
    %c0_3 = arith.constant 0 : index
    %c0_4 = arith.constant 0 : index
    %3 = vector.load %arg3[%c0_3, %c0_4] : memref<1x128xf32, #tpu.memory_space<vmem>>, vector<1x128xf32>
    %4 = vector.broadcast %3 : vector<1x128xf32> to vector<256x128xf32>
    %5 = arith.addf %2, %4 : vector<256x128xf32>
    %cst_5 = arith.constant 0.000000e+00 : f32
    %6 = vector.broadcast %cst_5 : f32 to vector<256x128xf32>
    %7 = arith.maximumf %5, %6 : vector<256x128xf32>
    %8 = arith.truncf %7 : vector<256x128xf32> to vector<256x128xbf16>
    %c0_6 = arith.constant 0 : index
    %c0_7 = arith.constant 0 : index
    %9 = vector.load %arg4[%c0_6, %c0_7] : memref<256x128xbf16, #tpu.memory_space<vmem>>, vector<256x128xbf16>
    tpu.vector_store %arg4[%c0_6, %c0_7], %8 {strides = array<i32>} : memref<256x128xbf16, #tpu.memory_space<vmem>>, vector<256x128xbf16>,
    return
  }
  func.func @transform_0(%arg0: i32) -> (i32, i32) {
    %c0_i32 = arith.constant 0 : i32
    %c0_i32_0 = arith.constant 0 : i32
    return %arg0, %c0_i32 : i32, i32
  }
  func.func @transform_1(%arg0: i32) -> (i32, i32) {
    %c0_i32 = arith.constant 0 : i32
    %c0_i32_0 = arith.constant 0 : i32
    %c0_i32_1 = arith.constant 0 : i32
    return %c0_i32, %c0_i32_0 : i32, i32
  }
  func.func @transform_2(%arg0: i32) -> (i32, i32) {
    %c0_i32 = arith.constant 0 : i32
    %c0_i32_0 = arith.constant 0 : i32
    %c0_i32_1 = arith.constant 0 : i32
    return %c0_i32, %c0_i32_0 : i32, i32
  }
  func.func @transform_3(%arg0: i32) -> (i32, i32) {
    %c0_i32 = arith.constant 0 : i32
    %c0_i32_0 = arith.constant 0 : i32
    return %arg0, %c0_i32 : i32, i32
  }
}

module attributes {stable_mosaic.version = 11 : i64} {
  func.func @_matmul_bias_relu_kernel(%arg0: i32, %arg1: memref<176x640xbf16, #tpu.memory_space<vmem>>, %arg2: memref<640x128xbf16, #tpu.memory_space<vmem>>, %arg3: memref<1x128xf32, #tpu.memory_space<vmem>>, %arg4: memref<176x128xbf16, #tpu.memory_space<vmem>>) attributes {dimension_semantics = [#tpu.dimension_semantics<parallel>], iteration_bounds = array<i64: 1>, scalar_prefetch = 0 : i64, scratch_operands = 0 : i64, tpu.core_type = #tpu.core_type<tc>, window_params = [{transform_indices = @transform_0, window_bounds = array<i64: 176, 640>}, {pipeline_mode = #tpu.pipeline_mode<synchronous>, transform_indices = @transform_1, window_bounds = array<i64: 640, 128>}, {pipeline_mode = #tpu.pipeline_mode<synchronous>, transform_indices = @transform_2, window_bounds = array<i64: 1, 128>}, {transform_indices = @transform_3, window_bounds = array<i64: 176, 128>}]} {
    %c0 = arith.constant 0 : index
    %c0_0 = arith.constant 0 : index
    %0 = vector.load %arg1[%c0, %c0_0] : memref<176x640xbf16, #tpu.memory_space<vmem>>, vector<176x640xbf16>
    %c0_1 = arith.constant 0 : index
    %c0_2 = arith.constant 0 : index
    %1 = vector.load %arg2[%c0_1, %c0_2] : memref<640x128xbf16, #tpu.memory_space<vmem>>, vector<640x128xbf16>
    %cst = arith.constant dense<0.000000e+00> : vector<176x128xf32>
    %2 = tpu.matmul %0, %1, %cst {dimension_numbers = #tpu.dot_dimension_numbers<[1], [0], [0], [1], [0, 0, 1, 1], [], []>} : vector<176x640xbf16>, vector<640x128xbf16>, vector<176x128xf32> -> vector<176x128xf32>
    %c0_3 = arith.constant 0 : index
    %c0_4 = arith.constant 0 : index
    %3 = vector.load %arg3[%c0_3, %c0_4] : memref<1x128xf32, #tpu.memory_space<vmem>>, vector<1x128xf32>
    %4 = vector.broadcast %3 : vector<1x128xf32> to vector<176x128xf32>
    %5 = arith.addf %2, %4 : vector<176x128xf32>
    %cst_5 = arith.constant 0.000000e+00 : f32
    %6 = vector.broadcast %cst_5 : f32 to vector<176x128xf32>
    %7 = arith.maximumf %5, %6 : vector<176x128xf32>
    %8 = arith.truncf %7 : vector<176x128xf32> to vector<176x128xbf16>
    %c0_6 = arith.constant 0 : index
    %c0_7 = arith.constant 0 : index
    %9 = vector.load %arg4[%c0_6, %c0_7] : memref<176x128xbf16, #tpu.memory_space<vmem>>, vector<176x128xbf16>
    tpu.vector_store %arg4[%c0_6, %c0_7], %8 {strides = array<i32>} : memref<176x128xbf16, #tpu.memory_space<vmem>>, vector<176x128xbf16>,
    return
  }
  func.func @transform_0(%arg0: i32) -> (i32, i32) {
    %c0_i32 = arith.constant 0 : i32
    %c0_i32_0 = arith.constant 0 : i32
    return %arg0, %c0_i32 : i32, i32
  }
  func.func @transform_1(%arg0: i32) -> (i32, i32) {
    %c0_i32 = arith.constant 0 : i32
    %c0_i32_0 = arith.constant 0 : i32
    %c0_i32_1 = arith.constant 0 : i32
    return %c0_i32, %c0_i32_0 : i32, i32
  }
  func.func @transform_2(%arg0: i32) -> (i32, i32) {
    %c0_i32 = arith.constant 0 : i32
    %c0_i32_0 = arith.constant 0 : i32
    %c0_i32_1 = arith.constant 0 : i32
    return %c0_i32, %c0_i32_0 : i32, i32
  }
  func.func @transform_3(%arg0: i32) -> (i32, i32) {
    %c0_i32 = arith.constant 0 : i32
    %c0_i32_0 = arith.constant 0 : i32
    return %arg0, %c0_i32 : i32, i32
  }
}

module attributes {stable_mosaic.version = 11 : i64} {
  func.func @_head_kernel(%arg0: i32, %arg1: memref<16x5248xbf16, #tpu.memory_space<vmem>>, %arg2: memref<5248x512xbf16, #tpu.memory_space<vmem>>, %arg3: memref<1x512xf32, #tpu.memory_space<vmem>>, %arg4: memref<512x128xbf16, #tpu.memory_space<vmem>>, %arg5: memref<1x128xf32, #tpu.memory_space<vmem>>, %arg6: memref<16x128xf32, #tpu.memory_space<vmem>>) attributes {dimension_semantics = [#tpu.dimension_semantics<parallel>], iteration_bounds = array<i64: 1>, scalar_prefetch = 0 : i64, scratch_operands = 0 : i64, tpu.core_type = #tpu.core_type<tc>, window_params = [{transform_indices = @transform_0, window_bounds = array<i64: 16, 5248>}, {pipeline_mode = #tpu.pipeline_mode<synchronous>, transform_indices = @transform_1, window_bounds = array<i64: 5248, 512>}, {pipeline_mode = #tpu.pipeline_mode<synchronous>, transform_indices = @transform_2, window_bounds = array<i64: 1, 512>}, {pipeline_mode = #tpu.pipeline_mode<synchronous>, transform_indices = @transform_3, window_bounds = array<i64: 512, 128>}, {pipeline_mode = #tpu.pipeline_mode<synchronous>, transform_indices = @transform_4, window_bounds = array<i64: 1, 128>}, {transform_indices = @transform_5, window_bounds = array<i64: 16, 128>}]} {
    %c0 = arith.constant 0 : index
    %c0_0 = arith.constant 0 : index
    %0 = vector.load %arg1[%c0, %c0_0] : memref<16x5248xbf16, #tpu.memory_space<vmem>>, vector<16x5248xbf16>
    %c0_1 = arith.constant 0 : index
    %c0_2 = arith.constant 0 : index
    %1 = vector.load %arg2[%c0_1, %c0_2] : memref<5248x512xbf16, #tpu.memory_space<vmem>>, vector<5248x512xbf16>
    %cst = arith.constant dense<0.000000e+00> : vector<16x512xf32>
    %2 = tpu.matmul %0, %1, %cst {dimension_numbers = #tpu.dot_dimension_numbers<[1], [0], [0], [1], [0, 0, 1, 1], [], []>} : vector<16x5248xbf16>, vector<5248x512xbf16>, vector<16x512xf32> -> vector<16x512xf32>
    %c0_3 = arith.constant 0 : index
    %c0_4 = arith.constant 0 : index
    %3 = vector.load %arg3[%c0_3, %c0_4] : memref<1x512xf32, #tpu.memory_space<vmem>>, vector<1x512xf32>
    %4 = vector.broadcast %3 : vector<1x512xf32> to vector<16x512xf32>
    %5 = arith.addf %2, %4 : vector<16x512xf32>
    %cst_5 = arith.constant 0.000000e+00 : f32
    %6 = vector.broadcast %cst_5 : f32 to vector<16x512xf32>
    %7 = arith.maximumf %5, %6 : vector<16x512xf32>
    %8 = arith.truncf %7 : vector<16x512xf32> to vector<16x512xbf16>
    %c0_6 = arith.constant 0 : index
    %c0_7 = arith.constant 0 : index
    %9 = vector.load %arg4[%c0_6, %c0_7] : memref<512x128xbf16, #tpu.memory_space<vmem>>, vector<512x128xbf16>
    %cst_8 = arith.constant dense<0.000000e+00> : vector<16x128xf32>
    %10 = tpu.matmul %8, %9, %cst_8 {dimension_numbers = #tpu.dot_dimension_numbers<[1], [0], [0], [1], [0, 0, 1, 1], [], []>} : vector<16x512xbf16>, vector<512x128xbf16>, vector<16x128xf32> -> vector<16x128xf32>
    %c0_9 = arith.constant 0 : index
    %c0_10 = arith.constant 0 : index
    %11 = vector.load %arg5[%c0_9, %c0_10] : memref<1x128xf32, #tpu.memory_space<vmem>>, vector<1x128xf32>
    %12 = vector.broadcast %11 : vector<1x128xf32> to vector<16x128xf32>
    %13 = arith.addf %10, %12 : vector<16x128xf32>
    %cst_11 = arith.constant dense<0xFF800000> : vector<16xf32>
    %14 = vector.multi_reduction <maximumf>, %13, %cst_11 [1] : vector<16x128xf32> to vector<16xf32>
    %15 = vector.shape_cast %14 : vector<16xf32> to vector<16x1xf32>
    %16 = vector.broadcast %15 : vector<16x1xf32> to vector<16x128xf32>
    %17 = arith.subf %13, %16 : vector<16x128xf32>
    %18 = math.exp %17 : vector<16x128xf32>
    %cst_12 = arith.constant dense<0.000000e+00> : vector<16xf32>
    %19 = vector.multi_reduction <add>, %18, %cst_12 [1] : vector<16x128xf32> to vector<16xf32>
    %20 = vector.shape_cast %19 : vector<16xf32> to vector<16x1xf32>
    %21 = vector.broadcast %20 : vector<16x1xf32> to vector<16x128xf32>
    %22 = arith.divf %18, %21 : vector<16x128xf32>
    %c0_13 = arith.constant 0 : index
    %c0_14 = arith.constant 0 : index
    %23 = vector.load %arg6[%c0_13, %c0_14] : memref<16x128xf32, #tpu.memory_space<vmem>>, vector<16x128xf32>
    tpu.vector_store %arg6[%c0_13, %c0_14], %22 {strides = array<i32>} : memref<16x128xf32, #tpu.memory_space<vmem>>, vector<16x128xf32>,
    return
  }
  func.func @transform_0(%arg0: i32) -> (i32, i32) {
    %c0_i32 = arith.constant 0 : i32
    %c0_i32_0 = arith.constant 0 : i32
    return %arg0, %c0_i32 : i32, i32
  }
  func.func @transform_1(%arg0: i32) -> (i32, i32) {
    %c0_i32 = arith.constant 0 : i32
    %c0_i32_0 = arith.constant 0 : i32
    %c0_i32_1 = arith.constant 0 : i32
    return %c0_i32, %c0_i32_0 : i32, i32
  }
  func.func @transform_2(%arg0: i32) -> (i32, i32) {
    %c0_i32 = arith.constant 0 : i32
    %c0_i32_0 = arith.constant 0 : i32
    %c0_i32_1 = arith.constant 0 : i32
    return %c0_i32, %c0_i32_0 : i32, i32
  }
  func.func @transform_3(%arg0: i32) -> (i32, i32) {
    %c0_i32 = arith.constant 0 : i32
    %c0_i32_0 = arith.constant 0 : i32
    %c0_i32_1 = arith.constant 0 : i32
    return %c0_i32, %c0_i32_0 : i32, i32
  }
  func.func @transform_4(%arg0: i32) -> (i32, i32) {
    %c0_i32 = arith.constant 0 : i32
    %c0_i32_0 = arith.constant 0 : i32
    %c0_i32_1 = arith.constant 0 : i32
    return %c0_i32, %c0_i32_0 : i32, i32
  }
  func.func @transform_5(%arg0: i32) -> (i32, i32) {
    %c0_i32 = arith.constant 0 : i32
    %c0_i32_0 = arith.constant 0 : i32
    return %arg0, %c0_i32 : i32, i32
  }
}

</mosaic_0001>

<bundles_post_ra>
// kernel: tpu_custom_call.1
= control target key start
LH: loop header
LB: loop body
LE: loop exit
PB: predicated region body
PF: predicated region fallthrough
CT: control target
= control target key end

     0   :  { %6 = vsyncpa [#allocation3], 0  ;;  %s453_s0 = inlined_call_operand.hbm [shape: f32[8,128], index: 0, kind: input, shape index: {}]   ;;  %s454_s1 = inlined_call_operand.hbm [shape: f32[16,128], index: 1, kind: output, shape index: {}]  }
   0x1   :  { %7 = vsyncpa [#allocation4], 0 }
   0x2   :  { %9 = vsyncpa [#allocation4 + $0x1], 0  ;;  %s347_s6 = smov 0   ;;  %s349_s7 = smov 0  }
   0x3   :  { %s351_s8 = smov 0   ;;  %s353_s9 = smov 0  }
   0x4 LB: > { %s368_s10 = sadd.s32 4294967295, %s333_s9   ;;  %s183_s11 = sadd.s32 4294967294, %s333_s9   ;;  %s333_s9 = sphi %s353_s9, %s462_s9   ;;  %s329_s8 = sphi %s351_s8, %s461_s8   ;;  %s325_s7 = sphi %s349_s7, %s460_s7   ;;  %s321_s6 = sphi %s347_s6, %s459_s6  }
   0x5   : > { %s372_s12 = sadd.s32 1, %s333_s9   ;;  %s43_s13 = sadd.s32 1, %s329_s8 }
   0x6   : > { %s40_s14 = ssub.s32 %s333_s9, %s372_s12  ;;  %p53_p0 = scmp.ne.s32.totalorder %s329_s8, %s325_s7 }
   0x7   : > { %p41_p1 = scmp.eq.s32.totalorder %s40_s14, 0  ;;  %p54_p2 = scmp.eq.s32.totalorder %s368_s10, 1 }
   0x8   : > { %p59_p3 = scmp.ne.s32.totalorder %s325_s7, %s321_s6  ;;  %p60_p4 = scmp.eq.s32.totalorder %s183_s11, 1 }
   0x9   : > { %s383_s15 = scalar_select %p41_p1, %s329_s8, %s43_s13  }
   0xa   : > { %p385_p5 = por %p54_p2, %p53_p0  ;;  %p389_p6 = por %p60_p4, %p59_p3 }
   0xb   : > { %p184_p7 = scmp.ge.s32.totalorder %s333_s9, 1  ;;  %p67_p8 = scmp.lt.s32.totalorder %s333_s9, 3 }
   0xc   : > { %s456_s17 = scalar_select %p389_p6, 1, 0 }
   0xd   : > { %p207_p9 = scmp.eq.s32.totalorder %s368_s10, 0  ;;  %p396_p10 = pnand %p184_p7, %p67_p8 }
   0xe   : > { %s335_s19 = smov [#allocation2]  }
   0xf   : > { %s80_s20 = sshll.u32 %s335_s19, 4  ;;  %p199_p11 = pneg %p396_p10  ;;  %s81_s20 = int_to_ptr.vmem [resolvable:$true] %s80_s20 }
  0x10   : > { %s254_s21 = scalar_lea.vmem %s81_s20, 128  ;;  %p262_p3 = scmp.lt.s32.totalorder %s81_s20, %s81_s20 }
  0x11   : > { %p200_p12 = pnand %p207_p9, %p199_p11  ;;  %p255_p0 = scmp.ne.s32.totalorder %s81_s20, %s254_s21 }
  0x12   : > { %p263_p4 = scmp.lt.s32.totalorder %s254_s21, %s254_s21 }
  0x13   : > { %p245_p13 = pneg %p200_p12 }
  0x14   : > { %p264_p6 = por %p263_p4, %p262_p3 }
  0x15   : > { %p257_p1 = pnand %p255_p0, %p245_p13 }
  0x17   : > { %p258_p2 = pneg %p257_p1 }
  0x19   : > { %p265_p7 = pnand %p264_p6, %p258_p2 }
  0x1b   : > { %268 = shalt.err (!%p265_p7)
}
  0x1c   : > { %202 = dma.hbm_to_vmem [thread:$0]  (!%p200_p12), %s453_s0, 128, %s81_s20, [#allocation3]  }
  0x1d   : > { %93 = sbr.rel (%p396_p10) target bundleno = 60 (0x3c), region = 24 }
  0x22   : > { %312 = dma.done.wait (%p207_p9), [#allocation3], 128  }
  0x23   : > { %314 = vsyncadd (%p207_p9), [#allocation3], 4294967168  ;;  %s105_s24 = sand.u32 1, %s325_s7   ;;  %s190_s28 = sshll.u32 %s368_s10, 7  ;;  %v108_v0 = vld [vmem:[#allocation2] sm:$0xff] }
  0x24   : > { %s188_s25 = sshll.u32 %s105_s24, 3  ;;  %s122_s2 = scalar_lea.hbm %s454_s1, %s190_s28 }
  0x25   : > { %s107_s26 = scalar_lea.vmem [#allocation5], %s188_s25  ;;  %s111_s3 = scalar_lea.sflag [#allocation4], %s105_s24 }
  0x26   : > { %s124_s27 = sshll.u32 %s107_s26, 4  ;;  %109 = vst [vmem:[%s107_s26] sm:$0xff] %v108_v0  ;;  %s336_s5 = smov [#allocation5]   ;;  %s415_s27 = int_to_ptr.vmem [resolvable:$true] %s124_s27 }
  0x27   : > { %s269_s4 = scalar_lea.vmem %s415_s27, 128  ;;  %s273_s11 = sshll.u32 %s336_s5, 4  ;;  %s274_s11 = int_to_ptr.vmem [resolvable:$false] %s273_s11 }
  0x28   : > { %p270_p6 = scmp.ne.s32.totalorder %s415_s27, %s269_s4  ;;  %s275_s10 = scalar_lea.vmem %s274_s11, 256 }
  0x29   : > { %p276_p10 = scmp.lt.s32.totalorder %s415_s27, %s274_s11  ;;  %p277_p11 = scmp.lt.s32.totalorder %s275_s10, %s269_s4 }
  0x2a   : > { %p271_p8 = pnand %p270_p6, %p385_p5 }
  0x2b   : > { %p278_p12 = por %p277_p11, %p276_p10 }
  0x2c   : > { %p272_p9 = pneg %p271_p8 }
  0x2e   : > { %p279_p13 = pnand %p278_p12, %p272_p9 }
  0x30   : > { %282 = shalt.err (!%p279_p13)
}
  0x31   : > { %s283_s13 = scalar_lea.hbm %s122_s2, 128  ;;  %s287_s19 = scalar_lea.hbm %s454_s1, 256 }
  0x32   : > { %p284_p0 = scmp.ne.s32.totalorder %s122_s2, %s283_s13  ;;  %p288_p3 = scmp.lt.s32.totalorder %s122_s2, %s454_s1 }
  0x33   : > { %p289_p4 = scmp.lt.s32.totalorder %s287_s19, %s283_s13 }
  0x34   : > { %p285_p1 = pnand %p284_p0, %p385_p5 }
  0x35   : > { %p290_p7 = por %p289_p4, %p288_p3 }
  0x36   : > { %p286_p2 = pneg %p285_p1 }
  0x38   : > { %p291_p6 = pnand %p290_p7, %p286_p2 }
  0x3a   : > { %294 = shalt.err (!%p291_p6)
}
  0x3b   : > { %197 = dma.vmem_to_hbm [thread:$0]  (%p385_p5), %s415_s27, 128, %s122_s2, %s111_s3  }
  0x3c PF: > { %p209_p8 = scmp.ge.s32.totalorder %s333_s9, 2  ;;  %s136_s22 = sand.u32 1, %s321_s6  }
  0x3d   : > { %p458_p9 = scmp.ne.s32.totalorder %s456_s17, 0  ;;  %s137_s23 = scalar_lea.sflag [#allocation4], %s136_s22 }
  0x3f   : > { %p204_p10 = pnand %p209_p8, %p458_p9 }
  0x41   : > { %p205_p11 = pneg %p204_p10 }
  0x43   : > { %316 = dma.done.wait (%p205_p11), %s137_s23, 128  }
  0x44   : > { %318 = vsyncadd (%p205_p11), %s137_s23, 4294967168  ;;  %p12_p12 = scmp.ge.s32.totalorder %s372_s12, 4   ;;  %s459_s6 = smov %s325_s7 }
  0x45   : > { %s460_s7 = smov %s329_s8  ;;  %s461_s8 = smov %s383_s15 }
  0x46   : > { %s462_s9 = smov %s372_s12  ;;  %14 = sbr.rel (!%p12_p12) target bundleno = 4 (0x4), region = 61 }
  0x4b   :  { %142 = vsyncpa [#allocation3], 1 }
  0x4c   :  { %144 = vsyncpa [#allocation3 + $0x1], 1 }
  0x4d   :  { %145 = vsyncpa [#allocation4], 1 }
  0x4e   :  { %147 = vsyncpa [#allocation4 + $0x1], 1 }

// kernel: policy_forward.4
= control target key start
LH: loop header
LB: loop body
LE: loop exit
PB: predicated region body
PF: predicated region fallthrough
CT: control target
= control target key end

     0   :  { %s2207_s12 = smov 0   ;;  %s2497_s0 = inlined_call_operand.vmem [shape: bf16[1152,256], index: 0, kind: input, shape index: {}]   ;;  %s2498_s1 = inlined_call_operand.vmem [shape: bf16[256,128], index: 1, kind: input, shape index: {}]   ;;  %s2499_s2 = inlined_call_operand.vmem [shape: f32[1,128], index: 2, kind: input, shape index: {}]   ;;  %s2500_s3 = inlined_call_operand.vmem [shape: bf16[1152,128], index: 3, kind: output, shape index: {}]  }
   0x1 LB: > { %s1554_s13 = sadd.s32 4294967295, %s2184_s12   ;;  %p1558_p0 = scmp.ge.s32.totalorder %s2184_s12, 1  ;;  %s2184_s12 = sphi %s2207_s12, %s13_s12  }
   0x2   : > { %p139_p1 = scmp.lt.s32.totalorder %s2184_s12, 3 }
   0x4   : > { %p140_p2 = pnand %p1558_p0, %p139_p1 }
   0x5   : > { %s164_s16 = smul.u32 (!%p140_p2), 72, %s1554_s13 }
   0x6   : > { %143 = sbr.rel (%p140_p2) target bundleno = 416 (0x1a0), region = 32 }
   0x7   : > { %p165_p3 = scmp.lt.s32.totalorder (!%p140_p2), %s164_s16, 143 }
   0xb   : > { %v2054_v0 = vld [vmem:[%s2498_s1 + $0x38] sm:$0xff]   ;;  %v2186_v1 = vmov 0   ;;  %v2055_v2 = vld [vmem:[%s2498_s1 + $0x30] sm:$0xff]   ;;  %v2056_v3 = vld [vmem:[%s2498_s1 + $0x28] sm:$0xff]   ;;  %s2502_s16 = smov (!%p165_p3, %s164_s16), 143 }
   0xc   : > { %745 = vmatprep.subr.bf16.mxu0 %v2186_v1  ;;  %2013 = vmatprep.subr.bf16.mxu1 %v2186_v1  ;;  %v2057_v4 = vld [vmem:[%s2498_s1 + $0x20] sm:$0xff]   ;;  %s1725_s23 = sshll.u32 %s2502_s16, 3  ;;  %v2058_v5 = vld [vmem:[%s2498_s1 + $0x18] sm:$0xff]   ;;  %v2059_v7 = vld [vmem:[%s2498_s1 + $0x10] sm:$0xff]   ;;  %s1561_s29 = sshll.u32 %s2502_s16, 2 }
   0xd   : > { %746 = vmatpush1.bf16.msra.mxu0 %v2054_v0  ;;  %2029 = vmatpush1.bf16.msra.mxu1 %v2054_v0  ;;  %s2244_s28 = scalar_lea.vmem %s2497_s0, %s1725_s23  ;;  %v2060_v9 = vld [vmem:[%s2498_s1 + $0x8] sm:$0xff]   ;;  %v2061_v10 = vld [vmem:[%s2498_s1] sm:$0xff]   ;;  %v2062_v11 = vld [vmem:[%s2498_s1 + $0x78] sm:$0xff]   ;;  %s2388_s4 = scalar_lea.vmem %s2500_s3, %s1561_s29 }
   0xe   : > { %747 = vmatprep.subr.bf16.mxu0 %v2186_v1  ;;  %2014 = vmatprep.subr.bf16.mxu1 %v2186_v1  ;;  %v2072_v6 = vld [vmem:[%s2244_s28 + $0x4] ss:$8 sps:$4 sm:$0xff]   ;;  %v2063_v12 = vld [vmem:[%s2498_s1 + $0x70] sm:$0xff]   ;;  %v2066_v15 = vld [vmem:[%s2498_s1 + $0x58] sm:$0xff]  }
   0xf   : > { %v2075_v8 = vld [vmem:[%s2244_s28 + $0x124] ss:$8 sps:$4 sm:$0xff]   ;;  %777 = vmatprep.mubr.bf16.mxu0 %v2072_v6  ;;  %v2067_v16 = vld [vmem:[%s2498_s1 + $0x50] sm:$0xff]   ;;  %v2070_v19 = vld [vmem:[%s2244_s28] ss:$8 sps:$4 sm:$0xff]  }
  0x10   : > { %921 = vmatprep.mubr.bf16.mxu1 %v2075_v8  ;;  %v2064_v13 = vld [vmem:[%s2498_s1 + $0x68] sm:$0xff]   ;;  %v2065_v14 = vld [vmem:[%s2498_s1 + $0x60] sm:$0xff]   ;;  %v2076_v21 = vld [vmem:[%s2244_s28 + $0x14] ss:$8 sps:$4 sm:$0xff]  }
  0x11   : > { %748 = vmatpush1.bf16.msra.mxu0 %v2055_v2  ;;  %2030 = vmatpush1.bf16.msra.mxu1 %v2055_v2  ;;  %v2068_v17 = vld [vmem:[%s2498_s1 + $0x48] sm:$0xff]   ;;  %v2069_v18 = vld [vmem:[%s2498_s1 + $0x40] sm:$0xff]   ;;  %v2078_v22 = vld [vmem:[%s2244_s28 + $0x134] ss:$8 sps:$4 sm:$0xff]  }
  0x12   : > { %749 = vmatprep.subr.bf16.mxu0 %v2186_v1  ;;  %2015 = vmatprep.subr.bf16.mxu1 %v2186_v1  ;;  %v2073_v20 = vld [vmem:[%s2244_s28 + $0x120] ss:$8 sps:$4 sm:$0xff]   ;;  %v2080_v23 = vld [vmem:[%s2244_s28 + $0x10] ss:$8 sps:$4 sm:$0xff]   ;;  %v2082_v25 = vld [vmem:[%s2244_s28 + $0x24] ss:$8 sps:$4 sm:$0xff]  }
  0x13   : > { %v2081_v24 = vld [vmem:[%s2244_s28 + $0x130] ss:$8 sps:$4 sm:$0xff]   ;;  %v2084_v26 = vld [vmem:[%s2244_s28 + $0x144] ss:$8 sps:$4 sm:$0xff]   ;;  %v2086_v27 = vld [vmem:[%s2244_s28 + $0x20] ss:$8 sps:$4 sm:$0xff]  }
  0x14   : > { %v2087_v28 = vld [vmem:[%s2244_s28 + $0x140] ss:$8 sps:$4 sm:$0xff]   ;;  %v2088_v29 = vld [vmem:[%s2244_s28 + $0x34] ss:$8 sps:$4 sm:$0xff]   ;;  %v2092_v31 = vld [vmem:[%s2244_s28 + $0x30] ss:$8 sps:$4 sm:$0xff]  }
  0x15   : > { %750 = vmatpush1.bf16.msra.mxu0 %v2056_v3  ;;  %2031 = vmatpush1.bf16.msra.mxu1 %v2056_v3  ;;  %v2090_v30 = vld [vmem:[%s2244_s28 + $0x154] ss:$8 sps:$4 sm:$0xff]   ;;  %v2093_v32 = vld [vmem:[%s2244_s28 + $0x150] ss:$8 sps:$4 sm:$0xff]   ;;  %v2094_v33 = vld [vmem:[%s2244_s28 + $0x44] ss:$8 sps:$4 sm:$0xff]  }
  0x16   : > { %751 = vmatprep.subr.bf16.mxu0 %v2186_v1  ;;  %2016 = vmatprep.subr.bf16.mxu1 %v2186_v1  ;;  %v2096_v34 = vld [vmem:[%s2244_s28 + $0x164] ss:$8 sps:$4 sm:$0xff]   ;;  %v2098_v35 = vld [vmem:[%s2244_s28 + $0x40] ss:$8 sps:$4 sm:$0xff]   ;;  %v2100_v37 = vld [vmem:[%s2244_s28 + $0x54] ss:$8 sps:$4 sm:$0xff]  }
  0x17   : > { %v2099_v36 = vld [vmem:[%s2244_s28 + $0x160] ss:$8 sps:$4 sm:$0xff]   ;;  %v2102_v38 = vld [vmem:[%s2244_s28 + $0x174] ss:$8 sps:$4 sm:$0xff]   ;;  %v2104_v39 = vld [vmem:[%s2244_s28 + $0x50] ss:$8 sps:$4 sm:$0xff]  }
  0x18   : > { %v2105_v40 = vld [vmem:[%s2244_s28 + $0x170] ss:$8 sps:$4 sm:$0xff]   ;;  %v2106_v41 = vld [vmem:[%s2244_s28 + $0x64] ss:$8 sps:$4 sm:$0xff]   ;;  %v2110_v43 = vld [vmem:[%s2244_s28 + $0x60] ss:$8 sps:$4 sm:$0xff]  }
  0x19   : > { %752 = vmatpush1.bf16.msra.mxu0 %v2057_v4  ;;  %2032 = vmatpush1.bf16.msra.mxu1 %v2057_v4  ;;  %v2108_v42 = vld [vmem:[%s2244_s28 + $0x184] ss:$8 sps:$4 sm:$0xff]   ;;  %v2111_v44 = vld [vmem:[%s2244_s28 + $0x180] ss:$8 sps:$4 sm:$0xff]   ;;  %v2112_v45 = vld [vmem:[%s2244_s28 + $0x74] ss:$8 sps:$4 sm:$0xff]  }
  0x1a   : > { %753 = vmatprep.subr.bf16.mxu0 %v2186_v1  ;;  %2017 = vmatprep.subr.bf16.mxu1 %v2186_v1  ;;  %v2114_v46 = vld [vmem:[%s2244_s28 + $0x194] ss:$8 sps:$4 sm:$0xff]   ;;  %v2116_v47 = vld [vmem:[%s2244_s28 + $0x70] ss:$8 sps:$4 sm:$0xff]   ;;  %v2118_v49 = vld [vmem:[%s2244_s28 + $0x84] ss:$8 sps:$4 sm:$0xff]  }
  0x1b   : > { %v2117_v48 = vld [vmem:[%s2244_s28 + $0x190] ss:$8 sps:$4 sm:$0xff]   ;;  %v2120_v50 = vld [vmem:[%s2244_s28 + $0x1a4] ss:$8 sps:$4 sm:$0xff]   ;;  %v2122_v51 = vld [vmem:[%s2244_s28 + $0x80] ss:$8 sps:$4 sm:$0xff]  }
  0x1c   : > { %v2123_v52 = vld [vmem:[%s2244_s28 + $0x1a0] ss:$8 sps:$4 sm:$0xff]   ;;  %v2124_v53 = vld [vmem:[%s2244_s28 + $0x94] ss:$8 sps:$4 sm:$0xff]   ;;  %v2128_v55 = vld [vmem:[%s2244_s28 + $0x90] ss:$8 sps:$4 sm:$0xff]  }
  0x1d   : > { %754 = vmatpush1.bf16.msra.mxu0 %v2058_v5  ;;  %2033 = vmatpush1.bf16.msra.mxu1 %v2058_v5  ;;  %v2126_v54 = vld [vmem:[%s2244_s28 + $0x1b4] ss:$8 sps:$4 sm:$0xff]   ;;  %v2129_v56 = vld [vmem:[%s2244_s28 + $0x1b0] ss:$8 sps:$4 sm:$0xff]   ;;  %v2130_v57 = vld [vmem:[%s2244_s28 + $0xa4] ss:$8 sps:$4 sm:$0xff]  }
  0x1e   : > { %755 = vmatprep.subr.bf16.mxu0 %v2186_v1  ;;  %2018 = vmatprep.subr.bf16.mxu1 %v2186_v1  ;;  %v2132_v58 = vld [vmem:[%s2244_s28 + $0x1c4] ss:$8 sps:$4 sm:$0xff]   ;;  %v2134_v59 = vld [vmem:[%s2244_s28 + $0xa0] ss:$8 sps:$4 sm:$0xff]   ;;  %v2136_v61 = vld [vmem:[%s2244_s28 + $0xb4] ss:$8 sps:$4 sm:$0xff]  }
  0x1f   : > { %v2135_v60 = vld [vmem:[%s2244_s28 + $0x1c0] ss:$8 sps:$4 sm:$0xff]   ;;  %v2138_v62 = vld [vmem:[%s2244_s28 + $0x1d4] ss:$8 sps:$4 sm:$0xff]   ;;  %v2140_v63 = vld [vmem:[%s2244_s28 + $0xb0] ss:$8 sps:$4 sm:$0xff]  }
  0x20   : > { %v2141_v0 = vld [vmem:[%s2244_s28 + $0x1d0] ss:$8 sps:$4 sm:$0xff]   ;;  %v2144_v2 = vld [vmem:[%s2244_s28 + $0x1e4] ss:$8 sps:$4 sm:$0xff]   ;;  %v2146_v3 = vld [vmem:[%s2244_s28 + $0xc0] ss:$8 sps:$4 sm:$0xff]  }
  0x21   : > { %756 = vmatpush1.bf16.msra.mxu0 %v2059_v7  ;;  %2034 = vmatpush1.bf16.msra.mxu1 %v2059_v7  ;;  %v2147_v4 = vld [vmem:[%s2244_s28 + $0x1e0] ss:$8 sps:$4 sm:$0xff]   ;;  %v2148_v5 = vld [vmem:[%s2244_s28 + $0xd4] ss:$8 sps:$4 sm:$0xff]   ;;  %v2152_v7 = vld [vmem:[%s2244_s28 + $0xd0] ss:$8 sps:$4 sm:$0xff]  }
  0x22   : > { %757 = vmatprep.subr.bf16.mxu0 %v2186_v1  ;;  %2019 = vmatprep.subr.bf16.mxu1 %v2186_v1  ;;  %v2150_v6 = vld [vmem:[%s2244_s28 + $0x1f4] ss:$8 sps:$4 sm:$0xff]   ;;  %v2153_v8 = vld [vmem:[%s2244_s28 + $0x1f0] ss:$8 sps:$4 sm:$0xff]  }
  0x25   : > { %758 = vmatpush1.bf16.msra.mxu0 %v2060_v9  ;;  %2035 = vmatpush1.bf16.msra.mxu1 %v2060_v9  ;;  %v2154_v9 = vld [vmem:[%s2244_s28 + $0xe4] ss:$8 sps:$4 sm:$0xff]  }
  0x26   : > { %759 = vmatprep.subr.bf16.mxu0 %v2186_v1  ;;  %2020 = vmatprep.subr.bf16.mxu1 %v2186_v1 }
  0x29   : > { %760 = vmatpush1.bf16.msra.mxu0 %v2061_v10  ;;  %2036 = vmatpush1.bf16.msra.mxu1 %v2061_v10  ;;  %v2156_v10 = vld [vmem:[%s2244_s28 + $0x204] ss:$8 sps:$4 sm:$0xff]  }
  0x2a   : > { %761 = vmatprep.subr.bf16.mxu0 %v2186_v1  ;;  %2021 = vmatprep.subr.bf16.mxu1 %v2186_v1 }
  0x2d   : > { %762 = vmatpush2.bf16.msra.mxu0 %v2062_v11  ;;  %2037 = vmatpush2.bf16.msra.mxu1 %v2062_v11  ;;  %v2158_v11 = vld [vmem:[%s2244_s28 + $0xe0] ss:$8 sps:$4 sm:$0xff]  }
  0x2e   : > { %763 = vmatprep.subr.bf16.mxu0 %v2186_v1  ;;  %2022 = vmatprep.subr.bf16.mxu1 %v2186_v1 }
  0x31   : > { %764 = vmatpush2.bf16.msra.mxu0 %v2063_v12  ;;  %2038 = vmatpush2.bf16.msra.mxu1 %v2063_v12  ;;  %v2159_v12 = vld [vmem:[%s2244_s28 + $0x200] ss:$8 sps:$4 sm:$0xff]  }
  0x32   : > { %765 = vmatprep.subr.bf16.mxu0 %v2186_v1  ;;  %2023 = vmatprep.subr.bf16.mxu1 %v2186_v1 }
  0x35   : > { %766 = vmatpush2.bf16.msra.mxu0 %v2064_v13  ;;  %2039 = vmatpush2.bf16.msra.mxu1 %v2064_v13  ;;  %v2160_v13 = vld [vmem:[%s2244_s28 + $0xf4] ss:$8 sps:$4 sm:$0xff]  }
  0x36   : > { %767 = vmatprep.subr.bf16.mxu0 %v2186_v1  ;;  %2024 = vmatprep.subr.bf16.mxu1 %v2186_v1 }
  0x39   : > { %768 = vmatpush2.bf16.msra.mxu0 %v2065_v14  ;;  %2040 = vmatpush2.bf16.msra.mxu1 %v2065_v14  ;;  %v2162_v14 = vld [vmem:[%s2244_s28 + $0x214] ss:$8 sps:$4 sm:$0xff]  }
  0x3a   : > { %769 = vmatprep.subr.bf16.mxu0 %v2186_v1  ;;  %2025 = vmatprep.subr.bf16.mxu1 %v2186_v1 }
  0x3d   : > { %770 = vmatpush2.bf16.msra.mxu0 %v2066_v15  ;;  %2041 = vmatpush2.bf16.msra.mxu1 %v2066_v15  ;;  %v2164_v15 = vld [vmem:[%s2244_s28 + $0xf0] ss:$8 sps:$4 sm:$0xff]  }
  0x3e   : > { %771 = vmatprep.subr.bf16.mxu0 %v2186_v1  ;;  %2026 = vmatprep.subr.bf16.mxu1 %v2186_v1 }
  0x41   : > { %772 = vmatpush2.bf16.msra.mxu0 %v2067_v16  ;;  %2042 = vmatpush2.bf16.msra.mxu1 %v2067_v16  ;;  %v2165_v16 = vld [vmem:[%s2244_s28 + $0x210] ss:$8 sps:$4 sm:$0xff]  }
  0x42   : > { %773 = vmatprep.subr.bf16.mxu0 %v2186_v1  ;;  %2027 = vmatprep.subr.bf16.mxu1 %v2186_v1 }
  0x45   : > { %774 = vmatpush2.bf16.msra.mxu0 %v2068_v17  ;;  %2043 = vmatpush2.bf16.msra.mxu1 %v2068_v17  ;;  %v2166_v17 = vld [vmem:[%s2244_s28 + $0x104] ss:$8 sps:$4 sm:$0xff]  }
  0x46   : > { %775 = vmatprep.subr.bf16.mxu0 %v2186_v1  ;;  %2028 = vmatprep.subr.bf16.mxu1 %v2186_v1  ;;  %v2142_v1 = vld [vmem:[%s2244_s28 + $0xc4] ss:$8 sps:$4 sm:$0xff]  }
  0x49   : > { %776 = vmatpush2.bf16.msra.mxu0 %v2069_v18  ;;  %2044 = vmatpush2.bf16.msra.mxu1 %v2069_v18  ;;  %v2168_v18 = vld [vmem:[%s2244_s28 + $0x224] ss:$8 sps:$4 sm:$0xff]  }
  0x4c   : > { %778 = vmatmul.mubr.bf16.vlgmr.msra.gmra.mxu0 %v2070_v19  ;;  %922 = vmatmul.mubr.bf16.vlgmr.msra.gmra.mxu1 %v2073_v20  ;;  %v2170_v19 = vld [vmem:[%s2244_s28 + $0x100] ss:$8 sps:$4 sm:$0xff]  }
  0x4d   : > { %785 = vmatprep.mubr.bf16.mxu0 %v2076_v21  ;;  %929 = vmatprep.mubr.bf16.mxu1 %v2078_v22  ;;  %v2171_v20 = vld [vmem:[%s2244_s28 + $0x220] ss:$8 sps:$4 sm:$0xff]   ;;  %v2172_v21 = vld [vmem:[%s2244_s28 + $0x114] ss:$8 sps:$4 sm:$0xff]  }
  0x4e   : > { %v2174_v22 = vld [vmem:[%s2244_s28 + $0x234] ss:$8 sps:$4 sm:$0xff]  }
  0x54   : > { %786 = vmatmul.mubr.bf16.gmra.mxu0 %v2080_v23  ;;  %930 = vmatmul.mubr.bf16.gmra.mxu1 %v2081_v24  ;;  %v2176_v23 = vld [vmem:[%s2244_s28 + $0x110] ss:$8 sps:$4 sm:$0xff]  }
  0x55   : > { %793 = vmatprep.mubr.bf16.mxu0 %v2082_v25  ;;  %937 = vmatprep.mubr.bf16.mxu1 %v2084_v26  ;;  %v2177_v24 = vld [vmem:[%s2244_s28 + $0x230] ss:$8 sps:$4 sm:$0xff]   ;;  %v2378_v25 = vld [vmem:[%s2499_s2] ss:$0 sm:$0xff] }
  0x5c   : > { %794 = vmatmul.mubr.bf16.gmra.mxu0 %v2086_v27  ;;  %938 = vmatmul.mubr.bf16.gmra.mxu1 %v2087_v28 }
  0x5d   : > { %801 = vmatprep.mubr.bf16.mxu0 %v2088_v29  ;;  %945 = vmatprep.mubr.bf16.mxu1 %v2090_v30 }
  0x64   : > { %802 = vmatmul.mubr.bf16.gmra.mxu0 %v2092_v31  ;;  %946 = vmatmul.mubr.bf16.gmra.mxu1 %v2093_v32 }
  0x65   : > { %809 = vmatprep.mubr.bf16.mxu0 %v2094_v33  ;;  %953 = vmatprep.mubr.bf16.mxu1 %v2096_v34 }
  0x6c   : > { %810 = vmatmul.mubr.bf16.gmra.mxu0 %v2098_v35  ;;  %954 = vmatmul.mubr.bf16.gmra.mxu1 %v2099_v36 }
  0x6d   : > { %817 = vmatprep.mubr.bf16.mxu0 %v2100_v37  ;;  %961 = vmatprep.mubr.bf16.mxu1 %v2102_v38 }
  0x74   : > { %818 = vmatmul.mubr.bf16.gmra.mxu0 %v2104_v39  ;;  %962 = vmatmul.mubr.bf16.gmra.mxu1 %v2105_v40 }
  0x75   : > { %825 = vmatprep.mubr.bf16.mxu0 %v2106_v41  ;;  %969 = vmatprep.mubr.bf16.mxu1 %v2108_v42 }
  0x7c   : > { %826 = vmatmul.mubr.bf16.gmra.mxu0 %v2110_v43  ;;  %970 = vmatmul.mubr.bf16.gmra.mxu1 %v2111_v44 }
  0x7d   : > { %833 = vmatprep.mubr.bf16.mxu0 %v2112_v45  ;;  %977 = vmatprep.mubr.bf16.mxu1 %v2114_v46 }
  0x84   : > { %834 = vmatmul.mubr.bf16.gmra.mxu0 %v2116_v47  ;;  %978 = vmatmul.mubr.bf16.gmra.mxu1 %v2117_v48 }
  0x85   : > { %841 = vmatprep.mubr.bf16.mxu0 %v2118_v49  ;;  %985 = vmatprep.mubr.bf16.mxu1 %v2120_v50 }
  0x8c   : > { %842 = vmatmul.mubr.bf16.gmra.mxu0 %v2122_v51  ;;  %986 = vmatmul.mubr.bf16.gmra.mxu1 %v2123_v52 }
  0x8d   : > { %849 = vmatprep.mubr.bf16.mxu0 %v2124_v53  ;;  %993 = vmatprep.mubr.bf16.mxu1 %v2126_v54 }
  0x94   : > { %850 = vmatmul.mubr.bf16.gmra.mxu0 %v2128_v55  ;;  %994 = vmatmul.mubr.bf16.gmra.mxu1 %v2129_v56 }
  0x95   : > { %857 = vmatprep.mubr.bf16.mxu0 %v2130_v57  ;;  %1001 = vmatprep.mubr.bf16.mxu1 %v2132_v58 }
  0x9c   : > { %858 = vmatmul.mubr.bf16.gmra.mxu0 %v2134_v59  ;;  %1002 = vmatmul.mubr.bf16.gmra.mxu1 %v2135_v60 }
  0x9d   : > { %865 = vmatprep.mubr.bf16.mxu0 %v2136_v61  ;;  %1009 = vmatprep.mubr.bf16.mxu1 %v2138_v62 }
  0xa4   : > { %866 = vmatmul.mubr.bf16.gmra.mxu0 %v2140_v63  ;;  %1010 = vmatmul.mubr.bf16.gmra.mxu1 %v2141_v0 }
  0xa5   : > { %873 = vmatprep.mubr.bf16.mxu0 %v2142_v1  ;;  %1017 = vmatprep.mubr.bf16.mxu1 %v2144_v2 }
  0xac   : > { %874 = vmatmul.mubr.bf16.gmra.mxu0 %v2146_v3  ;;  %1018 = vmatmul.mubr.bf16.gmra.mxu1 %v2147_v4 }
  0xad   : > { %881 = vmatprep.mubr.bf16.mxu0 %v2148_v5  ;;  %1025 = vmatprep.mubr.bf16.mxu1 %v2150_v6 }
  0xb4   : > { %882 = vmatmul.mubr.bf16.gmra.mxu0 %v2152_v7  ;;  %1026 = vmatmul.mubr.bf16.gmra.mxu1 %v2153_v8 }
  0xb5   : > { %889 = vmatprep.mubr.bf16.mxu0 %v2154_v9  ;;  %1033 = vmatprep.mubr.bf16.mxu1 %v2156_v10 }
  0xbc   : > { %890 = vmatmul.mubr.bf16.gmra.mxu0 %v2158_v11  ;;  %1034 = vmatmul.mubr.bf16.gmra.mxu1 %v2159_v12 }
  0xbd   : > { %897 = vmatprep.mubr.bf16.mxu0 %v2160_v13  ;;  %1041 = vmatprep.mubr.bf16.mxu1 %v2162_v14 }
  0xc4   : > { %898 = vmatmul.mubr.bf16.gmra.mxu0 %v2164_v15  ;;  %1042 = vmatmul.mubr.bf16.gmra.mxu1 %v2165_v16 }
  0xc5   : > { %905 = vmatprep.mubr.bf16.mxu0 %v2166_v17  ;;  %1049 = vmatprep.mubr.bf16.mxu1 %v2168_v18 }
  0xcc   : > { %906 = vmatmul.mubr.bf16.gmra.mxu0 %v2170_v19  ;;  %1050 = vmatmul.mubr.bf16.gmra.mxu1 %v2171_v20 }
  0xcd   : > { %913 = vmatprep.mubr.bf16.mxu0 %v2172_v21  ;;  %1057 = vmatprep.mubr.bf16.mxu1 %v2174_v22 }
  0xd4   : > { %914 = vmatmul.mubr.bf16.gmra.mxu0 %v2176_v23  ;;  %1058 = vmatmul.mubr.bf16.gmra.mxu1 %v2177_v24 }
 0x10c   : > { %v779_v26 = vpop.f32.mrf.mxu0  ;;  %v923_v27 = vpop.f32.mrf.mxu1 }
 0x10d   : > { %v780_v30 = vadd.f32 %v2378_v25, %v779_v26  ;;  %v924_v31 = vadd.f32 %v2378_v25, %v923_v27 }
 0x10e   : > { %v781_v28 = vpop.f32.mrf.mxu0  ;;  %v925_v29 = vpop.f32.mrf.mxu1 }
 0x10f   : > { %v1066_v38 = vmax.f32 %v780_v30, 0.0  ;;  %v1102_v39 = vmax.f32 %v924_v31, 0.0 }
 0x110   : > { %v782_v32 = vpop.f32.mrf.mxu0  ;;  %v926_v33 = vpop.f32.mrf.mxu1 }
 0x111   : > { %v783_v34 = vadd.f32 %v2378_v25, %v782_v32  ;;  %v927_v35 = vadd.f32 %v2378_v25, %v926_v33 }
 0x112   : > { %v784_v36 = vpop.f32.mrf.mxu0  ;;  %v928_v37 = vpop.f32.mrf.mxu1 }
 0x113   : > { %v1067_v40 = vmax.f32 %v783_v34, 0.0  ;;  %v1103_v41 = vmax.f32 %v927_v35, 0.0 }
 0x114   : > { %v787_v42 = vpop.f32.mrf.mxu0  ;;  %v931_v43 = vpop.f32.mrf.mxu1 }
 0x115   : > { %v1801_v44 = vpack.c.bf16 %v1067_v40, %v1066_v38  ;;  %v1891_v45 = vpack.c.bf16 %v1103_v41, %v1102_v39  ;;  %v788_v48 = vadd.f32 %v2378_v25, %v787_v42  ;;  %v932_v49 = vadd.f32 %v2378_v25, %v931_v43 }
 0x116   : > { %v789_v46 = vpop.f32.mrf.mxu0  ;;  %v933_v47 = vpop.f32.mrf.mxu1 }
 0x117   : > { %1802 = vst [vmem:[%s2388_s4] sm:$0xff] %v1801_v44   ;;  %1995 = vst [vmem:[%s2388_s4 + $0x90] sm:$0xff] %v1891_v45   ;;  %v1068_v56 = vmax.f32 %v788_v48, 0.0  ;;  %v1104_v57 = vmax.f32 %v932_v49, 0.0 }
 0x118   : > { %v790_v50 = vpop.f32.mrf.mxu0  ;;  %v934_v51 = vpop.f32.mrf.mxu1 }
 0x119   : > { %v791_v52 = vadd.f32 %v2378_v25, %v790_v50  ;;  %v935_v53 = vadd.f32 %v2378_v25, %v934_v51 }
 0x11a   : > { %v792_v54 = vpop.f32.mrf.mxu0  ;;  %v936_v55 = vpop.f32.mrf.mxu1 }
 0x11b   : > { %v1069_v58 = vmax.f32 %v791_v52, 0.0  ;;  %v1105_v59 = vmax.f32 %v935_v53, 0.0 }
 0x11c   : > { %v795_v60 = vpop.f32.mrf.mxu0  ;;  %v939_v61 = vpop.f32.mrf.mxu1 }
 0x11d   : > { %v1806_v62 = vpack.c.bf16 %v1069_v58, %v1068_v56  ;;  %v1896_v63 = vpack.c.bf16 %v1105_v59, %v1104_v57  ;;  %v796_v2 = vadd.f32 %v2378_v25, %v795_v60  ;;  %v940_v3 = vadd.f32 %v2378_v25, %v939_v61 }
 0x11e   : > { %v797_v0 = vpop.f32.mrf.mxu0  ;;  %v941_v1 = vpop.f32.mrf.mxu1 }
 0x11f   : > { %1978 = vst [vmem:[%s2388_s4 + $0x8] sm:$0xff] %v1806_v62   ;;  %1996 = vst [vmem:[%s2388_s4 + $0x98] sm:$0xff] %v1896_v63   ;;  %v1070_v10 = vmax.f32 %v796_v2, 0.0  ;;  %v1106_v11 = vmax.f32 %v940_v3, 0.0 }
 0x120   : > { %v798_v4 = vpop.f32.mrf.mxu0  ;;  %v942_v5 = vpop.f32.mrf.mxu1 }
 0x121   : > { %v799_v6 = vadd.f32 %v2378_v25, %v798_v4  ;;  %v943_v7 = vadd.f32 %v2378_v25, %v942_v5 }
 0x122   : > { %v800_v8 = vpop.f32.mrf.mxu0  ;;  %v944_v9 = vpop.f32.mrf.mxu1 }
 0x123   : > { %v1071_v12 = vmax.f32 %v799_v6, 0.0  ;;  %v1107_v13 = vmax.f32 %v943_v7, 0.0 }
 0x124   : > { %v803_v14 = vpop.f32.mrf.mxu0  ;;  %v947_v15 = vpop.f32.mrf.mxu1 }
 0x125   : > { %v1811_v16 = vpack.c.bf16 %v1071_v12, %v1070_v10  ;;  %v1901_v17 = vpack.c.bf16 %v1107_v13, %v1106_v11  ;;  %v804_v20 = vadd.f32 %v2378_v25, %v803_v14  ;;  %v948_v21 = vadd.f32 %v2378_v25, %v947_v15 }
 0x126   : > { %v805_v18 = vpop.f32.mrf.mxu0  ;;  %v949_v19 = vpop.f32.mrf.mxu1 }
 0x127   : > { %1979 = vst [vmem:[%s2388_s4 + $0x10] sm:$0xff] %v1811_v16   ;;  %1997 = vst [vmem:[%s2388_s4 + $0xa0] sm:$0xff] %v1901_v17   ;;  %v1072_v29 = vmax.f32 %v804_v20, 0.0  ;;  %v1108_v30 = vmax.f32 %v948_v21, 0.0 }
 0x128   : > { %v806_v22 = vpop.f32.mrf.mxu0  ;;  %v950_v23 = vpop.f32.mrf.mxu1 }
 0x129   : > { %v807_v24 = vadd.f32 %v2378_v25, %v806_v22  ;;  %v951_v26 = vadd.f32 %v2378_v25, %v950_v23 }
 0x12a   : > { %v808_v27 = vpop.f32.mrf.mxu0  ;;  %v952_v28 = vpop.f32.mrf.mxu1 }
 0x12b   : > { %v1073_v31 = vmax.f32 %v807_v24, 0.0  ;;  %v1109_v32 = vmax.f32 %v951_v26, 0.0 }
 0x12c   : > { %v811_v33 = vpop.f32.mrf.mxu0  ;;  %v955_v34 = vpop.f32.mrf.mxu1 }
 0x12d   : > { %v1816_v35 = vpack.c.bf16 %v1073_v31, %v1072_v29  ;;  %v1906_v36 = vpack.c.bf16 %v1109_v32, %v1108_v30  ;;  %v812_v39 = vadd.f32 %v2378_v25, %v811_v33  ;;  %v956_v40 = vadd.f32 %v2378_v25, %v955_v34 }
 0x12e   : > { %v813_v37 = vpop.f32.mrf.mxu0  ;;  %v957_v38 = vpop.f32.mrf.mxu1 }
 0x12f   : > { %1980 = vst [vmem:[%s2388_s4 + $0x18] sm:$0xff] %v1816_v35   ;;  %1998 = vst [vmem:[%s2388_s4 + $0xa8] sm:$0xff] %v1906_v36   ;;  %v1074_v47 = vmax.f32 %v812_v39, 0.0  ;;  %v1110_v48 = vmax.f32 %v956_v40, 0.0 }
 0x130   : > { %v814_v41 = vpop.f32.mrf.mxu0  ;;  %v958_v42 = vpop.f32.mrf.mxu1 }
 0x131   : > { %v815_v43 = vadd.f32 %v2378_v25, %v814_v41  ;;  %v959_v44 = vadd.f32 %v2378_v25, %v958_v42 }
 0x132   : > { %v816_v45 = vpop.f32.mrf.mxu0  ;;  %v960_v46 = vpop.f32.mrf.mxu1 }
 0x133   : > { %v1075_v49 = vmax.f32 %v815_v43, 0.0  ;;  %v1111_v50 = vmax.f32 %v959_v44, 0.0 }
 0x134   : > { %v819_v51 = vpop.f32.mrf.mxu0  ;;  %v963_v52 = vpop.f32.mrf.mxu1 }
 0x135   : > { %v1821_v53 = vpack.c.bf16 %v1075_v49, %v1074_v47  ;;  %v1911_v54 = vpack.c.bf16 %v1111_v50, %v1110_v48  ;;  %v820_v57 = vadd.f32 %v2378_v25, %v819_v51  ;;  %v964_v58 = vadd.f32 %v2378_v25, %v963_v52 }
 0x136   : > { %v821_v55 = vpop.f32.mrf.mxu0  ;;  %v965_v56 = vpop.f32.mrf.mxu1 }
 0x137   : > { %1981 = vst [vmem:[%s2388_s4 + $0x20] sm:$0xff] %v1821_v53   ;;  %1999 = vst [vmem:[%s2388_s4 + $0xb0] sm:$0xff] %v1911_v54   ;;  %v1076_v1 = vmax.f32 %v820_v57, 0.0  ;;  %v1112_v2 = vmax.f32 %v964_v58, 0.0 }
 0x138   : > { %v822_v59 = vpop.f32.mrf.mxu0  ;;  %v966_v60 = vpop.f32.mrf.mxu1 }
 0x139   : > { %v823_v61 = vadd.f32 %v2378_v25, %v822_v59  ;;  %v967_v62 = vadd.f32 %v2378_v25, %v966_v60 }
 0x13a   : > { %v824_v63 = vpop.f32.mrf.mxu0  ;;  %v968_v0 = vpop.f32.mrf.mxu1 }
 0x13b   : > { %v1077_v3 = vmax.f32 %v823_v61, 0.0  ;;  %v1113_v4 = vmax.f32 %v967_v62, 0.0 }
 0x13c   : > { %v827_v5 = vpop.f32.mrf.mxu0  ;;  %v971_v6 = vpop.f32.mrf.mxu1 }
 0x13d   : > { %v1826_v7 = vpack.c.bf16 %v1077_v3, %v1076_v1  ;;  %v1916_v8 = vpack.c.bf16 %v1113_v4, %v1112_v2  ;;  %v828_v11 = vadd.f32 %v2378_v25, %v827_v5  ;;  %v972_v12 = vadd.f32 %v2378_v25, %v971_v6 }
 0x13e   : > { %v829_v9 = vpop.f32.mrf.mxu0  ;;  %v973_v10 = vpop.f32.mrf.mxu1 }
 0x13f   : > { %1982 = vst [vmem:[%s2388_s4 + $0x28] sm:$0xff] %v1826_v7   ;;  %2000 = vst [vmem:[%s2388_s4 + $0xb8] sm:$0xff] %v1916_v8   ;;  %v1078_v19 = vmax.f32 %v828_v11, 0.0  ;;  %v1114_v20 = vmax.f32 %v972_v12, 0.0 }
 0x140   : > { %v830_v13 = vpop.f32.mrf.mxu0  ;;  %v974_v14 = vpop.f32.mrf.mxu1 }
 0x141   : > { %v831_v15 = vadd.f32 %v2378_v25, %v830_v13  ;;  %v975_v16 = vadd.f32 %v2378_v25, %v974_v14 }
 0x142   : > { %v832_v17 = vpop.f32.mrf.mxu0  ;;  %v976_v18 = vpop.f32.mrf.mxu1 }
 0x143   : > { %v1079_v21 = vmax.f32 %v831_v15, 0.0  ;;  %v1115_v22 = vmax.f32 %v975_v16, 0.0 }
 0x144   : > { %v835_v23 = vpop.f32.mrf.mxu0  ;;  %v979_v24 = vpop.f32.mrf.mxu1 }
 0x145   : > { %v1831_v26 = vpack.c.bf16 %v1079_v21, %v1078_v19  ;;  %v1921_v27 = vpack.c.bf16 %v1115_v22, %v1114_v20  ;;  %v836_v30 = vadd.f32 %v2378_v25, %v835_v23  ;;  %v980_v31 = vadd.f32 %v2378_v25, %v979_v24 }
 0x146   : > { %v837_v28 = vpop.f32.mrf.mxu0  ;;  %v981_v29 = vpop.f32.mrf.mxu1 }
 0x147   : > { %1983 = vst [vmem:[%s2388_s4 + $0x30] sm:$0xff] %v1831_v26   ;;  %2001 = vst [vmem:[%s2388_s4 + $0xc0] sm:$0xff] %v1921_v27   ;;  %v1080_v38 = vmax.f32 %v836_v30, 0.0  ;;  %v1116_v39 = vmax.f32 %v980_v31, 0.0 }
 0x148   : > { %v838_v32 = vpop.f32.mrf.mxu0  ;;  %v982_v33 = vpop.f32.mrf.mxu1 }
 0x149   : > { %v839_v34 = vadd.f32 %v2378_v25, %v838_v32  ;;  %v983_v35 = vadd.f32 %v2378_v25, %v982_v33 }
 0x14a   : > { %v840_v36 = vpop.f32.mrf.mxu0  ;;  %v984_v37 = vpop.f32.mrf.mxu1 }
 0x14b   : > { %v1081_v40 = vmax.f32 %v839_v34, 0.0  ;;  %v1117_v41 = vmax.f32 %v983_v35, 0.0 }
 0x14c   : > { %v843_v42 = vpop.f32.mrf.mxu0  ;;  %v987_v43 = vpop.f32.mrf.mxu1 }
 0x14d   : > { %v1836_v44 = vpack.c.bf16 %v1081_v40, %v1080_v38  ;;  %v1926_v45 = vpack.c.bf16 %v1117_v41, %v1116_v39  ;;  %v844_v48 = vadd.f32 %v2378_v25, %v843_v42  ;;  %v988_v49 = vadd.f32 %v2378_v25, %v987_v43 }
 0x14e   : > { %v845_v46 = vpop.f32.mrf.mxu0  ;;  %v989_v47 = vpop.f32.mrf.mxu1 }
 0x14f   : > { %1984 = vst [vmem:[%s2388_s4 + $0x38] sm:$0xff] %v1836_v44   ;;  %2002 = vst [vmem:[%s2388_s4 + $0xc8] sm:$0xff] %v1926_v45   ;;  %v1082_v56 = vmax.f32 %v844_v48, 0.0  ;;  %v1118_v57 = vmax.f32 %v988_v49, 0.0 }
 0x150   : > { %v846_v50 = vpop.f32.mrf.mxu0  ;;  %v990_v51 = vpop.f32.mrf.mxu1 }
 0x151   : > { %v847_v52 = vadd.f32 %v2378_v25, %v846_v50  ;;  %v991_v53 = vadd.f32 %v2378_v25, %v990_v51 }
 0x152   : > { %v848_v54 = vpop.f32.mrf.mxu0  ;;  %v992_v55 = vpop.f32.mrf.mxu1 }
 0x153   : > { %v1083_v58 = vmax.f32 %v847_v52, 0.0  ;;  %v1119_v59 = vmax.f32 %v991_v53, 0.0 }
 0x154   : > { %v851_v60 = vpop.f32.mrf.mxu0  ;;  %v995_v61 = vpop.f32.mrf.mxu1 }
 0x155   : > { %v1841_v62 = vpack.c.bf16 %v1083_v58, %v1082_v56  ;;  %v1931_v63 = vpack.c.bf16 %v1119_v59, %v1118_v57  ;;  %v852_v2 = vadd.f32 %v2378_v25, %v851_v60  ;;  %v996_v3 = vadd.f32 %v2378_v25, %v995_v61 }
 0x156   : > { %v853_v0 = vpop.f32.mrf.mxu0  ;;  %v997_v1 = vpop.f32.mrf.mxu1 }
 0x157   : > { %1985 = vst [vmem:[%s2388_s4 + $0x40] sm:$0xff] %v1841_v62   ;;  %2003 = vst [vmem:[%s2388_s4 + $0xd0] sm:$0xff] %v1931_v63   ;;  %v1084_v10 = vmax.f32 %v852_v2, 0.0  ;;  %v1120_v11 = vmax.f32 %v996_v3, 0.0 }
 0x158   : > { %v854_v4 = vpop.f32.mrf.mxu0  ;;  %v998_v5 = vpop.f32.mrf.mxu1 }
 0x159   : > { %v855_v6 = vadd.f32 %v2378_v25, %v854_v4  ;;  %v999_v7 = vadd.f32 %v2378_v25, %v998_v5 }
 0x15a   : > { %v856_v8 = vpop.f32.mrf.mxu0  ;;  %v1000_v9 = vpop.f32.mrf.mxu1 }
 0x15b   : > { %v1085_v12 = vmax.f32 %v855_v6, 0.0  ;;  %v1121_v13 = vmax.f32 %v999_v7, 0.0 }
 0x15c   : > { %v859_v14 = vpop.f32.mrf.mxu0  ;;  %v1003_v15 = vpop.f32.mrf.mxu1 }
 0x15d   : > { %v1846_v16 = vpack.c.bf16 %v1085_v12, %v1084_v10  ;;  %v1936_v17 = vpack.c.bf16 %v1121_v13, %v1120_v11  ;;  %v860_v20 = vadd.f32 %v2378_v25, %v859_v14  ;;  %v1004_v21 = vadd.f32 %v2378_v25, %v1003_v15 }
 0x15e   : > { %v861_v18 = vpop.f32.mrf.mxu0  ;;  %v1005_v19 = vpop.f32.mrf.mxu1 }
 0x15f   : > { %1986 = vst [vmem:[%s2388_s4 + $0x48] sm:$0xff] %v1846_v16   ;;  %2004 = vst [vmem:[%s2388_s4 + $0xd8] sm:$0xff] %v1936_v17   ;;  %v1086_v29 = vmax.f32 %v860_v20, 0.0  ;;  %v1122_v30 = vmax.f32 %v1004_v21, 0.0 }
 0x160   : > { %v862_v22 = vpop.f32.mrf.mxu0  ;;  %v1006_v23 = vpop.f32.mrf.mxu1 }
 0x161   : > { %v863_v24 = vadd.f32 %v2378_v25, %v862_v22  ;;  %v1007_v26 = vadd.f32 %v2378_v25, %v1006_v23 }
 0x162   : > { %v864_v27 = vpop.f32.mrf.mxu0  ;;  %v1008_v28 = vpop.f32.mrf.mxu1 }
 0x163   : > { %v1087_v31 = vmax.f32 %v863_v24, 0.0  ;;  %v1123_v32 = vmax.f32 %v1007_v26, 0.0 }
 0x164   : > { %v867_v33 = vpop.f32.mrf.mxu0  ;;  %v1011_v34 = vpop.f32.mrf.mxu1 }
 0x165   : > { %v1851_v35 = vpack.c.bf16 %v1087_v31, %v1086_v29  ;;  %v1941_v36 = vpack.c.bf16 %v1123_v32, %v1122_v30  ;;  %v868_v39 = vadd.f32 %v2378_v25, %v867_v33  ;;  %v1012_v40 = vadd.f32 %v2378_v25, %v1011_v34 }
 0x166   : > { %v869_v37 = vpop.f32.mrf.mxu0  ;;  %v1013_v38 = vpop.f32.mrf.mxu1 }
 0x167   : > { %1987 = vst [vmem:[%s2388_s4 + $0x50] sm:$0xff] %v1851_v35   ;;  %2005 = vst [vmem:[%s2388_s4 + $0xe0] sm:$0xff] %v1941_v36   ;;  %v1088_v47 = vmax.f32 %v868_v39, 0.0  ;;  %v1124_v48 = vmax.f32 %v1012_v40, 0.0 }
 0x168   : > { %v870_v41 = vpop.f32.mrf.mxu0  ;;  %v1014_v42 = vpop.f32.mrf.mxu1 }
 0x169   : > { %v871_v43 = vadd.f32 %v2378_v25, %v870_v41  ;;  %v1015_v44 = vadd.f32 %v2378_v25, %v1014_v42 }
 0x16a   : > { %v872_v45 = vpop.f32.mrf.mxu0  ;;  %v1016_v46 = vpop.f32.mrf.mxu1 }
 0x16b   : > { %v1089_v49 = vmax.f32 %v871_v43, 0.0  ;;  %v1125_v50 = vmax.f32 %v1015_v44, 0.0 }
 0x16c   : > { %v875_v51 = vpop.f32.mrf.mxu0  ;;  %v1019_v52 = vpop.f32.mrf.mxu1 }
 0x16d   : > { %v1856_v53 = vpack.c.bf16 %v1089_v49, %v1088_v47  ;;  %v1946_v54 = vpack.c.bf16 %v1125_v50, %v1124_v48  ;;  %v876_v57 = vadd.f32 %v2378_v25, %v875_v51  ;;  %v1020_v58 = vadd.f32 %v2378_v25, %v1019_v52 }
 0x16e   : > { %v877_v55 = vpop.f32.mrf.mxu0  ;;  %v1021_v56 = vpop.f32.mrf.mxu1 }
 0x16f   : > { %1988 = vst [vmem:[%s2388_s4 + $0x58] sm:$0xff] %v1856_v53   ;;  %2006 = vst [vmem:[%s2388_s4 + $0xe8] sm:$0xff] %v1946_v54   ;;  %v1090_v1 = vmax.f32 %v876_v57, 0.0  ;;  %v1126_v2 = vmax.f32 %v1020_v58, 0.0 }
 0x170   : > { %v878_v59 = vpop.f32.mrf.mxu0  ;;  %v1022_v60 = vpop.f32.mrf.mxu1 }
 0x171   : > { %v879_v61 = vadd.f32 %v2378_v25, %v878_v59  ;;  %v1023_v62 = vadd.f32 %v2378_v25, %v1022_v60 }
 0x172   : > { %v880_v63 = vpop.f32.mrf.mxu0  ;;  %v1024_v0 = vpop.f32.mrf.mxu1 }
 0x173   : > { %v1091_v3 = vmax.f32 %v879_v61, 0.0  ;;  %v1127_v4 = vmax.f32 %v1023_v62, 0.0 }
 0x174   : > { %v883_v5 = vpop.f32.mrf.mxu0  ;;  %v1027_v6 = vpop.f32.mrf.mxu1 }
 0x175   : > { %v1861_v7 = vpack.c.bf16 %v1091_v3, %v1090_v1  ;;  %v1951_v8 = vpack.c.bf16 %v1127_v4, %v1126_v2  ;;  %v884_v11 = vadd.f32 %v2378_v25, %v883_v5  ;;  %v1028_v12 = vadd.f32 %v2378_v25, %v1027_v6 }
 0x176   : > { %v885_v9 = vpop.f32.mrf.mxu0  ;;  %v1029_v10 = vpop.f32.mrf.mxu1 }
 0x177   : > { %1989 = vst [vmem:[%s2388_s4 + $0x60] sm:$0xff] %v1861_v7   ;;  %2007 = vst [vmem:[%s2388_s4 + $0xf0] sm:$0xff] %v1951_v8   ;;  %v1092_v19 = vmax.f32 %v884_v11, 0.0  ;;  %v1128_v20 = vmax.f32 %v1028_v12, 0.0 }
 0x178   : > { %v886_v13 = vpop.f32.mrf.mxu0  ;;  %v1030_v14 = vpop.f32.mrf.mxu1 }
 0x179   : > { %v887_v15 = vadd.f32 %v2378_v25, %v886_v13  ;;  %v1031_v16 = vadd.f32 %v2378_v25, %v1030_v14 }
 0x17a   : > { %v888_v17 = vpop.f32.mrf.mxu0  ;;  %v1032_v18 = vpop.f32.mrf.mxu1 }
 0x17b   : > { %v1093_v21 = vmax.f32 %v887_v15, 0.0  ;;  %v1129_v22 = vmax.f32 %v1031_v16, 0.0 }
 0x17c   : > { %v891_v23 = vpop.f32.mrf.mxu0  ;;  %v1035_v24 = vpop.f32.mrf.mxu1 }
 0x17d   : > { %v1866_v26 = vpack.c.bf16 %v1093_v21, %v1092_v19  ;;  %v1956_v27 = vpack.c.bf16 %v1129_v22, %v1128_v20  ;;  %v892_v30 = vadd.f32 %v2378_v25, %v891_v23  ;;  %v1036_v31 = vadd.f32 %v2378_v25, %v1035_v24 }
 0x17e   : > { %v893_v28 = vpop.f32.mrf.mxu0  ;;  %v1037_v29 = vpop.f32.mrf.mxu1 }
 0x17f   : > { %1990 = vst [vmem:[%s2388_s4 + $0x68] sm:$0xff] %v1866_v26   ;;  %2008 = vst [vmem:[%s2388_s4 + $0xf8] sm:$0xff] %v1956_v27   ;;  %v1094_v38 = vmax.f32 %v892_v30, 0.0  ;;  %v1130_v39 = vmax.f32 %v1036_v31, 0.0 }
 0x180   : > { %v894_v32 = vpop.f32.mrf.mxu0  ;;  %v1038_v33 = vpop.f32.mrf.mxu1 }
 0x181   : > { %v895_v34 = vadd.f32 %v2378_v25, %v894_v32  ;;  %v1039_v35 = vadd.f32 %v2378_v25, %v1038_v33 }
 0x182   : > { %v896_v36 = vpop.f32.mrf.mxu0  ;;  %v1040_v37 = vpop.f32.mrf.mxu1 }
 0x183   : > { %v1095_v40 = vmax.f32 %v895_v34, 0.0  ;;  %v1131_v41 = vmax.f32 %v1039_v35, 0.0 }
 0x184   : > { %v899_v42 = vpop.f32.mrf.mxu0  ;;  %v1043_v43 = vpop.f32.mrf.mxu1 }
 0x185   : > { %v1871_v44 = vpack.c.bf16 %v1095_v40, %v1094_v38  ;;  %v1961_v45 = vpack.c.bf16 %v1131_v41, %v1130_v39  ;;  %v900_v48 = vadd.f32 %v2378_v25, %v899_v42  ;;  %v1044_v49 = vadd.f32 %v2378_v25, %v1043_v43 }
 0x186   : > { %v901_v46 = vpop.f32.mrf.mxu0  ;;  %v1045_v47 = vpop.f32.mrf.mxu1 }
 0x187   : > { %1991 = vst [vmem:[%s2388_s4 + $0x70] sm:$0xff] %v1871_v44   ;;  %2009 = vst [vmem:[%s2388_s4 + $0x100] sm:$0xff] %v1961_v45   ;;  %v1096_v56 = vmax.f32 %v900_v48, 0.0  ;;  %v1132_v57 = vmax.f32 %v1044_v49, 0.0 }
 0x188   : > { %v902_v50 = vpop.f32.mrf.mxu0  ;;  %v1046_v51 = vpop.f32.mrf.mxu1 }
 0x189   : > { %v903_v52 = vadd.f32 %v2378_v25, %v902_v50  ;;  %v1047_v53 = vadd.f32 %v2378_v25, %v1046_v51 }
 0x18a   : > { %v904_v54 = vpop.f32.mrf.mxu0  ;;  %v1048_v55 = vpop.f32.mrf.mxu1 }
 0x18b   : > { %v1097_v58 = vmax.f32 %v903_v52, 0.0  ;;  %v1133_v59 = vmax.f32 %v1047_v53, 0.0 }
 0x18c   : > { %v907_v60 = vpop.f32.mrf.mxu0  ;;  %v1051_v61 = vpop.f32.mrf.mxu1 }
 0x18d   : > { %v1876_v62 = vpack.c.bf16 %v1097_v58, %v1096_v56  ;;  %v1966_v63 = vpack.c.bf16 %v1133_v59, %v1132_v57  ;;  %v908_v2 = vadd.f32 %v2378_v25, %v907_v60  ;;  %v1052_v3 = vadd.f32 %v2378_v25, %v1051_v61 }
 0x18e   : > { %v909_v0 = vpop.f32.mrf.mxu0  ;;  %v1053_v1 = vpop.f32.mrf.mxu1 }
 0x18f   : > { %1992 = vst [vmem:[%s2388_s4 + $0x78] sm:$0xff] %v1876_v62   ;;  %2010 = vst [vmem:[%s2388_s4 + $0x108] sm:$0xff] %v1966_v63   ;;  %v1098_v10 = vmax.f32 %v908_v2, 0.0  ;;  %v1134_v11 = vmax.f32 %v1052_v3, 0.0 }
 0x190   : > { %v910_v4 = vpop.f32.mrf.mxu0  ;;  %v1054_v5 = vpop.f32.mrf.mxu1 }
 0x191   : > { %v911_v6 = vadd.f32 %v2378_v25, %v910_v4  ;;  %v1055_v7 = vadd.f32 %v2378_v25, %v1054_v5 }
 0x192   : > { %v912_v8 = vpop.f32.mrf.mxu0  ;;  %v1056_v9 = vpop.f32.mrf.mxu1 }
 0x193   : > { %v1099_v12 = vmax.f32 %v911_v6, 0.0  ;;  %v1135_v13 = vmax.f32 %v1055_v7, 0.0 }
 0x194   : > { %v915_v14 = vpop.f32.mrf.mxu0  ;;  %v1059_v15 = vpop.f32.mrf.mxu1 }
 0x195   : > { %v1881_v16 = vpack.c.bf16 %v1099_v12, %v1098_v10  ;;  %v1971_v17 = vpack.c.bf16 %v1135_v13, %v1134_v11  ;;  %v916_v20 = vadd.f32 %v2378_v25, %v915_v14  ;;  %v1060_v21 = vadd.f32 %v2378_v25, %v1059_v15 }
 0x196   : > { %v917_v18 = vpop.f32.mrf.mxu0  ;;  %v1061_v19 = vpop.f32.mrf.mxu1 }
 0x197   : > { %1993 = vst [vmem:[%s2388_s4 + $0x80] sm:$0xff] %v1881_v16   ;;  %2011 = vst [vmem:[%s2388_s4 + $0x110] sm:$0xff] %v1971_v17   ;;  %v1100_v29 = vmax.f32 %v916_v20, 0.0  ;;  %v1136_v30 = vmax.f32 %v1060_v21, 0.0 }
 0x198   : > { %v918_v22 = vpop.f32.mrf.mxu0  ;;  %v1062_v23 = vpop.f32.mrf.mxu1 }
 0x199   : > { %v919_v24 = vadd.f32 %v2378_v25, %v918_v22  ;;  %v1063_v26 = vadd.f32 %v2378_v25, %v1062_v23 }
 0x19a   : > { %v920_v27 = vpop.f32.mrf.mxu0  ;;  %v1064_v28 = vpop.f32.mrf.mxu1 }
 0x19b   : > { %v1101_v31 = vmax.f32 %v919_v24, 0.0  ;;  %v1137_v32 = vmax.f32 %v1063_v26, 0.0 }
 0x19d   : > { %v1886_v33 = vpack.c.bf16 %v1101_v31, %v1100_v29  ;;  %v1976_v34 = vpack.c.bf16 %v1137_v32, %v1136_v30 }
 0x19f   : > { %1994 = vst [vmem:[%s2388_s4 + $0x88] sm:$0xff] %v1886_v33   ;;  %2012 = vst [vmem:[%s2388_s4 + $0x118] sm:$0xff] %v1976_v34  }
 0x1a0 PF: > { %s13_s12 = sadd.s32 1, %s2184_s12  }
 0x1a1   : > { %p10_p4 = scmp.ge.s32.totalorder %s13_s12, 4  }
 0x1a3   :  { %12 = sbr.rel (!%p10_p4) target bundleno = 1 (0x1), region = 62 }

// kernel: policy_forward.5
= control target key start
LH: loop header
LB: loop body
LE: loop exit
PB: predicated region body
PF: predicated region fallthrough
CT: control target
= control target key end

     0   :  { %s2181_s1 = inlined_call_operand.vmem [shape: bf16[512,128], index: 1, kind: input, shape index: {}]   ;;  %s2182_s0 = inlined_call_operand.vmem [shape: bf16[256,512], index: 0, kind: input, shape index: {}]   ;;  %s2183_s2 = inlined_call_operand.vmem [shape: f32[1,128], index: 2, kind: input, shape index: {}]   ;;  %s2184_s3 = inlined_call_operand.vmem [shape: bf16[256,128], index: 3, kind: output, shape index: {}]  }
   0x1   :  { %v1660_v0 = vld [vmem:[%s2181_s1 + $0x78] sm:$0xff]   ;;  %v1664_v4 = vld [vmem:[%s2181_s1 + $0x70] sm:$0xff]   ;;  %v1668_v8 = vld [vmem:[%s2181_s1 + $0x68] sm:$0xff]  }
   0x2   :  { %v1661_v1 = vld [vmem:[%s2181_s1 + $0xf8] sm:$0xff]   ;;  %1436 = vmatprep.subr.bf16.mxu0 %v1660_v0  ;;  %v1665_v5 = vld [vmem:[%s2181_s1 + $0xf0] sm:$0xff]   ;;  %v1669_v9 = vld [vmem:[%s2181_s1 + $0xe8] sm:$0xff]  }
   0x3   :  { %v1662_v2 = vld [vmem:[%s2181_s1 + $0x38] sm:$0xff]   ;;  %1548 = vmatprep.subr.bf16.mxu1 %v1661_v1  ;;  %v1666_v6 = vld [vmem:[%s2181_s1 + $0x30] sm:$0xff]   ;;  %v1670_v10 = vld [vmem:[%s2181_s1 + $0x28] sm:$0xff]  }
   0x4   :  { %v1663_v3 = vld [vmem:[%s2181_s1 + $0xb8] sm:$0xff]   ;;  %1437 = vmatpush3.bf16.msra.mxu0 %v1662_v2  ;;  %v1667_v7 = vld [vmem:[%s2181_s1 + $0xb0] sm:$0xff]   ;;  %v1671_v11 = vld [vmem:[%s2181_s1 + $0xa8] sm:$0xff]  }
   0x5   :  { %1549 = vmatpush3.bf16.msra.mxu1 %v1663_v3  ;;  %1438 = vmatprep.subr.bf16.mxu0 %v1664_v4  ;;  %v1672_v12 = vld [vmem:[%s2181_s1 + $0x60] sm:$0xff]   ;;  %v1676_v16 = vld [vmem:[%s2181_s1 + $0x58] sm:$0xff]   ;;  %v1680_v20 = vld [vmem:[%s2181_s1 + $0x50] sm:$0xff]  }
   0x6   :  { %1550 = vmatprep.subr.bf16.mxu1 %v1665_v5  ;;  %v1673_v13 = vld [vmem:[%s2181_s1 + $0xe0] sm:$0xff]   ;;  %v1677_v17 = vld [vmem:[%s2181_s1 + $0xd8] sm:$0xff]   ;;  %v1681_v21 = vld [vmem:[%s2181_s1 + $0xd0] sm:$0xff]  }
   0x7   :  { %v1674_v14 = vld [vmem:[%s2181_s1 + $0x20] sm:$0xff]   ;;  %v1678_v18 = vld [vmem:[%s2181_s1 + $0x18] sm:$0xff]   ;;  %v1682_v22 = vld [vmem:[%s2181_s1 + $0x10] sm:$0xff]  }
   0x8   :  { %1439 = vmatpush3.bf16.msra.mxu0 %v1666_v6  ;;  %v1675_v15 = vld [vmem:[%s2181_s1 + $0xa0] sm:$0xff]   ;;  %v1679_v19 = vld [vmem:[%s2181_s1 + $0x98] sm:$0xff]   ;;  %v1683_v23 = vld [vmem:[%s2181_s1 + $0x90] sm:$0xff]  }
   0x9   :  { %1551 = vmatpush3.bf16.msra.mxu1 %v1667_v7  ;;  %1440 = vmatprep.subr.bf16.mxu0 %v1668_v8  ;;  %v1684_v24 = vld [vmem:[%s2181_s1 + $0x48] sm:$0xff]   ;;  %v1688_v28 = vld [vmem:[%s2181_s1 + $0x40] sm:$0xff]  }
   0xa   :  { %1552 = vmatprep.subr.bf16.mxu1 %v1669_v9  ;;  %v1685_v25 = vld [vmem:[%s2181_s1 + $0xc8] sm:$0xff]   ;;  %v1689_v29 = vld [vmem:[%s2181_s1 + $0xc0] sm:$0xff]  }
   0xb   :  { %v1686_v26 = vld [vmem:[%s2181_s1 + $0x8] sm:$0xff]   ;;  %v1690_v30 = vld [vmem:[%s2181_s1] sm:$0xff]  }
   0xc   :  { %1441 = vmatpush3.bf16.msra.mxu0 %v1670_v10  ;;  %v1687_v27 = vld [vmem:[%s2181_s1 + $0x88] sm:$0xff]   ;;  %v1691_v31 = vld [vmem:[%s2181_s1 + $0x80] sm:$0xff]  }
   0xd   :  { %1553 = vmatpush3.bf16.msra.mxu1 %v1671_v11  ;;  %1442 = vmatprep.subr.bf16.mxu0 %v1672_v12  ;;  %v1692_v32 = vld [vmem:[%s2182_s0] ss:$16 sps:$4 sm:$0xff]   ;;  %v1694_v33 = vld [vmem:[%s2182_s0 + $0x4] ss:$16 sps:$4 sm:$0xff]   ;;  %v1695_v34 = vld [vmem:[%s2182_s0 + $0x8] ss:$16 sps:$4 sm:$0xff]  }
   0xe   :  { %1554 = vmatprep.subr.bf16.mxu1 %v1673_v13  ;;  %v1697_v35 = vld [vmem:[%s2182_s0 + $0xc] ss:$16 sps:$4 sm:$0xff]   ;;  %694 = vmatprep.mubr.bf16.mxu0 %v1694_v33  ;;  %v1698_v36 = vld [vmem:[%s2182_s0 + $0x24] ss:$16 sps:$4 sm:$0xff]   ;;  %v1702_v38 = vld [vmem:[%s2182_s0 + $0x20] ss:$16 sps:$4 sm:$0xff]  }
   0xf   :  { %855 = vmatprep.mubr.bf16.mxu1 %v1697_v35  ;;  %v1700_v37 = vld [vmem:[%s2182_s0 + $0x2c] ss:$16 sps:$4 sm:$0xff]   ;;  %v1703_v39 = vld [vmem:[%s2182_s0 + $0x28] ss:$16 sps:$4 sm:$0xff]   ;;  %v1704_v40 = vld [vmem:[%s2182_s0 + $0x44] ss:$16 sps:$4 sm:$0xff]  }
  0x10   :  { %1443 = vmatpush3.bf16.msra.mxu0 %v1674_v14  ;;  %v1706_v41 = vld [vmem:[%s2182_s0 + $0x4c] ss:$16 sps:$4 sm:$0xff]   ;;  %v1708_v42 = vld [vmem:[%s2182_s0 + $0x40] ss:$16 sps:$4 sm:$0xff]   ;;  %v1709_v43 = vld [vmem:[%s2182_s0 + $0x48] ss:$16 sps:$4 sm:$0xff]  }
  0x11   :  { %1555 = vmatpush3.bf16.msra.mxu1 %v1675_v15  ;;  %1444 = vmatprep.subr.bf16.mxu0 %v1676_v16  ;;  %v1710_v44 = vld [vmem:[%s2182_s0 + $0x64] ss:$16 sps:$4 sm:$0xff]   ;;  %v1712_v45 = vld [vmem:[%s2182_s0 + $0x6c] ss:$16 sps:$4 sm:$0xff]   ;;  %v1714_v46 = vld [vmem:[%s2182_s0 + $0x60] ss:$16 sps:$4 sm:$0xff]  }
  0x12   :  { %1556 = vmatprep.subr.bf16.mxu1 %v1677_v17  ;;  %v1715_v47 = vld [vmem:[%s2182_s0 + $0x68] ss:$16 sps:$4 sm:$0xff]   ;;  %v1716_v48 = vld [vmem:[%s2182_s0 + $0x84] ss:$16 sps:$4 sm:$0xff]   ;;  %v1718_v49 = vld [vmem:[%s2182_s0 + $0x8c] ss:$16 sps:$4 sm:$0xff]  }
  0x13   :  { %v1720_v50 = vld [vmem:[%s2182_s0 + $0x80] ss:$16 sps:$4 sm:$0xff]   ;;  %v1721_v51 = vld [vmem:[%s2182_s0 + $0x88] ss:$16 sps:$4 sm:$0xff]   ;;  %v1722_v52 = vld [vmem:[%s2182_s0 + $0xa4] ss:$16 sps:$4 sm:$0xff]  }
  0x14   :  { %1445 = vmatpush3.bf16.msra.mxu0 %v1678_v18  ;;  %v1724_v53 = vld [vmem:[%s2182_s0 + $0xac] ss:$16 sps:$4 sm:$0xff]   ;;  %v1726_v54 = vld [vmem:[%s2182_s0 + $0xa0] ss:$16 sps:$4 sm:$0xff]   ;;  %v1727_v55 = vld [vmem:[%s2182_s0 + $0xa8] ss:$16 sps:$4 sm:$0xff]  }
  0x15   :  { %1557 = vmatpush3.bf16.msra.mxu1 %v1679_v19  ;;  %1446 = vmatprep.subr.bf16.mxu0 %v1680_v20  ;;  %v1728_v56 = vld [vmem:[%s2182_s0 + $0xc4] ss:$16 sps:$4 sm:$0xff]   ;;  %v1730_v57 = vld [vmem:[%s2182_s0 + $0xcc] ss:$16 sps:$4 sm:$0xff]   ;;  %v1732_v58 = vld [vmem:[%s2182_s0 + $0xc0] ss:$16 sps:$4 sm:$0xff]  }
  0x16   :  { %1558 = vmatprep.subr.bf16.mxu1 %v1681_v21  ;;  %v1733_v59 = vld [vmem:[%s2182_s0 + $0xc8] ss:$16 sps:$4 sm:$0xff]   ;;  %v1734_v60 = vld [vmem:[%s2182_s0 + $0xe4] ss:$16 sps:$4 sm:$0xff]   ;;  %v1736_v61 = vld [vmem:[%s2182_s0 + $0xec] ss:$16 sps:$4 sm:$0xff]  }
  0x17   :  { %v1738_v62 = vld [vmem:[%s2182_s0 + $0xe0] ss:$16 sps:$4 sm:$0xff]   ;;  %v1739_v63 = vld [vmem:[%s2182_s0 + $0xe8] ss:$16 sps:$4 sm:$0xff]   ;;  %v1740_v0 = vld [vmem:[%s2182_s0 + $0x104] ss:$16 sps:$4 sm:$0xff]  }
  0x18   :  { %1447 = vmatpush3.bf16.msra.mxu0 %v1682_v22  ;;  %v1742_v1 = vld [vmem:[%s2182_s0 + $0x10c] ss:$16 sps:$4 sm:$0xff]   ;;  %v1744_v2 = vld [vmem:[%s2182_s0 + $0x100] ss:$16 sps:$4 sm:$0xff]   ;;  %v1745_v3 = vld [vmem:[%s2182_s0 + $0x108] ss:$16 sps:$4 sm:$0xff]  }
  0x19   :  { %1559 = vmatpush3.bf16.msra.mxu1 %v1683_v23  ;;  %1448 = vmatprep.subr.bf16.mxu0 %v1684_v24  ;;  %v1746_v4 = vld [vmem:[%s2182_s0 + $0x124] ss:$16 sps:$4 sm:$0xff]   ;;  %v1748_v5 = vld [vmem:[%s2182_s0 + $0x12c] ss:$16 sps:$4 sm:$0xff]   ;;  %v1750_v6 = vld [vmem:[%s2182_s0 + $0x120] ss:$16 sps:$4 sm:$0xff]  }
  0x1a   :  { %1560 = vmatprep.subr.bf16.mxu1 %v1685_v25  ;;  %v1751_v7 = vld [vmem:[%s2182_s0 + $0x128] ss:$16 sps:$4 sm:$0xff]   ;;  %v1752_v8 = vld [vmem:[%s2182_s0 + $0x144] ss:$16 sps:$4 sm:$0xff]   ;;  %v1754_v9 = vld [vmem:[%s2182_s0 + $0x14c] ss:$16 sps:$4 sm:$0xff]  }
  0x1b   :  { %v1756_v10 = vld [vmem:[%s2182_s0 + $0x140] ss:$16 sps:$4 sm:$0xff]   ;;  %v1757_v11 = vld [vmem:[%s2182_s0 + $0x148] ss:$16 sps:$4 sm:$0xff]   ;;  %v1758_v12 = vld [vmem:[%s2182_s0 + $0x164] ss:$16 sps:$4 sm:$0xff]  }
  0x1c   :  { %1449 = vmatpush3.bf16.msra.mxu0 %v1686_v26  ;;  %v1760_v13 = vld [vmem:[%s2182_s0 + $0x16c] ss:$16 sps:$4 sm:$0xff]   ;;  %v1762_v14 = vld [vmem:[%s2182_s0 + $0x160] ss:$16 sps:$4 sm:$0xff]   ;;  %v1763_v15 = vld [vmem:[%s2182_s0 + $0x168] ss:$16 sps:$4 sm:$0xff]  }
  0x1d   :  { %1561 = vmatpush3.bf16.msra.mxu1 %v1687_v27  ;;  %1450 = vmatprep.subr.bf16.mxu0 %v1688_v28  ;;  %v1764_v16 = vld [vmem:[%s2182_s0 + $0x184] ss:$16 sps:$4 sm:$0xff]   ;;  %v1766_v17 = vld [vmem:[%s2182_s0 + $0x18c] ss:$16 sps:$4 sm:$0xff]   ;;  %v1768_v18 = vld [vmem:[%s2182_s0 + $0x180] ss:$16 sps:$4 sm:$0xff]  }
  0x1e   :  { %1562 = vmatprep.subr.bf16.mxu1 %v1689_v29  ;;  %v1769_v19 = vld [vmem:[%s2182_s0 + $0x188] ss:$16 sps:$4 sm:$0xff]   ;;  %v1770_v20 = vld [vmem:[%s2182_s0 + $0x1a4] ss:$16 sps:$4 sm:$0xff]   ;;  %v1772_v21 = vld [vmem:[%s2182_s0 + $0x1ac] ss:$16 sps:$4 sm:$0xff]  }
  0x1f   :  { %v1774_v22 = vld [vmem:[%s2182_s0 + $0x1a0] ss:$16 sps:$4 sm:$0xff]   ;;  %v1775_v23 = vld [vmem:[%s2182_s0 + $0x1a8] ss:$16 sps:$4 sm:$0xff]   ;;  %v1776_v24 = vld [vmem:[%s2182_s0 + $0x1c4] ss:$16 sps:$4 sm:$0xff]  }
  0x20   :  { %1451 = vmatpush3.bf16.msra.mxu0 %v1690_v30  ;;  %v1778_v25 = vld [vmem:[%s2182_s0 + $0x1cc] ss:$16 sps:$4 sm:$0xff]   ;;  %v1780_v26 = vld [vmem:[%s2182_s0 + $0x1c0] ss:$16 sps:$4 sm:$0xff]   ;;  %v1781_v27 = vld [vmem:[%s2182_s0 + $0x1c8] ss:$16 sps:$4 sm:$0xff]  }
  0x21   :  { %1563 = vmatpush3.bf16.msra.mxu1 %v1691_v31  ;;  %v1782_v28 = vld [vmem:[%s2182_s0 + $0x1e4] ss:$16 sps:$4 sm:$0xff]   ;;  %v1784_v29 = vld [vmem:[%s2182_s0 + $0x1ec] ss:$16 sps:$4 sm:$0xff]   ;;  %v1786_v30 = vld [vmem:[%s2182_s0 + $0x1e0] ss:$16 sps:$4 sm:$0xff]  }
  0x22   :  { %v1787_v31 = vld [vmem:[%s2182_s0 + $0x1e8] ss:$16 sps:$4 sm:$0xff]  }
  0x23   :  { %695 = vmatmul.mubr.bf16.vlgmr.msra.gmra.mxu0 %v1692_v32 }
  0x24   :  { %856 = vmatmul.mubr.bf16.vlgmr.msra.gmra.mxu1 %v1695_v34  ;;  %702 = vmatprep.mubr.bf16.mxu0 %v1698_v36  ;;  %v2099_v34 = vld [vmem:[%s2183_s2] ss:$0 sm:$0xff] }
  0x25   :  { %863 = vmatprep.mubr.bf16.mxu1 %v1700_v37 }
  0x2b   :  { %703 = vmatmul.mubr.bf16.gmra.mxu0 %v1702_v38 }
  0x2c   :  { %864 = vmatmul.mubr.bf16.gmra.mxu1 %v1703_v39  ;;  %710 = vmatprep.mubr.bf16.mxu0 %v1704_v40 }
  0x2d   :  { %871 = vmatprep.mubr.bf16.mxu1 %v1706_v41 }
  0x33   :  { %711 = vmatmul.mubr.bf16.gmra.mxu0 %v1708_v42 }
  0x34   :  { %872 = vmatmul.mubr.bf16.gmra.mxu1 %v1709_v43  ;;  %718 = vmatprep.mubr.bf16.mxu0 %v1710_v44 }
  0x35   :  { %879 = vmatprep.mubr.bf16.mxu1 %v1712_v45 }
  0x3b   :  { %719 = vmatmul.mubr.bf16.gmra.mxu0 %v1714_v46 }
  0x3c   :  { %880 = vmatmul.mubr.bf16.gmra.mxu1 %v1715_v47  ;;  %726 = vmatprep.mubr.bf16.mxu0 %v1716_v48 }
  0x3d   :  { %887 = vmatprep.mubr.bf16.mxu1 %v1718_v49 }
  0x43   :  { %727 = vmatmul.mubr.bf16.gmra.mxu0 %v1720_v50 }
  0x44   :  { %888 = vmatmul.mubr.bf16.gmra.mxu1 %v1721_v51  ;;  %734 = vmatprep.mubr.bf16.mxu0 %v1722_v52 }
  0x45   :  { %895 = vmatprep.mubr.bf16.mxu1 %v1724_v53 }
  0x4b   :  { %735 = vmatmul.mubr.bf16.gmra.mxu0 %v1726_v54 }
  0x4c   :  { %896 = vmatmul.mubr.bf16.gmra.mxu1 %v1727_v55  ;;  %742 = vmatprep.mubr.bf16.mxu0 %v1728_v56 }
  0x4d   :  { %903 = vmatprep.mubr.bf16.mxu1 %v1730_v57 }
  0x53   :  { %743 = vmatmul.mubr.bf16.gmra.mxu0 %v1732_v58 }
  0x54   :  { %904 = vmatmul.mubr.bf16.gmra.mxu1 %v1733_v59  ;;  %750 = vmatprep.mubr.bf16.mxu0 %v1734_v60 }
  0x55   :  { %911 = vmatprep.mubr.bf16.mxu1 %v1736_v61 }
  0x5b   :  { %751 = vmatmul.mubr.bf16.gmra.mxu0 %v1738_v62 }
  0x5c   :  { %912 = vmatmul.mubr.bf16.gmra.mxu1 %v1739_v63  ;;  %758 = vmatprep.mubr.bf16.mxu0 %v1740_v0 }
  0x5d   :  { %919 = vmatprep.mubr.bf16.mxu1 %v1742_v1 }
  0x63   :  { %759 = vmatmul.mubr.bf16.gmra.mxu0 %v1744_v2 }
  0x64   :  { %920 = vmatmul.mubr.bf16.gmra.mxu1 %v1745_v3  ;;  %766 = vmatprep.mubr.bf16.mxu0 %v1746_v4 }
  0x65   :  { %927 = vmatprep.mubr.bf16.mxu1 %v1748_v5 }
  0x6b   :  { %767 = vmatmul.mubr.bf16.gmra.mxu0 %v1750_v6 }
  0x6c   :  { %928 = vmatmul.mubr.bf16.gmra.mxu1 %v1751_v7  ;;  %774 = vmatprep.mubr.bf16.mxu0 %v1752_v8 }
  0x6d   :  { %935 = vmatprep.mubr.bf16.mxu1 %v1754_v9 }
  0x73   :  { %775 = vmatmul.mubr.bf16.gmra.mxu0 %v1756_v10 }
  0x74   :  { %936 = vmatmul.mubr.bf16.gmra.mxu1 %v1757_v11  ;;  %782 = vmatprep.mubr.bf16.mxu0 %v1758_v12 }
  0x75   :  { %943 = vmatprep.mubr.bf16.mxu1 %v1760_v13 }
  0x7b   :  { %783 = vmatmul.mubr.bf16.gmra.mxu0 %v1762_v14 }
  0x7c   :  { %944 = vmatmul.mubr.bf16.gmra.mxu1 %v1763_v15  ;;  %790 = vmatprep.mubr.bf16.mxu0 %v1764_v16 }
  0x7d   :  { %951 = vmatprep.mubr.bf16.mxu1 %v1766_v17 }
  0x83   :  { %791 = vmatmul.mubr.bf16.gmra.mxu0 %v1768_v18 }
  0x84   :  { %952 = vmatmul.mubr.bf16.gmra.mxu1 %v1769_v19  ;;  %798 = vmatprep.mubr.bf16.mxu0 %v1770_v20 }
  0x85   :  { %959 = vmatprep.mubr.bf16.mxu1 %v1772_v21 }
  0x8b   :  { %799 = vmatmul.mubr.bf16.gmra.mxu0 %v1774_v22 }
  0x8c   :  { %960 = vmatmul.mubr.bf16.gmra.mxu1 %v1775_v23  ;;  %806 = vmatprep.mubr.bf16.mxu0 %v1776_v24 }
  0x8d   :  { %967 = vmatprep.mubr.bf16.mxu1 %v1778_v25 }
  0x93   :  { %807 = vmatmul.mubr.bf16.gmra.mxu0 %v1780_v26 }
  0x94   :  { %968 = vmatmul.mubr.bf16.gmra.mxu1 %v1781_v27  ;;  %814 = vmatprep.mubr.bf16.mxu0 %v1782_v28 }
  0x95   :  { %975 = vmatprep.mubr.bf16.mxu1 %v1784_v29 }
  0x9b   :  { %815 = vmatmul.mubr.bf16.gmra.mxu0 %v1786_v30 }
  0x9c   :  { %976 = vmatmul.mubr.bf16.gmra.mxu1 %v1787_v31 }
  0xe3   :  { %v1452_v32 = vpop.f32.mrf.mxu0 }
  0xe4   :  { %v1564_v33 = vpop.f32.mrf.mxu1 }
  0xe5   :  { %v1453_v35 = vpop.f32.mrf.mxu0 }
  0xe6   :  { %v1454_v36 = vadd.f32 %v1453_v35, %v1452_v32  ;;  %v1565_v37 = vpop.f32.mrf.mxu1 }
  0xe7   :  { %v1455_v38 = vpop.f32.mrf.mxu0  ;;  %v1566_v42 = vadd.f32 %v1565_v37, %v1564_v33 }
  0xe8   :  { %v697_v39 = vadd.f32 %v1454_v36, %v2099_v34  ;;  %v1567_v40 = vpop.f32.mrf.mxu1 }
  0xe9   :  { %v1456_v41 = vpop.f32.mrf.mxu0 }
  0xea   :  { %v1457_v43 = vadd.f32 %v1456_v41, %v1455_v38  ;;  %v1568_v44 = vpop.f32.mrf.mxu1  ;;  %v858_v46 = vadd.f32 %v1566_v42, %v697_v39 }
  0xeb   :  { %v1458_v45 = vpop.f32.mrf.mxu0  ;;  %v1569_v48 = vadd.f32 %v1568_v44, %v1567_v40 }
  0xec   :  { %v700_v47 = vadd.f32 %v1457_v43, %v2099_v34  ;;  %v1570_v49 = vpop.f32.mrf.mxu1  ;;  %v984_v55 = vmax.f32 %v858_v46, 0.0 }
  0xed   :  { %v1459_v50 = vpop.f32.mrf.mxu0 }
  0xee   :  { %v861_v51 = vadd.f32 %v1569_v48, %v700_v47  ;;  %v1460_v52 = vadd.f32 %v1459_v50, %v1458_v45  ;;  %v1571_v53 = vpop.f32.mrf.mxu1 }
  0xef   :  { %v1461_v54 = vpop.f32.mrf.mxu0  ;;  %v1572_v61 = vadd.f32 %v1571_v53, %v1570_v49 }
  0xf0   :  { %v985_v56 = vmax.f32 %v861_v51, 0.0  ;;  %v705_v57 = vadd.f32 %v1460_v52, %v2099_v34  ;;  %v1573_v58 = vpop.f32.mrf.mxu1 }
  0xf1   :  { %v1462_v59 = vpop.f32.mrf.mxu0 }
  0xf2   :  { %v1344_v60 = vpack.c.bf16 %v985_v56, %v984_v55  ;;  %v1463_v62 = vadd.f32 %v1462_v59, %v1461_v54  ;;  %v1574_v63 = vpop.f32.mrf.mxu1  ;;  %v866_v1 = vadd.f32 %v1572_v61, %v705_v57 }
  0xf3   :  { %v1464_v0 = vpop.f32.mrf.mxu0  ;;  %v1575_v3 = vadd.f32 %v1574_v63, %v1573_v58 }
  0xf4   :  { %1345 = vst [vmem:[%s2184_s3] sm:$0xff] %v1344_v60   ;;  %v708_v2 = vadd.f32 %v1463_v62, %v2099_v34  ;;  %v1576_v4 = vpop.f32.mrf.mxu1  ;;  %v986_v10 = vmax.f32 %v866_v1, 0.0 }
  0xf5   :  { %v1465_v5 = vpop.f32.mrf.mxu0 }
  0xf6   :  { %v869_v6 = vadd.f32 %v1575_v3, %v708_v2  ;;  %v1466_v7 = vadd.f32 %v1465_v5, %v1464_v0  ;;  %v1577_v8 = vpop.f32.mrf.mxu1 }
  0xf7   :  { %v1467_v9 = vpop.f32.mrf.mxu0  ;;  %v1578_v16 = vadd.f32 %v1577_v8, %v1576_v4 }
  0xf8   :  { %v987_v11 = vmax.f32 %v869_v6, 0.0  ;;  %v713_v12 = vadd.f32 %v1466_v7, %v2099_v34  ;;  %v1579_v13 = vpop.f32.mrf.mxu1 }
  0xf9   :  { %v1468_v14 = vpop.f32.mrf.mxu0 }
  0xfa   :  { %v1349_v15 = vpack.c.bf16 %v987_v11, %v986_v10  ;;  %v1469_v17 = vadd.f32 %v1468_v14, %v1467_v9  ;;  %v1580_v18 = vpop.f32.mrf.mxu1  ;;  %v874_v20 = vadd.f32 %v1578_v16, %v713_v12 }
  0xfb   :  { %v1470_v19 = vpop.f32.mrf.mxu0  ;;  %v1581_v22 = vadd.f32 %v1580_v18, %v1579_v13 }
  0xfc   :  { %1421 = vst [vmem:[%s2184_s3 + $0x8] sm:$0xff] %v1349_v15   ;;  %v716_v21 = vadd.f32 %v1469_v17, %v2099_v34  ;;  %v1582_v23 = vpop.f32.mrf.mxu1  ;;  %v988_v29 = vmax.f32 %v874_v20, 0.0 }
  0xfd   :  { %v1471_v24 = vpop.f32.mrf.mxu0 }
  0xfe   :  { %v877_v25 = vadd.f32 %v1581_v22, %v716_v21  ;;  %v1472_v26 = vadd.f32 %v1471_v24, %v1470_v19  ;;  %v1583_v27 = vpop.f32.mrf.mxu1 }
  0xff   :  { %v1473_v28 = vpop.f32.mrf.mxu0  ;;  %v1584_v36 = vadd.f32 %v1583_v27, %v1582_v23 }
 0x100   :  { %v989_v30 = vmax.f32 %v877_v25, 0.0  ;;  %v721_v31 = vadd.f32 %v1472_v26, %v2099_v34  ;;  %v1585_v32 = vpop.f32.mrf.mxu1 }
 0x101   :  { %v1474_v33 = vpop.f32.mrf.mxu0 }
 0x102   :  { %v1354_v35 = vpack.c.bf16 %v989_v30, %v988_v29  ;;  %v1475_v37 = vadd.f32 %v1474_v33, %v1473_v28  ;;  %v1586_v38 = vpop.f32.mrf.mxu1  ;;  %v882_v40 = vadd.f32 %v1584_v36, %v721_v31 }
 0x103   :  { %v1476_v39 = vpop.f32.mrf.mxu0  ;;  %v1587_v42 = vadd.f32 %v1586_v38, %v1585_v32 }
 0x104   :  { %1422 = vst [vmem:[%s2184_s3 + $0x10] sm:$0xff] %v1354_v35   ;;  %v724_v41 = vadd.f32 %v1475_v37, %v2099_v34  ;;  %v1588_v43 = vpop.f32.mrf.mxu1  ;;  %v990_v49 = vmax.f32 %v882_v40, 0.0 }
 0x105   :  { %v1477_v44 = vpop.f32.mrf.mxu0 }
 0x106   :  { %v885_v45 = vadd.f32 %v1587_v42, %v724_v41  ;;  %v1478_v46 = vadd.f32 %v1477_v44, %v1476_v39  ;;  %v1589_v47 = vpop.f32.mrf.mxu1 }
 0x107   :  { %v1479_v48 = vpop.f32.mrf.mxu0  ;;  %v1590_v55 = vadd.f32 %v1589_v47, %v1588_v43 }
 0x108   :  { %v991_v50 = vmax.f32 %v885_v45, 0.0  ;;  %v729_v51 = vadd.f32 %v1478_v46, %v2099_v34  ;;  %v1591_v52 = vpop.f32.mrf.mxu1 }
 0x109   :  { %v1480_v53 = vpop.f32.mrf.mxu0 }
 0x10a   :  { %v1359_v54 = vpack.c.bf16 %v991_v50, %v990_v49  ;;  %v1481_v56 = vadd.f32 %v1480_v53, %v1479_v48  ;;  %v1592_v57 = vpop.f32.mrf.mxu1  ;;  %v890_v59 = vadd.f32 %v1590_v55, %v729_v51 }
 0x10b   :  { %v1482_v58 = vpop.f32.mrf.mxu0  ;;  %v1593_v61 = vadd.f32 %v1592_v57, %v1591_v52 }
 0x10c   :  { %1423 = vst [vmem:[%s2184_s3 + $0x18] sm:$0xff] %v1359_v54   ;;  %v732_v60 = vadd.f32 %v1481_v56, %v2099_v34  ;;  %v1594_v62 = vpop.f32.mrf.mxu1  ;;  %v992_v4 = vmax.f32 %v890_v59, 0.0 }
 0x10d   :  { %v1483_v63 = vpop.f32.mrf.mxu0 }
 0x10e   :  { %v893_v0 = vadd.f32 %v1593_v61, %v732_v60  ;;  %v1484_v1 = vadd.f32 %v1483_v63, %v1482_v58  ;;  %v1595_v2 = vpop.f32.mrf.mxu1 }
 0x10f   :  { %v1485_v3 = vpop.f32.mrf.mxu0  ;;  %v1596_v10 = vadd.f32 %v1595_v2, %v1594_v62 }
 0x110   :  { %v993_v5 = vmax.f32 %v893_v0, 0.0  ;;  %v737_v6 = vadd.f32 %v1484_v1, %v2099_v34  ;;  %v1597_v7 = vpop.f32.mrf.mxu1 }
 0x111   :  { %v1486_v8 = vpop.f32.mrf.mxu0 }
 0x112   :  { %v1364_v9 = vpack.c.bf16 %v993_v5, %v992_v4  ;;  %v1487_v11 = vadd.f32 %v1486_v8, %v1485_v3  ;;  %v1598_v12 = vpop.f32.mrf.mxu1  ;;  %v898_v14 = vadd.f32 %v1596_v10, %v737_v6 }
 0x113   :  { %v1488_v13 = vpop.f32.mrf.mxu0  ;;  %v1599_v16 = vadd.f32 %v1598_v12, %v1597_v7 }
 0x114   :  { %1424 = vst [vmem:[%s2184_s3 + $0x20] sm:$0xff] %v1364_v9   ;;  %v740_v15 = vadd.f32 %v1487_v11, %v2099_v34  ;;  %v1600_v17 = vpop.f32.mrf.mxu1  ;;  %v994_v23 = vmax.f32 %v898_v14, 0.0 }
 0x115   :  { %v1489_v18 = vpop.f32.mrf.mxu0 }
 0x116   :  { %v901_v19 = vadd.f32 %v1599_v16, %v740_v15  ;;  %v1490_v20 = vadd.f32 %v1489_v18, %v1488_v13  ;;  %v1601_v21 = vpop.f32.mrf.mxu1 }
 0x117   :  { %v1491_v22 = vpop.f32.mrf.mxu0  ;;  %v1602_v29 = vadd.f32 %v1601_v21, %v1600_v17 }
 0x118   :  { %v995_v24 = vmax.f32 %v901_v19, 0.0  ;;  %v745_v25 = vadd.f32 %v1490_v20, %v2099_v34  ;;  %v1603_v26 = vpop.f32.mrf.mxu1 }
 0x119   :  { %v1492_v27 = vpop.f32.mrf.mxu0 }
 0x11a   :  { %v1369_v28 = vpack.c.bf16 %v995_v24, %v994_v23  ;;  %v1493_v30 = vadd.f32 %v1492_v27, %v1491_v22  ;;  %v1604_v31 = vpop.f32.mrf.mxu1  ;;  %v906_v33 = vadd.f32 %v1602_v29, %v745_v25 }
 0x11b   :  { %v1494_v32 = vpop.f32.mrf.mxu0  ;;  %v1605_v36 = vadd.f32 %v1604_v31, %v1603_v26 }
 0x11c   :  { %1425 = vst [vmem:[%s2184_s3 + $0x28] sm:$0xff] %v1369_v28   ;;  %v748_v35 = vadd.f32 %v1493_v30, %v2099_v34  ;;  %v1606_v37 = vpop.f32.mrf.mxu1  ;;  %v996_v43 = vmax.f32 %v906_v33, 0.0 }
 0x11d   :  { %v1495_v38 = vpop.f32.mrf.mxu0 }
 0x11e   :  { %v909_v39 = vadd.f32 %v1605_v36, %v748_v35  ;;  %v1496_v40 = vadd.f32 %v1495_v38, %v1494_v32  ;;  %v1607_v41 = vpop.f32.mrf.mxu1 }
 0x11f   :  { %v1497_v42 = vpop.f32.mrf.mxu0  ;;  %v1608_v49 = vadd.f32 %v1607_v41, %v1606_v37 }
 0x120   :  { %v997_v44 = vmax.f32 %v909_v39, 0.0  ;;  %v753_v45 = vadd.f32 %v1496_v40, %v2099_v34  ;;  %v1609_v46 = vpop.f32.mrf.mxu1 }
 0x121   :  { %v1498_v47 = vpop.f32.mrf.mxu0 }
 0x122   :  { %v1374_v48 = vpack.c.bf16 %v997_v44, %v996_v43  ;;  %v1499_v50 = vadd.f32 %v1498_v47, %v1497_v42  ;;  %v1610_v51 = vpop.f32.mrf.mxu1  ;;  %v914_v53 = vadd.f32 %v1608_v49, %v753_v45 }
 0x123   :  { %v1500_v52 = vpop.f32.mrf.mxu0  ;;  %v1611_v55 = vadd.f32 %v1610_v51, %v1609_v46 }
 0x124   :  { %1426 = vst [vmem:[%s2184_s3 + $0x30] sm:$0xff] %v1374_v48   ;;  %v756_v54 = vadd.f32 %v1499_v50, %v2099_v34  ;;  %v1612_v56 = vpop.f32.mrf.mxu1  ;;  %v998_v62 = vmax.f32 %v914_v53, 0.0 }
 0x125   :  { %v1501_v57 = vpop.f32.mrf.mxu0 }
 0x126   :  { %v917_v58 = vadd.f32 %v1611_v55, %v756_v54  ;;  %v1502_v59 = vadd.f32 %v1501_v57, %v1500_v52  ;;  %v1613_v60 = vpop.f32.mrf.mxu1 }
 0x127   :  { %v1503_v61 = vpop.f32.mrf.mxu0  ;;  %v1614_v4 = vadd.f32 %v1613_v60, %v1612_v56 }
 0x128   :  { %v999_v63 = vmax.f32 %v917_v58, 0.0  ;;  %v761_v0 = vadd.f32 %v1502_v59, %v2099_v34  ;;  %v1615_v1 = vpop.f32.mrf.mxu1 }
 0x129   :  { %v1504_v2 = vpop.f32.mrf.mxu0 }
 0x12a   :  { %v1379_v3 = vpack.c.bf16 %v999_v63, %v998_v62  ;;  %v1505_v5 = vadd.f32 %v1504_v2, %v1503_v61  ;;  %v1616_v6 = vpop.f32.mrf.mxu1  ;;  %v922_v8 = vadd.f32 %v1614_v4, %v761_v0 }
 0x12b   :  { %v1506_v7 = vpop.f32.mrf.mxu0  ;;  %v1617_v10 = vadd.f32 %v1616_v6, %v1615_v1 }
 0x12c   :  { %1427 = vst [vmem:[%s2184_s3 + $0x38] sm:$0xff] %v1379_v3   ;;  %v764_v9 = vadd.f32 %v1505_v5, %v2099_v34  ;;  %v1618_v11 = vpop.f32.mrf.mxu1  ;;  %v1000_v17 = vmax.f32 %v922_v8, 0.0 }
 0x12d   :  { %v1507_v12 = vpop.f32.mrf.mxu0 }
 0x12e   :  { %v925_v13 = vadd.f32 %v1617_v10, %v764_v9  ;;  %v1508_v14 = vadd.f32 %v1507_v12, %v1506_v7  ;;  %v1619_v15 = vpop.f32.mrf.mxu1 }
 0x12f   :  { %v1509_v16 = vpop.f32.mrf.mxu0  ;;  %v1620_v23 = vadd.f32 %v1619_v15, %v1618_v11 }
 0x130   :  { %v1001_v18 = vmax.f32 %v925_v13, 0.0  ;;  %v769_v19 = vadd.f32 %v1508_v14, %v2099_v34  ;;  %v1621_v20 = vpop.f32.mrf.mxu1 }
 0x131   :  { %v1510_v21 = vpop.f32.mrf.mxu0 }
 0x132   :  { %v1384_v22 = vpack.c.bf16 %v1001_v18, %v1000_v17  ;;  %v1511_v24 = vadd.f32 %v1510_v21, %v1509_v16  ;;  %v1622_v25 = vpop.f32.mrf.mxu1  ;;  %v930_v27 = vadd.f32 %v1620_v23, %v769_v19 }
 0x133   :  { %v1512_v26 = vpop.f32.mrf.mxu0  ;;  %v1623_v29 = vadd.f32 %v1622_v25, %v1621_v20 }
 0x134   :  { %1428 = vst [vmem:[%s2184_s3 + $0x40] sm:$0xff] %v1384_v22   ;;  %v772_v28 = vadd.f32 %v1511_v24, %v2099_v34  ;;  %v1624_v30 = vpop.f32.mrf.mxu1  ;;  %v1002_v37 = vmax.f32 %v930_v27, 0.0 }
 0x135   :  { %v1513_v31 = vpop.f32.mrf.mxu0 }
 0x136   :  { %v933_v32 = vadd.f32 %v1623_v29, %v772_v28  ;;  %v1514_v33 = vadd.f32 %v1513_v31, %v1512_v26  ;;  %v1625_v35 = vpop.f32.mrf.mxu1 }
 0x137   :  { %v1515_v36 = vpop.f32.mrf.mxu0  ;;  %v1626_v43 = vadd.f32 %v1625_v35, %v1624_v30 }
 0x138   :  { %v1003_v38 = vmax.f32 %v933_v32, 0.0  ;;  %v777_v39 = vadd.f32 %v1514_v33, %v2099_v34  ;;  %v1627_v40 = vpop.f32.mrf.mxu1 }
 0x139   :  { %v1516_v41 = vpop.f32.mrf.mxu0 }
 0x13a   :  { %v1389_v42 = vpack.c.bf16 %v1003_v38, %v1002_v37  ;;  %v1517_v44 = vadd.f32 %v1516_v41, %v1515_v36  ;;  %v1628_v45 = vpop.f32.mrf.mxu1  ;;  %v938_v47 = vadd.f32 %v1626_v43, %v777_v39 }
 0x13b   :  { %v1518_v46 = vpop.f32.mrf.mxu0  ;;  %v1629_v49 = vadd.f32 %v1628_v45, %v1627_v40 }
 0x13c   :  { %1429 = vst [vmem:[%s2184_s3 + $0x48] sm:$0xff] %v1389_v42   ;;  %v780_v48 = vadd.f32 %v1517_v44, %v2099_v34  ;;  %v1630_v50 = vpop.f32.mrf.mxu1  ;;  %v1004_v56 = vmax.f32 %v938_v47, 0.0 }
 0x13d   :  { %v1519_v51 = vpop.f32.mrf.mxu0 }
 0x13e   :  { %v941_v52 = vadd.f32 %v1629_v49, %v780_v48  ;;  %v1520_v53 = vadd.f32 %v1519_v51, %v1518_v46  ;;  %v1631_v54 = vpop.f32.mrf.mxu1 }
 0x13f   :  { %v1521_v55 = vpop.f32.mrf.mxu0  ;;  %v1632_v62 = vadd.f32 %v1631_v54, %v1630_v50 }
 0x140   :  { %v1005_v57 = vmax.f32 %v941_v52, 0.0  ;;  %v785_v58 = vadd.f32 %v1520_v53, %v2099_v34  ;;  %v1633_v59 = vpop.f32.mrf.mxu1 }
 0x141   :  { %v1522_v60 = vpop.f32.mrf.mxu0 }
 0x142   :  { %v1394_v61 = vpack.c.bf16 %v1005_v57, %v1004_v56  ;;  %v1523_v63 = vadd.f32 %v1522_v60, %v1521_v55  ;;  %v1634_v0 = vpop.f32.mrf.mxu1  ;;  %v946_v2 = vadd.f32 %v1632_v62, %v785_v58 }
 0x143   :  { %v1524_v1 = vpop.f32.mrf.mxu0  ;;  %v1635_v4 = vadd.f32 %v1634_v0, %v1633_v59 }
 0x144   :  { %1430 = vst [vmem:[%s2184_s3 + $0x50] sm:$0xff] %v1394_v61   ;;  %v788_v3 = vadd.f32 %v1523_v63, %v2099_v34  ;;  %v1636_v5 = vpop.f32.mrf.mxu1  ;;  %v1006_v11 = vmax.f32 %v946_v2, 0.0 }
 0x145   :  { %v1525_v6 = vpop.f32.mrf.mxu0 }
 0x146   :  { %v949_v7 = vadd.f32 %v1635_v4, %v788_v3  ;;  %v1526_v8 = vadd.f32 %v1525_v6, %v1524_v1  ;;  %v1637_v9 = vpop.f32.mrf.mxu1 }
 0x147   :  { %v1527_v10 = vpop.f32.mrf.mxu0  ;;  %v1638_v17 = vadd.f32 %v1637_v9, %v1636_v5 }
 0x148   :  { %v1007_v12 = vmax.f32 %v949_v7, 0.0  ;;  %v793_v13 = vadd.f32 %v1526_v8, %v2099_v34  ;;  %v1639_v14 = vpop.f32.mrf.mxu1 }
 0x149   :  { %v1528_v15 = vpop.f32.mrf.mxu0 }
 0x14a   :  { %v1399_v16 = vpack.c.bf16 %v1007_v12, %v1006_v11  ;;  %v1529_v18 = vadd.f32 %v1528_v15, %v1527_v10  ;;  %v1640_v19 = vpop.f32.mrf.mxu1  ;;  %v954_v21 = vadd.f32 %v1638_v17, %v793_v13 }
 0x14b   :  { %v1530_v20 = vpop.f32.mrf.mxu0  ;;  %v1641_v23 = vadd.f32 %v1640_v19, %v1639_v14 }
 0x14c   :  { %1431 = vst [vmem:[%s2184_s3 + $0x58] sm:$0xff] %v1399_v16   ;;  %v796_v22 = vadd.f32 %v1529_v18, %v2099_v34  ;;  %v1642_v24 = vpop.f32.mrf.mxu1  ;;  %v1008_v30 = vmax.f32 %v954_v21, 0.0 }
 0x14d   :  { %v1531_v25 = vpop.f32.mrf.mxu0 }
 0x14e   :  { %v957_v26 = vadd.f32 %v1641_v23, %v796_v22  ;;  %v1532_v27 = vadd.f32 %v1531_v25, %v1530_v20  ;;  %v1643_v28 = vpop.f32.mrf.mxu1 }
 0x14f   :  { %v1533_v29 = vpop.f32.mrf.mxu0  ;;  %v1644_v37 = vadd.f32 %v1643_v28, %v1642_v24 }
 0x150   :  { %v1009_v31 = vmax.f32 %v957_v26, 0.0  ;;  %v801_v32 = vadd.f32 %v1532_v27, %v2099_v34  ;;  %v1645_v33 = vpop.f32.mrf.mxu1 }
 0x151   :  { %v1534_v35 = vpop.f32.mrf.mxu0 }
 0x152   :  { %v1404_v36 = vpack.c.bf16 %v1009_v31, %v1008_v30  ;;  %v1535_v38 = vadd.f32 %v1534_v35, %v1533_v29  ;;  %v1646_v39 = vpop.f32.mrf.mxu1  ;;  %v962_v41 = vadd.f32 %v1644_v37, %v801_v32 }
 0x153   :  { %v1536_v40 = vpop.f32.mrf.mxu0  ;;  %v1647_v43 = vadd.f32 %v1646_v39, %v1645_v33 }
 0x154   :  { %1432 = vst [vmem:[%s2184_s3 + $0x60] sm:$0xff] %v1404_v36   ;;  %v804_v42 = vadd.f32 %v1535_v38, %v2099_v34  ;;  %v1648_v44 = vpop.f32.mrf.mxu1  ;;  %v1010_v50 = vmax.f32 %v962_v41, 0.0 }
 0x155   :  { %v1537_v45 = vpop.f32.mrf.mxu0 }
 0x156   :  { %v965_v46 = vadd.f32 %v1647_v43, %v804_v42  ;;  %v1538_v47 = vadd.f32 %v1537_v45, %v1536_v40  ;;  %v1649_v48 = vpop.f32.mrf.mxu1 }
 0x157   :  { %v1539_v49 = vpop.f32.mrf.mxu0  ;;  %v1650_v56 = vadd.f32 %v1649_v48, %v1648_v44 }
 0x158   :  { %v1011_v51 = vmax.f32 %v965_v46, 0.0  ;;  %v809_v52 = vadd.f32 %v1538_v47, %v2099_v34  ;;  %v1651_v53 = vpop.f32.mrf.mxu1 }
 0x159   :  { %v1540_v54 = vpop.f32.mrf.mxu0 }
 0x15a   :  { %v1409_v55 = vpack.c.bf16 %v1011_v51, %v1010_v50  ;;  %v1541_v57 = vadd.f32 %v1540_v54, %v1539_v49  ;;  %v1652_v58 = vpop.f32.mrf.mxu1  ;;  %v970_v60 = vadd.f32 %v1650_v56, %v809_v52 }
 0x15b   :  { %v1542_v59 = vpop.f32.mrf.mxu0  ;;  %v1653_v62 = vadd.f32 %v1652_v58, %v1651_v53 }
 0x15c   :  { %1433 = vst [vmem:[%s2184_s3 + $0x68] sm:$0xff] %v1409_v55   ;;  %v812_v61 = vadd.f32 %v1541_v57, %v2099_v34  ;;  %v1654_v63 = vpop.f32.mrf.mxu1  ;;  %v1012_v5 = vmax.f32 %v970_v60, 0.0 }
 0x15d   :  { %v1543_v0 = vpop.f32.mrf.mxu0 }
 0x15e   :  { %v973_v1 = vadd.f32 %v1653_v62, %v812_v61  ;;  %v1544_v2 = vadd.f32 %v1543_v0, %v1542_v59  ;;  %v1655_v3 = vpop.f32.mrf.mxu1 }
 0x15f   :  { %v1545_v4 = vpop.f32.mrf.mxu0  ;;  %v1656_v11 = vadd.f32 %v1655_v3, %v1654_v63 }
 0x160   :  { %v1013_v6 = vmax.f32 %v973_v1, 0.0  ;;  %v817_v7 = vadd.f32 %v1544_v2, %v2099_v34  ;;  %v1657_v8 = vpop.f32.mrf.mxu1 }
 0x161   :  { %v1546_v9 = vpop.f32.mrf.mxu0 }
 0x162   :  { %v1414_v10 = vpack.c.bf16 %v1013_v6, %v1012_v5  ;;  %v1547_v12 = vadd.f32 %v1546_v9, %v1545_v4  ;;  %v1658_v13 = vpop.f32.mrf.mxu1  ;;  %v978_v14 = vadd.f32 %v1656_v11, %v817_v7 }
 0x163   :  { %v1659_v16 = vadd.f32 %v1658_v13, %v1657_v8 }
 0x164   :  { %1434 = vst [vmem:[%s2184_s3 + $0x70] sm:$0xff] %v1414_v10   ;;  %v820_v15 = vadd.f32 %v1547_v12, %v2099_v34  ;;  %v1014_v18 = vmax.f32 %v978_v14, 0.0 }
 0x166   :  { %v981_v17 = vadd.f32 %v1659_v16, %v820_v15 }
 0x168   :  { %v1015_v19 = vmax.f32 %v981_v17, 0.0 }
 0x16a   :  { %v1419_v20 = vpack.c.bf16 %v1015_v19, %v1014_v18 }
 0x16c   :  { %1435 = vst [vmem:[%s2184_s3 + $0x78] sm:$0xff] %v1419_v20  }

// kernel: policy_forward.6
= control target key start
LH: loop header
LB: loop body
LE: loop exit
PB: predicated region body
PF: predicated region fallthrough
CT: control target
= control target key end

     0   :  { %v1776_v23 = vmov 0.0   ;;  %vm1777_vm0 = vmmov 0   ;;  %s2263_s1 = inlined_call_operand.vmem [shape: bf16[640,128], index: 1, kind: input, shape index: {}]   ;;  %s2264_s0 = inlined_call_operand.vmem [shape: bf16[176,640], index: 0, kind: input, shape index: {}]   ;;  %s2265_s2 = inlined_call_operand.vmem [shape: f32[1,128], index: 2, kind: input, shape index: {}]   ;;  %s2266_s3 = inlined_call_operand.vmem [shape: bf16[176,128], index: 3, kind: output, shape index: {}]  }
   0x1   :  { %v1659_v0 = vld [vmem:[%s2263_s1 + $0x78] sm:$0xff]   ;;  %v1661_v2 = vld [vmem:[%s2263_s1 + $0x70] sm:$0xff]   ;;  %v1663_v4 = vld [vmem:[%s2263_s1 + $0x68] sm:$0xff]  }
   0x2   :  { %v1660_v1 = vld [vmem:[%s2263_s1 + $0x38] sm:$0xff]   ;;  %1398 = vmatprep.subr.bf16.mxu0 %v1659_v0  ;;  %1641 = vmatprep.subr.bf16.mxu1 %v1659_v0  ;;  %v1662_v3 = vld [vmem:[%s2263_s1 + $0x30] sm:$0xff]   ;;  %v1664_v5 = vld [vmem:[%s2263_s1 + $0x28] sm:$0xff]  }
   0x3   :  { %1399 = vmatpush3.bf16.msra.mxu0 %v1660_v1  ;;  %1649 = vmatpush3.bf16.msra.mxu1 %v1660_v1  ;;  %v1665_v6 = vld [vmem:[%s2263_s1 + $0x60] sm:$0xff]   ;;  %v1667_v8 = vld [vmem:[%s2263_s1 + $0x58] sm:$0xff]   ;;  %v1669_v10 = vld [vmem:[%s2263_s1 + $0x50] sm:$0xff]  }
   0x4   :  { %1400 = vmatprep.subr.bf16.mxu0 %v1661_v2  ;;  %1642 = vmatprep.subr.bf16.mxu1 %v1661_v2  ;;  %v1666_v7 = vld [vmem:[%s2263_s1 + $0x20] sm:$0xff]   ;;  %v1668_v9 = vld [vmem:[%s2263_s1 + $0x18] sm:$0xff]   ;;  %v1680_v12 = vld [vmem:[%s2264_s0 + $0xf4] ss:$20 sps:$4 sm:$0xff]  }
   0x5   :  { %v1677_v11 = vld [vmem:[%s2264_s0 + $0x4] ss:$20 sps:$4 sm:$0xff]   ;;  %v1670_v13 = vld [vmem:[%s2263_s1 + $0x10] sm:$0xff]   ;;  %v1671_v14 = vld [vmem:[%s2263_s1 + $0x48] sm:$0xff]   ;;  %774 = vmatprep.mubr.bf16.mxu1 %v1680_v12 }
   0x6   :  { %726 = vmatprep.mubr.bf16.mxu0 %v1677_v11  ;;  %v1672_v15 = vld [vmem:[%s2263_s1 + $0x8] sm:$0xff]   ;;  %v1673_v16 = vld [vmem:[%s2263_s1 + $0x40] sm:$0xff]   ;;  %v1682_v19 = vld [vmem:[%s2263_s1 + $0xf8] sm:$0xff]  }
   0x7   :  { %1401 = vmatpush3.bf16.msra.mxu0 %v1662_v3  ;;  %1650 = vmatpush3.bf16.msra.mxu1 %v1662_v3  ;;  %v1674_v17 = vld [vmem:[%s2263_s1] sm:$0xff]   ;;  %v1681_v21 = vld [vmem:[%s2263_s1 + $0x138] sm:$0xff]   ;;  %v1688_v26 = vld [vmem:[%s2263_s1 + $0xf0] sm:$0xff]  }
   0x8   :  { %1402 = vmatprep.subr.bf16.mxu0 %v1663_v4  ;;  %1643 = vmatprep.subr.bf16.mxu1 %v1663_v4  ;;  %v1675_v18 = vld [vmem:[%s2264_s0] ss:$20 sps:$4 sm:$0xff]   ;;  %v1678_v20 = vld [vmem:[%s2264_s0 + $0xf0] ss:$20 sps:$4 sm:$0xff]   ;;  %v1683_v22 = vld [vmem:[%s2263_s1 + $0xb8] sm:$0xff]  }
   0x9   :  { %v1684_v24 = vld [vmem:[%s2264_s0 + $0x2c] ss:$20 sps:$4 sm:$0xff]   ;;  %v1686_v25 = vld [vmem:[%s2264_s0 + $0x11c] ss:$20 sps:$4 sm:$0xff]   ;;  %v1696_v34 = vld [vmem:[%s2264_s0 + $0x54] ss:$20 sps:$4 sm:$0xff]  }
   0xa   :  { %v1689_v27 = vld [vmem:[%s2263_s1 + $0x130] sm:$0xff]   ;;  %v1690_v29 = vld [vmem:[%s2264_s0 + $0x28] ss:$20 sps:$4 sm:$0xff]   ;;  %v1691_v31 = vld [vmem:[%s2264_s0 + $0x118] ss:$20 sps:$4 sm:$0xff]  }
   0xb   :  { %1403 = vmatpush3.bf16.msra.mxu0 %v1664_v5  ;;  %1651 = vmatpush3.bf16.msra.mxu1 %v1664_v5  ;;  %v1692_v28 = vld [vmem:[%s2263_s1 + $0xb0] sm:$0xff]   ;;  %v1693_v30 = vld [vmem:[%s2263_s1 + $0xe8] sm:$0xff]   ;;  %v1698_v35 = vld [vmem:[%s2264_s0 + $0x144] ss:$20 sps:$4 sm:$0xff]  }
   0xc   :  { %1404 = vmatprep.subr.bf16.mxu0 %v1665_v6  ;;  %1644 = vmatprep.subr.bf16.mxu1 %v1665_v6  ;;  %v1694_v32 = vld [vmem:[%s2263_s1 + $0xa8] sm:$0xff]   ;;  %v1702_v36 = vld [vmem:[%s2263_s1 + $0xe0] sm:$0xff]   ;;  %v1705_v40 = vld [vmem:[%s2263_s1 + $0xd8] sm:$0xff]  }
   0xd   :  { %v1695_v33 = vld [vmem:[%s2263_s1 + $0x128] sm:$0xff]   ;;  %v1703_v37 = vld [vmem:[%s2263_s1 + $0xa0] sm:$0xff]   ;;  %v1706_v42 = vld [vmem:[%s2264_s0 + $0x7c] ss:$20 sps:$4 sm:$0xff]  }
   0xe   :  { %v1704_v38 = vld [vmem:[%s2263_s1 + $0x120] sm:$0xff]   ;;  %v1710_v44 = vld [vmem:[%s2263_s1 + $0x98] sm:$0xff]   ;;  %v1714_v46 = vld [vmem:[%s2263_s1 + $0xd0] sm:$0xff]  }
   0xf   :  { %1405 = vmatpush3.bf16.msra.mxu0 %v1666_v7  ;;  %1652 = vmatpush3.bf16.msra.mxu1 %v1666_v7  ;;  %v1700_v39 = vld [vmem:[%s2264_s0 + $0x50] ss:$20 sps:$4 sm:$0xff]   ;;  %v1701_v41 = vld [vmem:[%s2264_s0 + $0x140] ss:$20 sps:$4 sm:$0xff]   ;;  %v1713_v45 = vld [vmem:[%s2263_s1 + $0x118] sm:$0xff]  }
  0x10   :  { %1406 = vmatprep.subr.bf16.mxu0 %v1667_v8  ;;  %1645 = vmatprep.subr.bf16.mxu1 %v1667_v8  ;;  %v1708_v43 = vld [vmem:[%s2264_s0 + $0x16c] ss:$20 sps:$4 sm:$0xff]   ;;  %v1715_v47 = vld [vmem:[%s2263_s1 + $0x90] sm:$0xff]   ;;  %v1712_v51 = vld [vmem:[%s2264_s0 + $0x168] ss:$20 sps:$4 sm:$0xff]  }
  0x11   :  { %v1711_v48 = vld [vmem:[%s2264_s0 + $0x78] ss:$20 sps:$4 sm:$0xff]   ;;  %v1720_v49 = vld [vmem:[%s2263_s1 + $0x110] sm:$0xff]   ;;  %v1725_v56 = vld [vmem:[%s2263_s1 + $0xc0] sm:$0xff]  }
  0x12   :  { %v1723_v50 = vld [vmem:[%s2263_s1 + $0xc8] sm:$0xff]   ;;  %v1716_v52 = vld [vmem:[%s2264_s0 + $0xa4] ss:$20 sps:$4 sm:$0xff]   ;;  %v1721_v59 = vld [vmem:[%s2264_s0 + $0xa0] ss:$20 sps:$4 sm:$0xff]  }
  0x13   :  { %1407 = vmatpush3.bf16.msra.mxu0 %v1668_v9  ;;  %1653 = vmatpush3.bf16.msra.mxu1 %v1668_v9  ;;  %v1718_v53 = vld [vmem:[%s2264_s0 + $0x194] ss:$20 sps:$4 sm:$0xff]   ;;  %v1726_v57 = vld [vmem:[%s2263_s1 + $0x80] sm:$0xff]   ;;  %v1739_v4 = vld [vmem:[%s2264_s0 + $0x5c] ss:$20 sps:$4 sm:$0xff]  }
  0x14   :  { %1408 = vmatprep.subr.bf16.mxu0 %v1669_v10  ;;  %1646 = vmatprep.subr.bf16.mxu1 %v1669_v10  ;;  %v1724_v54 = vld [vmem:[%s2263_s1 + $0x88] sm:$0xff]   ;;  %v1734_v58 = vld [vmem:[%s2263_s1 + $0x100] sm:$0xff]  }
  0x15   :  { %v1727_v55 = vld [vmem:[%s2263_s1 + $0x108] sm:$0xff]   ;;  %v1722_v60 = vld [vmem:[%s2264_s0 + $0x190] ss:$20 sps:$4 sm:$0xff]   ;;  %v1745_v8 = vld [vmem:[%s2264_s0 + $0x80] ss:$20 sps:$4 sm:$0xff]  }
  0x16   :  { %v1728_v61 = vld [vmem:[%s2264_s0 + $0xcc] ss:$20 sps:$4 sm:$0xff]   ;;  %v1730_v63 = vld [vmem:[%s2264_s0 + $0x8] ss:$20 sps:$4 sm:$0xff]   ;;  %v1737_v2 = vld [vmem:[%s2264_s0 + $0x30] ss:$20 sps:$4 sm:$0xff]  }
  0x17   :  { %1409 = vmatpush3.bf16.msra.mxu0 %v1670_v13  ;;  %1654 = vmatpush3.bf16.msra.mxu1 %v1670_v13  ;;  %v1732_v62 = vld [vmem:[%s2264_s0 + $0xc] ss:$20 sps:$4 sm:$0xff]   ;;  %v1733_v0 = vld [vmem:[%s2264_s0 + $0xc8] ss:$20 sps:$4 sm:$0xff]   ;;  %v1738_v3 = vld [vmem:[%s2264_s0 + $0x10] ss:$20 sps:$4 sm:$0xff]  }
  0x18   :  { %1410 = vmatprep.subr.bf16.mxu0 %v1671_v14  ;;  %1647 = vmatprep.subr.bf16.mxu1 %v1671_v14  ;;  %v1735_v1 = vld [vmem:[%s2264_s0 + $0x34] ss:$20 sps:$4 sm:$0xff]   ;;  %v1741_v5 = vld [vmem:[%s2264_s0 + $0x58] ss:$20 sps:$4 sm:$0xff]   ;;  %v1753_v14 = vld [vmem:[%s2264_s0 + $0xd0] ss:$20 sps:$4 sm:$0xff]  }
  0x19   :  { %v1742_v6 = vld [vmem:[%s2264_s0 + $0x38] ss:$20 sps:$4 sm:$0xff]   ;;  %v1746_v9 = vld [vmem:[%s2264_s0 + $0x60] ss:$20 sps:$4 sm:$0xff]   ;;  %v1749_v11 = vld [vmem:[%s2264_s0 + $0xa8] ss:$20 sps:$4 sm:$0xff]  }
  0x1a   :  { %v1743_v7 = vld [vmem:[%s2264_s0 + $0x84] ss:$20 sps:$4 sm:$0xff]   ;;  %v1747_v10 = vld [vmem:[%s2264_s0 + $0xac] ss:$20 sps:$4 sm:$0xff]   ;;  %v1750_v12 = vld [vmem:[%s2264_s0 + $0x88] ss:$20 sps:$4 sm:$0xff]  }
  0x1b   :  { %1411 = vmatpush3.bf16.msra.mxu0 %v1672_v15  ;;  %1655 = vmatpush3.bf16.msra.mxu1 %v1672_v15  ;;  %v1751_v13 = vld [vmem:[%s2264_s0 + $0xd4] ss:$20 sps:$4 sm:$0xff]   ;;  %v1754_v15 = vld [vmem:[%s2264_s0 + $0xb0] ss:$20 sps:$4 sm:$0xff]  }
  0x1c   :  { %1412 = vmatprep.subr.bf16.mxu0 %v1673_v16  ;;  %1648 = vmatprep.subr.bf16.mxu1 %v1673_v16  ;;  %v1755_v16 = vld [vmem:[%s2264_s0 + $0xfc] ss:$20 sps:$4 sm:$0xff]  }
  0x1f   :  { %1413 = vmatpush3.bf16.msra.mxu0 %v1674_v17  ;;  %1656 = vmatpush3.bf16.msra.mxu1 %v1674_v17  ;;  %v1757_v17 = vld [vmem:[%s2264_s0 + $0xf8] ss:$20 sps:$4 sm:$0xff]  }
  0x20   :  { %1581 = vmatprep.subr.bf16.mxu0 %v1776_v23  ;;  %1480 = vmatprep.subr.bf16.mxu1 %v1682_v19  ;;  %v1759_v19 = vld [vmem:[%s2264_s0 + $0x124] ss:$20 sps:$4 sm:$0xff]  }
  0x22   :  { %727 = vmatmul.mubr.bf16.vlgmr.msra.gmra.mxu0 %v1675_v18  ;;  %775 = vmatmul.mubr.bf16.vlgmr.msra.gmra.mxu1 %v1678_v20  ;;  %v1758_v18 = vld [vmem:[%s2264_s0 + $0xd8] ss:$20 sps:$4 sm:$0xff]   ;;  %v1761_v20 = vld [vmem:[%s2264_s0 + $0x120] ss:$20 sps:$4 sm:$0xff]  }
  0x23   :  { %1582 = vmatpush3.bf16.msra.mxu0 %v1681_v21  ;;  %1481 = vmatpush3.bf16.msra.mxu1 %v1683_v22  ;;  %v1762_v21 = vld [vmem:[%s2264_s0 + $0x100] ss:$20 sps:$4 sm:$0xff]  }
  0x24   :  { %1583 = vmatprep.subr.bf16.mxu0 %v1776_v23  ;;  %734 = vmatprep.mubr.bf16.mxu0 %v1684_v24  ;;  %v1763_v22 = vld [vmem:[%s2264_s0 + $0x14c] ss:$20 sps:$4 sm:$0xff]   ;;  %v1765_v24 = vld [vmem:[%s2264_s0 + $0x148] ss:$20 sps:$4 sm:$0xff]  }
  0x25   :  { %782 = vmatprep.mubr.bf16.mxu1 %v1686_v25  ;;  %1482 = vmatprep.subr.bf16.mxu1 %v1688_v26  ;;  %v1766_v25 = vld [vmem:[%s2264_s0 + $0x128] ss:$20 sps:$4 sm:$0xff]  }
  0x26   :  { %v1767_v26 = vld [vmem:[%s2264_s0 + $0x174] ss:$20 sps:$4 sm:$0xff]  }
  0x27   :  { %1584 = vmatpush3.bf16.msra.mxu0 %v1689_v27  ;;  %1483 = vmatpush3.bf16.msra.mxu1 %v1692_v28  ;;  %v1769_v27 = vld [vmem:[%s2264_s0 + $0x170] ss:$20 sps:$4 sm:$0xff]  }
  0x28   :  { %1484 = vmatprep.subr.bf16.mxu1 %v1693_v30  ;;  %1585 = vmatprep.subr.bf16.mxu0 %v1776_v23  ;;  %v1770_v28 = vld [vmem:[%s2264_s0 + $0x150] ss:$20 sps:$4 sm:$0xff]   ;;  %v1773_v30 = vld [vmem:[%s2264_s0 + $0x198] ss:$20 sps:$4 sm:$0xff]  }
  0x2a   :  { %735 = vmatmul.mubr.bf16.gmra.mxu0 %v1690_v29  ;;  %783 = vmatmul.mubr.bf16.gmra.mxu1 %v1691_v31  ;;  %v1771_v29 = vld [vmem:[%s2264_s0 + $0x19c] ss:$20 sps:$4 sm:$0xff]   ;;  %v1774_v31 = vld [vmem:[%s2264_s0 + $0x178] ss:$20 sps:$4 sm:$0xff]  }
  0x2b   :  { %1485 = vmatpush3.bf16.msra.mxu1 %v1694_v32  ;;  %1586 = vmatpush3.bf16.msra.mxu0 %v1695_v33  ;;  %v1775_v32 = vld [vmem:[%s2264_s0 + $0x1a0] ss:$20 sps:$4 sm:$0xff]  }
  0x2c   :  { %742 = vmatprep.mubr.bf16.mxu0 %v1696_v34  ;;  %790 = vmatprep.mubr.bf16.mxu1 %v1698_v35 }
  0x2d   :  { %1486 = vmatprep.subr.bf16.mxu1 %v1702_v36  ;;  %1587 = vmatprep.subr.bf16.mxu0 %v1776_v23 }
  0x2f   :  { %1487 = vmatpush3.bf16.msra.mxu1 %v1703_v37  ;;  %1588 = vmatpush3.bf16.msra.mxu0 %v1704_v38 }
  0x30   :  { %1488 = vmatprep.subr.bf16.mxu1 %v1705_v40  ;;  %1589 = vmatprep.subr.bf16.mxu0 %v1776_v23 }
  0x32   :  { %743 = vmatmul.mubr.bf16.gmra.mxu0 %v1700_v39  ;;  %791 = vmatmul.mubr.bf16.gmra.mxu1 %v1701_v41 }
  0x33   :  { %750 = vmatprep.mubr.bf16.mxu0 %v1706_v42  ;;  %798 = vmatprep.mubr.bf16.mxu1 %v1708_v43 }
  0x34   :  { %1489 = vmatpush3.bf16.msra.mxu1 %v1710_v44  ;;  %1590 = vmatpush3.bf16.msra.mxu0 %v1713_v45 }
  0x35   :  { %1490 = vmatprep.subr.bf16.mxu1 %v1714_v46  ;;  %1591 = vmatprep.subr.bf16.mxu0 %v1776_v23 }
  0x38   :  { %1491 = vmatpush3.bf16.msra.mxu1 %v1715_v47  ;;  %1592 = vmatpush3.bf16.msra.mxu0 %v1720_v49 }
  0x39   :  { %1492 = vmatprep.subr.bf16.mxu1 %v1723_v50  ;;  %1593 = vmatprep.subr.bf16.mxu0 %v1776_v23 }
  0x3a   :  { %751 = vmatmul.mubr.bf16.gmra.mxu0 %v1711_v48  ;;  %799 = vmatmul.mubr.bf16.gmra.mxu1 %v1712_v51 }
  0x3b   :  { %758 = vmatprep.mubr.bf16.mxu0 %v1716_v52  ;;  %806 = vmatprep.mubr.bf16.mxu1 %v1718_v53 }
  0x3c   :  { %1493 = vmatpush3.bf16.msra.mxu1 %v1724_v54  ;;  %1594 = vmatpush3.bf16.msra.mxu0 %v1727_v55 }
  0x3d   :  { %1494 = vmatprep.subr.bf16.mxu1 %v1725_v56  ;;  %1595 = vmatprep.subr.bf16.mxu0 %v1776_v23 }
  0x40   :  { %1495 = vmatpush3.bf16.msra.mxu1 %v1726_v57  ;;  %1596 = vmatpush3.bf16.msra.mxu0 %v1734_v58  ;;  %v2136_v57 = vld [vmem:[%s2265_s2] ss:$0 sm:$0xff] }
  0x42   :  { %759 = vmatmul.mubr.bf16.gmra.mxu0 %v1721_v59  ;;  %807 = vmatmul.mubr.bf16.gmra.mxu1 %v1722_v60 }
  0x43   :  { %766 = vmatprep.mubr.bf16.mxu0 %v1728_v61  ;;  %847 = vmatprep.mubr.bf16.mxu1 %v1732_v62 }
  0x4a   :  { %767 = vmatmul.mubr.bf16.gmra.mxu0 %v1733_v0  ;;  %848 = vmatmul.mubr.bf16.vlgmr.msra.gmra.mxu1 %v1730_v63 }
  0x4b   :  { %855 = vmatprep.mubr.bf16.mxu1 %v1735_v1  ;;  %1597 = vmatprep.mubr.msk.bf16.mxu0 %vm1777_vm0, %v1776_v23 }
  0x52   :  { %856 = vmatmul.mubr.bf16.gmra.mxu1 %v1737_v2  ;;  %1598 = vmatmul.mubr.bf16.vlgmr.msra.gmra.mxu0 %v1738_v3 }
  0x53   :  { %863 = vmatprep.mubr.bf16.mxu1 %v1739_v4  ;;  %1601 = vmatprep.mubr.msk.bf16.mxu0 %vm1777_vm0, %v1776_v23 }
  0x5a   :  { %864 = vmatmul.mubr.bf16.gmra.mxu1 %v1741_v5  ;;  %1602 = vmatmul.mubr.bf16.gmra.mxu0 %v1742_v6 }
  0x5b   :  { %871 = vmatprep.mubr.bf16.mxu1 %v1743_v7  ;;  %1605 = vmatprep.mubr.msk.bf16.mxu0 %vm1777_vm0, %v1776_v23 }
  0x62   :  { %872 = vmatmul.mubr.bf16.gmra.mxu1 %v1745_v8  ;;  %1606 = vmatmul.mubr.bf16.gmra.mxu0 %v1746_v9 }
  0x63   :  { %879 = vmatprep.mubr.bf16.mxu1 %v1747_v10  ;;  %1609 = vmatprep.mubr.msk.bf16.mxu0 %vm1777_vm0, %v1776_v23 }
  0x6a   :  { %880 = vmatmul.mubr.bf16.gmra.mxu1 %v1749_v11  ;;  %1610 = vmatmul.mubr.bf16.gmra.mxu0 %v1750_v12 }
  0x6b   :  { %887 = vmatprep.mubr.bf16.mxu1 %v1751_v13  ;;  %1613 = vmatprep.mubr.msk.bf16.mxu0 %vm1777_vm0, %v1776_v23 }
  0x72   :  { %888 = vmatmul.mubr.bf16.gmra.mxu1 %v1753_v14  ;;  %1614 = vmatmul.mubr.bf16.gmra.mxu0 %v1754_v15 }
  0x73   :  { %895 = vmatprep.mubr.bf16.mxu1 %v1755_v16  ;;  %1617 = vmatprep.mubr.msk.bf16.mxu0 %vm1777_vm0, %v1776_v23 }
  0x7a   :  { %896 = vmatmul.mubr.bf16.gmra.mxu1 %v1757_v17  ;;  %1618 = vmatmul.mubr.bf16.gmra.mxu0 %v1758_v18 }
  0x7b   :  { %903 = vmatprep.mubr.bf16.mxu1 %v1759_v19  ;;  %1621 = vmatprep.mubr.msk.bf16.mxu0 %vm1777_vm0, %v1776_v23 }
  0x82   :  { %904 = vmatmul.mubr.bf16.gmra.mxu1 %v1761_v20  ;;  %1622 = vmatmul.mubr.bf16.gmra.mxu0 %v1762_v21 }
  0x83   :  { %911 = vmatprep.mubr.bf16.mxu1 %v1763_v22  ;;  %1625 = vmatprep.mubr.msk.bf16.mxu0 %vm1777_vm0, %v1776_v23 }
  0x8a   :  { %912 = vmatmul.mubr.bf16.gmra.mxu1 %v1765_v24  ;;  %1626 = vmatmul.mubr.bf16.gmra.mxu0 %v1766_v25 }
  0x8b   :  { %919 = vmatprep.mubr.bf16.mxu1 %v1767_v26  ;;  %1629 = vmatprep.mubr.msk.bf16.mxu0 %vm1777_vm0, %v1776_v23 }
  0x92   :  { %920 = vmatmul.mubr.bf16.gmra.mxu1 %v1769_v27  ;;  %1630 = vmatmul.mubr.bf16.gmra.mxu0 %v1770_v28 }
  0x93   :  { %927 = vmatprep.mubr.bf16.mxu1 %v1771_v29  ;;  %1633 = vmatprep.mubr.msk.bf16.mxu0 %vm1777_vm0, %v1776_v23 }
  0x9a   :  { %928 = vmatmul.mubr.bf16.gmra.mxu1 %v1773_v30  ;;  %1634 = vmatmul.mubr.bf16.gmra.mxu0 %v1774_v31 }
  0x9b   :  { %1637 = vmatprep.mubr.msk.bf16.mxu0 %vm1777_vm0, %v1776_v23 }
  0xa2   :  { %1638 = vmatmul.mubr.bf16.gmra.mxu0 %v1775_v32 }
  0xe2   :  { %v1414_v33 = vpop.f32.mrf.mxu0  ;;  %v1450_v34 = vpop.f32.mrf.mxu1 }
  0xe4   :  { %v1415_v35 = vpop.f32.mrf.mxu0  ;;  %v1451_v36 = vpop.f32.mrf.mxu1 }
  0xe5   :  { %v2113_v37 = vadd.f32 %v1451_v36, %v1450_v34  ;;  %v1416_v30 = vadd.f32 %v1415_v35, %v1414_v33 }
  0xe6   :  { %v1417_v38 = vpop.f32.mrf.mxu0  ;;  %v1453_v39 = vpop.f32.mrf.mxu1 }
  0xe8   :  { %v1418_v40 = vpop.f32.mrf.mxu0  ;;  %v1454_v41 = vpop.f32.mrf.mxu1 }
  0xe9   :  { %v2115_v42 = vadd.f32 %v1454_v41, %v1453_v39  ;;  %v1419_v34 = vadd.f32 %v1418_v40, %v1417_v38 }
  0xea   :  { %v2117_v43 = vpop.f32.mrf.mxu0  ;;  %v1456_v23 = vpop.f32.mrf.mxu1 }
  0xec   :  { %v2119_v44 = vpop.f32.mrf.mxu0  ;;  %v1457_v45 = vpop.f32.mrf.mxu1 }
  0xed   :  { %v2121_v46 = vadd.f32 %v1457_v45, %v1456_v23  ;;  %v729_v23 = vadd.f32 %v1416_v30, %v2136_v57  ;;  %v1422_v33 = vadd.f32 %v2119_v44, %v2117_v43 }
  0xee   :  { %v2123_v47 = vpop.f32.mrf.mxu0  ;;  %v1459_v48 = vpop.f32.mrf.mxu1 }
  0xf0   :  { %v2125_v49 = vpop.f32.mrf.mxu0  ;;  %v1460_v50 = vpop.f32.mrf.mxu1 }
  0xf1   :  { %v2127_v51 = vadd.f32 %v1460_v50, %v1459_v48 }
  0xf2   :  { %v2129_v52 = vpop.f32.mrf.mxu0  ;;  %v1462_v53 = vpop.f32.mrf.mxu1 }
  0xf4   :  { %v2131_v54 = vpop.f32.mrf.mxu0  ;;  %v1463_v55 = vpop.f32.mrf.mxu1 }
  0xf5   :  { %v1464_v56 = vadd.f32 %v1463_v55, %v1462_v53  ;;  %v732_v53 = vadd.f32 %v1419_v34, %v2136_v57 }
  0xf6   :  { %v2138_v58 = vpop.f32.mrf.mxu0  ;;  %v1465_v59 = vpop.f32.mrf.mxu1 }
  0xf7   :  { %v2141_v60 = vadd.f32 %v1464_v56, %v2136_v57 }
  0xf8   :  { %v2143_v61 = vpop.f32.mrf.mxu0  ;;  %v1466_v62 = vpop.f32.mrf.mxu1 }
  0xf9   :  { %v1467_v63 = vadd.f32 %v1466_v62, %v1465_v59  ;;  %v1431_v34 = vadd.f32 %v2143_v61, %v2138_v58 }
  0xfa   :  { %v2145_v0 = vpop.f32.mrf.mxu0  ;;  %v1468_v1 = vpop.f32.mrf.mxu1 }
  0xfb   :  { %v2148_v2 = vadd.f32 %v1467_v63, %v2136_v57  ;;  %v1425_v63 = vadd.f32 %v2125_v49, %v2123_v47  ;;  %v1428_v47 = vadd.f32 %v2131_v54, %v2129_v52 }
  0xfc   :  { %v2150_v3 = vpop.f32.mrf.mxu0  ;;  %v1469_v4 = vpop.f32.mrf.mxu1 }
  0xfd   :  { %v1470_v5 = vadd.f32 %v1469_v4, %v1468_v1  ;;  %v740_v43 = vadd.f32 %v1425_v63, %v2136_v57  ;;  %v1434_v58 = vadd.f32 %v2150_v3, %v2145_v0 }
  0xfe   :  { %v2152_v6 = vpop.f32.mrf.mxu0  ;;  %v1471_v7 = vpop.f32.mrf.mxu1 }
  0xff   :  { %v2155_v8 = vadd.f32 %v1470_v5, %v2136_v57 }
 0x100   :  { %v2157_v9 = vpop.f32.mrf.mxu0  ;;  %v1472_v10 = vpop.f32.mrf.mxu1 }
 0x101   :  { %v1473_v11 = vadd.f32 %v1472_v10, %v1471_v7  ;;  %v737_v10 = vadd.f32 %v1422_v33, %v2136_v57 }
 0x102   :  { %v2159_v12 = vpop.f32.mrf.mxu0  ;;  %v1474_v13 = vpop.f32.mrf.mxu1 }
 0x103   :  { %v2162_v14 = vadd.f32 %v1473_v11, %v2136_v57 }
 0x104   :  { %v2164_v15 = vpop.f32.mrf.mxu0  ;;  %v1475_v16 = vpop.f32.mrf.mxu1 }
 0x105   :  { %v1476_v17 = vadd.f32 %v1475_v16, %v1474_v13 }
 0x106   :  { %v2166_v18 = vpop.f32.mrf.mxu0  ;;  %v1477_v19 = vpop.f32.mrf.mxu1 }
 0x107   :  { %v2169_v20 = vadd.f32 %v1476_v17, %v2136_v57 }
 0x108   :  { %v2171_v21 = vpop.f32.mrf.mxu0  ;;  %v1478_v22 = vpop.f32.mrf.mxu1 }
 0x109   :  { %v1479_v24 = vadd.f32 %v1478_v22, %v1477_v19 }
 0x10a   :  { %v2173_v25 = vpop.f32.mrf.mxu0  ;;  %v1496_v26 = vpop.f32.mrf.mxu1 }
 0x10b   :  { %v2176_v27 = vadd.f32 %v1479_v24, %v2136_v57 }
 0x10c   :  { %v2178_v28 = vpop.f32.mrf.mxu0  ;;  %v1497_v29 = vpop.f32.mrf.mxu1 }
 0x10d   :  { %v1498_v36 = vadd.f32 %v1497_v29, %v1496_v26 }
 0x10e   :  { %v2180_v31 = vpop.f32.mrf.mxu0  ;;  %v1499_v32 = vpop.f32.mrf.mxu1 }
 0x10f   :  { %v850_v55 = vadd.f32 %v1498_v36, %v729_v23 }
 0x110   :  { %v2182_v39 = vpop.f32.mrf.mxu0  ;;  %v1500_v41 = vpop.f32.mrf.mxu1 }
 0x111   :  { %v1501_v45 = vadd.f32 %v1500_v41, %v1499_v32 }
 0x112   :  { %v1502_v48 = vpop.f32.mrf.mxu1  ;;  %v970_v50 = vpop.f32.mrf.mxu0 }
 0x113   :  { %v971_v35 = vadd.f32 %v970_v50, %v850_v55  ;;  %v853_v62 = vadd.f32 %v1501_v45, %v732_v53 }
 0x114   :  { %v1503_v56 = vpop.f32.mrf.mxu1  ;;  %v1599_v59 = vpop.f32.mrf.mxu0 }
 0x115   :  { %v1504_v1 = vadd.f32 %v1503_v56, %v1502_v48  ;;  %v1057_v11 = vmax.f32 %v971_v35, 0.0  ;;  %v745_v48 = vadd.f32 %v1428_v47, %v2136_v57  ;;  %v748_v56 = vadd.f32 %v1431_v34, %v2136_v57 }
 0x116   :  { %v1505_v38 = vpop.f32.mrf.mxu1  ;;  %v973_v40 = vpop.f32.mrf.mxu0 }
 0x117   :  { %v974_v4 = vadd.f32 %v973_v40, %v853_v62  ;;  %v858_v22 = vadd.f32 %v1504_v1, %v737_v10  ;;  %v1437_v1 = vadd.f32 %v2157_v9, %v2152_v6  ;;  %v1440_v6 = vadd.f32 %v2164_v15, %v2159_v12 }
 0x118   :  { %v1506_v5 = vpop.f32.mrf.mxu1  ;;  %v1600_v7 = vpop.f32.mrf.mxu0 }
 0x119   :  { %v1058_v13 = vmax.f32 %v974_v4, 0.0  ;;  %v1507_v16 = vadd.f32 %v1506_v5, %v1505_v38 }
 0x11a   :  { %v1508_v17 = vpop.f32.mrf.mxu1  ;;  %v978_v19 = vpop.f32.mrf.mxu0 }
 0x11b   :  { %v1336_v44 = vpack.c.bf16 %v1058_v13, %v1057_v11  ;;  %v979_v49 = vadd.f32 %v978_v19, %v858_v22  ;;  %v861_v29 = vadd.f32 %v1507_v16, %v740_v43  ;;  %v753_v11 = vadd.f32 %v1434_v58, %v2136_v57 }
 0x11c   :  { %v1509_v24 = vpop.f32.mrf.mxu1  ;;  %v1603_v26 = vpop.f32.mrf.mxu0  ;;  %v756_v19 = vadd.f32 %v1437_v1, %v2136_v57 }
 0x11d   :  { %1337 = vst [vmem:[%s2266_s3] sm:$0xff] %v1336_v44   ;;  %v1510_v36 = vadd.f32 %v1509_v24, %v1508_v17  ;;  %v1059_v50 = vmax.f32 %v979_v49, 0.0 }
 0x11e   :  { %v1511_v30 = vpop.f32.mrf.mxu1  ;;  %v981_v32 = vpop.f32.mrf.mxu0 }
 0x11f   :  { %v982_v41 = vadd.f32 %v981_v32, %v861_v29  ;;  %v866_v33 = vadd.f32 %v1510_v36, %v745_v48  ;;  %v1443_v29 = vadd.f32 %v2171_v21, %v2166_v18  ;;  %v1446_v18 = vadd.f32 %v2178_v28, %v2173_v25 }
 0x120   :  { %v1512_v23 = vpop.f32.mrf.mxu1  ;;  %v1604_v45 = vpop.f32.mrf.mxu0 }
 0x121   :  { %v1060_v53 = vmax.f32 %v982_v41, 0.0  ;;  %v1513_v52 = vadd.f32 %v1512_v23, %v1511_v30  ;;  %v761_v41 = vadd.f32 %v1440_v6, %v2136_v57 }
 0x122   :  { %v1514_v54 = vpop.f32.mrf.mxu1  ;;  %v986_v55 = vpop.f32.mrf.mxu0 }
 0x123   :  { %v1341_v59 = vpack.c.bf16 %v1060_v53, %v1059_v50  ;;  %v987_v61 = vadd.f32 %v986_v55, %v866_v33  ;;  %v869_v38 = vadd.f32 %v1513_v52, %v748_v56  ;;  %v764_v50 = vadd.f32 %v1443_v29, %v2136_v57 }
 0x124   :  { %v1515_v35 = vpop.f32.mrf.mxu1  ;;  %v1607_v62 = vpop.f32.mrf.mxu0 }
 0x125   :  { %1388 = vst [vmem:[%s2266_s3 + $0x8] sm:$0xff] %v1341_v59   ;;  %v1516_v4 = vadd.f32 %v1515_v35, %v1514_v54  ;;  %v1061_v13 = vmax.f32 %v987_v61, 0.0  ;;  %v1449_v35 = vadd.f32 %v2182_v39, %v2180_v31 }
 0x126   :  { %v1517_v40 = vpop.f32.mrf.mxu1  ;;  %v989_v63 = vpop.f32.mrf.mxu0 }
 0x127   :  { %v990_v5 = vadd.f32 %v989_v63, %v869_v38  ;;  %v874_v44 = vadd.f32 %v1516_v4, %v753_v11 }
 0x128   :  { %v1518_v7 = vpop.f32.mrf.mxu1  ;;  %v1608_v10 = vpop.f32.mrf.mxu0 }
 0x129   :  { %v1062_v16 = vmax.f32 %v990_v5, 0.0  ;;  %v1519_v0 = vadd.f32 %v1518_v7, %v1517_v40  ;;  %v769_v40 = vadd.f32 %v1446_v18, %v2136_v57  ;;  %v772_v5 = vadd.f32 %v1449_v35, %v2136_v57 }
 0x12a   :  { %v1520_v3 = vpop.f32.mrf.mxu1  ;;  %v994_v17 = vpop.f32.mrf.mxu0 }
 0x12b   :  { %v1346_v43 = vpack.c.bf16 %v1062_v16, %v1061_v13  ;;  %v995_v9 = vadd.f32 %v994_v17, %v874_v44  ;;  %v877_v26 = vadd.f32 %v1519_v0, %v756_v19  ;;  %v777_v44 = vadd.f32 %v2113_v37, %v2136_v57 }
 0x12c   :  { %v1521_v22 = vpop.f32.mrf.mxu1  ;;  %v1611_v24 = vpop.f32.mrf.mxu0 }
 0x12d   :  { %1389 = vst [vmem:[%s2266_s3 + $0x10] sm:$0xff] %v1346_v43   ;;  %v1522_v30 = vadd.f32 %v1521_v22, %v1520_v3  ;;  %v1063_v23 = vmax.f32 %v995_v9, 0.0 }
 0x12e   :  { %v1523_v47 = vpop.f32.mrf.mxu1  ;;  %v997_v49 = vpop.f32.mrf.mxu0 }
 0x12f   :  { %v998_v32 = vadd.f32 %v997_v49, %v877_v26  ;;  %v882_v52 = vadd.f32 %v1522_v30, %v761_v41 }
 0x130   :  { %v1524_v34 = vpop.f32.mrf.mxu1  ;;  %v1612_v36 = vpop.f32.mrf.mxu0 }
 0x131   :  { %v1064_v45 = vmax.f32 %v998_v32, 0.0  ;;  %v1525_v12 = vadd.f32 %v1524_v34, %v1523_v47  ;;  %v780_v47 = vadd.f32 %v2115_v42, %v2136_v57 }
 0x132   :  { %v1526_v15 = vpop.f32.mrf.mxu1  ;;  %v1002_v48 = vpop.f32.mrf.mxu0 }
 0x133   :  { %v1351_v53 = vpack.c.bf16 %v1064_v45, %v1063_v23  ;;  %v1003_v21 = vadd.f32 %v1002_v48, %v882_v52  ;;  %v885_v56 = vadd.f32 %v1525_v12, %v764_v50  ;;  %v785_v48 = vadd.f32 %v2121_v46, %v2136_v57 }
 0x134   :  { %v1527_v54 = vpop.f32.mrf.mxu1  ;;  %v1615_v55 = vpop.f32.mrf.mxu0 }
 0x135   :  { %1390 = vst [vmem:[%s2266_s3 + $0x18] sm:$0xff] %v1351_v53   ;;  %v1528_v62 = vadd.f32 %v1527_v54, %v1526_v15  ;;  %v1065_v63 = vmax.f32 %v1003_v21, 0.0  ;;  %v788_v55 = vadd.f32 %v2127_v51, %v2136_v57 }
 0x136   :  { %v1529_v59 = vpop.f32.mrf.mxu1  ;;  %v1005_v33 = vpop.f32.mrf.mxu0 }
 0x137   :  { %v1006_v58 = vadd.f32 %v1005_v33, %v885_v56  ;;  %v890_v10 = vadd.f32 %v1528_v62, %v769_v40 }
 0x138   :  { %v1530_v61 = vpop.f32.mrf.mxu1  ;;  %v1616_v38 = vpop.f32.mrf.mxu0 }
 0x139   :  { %v1066_v1 = vmax.f32 %v1006_v58, 0.0  ;;  %v1531_v25 = vadd.f32 %v1530_v61, %v1529_v59 }
 0x13a   :  { %v1532_v28 = vpop.f32.mrf.mxu1  ;;  %v1010_v4 = vpop.f32.mrf.mxu0 }
 0x13b   :  { %v1356_v7 = vpack.c.bf16 %v1066_v1, %v1065_v63  ;;  %v1011_v31 = vadd.f32 %v1010_v4, %v890_v10  ;;  %v893_v39 = vadd.f32 %v1531_v25, %v772_v5 }
 0x13c   :  { %v1533_v11 = vpop.f32.mrf.mxu1  ;;  %v1619_v13 = vpop.f32.mrf.mxu0 }
 0x13d   :  { %1391 = vst [vmem:[%s2266_s3 + $0x20] sm:$0xff] %v1356_v7   ;;  %v1534_v3 = vadd.f32 %v1533_v11, %v1532_v28  ;;  %v1067_v22 = vmax.f32 %v1011_v31, 0.0 }
 0x13e   :  { %v1535_v16 = vpop.f32.mrf.mxu1  ;;  %v1013_v0 = vpop.f32.mrf.mxu0 }
 0x13f   :  { %v1014_v17 = vadd.f32 %v1013_v0, %v893_v39  ;;  %v898_v29 = vadd.f32 %v1534_v3, %v777_v44 }
 0x140   :  { %v1536_v19 = vpop.f32.mrf.mxu1  ;;  %v1620_v43 = vpop.f32.mrf.mxu0 }
 0x141   :  { %v1068_v24 = vmax.f32 %v1014_v17, 0.0  ;;  %v1537_v6 = vadd.f32 %v1536_v19, %v1535_v16 }
 0x142   :  { %v1538_v9 = vpop.f32.mrf.mxu1  ;;  %v1018_v26 = vpop.f32.mrf.mxu0 }
 0x143   :  { %v1361_v49 = vpack.c.bf16 %v1068_v24, %v1067_v22  ;;  %v1019_v34 = vadd.f32 %v1018_v26, %v898_v29  ;;  %v901_v36 = vadd.f32 %v1537_v6, %v780_v47 }
 0x144   :  { %v1539_v30 = vpop.f32.mrf.mxu1  ;;  %v1623_v32 = vpop.f32.mrf.mxu0 }
 0x145   :  { %1392 = vst [vmem:[%s2266_s3 + $0x28] sm:$0xff] %v1361_v49   ;;  %v1540_v23 = vadd.f32 %v1539_v30, %v1538_v9  ;;  %v1069_v42 = vmax.f32 %v1019_v34, 0.0 }
 0x146   :  { %v1541_v41 = vpop.f32.mrf.mxu1  ;;  %v1021_v37 = vpop.f32.mrf.mxu0 }
 0x147   :  { %v1022_v45 = vadd.f32 %v1021_v37, %v901_v36  ;;  %v906_v21 = vadd.f32 %v1540_v23, %v785_v48 }
 0x148   :  { %v1542_v12 = vpop.f32.mrf.mxu1  ;;  %v1624_v15 = vpop.f32.mrf.mxu0 }
 0x149   :  { %v1070_v50 = vmax.f32 %v1022_v45, 0.0  ;;  %v1543_v53 = vadd.f32 %v1542_v12, %v1541_v41 }
 0x14a   :  { %v1544_v52 = vpop.f32.mrf.mxu1  ;;  %v1026_v54 = vpop.f32.mrf.mxu0 }
 0x14b   :  { %v1366_v18 = vpack.c.bf16 %v1070_v50, %v1069_v42  ;;  %v1027_v33 = vadd.f32 %v1026_v54, %v906_v21  ;;  %v909_v35 = vadd.f32 %v1543_v53, %v788_v55 }
 0x14c   :  { %v1545_v56 = vpop.f32.mrf.mxu1  ;;  %v1627_v59 = vpop.f32.mrf.mxu0 }
 0x14d   :  { %1393 = vst [vmem:[%s2266_s3 + $0x30] sm:$0xff] %v1366_v18   ;;  %v1546_v58 = vadd.f32 %v1545_v56, %v1544_v52  ;;  %v1071_v63 = vmax.f32 %v1027_v33, 0.0 }
 0x14e   :  { %v1547_v62 = vpop.f32.mrf.mxu1  ;;  %v1029_v46 = vpop.f32.mrf.mxu0 }
 0x14f   :  { %v1030_v61 = vadd.f32 %v1029_v46, %v909_v35  ;;  %v914_v4 = vadd.f32 %v1546_v58, %v2141_v60 }
 0x150   :  { %v1548_v38 = vpop.f32.mrf.mxu1  ;;  %v1628_v40 = vpop.f32.mrf.mxu0 }
 0x151   :  { %v1072_v1 = vmax.f32 %v1030_v61, 0.0  ;;  %v1549_v25 = vadd.f32 %v1548_v38, %v1547_v62 }
 0x152   :  { %v1550_v51 = vpop.f32.mrf.mxu1  ;;  %v1034_v57 = vpop.f32.mrf.mxu0 }
 0x153   :  { %v1371_v28 = vpack.c.bf16 %v1072_v1, %v1071_v63  ;;  %v1035_v10 = vadd.f32 %v1034_v57, %v914_v4  ;;  %v917_v11 = vadd.f32 %v1549_v25, %v2148_v2 }
 0x154   :  { %v1551_v5 = vpop.f32.mrf.mxu1  ;;  %v1631_v7 = vpop.f32.mrf.mxu0 }
 0x155   :  { %1394 = vst [vmem:[%s2266_s3 + $0x38] sm:$0xff] %v1371_v28   ;;  %v1552_v39 = vadd.f32 %v1551_v5, %v1550_v51  ;;  %v1073_v17 = vmax.f32 %v1035_v10, 0.0 }
 0x156   :  { %v1553_v13 = vpop.f32.mrf.mxu1  ;;  %v1037_v31 = vpop.f32.mrf.mxu0 }
 0x157   :  { %v1038_v16 = vadd.f32 %v1037_v31, %v917_v11  ;;  %v922_v24 = vadd.f32 %v1552_v39, %v2155_v8 }
 0x158   :  { %v1554_v0 = vpop.f32.mrf.mxu1  ;;  %v1632_v3 = vpop.f32.mrf.mxu0 }
 0x159   :  { %v1074_v19 = vmax.f32 %v1038_v16, 0.0  ;;  %v1555_v43 = vadd.f32 %v1554_v0, %v1553_v13 }
 0x15a   :  { %v1556_v44 = vpop.f32.mrf.mxu1  ;;  %v1042_v60 = vpop.f32.mrf.mxu0 }
 0x15b   :  { %v1376_v22 = vpack.c.bf16 %v1074_v19, %v1073_v17  ;;  %v1043_v2 = vadd.f32 %v1042_v60, %v922_v24  ;;  %v925_v26 = vadd.f32 %v1555_v43, %v2162_v14 }
 0x15c   :  { %v1557_v6 = vpop.f32.mrf.mxu1  ;;  %v1635_v9 = vpop.f32.mrf.mxu0 }
 0x15d   :  { %1395 = vst [vmem:[%s2266_s3 + $0x40] sm:$0xff] %v1376_v22   ;;  %v1558_v29 = vadd.f32 %v1557_v6, %v1556_v44  ;;  %v1075_v36 = vmax.f32 %v1043_v2, 0.0 }
 0x15e   :  { %v1559_v47 = vpop.f32.mrf.mxu1  ;;  %v1045_v49 = vpop.f32.mrf.mxu0 }
 0x15f   :  { %v1046_v30 = vadd.f32 %v1045_v49, %v925_v26  ;;  %v930_v45 = vadd.f32 %v1558_v29, %v2169_v20 }
 0x160   :  { %v1560_v32 = vpop.f32.mrf.mxu1  ;;  %v1636_v34 = vpop.f32.mrf.mxu0 }
 0x161   :  { %v1076_v41 = vmax.f32 %v1046_v30, 0.0  ;;  %v1561_v37 = vadd.f32 %v1560_v32, %v1559_v47 }
 0x162   :  { %v1050_v23 = vpop.f32.mrf.mxu0 }
 0x163   :  { %v1381_v8 = vpack.c.bf16 %v1076_v41, %v1075_v36  ;;  %v1051_v15 = vadd.f32 %v1050_v23, %v930_v45  ;;  %v933_v14 = vadd.f32 %v1561_v37, %v2176_v27 }
 0x164   :  { %v1639_v12 = vpop.f32.mrf.mxu0 }
 0x165   :  { %1396 = vst [vmem:[%s2266_s3 + $0x48] sm:$0xff] %v1381_v8   ;;  %v1077_v53 = vmax.f32 %v1051_v15, 0.0 }
 0x166   :  { %v1053_v48 = vpop.f32.mrf.mxu0 }
 0x167   :  { %v1054_v42 = vadd.f32 %v1053_v48, %v933_v14 }
 0x168   :  { %v1640_v50 = vpop.f32.mrf.mxu0 }
 0x169   :  { %v1078_v52 = vmax.f32 %v1054_v42, 0.0 }
 0x16b   :  { %v1386_v54 = vpack.c.bf16 %v1078_v52, %v1077_v53 }
 0x16d   :  { %1397 = vst [vmem:[%s2266_s3 + $0x50] sm:$0xff] %v1386_v54  }

// kernel: policy_forward.7
= control target key start
LH: loop header
LB: loop body
LE: loop exit
PB: predicated region body
PF: predicated region fallthrough
CT: control target
= control target key end

     0   :  { %s18613_s1 = inlined_call_operand.vmem [shape: bf16[5248,512], index: 1, kind: input, shape index: {}]   ;;  %s18614_s0 = inlined_call_operand.vmem [shape: bf16[16,5248], index: 0, kind: input, shape index: {}]   ;;  %s18615_s2 = inlined_call_operand.vmem [shape: f32[1,512], index: 2, kind: input, shape index: {}]   ;;  %s18616_s3 = inlined_call_operand.vmem [shape: bf16[512,128], index: 3, kind: input, shape index: {}]   ;;  %s18617_s4 = inlined_call_operand.vmem [shape: f32[1,128], index: 4, kind: input, shape index: {}]   ;;  %s18618_s5 = inlined_call_operand.vmem [shape: f32[16,128], index: 5, kind: output, shape index: {}]  }
   0x1   :  { %v11781_v0 = vld [vmem:[%s18613_s1 + $0xe4] ss:$16 sps:$4 sm:$0xff]   ;;  %v11785_v2 = vld [vmem:[%s18613_s1 + $0xe0] ss:$16 sps:$4 sm:$0xff]  }
   0x2   :  { %v11783_v1 = vld [vmem:[%s18613_s1 + $0x2e4] ss:$16 sps:$4 sm:$0xff]   ;;  %8163 = vmatprep.subr.bf16.mxu0 %v11781_v0  ;;  %v11786_v3 = vld [vmem:[%s18613_s1 + $0x2e0] ss:$16 sps:$4 sm:$0xff]  }
   0x3   :  { %8206 = vmatprep.subr.bf16.mxu1 %v11783_v1  ;;  %v11787_v4 = vld [vmem:[%s18613_s1 + $0xc4] ss:$16 sps:$4 sm:$0xff]   ;;  %8164 = vmatpush1.bf16.msra.mxu0 %v11785_v2  ;;  %v11791_v6 = vld [vmem:[%s18613_s1 + $0xc0] ss:$16 sps:$4 sm:$0xff]  }
   0x4   :  { %8207 = vmatpush1.bf16.msra.mxu1 %v11786_v3  ;;  %v11789_v5 = vld [vmem:[%s18613_s1 + $0x2c4] ss:$16 sps:$4 sm:$0xff]   ;;  %8165 = vmatprep.subr.bf16.mxu0 %v11787_v4  ;;  %v11792_v7 = vld [vmem:[%s18613_s1 + $0x2c0] ss:$16 sps:$4 sm:$0xff]  }
   0x5   :  { %8208 = vmatprep.subr.bf16.mxu1 %v11789_v5  ;;  %v11793_v8 = vld [vmem:[%s18613_s1 + $0xa4] ss:$16 sps:$4 sm:$0xff]   ;;  %v11797_v10 = vld [vmem:[%s18613_s1 + $0xa0] ss:$16 sps:$4 sm:$0xff]   ;;  %v11880_v5 = vld [vmem:[%s18614_s0 + $0x8] ss:$164 sps:$4 sm:$0xff]  }
   0x6   :  { %v11795_v9 = vld [vmem:[%s18613_s1 + $0x2a4] ss:$16 sps:$4 sm:$0xff]   ;;  %v11798_v11 = vld [vmem:[%s18613_s1 + $0x2a0] ss:$16 sps:$4 sm:$0xff]  }
   0x7   :  { %8166 = vmatpush1.bf16.msra.mxu0 %v11791_v6  ;;  %v11799_v12 = vld [vmem:[%s18613_s1 + $0x84] ss:$16 sps:$4 sm:$0xff]   ;;  %v11803_v14 = vld [vmem:[%s18613_s1 + $0x80] ss:$16 sps:$4 sm:$0xff]  }
   0x8   :  { %8209 = vmatpush1.bf16.msra.mxu1 %v11792_v7  ;;  %8167 = vmatprep.subr.bf16.mxu0 %v11793_v8  ;;  %v11801_v13 = vld [vmem:[%s18613_s1 + $0x284] ss:$16 sps:$4 sm:$0xff]   ;;  %v11804_v15 = vld [vmem:[%s18613_s1 + $0x280] ss:$16 sps:$4 sm:$0xff]  }
   0x9   :  { %8210 = vmatprep.subr.bf16.mxu1 %v11795_v9  ;;  %v11805_v16 = vld [vmem:[%s18613_s1 + $0x64] ss:$16 sps:$4 sm:$0xff]   ;;  %v11809_v18 = vld [vmem:[%s18613_s1 + $0x60] ss:$16 sps:$4 sm:$0xff]  }
   0xa   :  { %v11807_v17 = vld [vmem:[%s18613_s1 + $0x264] ss:$16 sps:$4 sm:$0xff]   ;;  %v11810_v19 = vld [vmem:[%s18613_s1 + $0x260] ss:$16 sps:$4 sm:$0xff]  }
   0xb   :  { %8168 = vmatpush1.bf16.msra.mxu0 %v11797_v10  ;;  %v11811_v20 = vld [vmem:[%s18613_s1 + $0x44] ss:$16 sps:$4 sm:$0xff]   ;;  %v11815_v22 = vld [vmem:[%s18613_s1 + $0x40] ss:$16 sps:$4 sm:$0xff]  }
   0xc   :  { %8211 = vmatpush1.bf16.msra.mxu1 %v11798_v11  ;;  %8169 = vmatprep.subr.bf16.mxu0 %v11799_v12  ;;  %v11813_v21 = vld [vmem:[%s18613_s1 + $0x244] ss:$16 sps:$4 sm:$0xff]   ;;  %v11816_v23 = vld [vmem:[%s18613_s1 + $0x240] ss:$16 sps:$4 sm:$0xff]  }
   0xd   :  { %8212 = vmatprep.subr.bf16.mxu1 %v11801_v13  ;;  %v11817_v24 = vld [vmem:[%s18613_s1 + $0x24] ss:$16 sps:$4 sm:$0xff]   ;;  %v11821_v26 = vld [vmem:[%s18613_s1 + $0x20] ss:$16 sps:$4 sm:$0xff]  }
   0xe   :  { %v11819_v25 = vld [vmem:[%s18613_s1 + $0x224] ss:$16 sps:$4 sm:$0xff]   ;;  %v11822_v27 = vld [vmem:[%s18613_s1 + $0x220] ss:$16 sps:$4 sm:$0xff]  }
   0xf   :  { %8170 = vmatpush1.bf16.msra.mxu0 %v11803_v14  ;;  %v11823_v28 = vld [vmem:[%s18613_s1 + $0x4] ss:$16 sps:$4 sm:$0xff]   ;;  %v11827_v30 = vld [vmem:[%s18613_s1] ss:$16 sps:$4 sm:$0xff]  }
  0x10   :  { %8213 = vmatpush1.bf16.msra.mxu1 %v11804_v15  ;;  %8171 = vmatprep.subr.bf16.mxu0 %v11805_v16  ;;  %v11825_v29 = vld [vmem:[%s18613_s1 + $0x204] ss:$16 sps:$4 sm:$0xff]   ;;  %v11828_v31 = vld [vmem:[%s18613_s1 + $0x200] ss:$16 sps:$4 sm:$0xff]  }
  0x11   :  { %8214 = vmatprep.subr.bf16.mxu1 %v11807_v17  ;;  %v11829_v32 = vld [vmem:[%s18613_s1 + $0x1e4] ss:$16 sps:$4 sm:$0xff]   ;;  %v11833_v34 = vld [vmem:[%s18613_s1 + $0x1e0] ss:$16 sps:$4 sm:$0xff]  }
  0x12   :  { %v11831_v33 = vld [vmem:[%s18613_s1 + $0x3e4] ss:$16 sps:$4 sm:$0xff]   ;;  %v11834_v35 = vld [vmem:[%s18613_s1 + $0x3e0] ss:$16 sps:$4 sm:$0xff]  }
  0x13   :  { %8172 = vmatpush1.bf16.msra.mxu0 %v11809_v18  ;;  %v11835_v36 = vld [vmem:[%s18613_s1 + $0x1c4] ss:$16 sps:$4 sm:$0xff]   ;;  %v11839_v38 = vld [vmem:[%s18613_s1 + $0x1c0] ss:$16 sps:$4 sm:$0xff]  }
  0x14   :  { %8215 = vmatpush1.bf16.msra.mxu1 %v11810_v19  ;;  %8173 = vmatprep.subr.bf16.mxu0 %v11811_v20  ;;  %v11837_v37 = vld [vmem:[%s18613_s1 + $0x3c4] ss:$16 sps:$4 sm:$0xff]   ;;  %v11840_v39 = vld [vmem:[%s18613_s1 + $0x3c0] ss:$16 sps:$4 sm:$0xff]  }
  0x15   :  { %8216 = vmatprep.subr.bf16.mxu1 %v11813_v21  ;;  %v11841_v40 = vld [vmem:[%s18613_s1 + $0x1a4] ss:$16 sps:$4 sm:$0xff]   ;;  %v11845_v42 = vld [vmem:[%s18613_s1 + $0x1a0] ss:$16 sps:$4 sm:$0xff]  }
  0x16   :  { %v11843_v41 = vld [vmem:[%s18613_s1 + $0x3a4] ss:$16 sps:$4 sm:$0xff]   ;;  %v11846_v43 = vld [vmem:[%s18613_s1 + $0x3a0] ss:$16 sps:$4 sm:$0xff]  }
  0x17   :  { %8174 = vmatpush1.bf16.msra.mxu0 %v11815_v22  ;;  %v11847_v44 = vld [vmem:[%s18613_s1 + $0x184] ss:$16 sps:$4 sm:$0xff]   ;;  %v11851_v46 = vld [vmem:[%s18613_s1 + $0x180] ss:$16 sps:$4 sm:$0xff]  }
  0x18   :  { %8217 = vmatpush1.bf16.msra.mxu1 %v11816_v23  ;;  %8175 = vmatprep.subr.bf16.mxu0 %v11817_v24  ;;  %v11849_v45 = vld [vmem:[%s18613_s1 + $0x384] ss:$16 sps:$4 sm:$0xff]   ;;  %v11852_v47 = vld [vmem:[%s18613_s1 + $0x380] ss:$16 sps:$4 sm:$0xff]  }
  0x19   :  { %8218 = vmatprep.subr.bf16.mxu1 %v11819_v25  ;;  %v11853_v48 = vld [vmem:[%s18613_s1 + $0x164] ss:$16 sps:$4 sm:$0xff]   ;;  %v11882_v51 = vld [vmem:[%s18614_s0 + $0xc] ss:$164 sps:$4 sm:$0xff]  }
  0x1a   :  { %v11879_v49 = vld [vmem:[%s18614_s0 + $0x4] ss:$164 sps:$4 sm:$0xff]   ;;  %v11857_v52 = vld [vmem:[%s18613_s1 + $0x160] ss:$16 sps:$4 sm:$0xff]   ;;  %8238 = vmatprep.mubr.bf16.mxu1 %v11882_v51 }
  0x1b   :  { %8176 = vmatpush1.bf16.msra.mxu0 %v11821_v26  ;;  %v11855_v50 = vld [vmem:[%s18613_s1 + $0x364] ss:$16 sps:$4 sm:$0xff]   ;;  %8195 = vmatprep.mubr.bf16.mxu0 %v11879_v49  ;;  %v11858_v53 = vld [vmem:[%s18613_s1 + $0x360] ss:$16 sps:$4 sm:$0xff]  }
  0x1c   :  { %8219 = vmatpush1.bf16.msra.mxu1 %v11822_v27  ;;  %8177 = vmatprep.subr.bf16.mxu0 %v11823_v28  ;;  %v11859_v54 = vld [vmem:[%s18613_s1 + $0x144] ss:$16 sps:$4 sm:$0xff]   ;;  %v11863_v56 = vld [vmem:[%s18613_s1 + $0x140] ss:$16 sps:$4 sm:$0xff]  }
  0x1d   :  { %8220 = vmatprep.subr.bf16.mxu1 %v11825_v29  ;;  %v11861_v55 = vld [vmem:[%s18613_s1 + $0x344] ss:$16 sps:$4 sm:$0xff]   ;;  %v11864_v57 = vld [vmem:[%s18613_s1 + $0x340] ss:$16 sps:$4 sm:$0xff]  }
  0x1e   :  { %v11865_v58 = vld [vmem:[%s18613_s1 + $0x124] ss:$16 sps:$4 sm:$0xff]   ;;  %v11869_v60 = vld [vmem:[%s18613_s1 + $0x120] ss:$16 sps:$4 sm:$0xff]  }
  0x1f   :  { %8178 = vmatpush1.bf16.msra.mxu0 %v11827_v30  ;;  %v11867_v59 = vld [vmem:[%s18613_s1 + $0x324] ss:$16 sps:$4 sm:$0xff]   ;;  %v11870_v61 = vld [vmem:[%s18613_s1 + $0x320] ss:$16 sps:$4 sm:$0xff]  }
  0x20   :  { %8221 = vmatpush1.bf16.msra.mxu1 %v11828_v31  ;;  %8179 = vmatprep.subr.bf16.mxu0 %v11829_v32  ;;  %v11871_v62 = vld [vmem:[%s18613_s1 + $0x104] ss:$16 sps:$4 sm:$0xff]   ;;  %v11875_v0 = vld [vmem:[%s18613_s1 + $0x100] ss:$16 sps:$4 sm:$0xff]  }
  0x21   :  { %8222 = vmatprep.subr.bf16.mxu1 %v11831_v33  ;;  %v11873_v63 = vld [vmem:[%s18613_s1 + $0x304] ss:$16 sps:$4 sm:$0xff]   ;;  %v11876_v1 = vld [vmem:[%s18613_s1 + $0x300] ss:$16 sps:$4 sm:$0xff]  }
  0x22   :  { %v11885_v2 = vld [vmem:[%s18613_s1 + $0x4e4] ss:$16 sps:$4 sm:$0xff]   ;;  %v11883_v6 = vld [vmem:[%s18613_s1 + $0x4e0] ss:$16 sps:$4 sm:$0xff]  }
  0x23   :  { %8180 = vmatpush2.bf16.msra.mxu0 %v11833_v34  ;;  %v11888_v3 = vld [vmem:[%s18613_s1 + $0x6e4] ss:$16 sps:$4 sm:$0xff]   ;;  %v11886_v7 = vld [vmem:[%s18613_s1 + $0x6e0] ss:$16 sps:$4 sm:$0xff]  }
  0x24   :  { %8223 = vmatpush2.bf16.msra.mxu1 %v11834_v35  ;;  %8181 = vmatprep.subr.bf16.mxu0 %v11835_v36  ;;  %v11877_v4 = vld [vmem:[%s18614_s0] ss:$164 sps:$4 sm:$0xff]   ;;  %v11981_v34 = vld [vmem:[%s18614_s0 + $0x14] ss:$164 sps:$4 sm:$0xff]  }
  0x25   :  { %8224 = vmatprep.subr.bf16.mxu1 %v11837_v37  ;;  %v11891_v8 = vld [vmem:[%s18613_s1 + $0x4c4] ss:$16 sps:$4 sm:$0xff]   ;;  %v11889_v10 = vld [vmem:[%s18613_s1 + $0x4c0] ss:$16 sps:$4 sm:$0xff]  }
  0x26   :  { %v11894_v9 = vld [vmem:[%s18613_s1 + $0x6c4] ss:$16 sps:$4 sm:$0xff]   ;;  %v11892_v11 = vld [vmem:[%s18613_s1 + $0x6c0] ss:$16 sps:$4 sm:$0xff]  }
  0x27   :  { %8182 = vmatpush2.bf16.msra.mxu0 %v11839_v38  ;;  %v11897_v12 = vld [vmem:[%s18613_s1 + $0x4a4] ss:$16 sps:$4 sm:$0xff]   ;;  %v11895_v14 = vld [vmem:[%s18613_s1 + $0x4a0] ss:$16 sps:$4 sm:$0xff]  }
  0x28   :  { %8225 = vmatpush2.bf16.msra.mxu1 %v11840_v39  ;;  %8183 = vmatprep.subr.bf16.mxu0 %v11841_v40  ;;  %v11900_v13 = vld [vmem:[%s18613_s1 + $0x6a4] ss:$16 sps:$4 sm:$0xff]   ;;  %v11898_v15 = vld [vmem:[%s18613_s1 + $0x6a0] ss:$16 sps:$4 sm:$0xff]  }
  0x29   :  { %8226 = vmatprep.subr.bf16.mxu1 %v11843_v41  ;;  %v11903_v16 = vld [vmem:[%s18613_s1 + $0x484] ss:$16 sps:$4 sm:$0xff]   ;;  %v11901_v18 = vld [vmem:[%s18613_s1 + $0x480] ss:$16 sps:$4 sm:$0xff]  }
  0x2a   :  { %v11906_v17 = vld [vmem:[%s18613_s1 + $0x684] ss:$16 sps:$4 sm:$0xff]   ;;  %v11904_v19 = vld [vmem:[%s18613_s1 + $0x680] ss:$16 sps:$4 sm:$0xff]  }
  0x2b   :  { %8184 = vmatpush2.bf16.msra.mxu0 %v11845_v42  ;;  %v11909_v20 = vld [vmem:[%s18613_s1 + $0x464] ss:$16 sps:$4 sm:$0xff]   ;;  %v11907_v22 = vld [vmem:[%s18613_s1 + $0x460] ss:$16 sps:$4 sm:$0xff]  }
  0x2c   :  { %8227 = vmatpush2.bf16.msra.mxu1 %v11846_v43  ;;  %8185 = vmatprep.subr.bf16.mxu0 %v11847_v44  ;;  %v11912_v21 = vld [vmem:[%s18613_s1 + $0x664] ss:$16 sps:$4 sm:$0xff]   ;;  %v11910_v23 = vld [vmem:[%s18613_s1 + $0x660] ss:$16 sps:$4 sm:$0xff]  }
  0x2d   :  { %8228 = vmatprep.subr.bf16.mxu1 %v11849_v45  ;;  %v11915_v24 = vld [vmem:[%s18613_s1 + $0x444] ss:$16 sps:$4 sm:$0xff]   ;;  %v11913_v26 = vld [vmem:[%s18613_s1 + $0x440] ss:$16 sps:$4 sm:$0xff]  }
  0x2e   :  { %v11918_v25 = vld [vmem:[%s18613_s1 + $0x644] ss:$16 sps:$4 sm:$0xff]   ;;  %v11916_v27 = vld [vmem:[%s18613_s1 + $0x640] ss:$16 sps:$4 sm:$0xff]  }
  0x2f   :  { %8186 = vmatpush2.bf16.msra.mxu0 %v11851_v46  ;;  %v11921_v28 = vld [vmem:[%s18613_s1 + $0x424] ss:$16 sps:$4 sm:$0xff]   ;;  %v11919_v30 = vld [vmem:[%s18613_s1 + $0x420] ss:$16 sps:$4 sm:$0xff]  }
  0x30   :  { %8229 = vmatpush2.bf16.msra.mxu1 %v11852_v47  ;;  %8187 = vmatprep.subr.bf16.mxu0 %v11853_v48  ;;  %v11924_v29 = vld [vmem:[%s18613_s1 + $0x624] ss:$16 sps:$4 sm:$0xff]   ;;  %v11922_v31 = vld [vmem:[%s18613_s1 + $0x620] ss:$16 sps:$4 sm:$0xff]  }
  0x31   :  { %8230 = vmatprep.subr.bf16.mxu1 %v11855_v50  ;;  %v11927_v32 = vld [vmem:[%s18613_s1 + $0x404] ss:$16 sps:$4 sm:$0xff]   ;;  %v11984_v35 = vld [vmem:[%s18614_s0 + $0x1c] ss:$164 sps:$4 sm:$0xff]  }
  0x32   :  { %v11930_v33 = vld [vmem:[%s18613_s1 + $0x604] ss:$16 sps:$4 sm:$0xff]   ;;  %v11925_v36 = vld [vmem:[%s18613_s1 + $0x400] ss:$16 sps:$4 sm:$0xff]  }
  0x33   :  { %8188 = vmatpush2.bf16.msra.mxu0 %v11857_v52  ;;  %v11928_v37 = vld [vmem:[%s18613_s1 + $0x600] ss:$16 sps:$4 sm:$0xff]   ;;  %v11933_v38 = vld [vmem:[%s18613_s1 + $0x5e4] ss:$16 sps:$4 sm:$0xff]  }
  0x34   :  { %8231 = vmatpush2.bf16.msra.mxu1 %v11858_v53  ;;  %8189 = vmatprep.subr.bf16.mxu0 %v11859_v54  ;;  %v11936_v39 = vld [vmem:[%s18613_s1 + $0x7e4] ss:$16 sps:$4 sm:$0xff]   ;;  %v11931_v40 = vld [vmem:[%s18613_s1 + $0x5e0] ss:$16 sps:$4 sm:$0xff]  }
  0x35   :  { %8232 = vmatprep.subr.bf16.mxu1 %v11861_v55  ;;  %v11934_v41 = vld [vmem:[%s18613_s1 + $0x7e0] ss:$16 sps:$4 sm:$0xff]   ;;  %v11939_v42 = vld [vmem:[%s18613_s1 + $0x5c4] ss:$16 sps:$4 sm:$0xff]  }
  0x36   :  { %v11942_v43 = vld [vmem:[%s18613_s1 + $0x7c4] ss:$16 sps:$4 sm:$0xff]   ;;  %v11937_v44 = vld [vmem:[%s18613_s1 + $0x5c0] ss:$16 sps:$4 sm:$0xff]  }
  0x37   :  { %8190 = vmatpush2.bf16.msra.mxu0 %v11863_v56  ;;  %v11940_v45 = vld [vmem:[%s18613_s1 + $0x7c0] ss:$16 sps:$4 sm:$0xff]   ;;  %v11945_v46 = vld [vmem:[%s18613_s1 + $0x5a4] ss:$16 sps:$4 sm:$0xff]  }
  0x38   :  { %8233 = vmatpush2.bf16.msra.mxu1 %v11864_v57  ;;  %8191 = vmatprep.subr.bf16.mxu0 %v11865_v58  ;;  %v11948_v47 = vld [vmem:[%s18613_s1 + $0x7a4] ss:$16 sps:$4 sm:$0xff]   ;;  %v11943_v48 = vld [vmem:[%s18613_s1 + $0x5a0] ss:$16 sps:$4 sm:$0xff]  }
  0x39   :  { %8234 = vmatprep.subr.bf16.mxu1 %v11867_v59  ;;  %v11946_v49 = vld [vmem:[%s18613_s1 + $0x7a0] ss:$16 sps:$4 sm:$0xff]   ;;  %v11951_v50 = vld [vmem:[%s18613_s1 + $0x584] ss:$16 sps:$4 sm:$0xff]  }
  0x3a   :  { %v11954_v51 = vld [vmem:[%s18613_s1 + $0x784] ss:$16 sps:$4 sm:$0xff]   ;;  %v11949_v52 = vld [vmem:[%s18613_s1 + $0x580] ss:$16 sps:$4 sm:$0xff]  }
  0x3b   :  { %8192 = vmatpush2.bf16.msra.mxu0 %v11869_v60  ;;  %v11952_v53 = vld [vmem:[%s18613_s1 + $0x780] ss:$16 sps:$4 sm:$0xff]   ;;  %v11957_v54 = vld [vmem:[%s18613_s1 + $0x564] ss:$16 sps:$4 sm:$0xff]  }
  0x3c   :  { %8235 = vmatpush2.bf16.msra.mxu1 %v11870_v61  ;;  %8193 = vmatprep.subr.bf16.mxu0 %v11871_v62  ;;  %v11960_v55 = vld [vmem:[%s18613_s1 + $0x764] ss:$16 sps:$4 sm:$0xff]   ;;  %v11955_v56 = vld [vmem:[%s18613_s1 + $0x560] ss:$16 sps:$4 sm:$0xff]  }
  0x3d   :  { %8236 = vmatprep.subr.bf16.mxu1 %v11873_v63  ;;  %v11958_v57 = vld [vmem:[%s18613_s1 + $0x760] ss:$16 sps:$4 sm:$0xff]   ;;  %v11963_v58 = vld [vmem:[%s18613_s1 + $0x544] ss:$16 sps:$4 sm:$0xff]  }
  0x3e   :  { %v11966_v59 = vld [vmem:[%s18613_s1 + $0x744] ss:$16 sps:$4 sm:$0xff]   ;;  %v11961_v60 = vld [vmem:[%s18613_s1 + $0x540] ss:$16 sps:$4 sm:$0xff]  }
  0x3f   :  { %8194 = vmatpush2.bf16.msra.mxu0 %v11875_v0  ;;  %v11964_v61 = vld [vmem:[%s18613_s1 + $0x740] ss:$16 sps:$4 sm:$0xff]   ;;  %v11969_v62 = vld [vmem:[%s18613_s1 + $0x524] ss:$16 sps:$4 sm:$0xff]  }
  0x40   :  { %8237 = vmatpush2.bf16.msra.mxu1 %v11876_v1  ;;  %8249 = vmatprep.subr.bf16.mxu0 %v11885_v2  ;;  %v11972_v63 = vld [vmem:[%s18613_s1 + $0x724] ss:$16 sps:$4 sm:$0xff]   ;;  %v11967_v0 = vld [vmem:[%s18613_s1 + $0x520] ss:$16 sps:$4 sm:$0xff]  }
  0x41   :  { %8292 = vmatprep.subr.bf16.mxu1 %v11888_v3  ;;  %v11970_v1 = vld [vmem:[%s18613_s1 + $0x720] ss:$16 sps:$4 sm:$0xff]   ;;  %v11975_v2 = vld [vmem:[%s18613_s1 + $0x504] ss:$16 sps:$4 sm:$0xff]  }
  0x42   :  { %8196 = vmatmul.mubr.bf16.vlgmr.msra.gmra.mxu0 %v11877_v4  ;;  %v11978_v3 = vld [vmem:[%s18613_s1 + $0x704] ss:$16 sps:$4 sm:$0xff]   ;;  %v11973_v4 = vld [vmem:[%s18613_s1 + $0x500] ss:$16 sps:$4 sm:$0xff]  }
  0x43   :  { %8239 = vmatmul.mubr.bf16.vlgmr.msra.gmra.mxu1 %v11880_v5  ;;  %8250 = vmatpush1.bf16.msra.mxu0 %v11883_v6  ;;  %v11976_v5 = vld [vmem:[%s18613_s1 + $0x700] ss:$16 sps:$4 sm:$0xff]   ;;  %v11987_v6 = vld [vmem:[%s18613_s1 + $0x8e4] ss:$16 sps:$4 sm:$0xff]  }
  0x44   :  { %8293 = vmatpush1.bf16.msra.mxu1 %v11886_v7  ;;  %8251 = vmatprep.subr.bf16.mxu0 %v11891_v8  ;;  %v11990_v7 = vld [vmem:[%s18613_s1 + $0xae4] ss:$16 sps:$4 sm:$0xff]  }
  0x45   :  { %8294 = vmatprep.subr.bf16.mxu1 %v11894_v9  ;;  %8281 = vmatprep.mubr.bf16.mxu0 %v11981_v34  ;;  %v11979_v8 = vld [vmem:[%s18614_s0 + $0x10] ss:$164 sps:$4 sm:$0xff]   ;;  %v11982_v9 = vld [vmem:[%s18614_s0 + $0x18] ss:$164 sps:$4 sm:$0xff]  }
  0x46   :  { %8324 = vmatprep.mubr.bf16.mxu1 %v11984_v35  ;;  %v12023_v34 = vld [vmem:[%s18613_s1 + $0x824] ss:$16 sps:$4 sm:$0xff]  }
  0x47   :  { %8252 = vmatpush1.bf16.msra.mxu0 %v11889_v10  ;;  %v11985_v10 = vld [vmem:[%s18613_s1 + $0x8e0] ss:$16 sps:$4 sm:$0xff]   ;;  %v12026_v35 = vld [vmem:[%s18613_s1 + $0xa24] ss:$16 sps:$4 sm:$0xff]  }
  0x48   :  { %8295 = vmatpush1.bf16.msra.mxu1 %v11892_v11  ;;  %8253 = vmatprep.subr.bf16.mxu0 %v11897_v12  ;;  %v11988_v11 = vld [vmem:[%s18613_s1 + $0xae0] ss:$16 sps:$4 sm:$0xff]   ;;  %v11993_v12 = vld [vmem:[%s18613_s1 + $0x8c4] ss:$16 sps:$4 sm:$0xff]  }
  0x49   :  { %8296 = vmatprep.subr.bf16.mxu1 %v11900_v13  ;;  %v11996_v13 = vld [vmem:[%s18613_s1 + $0xac4] ss:$16 sps:$4 sm:$0xff]  }
  0x4b   :  { %8254 = vmatpush1.bf16.msra.mxu0 %v11895_v14  ;;  %v11991_v14 = vld [vmem:[%s18613_s1 + $0x8c0] ss:$16 sps:$4 sm:$0xff]  }
  0x4c   :  { %8297 = vmatpush1.bf16.msra.mxu1 %v11898_v15  ;;  %8255 = vmatprep.subr.bf16.mxu0 %v11903_v16  ;;  %v11994_v15 = vld [vmem:[%s18613_s1 + $0xac0] ss:$16 sps:$4 sm:$0xff]   ;;  %v11999_v16 = vld [vmem:[%s18613_s1 + $0x8a4] ss:$16 sps:$4 sm:$0xff]  }
  0x4d   :  { %8298 = vmatprep.subr.bf16.mxu1 %v11906_v17  ;;  %v12002_v17 = vld [vmem:[%s18613_s1 + $0xaa4] ss:$16 sps:$4 sm:$0xff]  }
  0x4f   :  { %8256 = vmatpush1.bf16.msra.mxu0 %v11901_v18  ;;  %v11997_v18 = vld [vmem:[%s18613_s1 + $0x8a0] ss:$16 sps:$4 sm:$0xff]  }
  0x50   :  { %8299 = vmatpush1.bf16.msra.mxu1 %v11904_v19  ;;  %8257 = vmatprep.subr.bf16.mxu0 %v11909_v20  ;;  %v12083_v19 = vld [vmem:[%s18614_s0 + $0x24] ss:$164 sps:$4 sm:$0xff]   ;;  %v12000_v20 = vld [vmem:[%s18613_s1 + $0xaa0] ss:$16 sps:$4 sm:$0xff]  }
  0x51   :  { %8300 = vmatprep.subr.bf16.mxu1 %v11912_v21  ;;  %v12086_v21 = vld [vmem:[%s18614_s0 + $0x2c] ss:$164 sps:$4 sm:$0xff]  }
  0x53   :  { %8258 = vmatpush1.bf16.msra.mxu0 %v11907_v22  ;;  %v12005_v22 = vld [vmem:[%s18613_s1 + $0x884] ss:$16 sps:$4 sm:$0xff]  }
  0x54   :  { %8301 = vmatpush1.bf16.msra.mxu1 %v11910_v23  ;;  %8259 = vmatprep.subr.bf16.mxu0 %v11915_v24  ;;  %v12008_v23 = vld [vmem:[%s18613_s1 + $0xa84] ss:$16 sps:$4 sm:$0xff]   ;;  %v12003_v24 = vld [vmem:[%s18613_s1 + $0x880] ss:$16 sps:$4 sm:$0xff]  }
  0x55   :  { %8302 = vmatprep.subr.bf16.mxu1 %v11918_v25  ;;  %v12006_v25 = vld [vmem:[%s18613_s1 + $0xa80] ss:$16 sps:$4 sm:$0xff]  }
  0x57   :  { %8260 = vmatpush1.bf16.msra.mxu0 %v11913_v26  ;;  %v12011_v26 = vld [vmem:[%s18613_s1 + $0x864] ss:$16 sps:$4 sm:$0xff]  }
  0x58   :  { %8303 = vmatpush1.bf16.msra.mxu1 %v11916_v27  ;;  %8261 = vmatprep.subr.bf16.mxu0 %v11921_v28  ;;  %v12014_v27 = vld [vmem:[%s18613_s1 + $0xa64] ss:$16 sps:$4 sm:$0xff]   ;;  %v12009_v28 = vld [vmem:[%s18613_s1 + $0x860] ss:$16 sps:$4 sm:$0xff]  }
  0x59   :  { %8304 = vmatprep.subr.bf16.mxu1 %v11924_v29  ;;  %v12012_v29 = vld [vmem:[%s18613_s1 + $0xa60] ss:$16 sps:$4 sm:$0xff]  }
  0x5b   :  { %8262 = vmatpush1.bf16.msra.mxu0 %v11919_v30  ;;  %v12017_v30 = vld [vmem:[%s18613_s1 + $0x844] ss:$16 sps:$4 sm:$0xff]  }
  0x5c   :  { %8305 = vmatpush1.bf16.msra.mxu1 %v11922_v31  ;;  %8263 = vmatprep.subr.bf16.mxu0 %v11927_v32  ;;  %v12020_v31 = vld [vmem:[%s18613_s1 + $0xa44] ss:$16 sps:$4 sm:$0xff]   ;;  %v12015_v32 = vld [vmem:[%s18613_s1 + $0x840] ss:$16 sps:$4 sm:$0xff]  }
  0x5d   :  { %8306 = vmatprep.subr.bf16.mxu1 %v11930_v33  ;;  %v12018_v33 = vld [vmem:[%s18613_s1 + $0xa40] ss:$16 sps:$4 sm:$0xff]  }
  0x5f   :  { %8264 = vmatpush1.bf16.msra.mxu0 %v11925_v36  ;;  %v12021_v36 = vld [vmem:[%s18613_s1 + $0x820] ss:$16 sps:$4 sm:$0xff]  }
  0x60   :  { %8307 = vmatpush1.bf16.msra.mxu1 %v11928_v37  ;;  %8265 = vmatprep.subr.bf16.mxu0 %v11933_v38  ;;  %v12024_v37 = vld [vmem:[%s18613_s1 + $0xa20] ss:$16 sps:$4 sm:$0xff]   ;;  %v12029_v38 = vld [vmem:[%s18613_s1 + $0x804] ss:$16 sps:$4 sm:$0xff]  }
  0x61   :  { %8308 = vmatprep.subr.bf16.mxu1 %v11936_v39  ;;  %v12032_v39 = vld [vmem:[%s18613_s1 + $0xa04] ss:$16 sps:$4 sm:$0xff]  }
  0x63   :  { %8266 = vmatpush2.bf16.msra.mxu0 %v11931_v40  ;;  %v12027_v40 = vld [vmem:[%s18613_s1 + $0x800] ss:$16 sps:$4 sm:$0xff]  }
  0x64   :  { %8309 = vmatpush2.bf16.msra.mxu1 %v11934_v41  ;;  %8267 = vmatprep.subr.bf16.mxu0 %v11939_v42  ;;  %v12030_v41 = vld [vmem:[%s18613_s1 + $0xa00] ss:$16 sps:$4 sm:$0xff]   ;;  %v12035_v42 = vld [vmem:[%s18613_s1 + $0x9e4] ss:$16 sps:$4 sm:$0xff]  }
  0x65   :  { %8310 = vmatprep.subr.bf16.mxu1 %v11942_v43  ;;  %v12038_v43 = vld [vmem:[%s18613_s1 + $0xbe4] ss:$16 sps:$4 sm:$0xff]  }
  0x67   :  { %8268 = vmatpush2.bf16.msra.mxu0 %v11937_v44  ;;  %v12033_v44 = vld [vmem:[%s18613_s1 + $0x9e0] ss:$16 sps:$4 sm:$0xff]  }
  0x68   :  { %8311 = vmatpush2.bf16.msra.mxu1 %v11940_v45  ;;  %8269 = vmatprep.subr.bf16.mxu0 %v11945_v46  ;;  %v12036_v45 = vld [vmem:[%s18613_s1 + $0xbe0] ss:$16 sps:$4 sm:$0xff]   ;;  %v12041_v46 = vld [vmem:[%s18613_s1 + $0x9c4] ss:$16 sps:$4 sm:$0xff]  }
  0x69   :  { %8312 = vmatprep.subr.bf16.mxu1 %v11948_v47  ;;  %v12044_v47 = vld [vmem:[%s18613_s1 + $0xbc4] ss:$16 sps:$4 sm:$0xff]  }
  0x6b   :  { %8270 = vmatpush2.bf16.msra.mxu0 %v11943_v48  ;;  %v12039_v48 = vld [vmem:[%s18613_s1 + $0x9c0] ss:$16 sps:$4 sm:$0xff]  }
  0x6c   :  { %8313 = vmatpush2.bf16.msra.mxu1 %v11946_v49  ;;  %8271 = vmatprep.subr.bf16.mxu0 %v11951_v50  ;;  %v12042_v49 = vld [vmem:[%s18613_s1 + $0xbc0] ss:$16 sps:$4 sm:$0xff]   ;;  %v12047_v50 = vld [vmem:[%s18613_s1 + $0x9a4] ss:$16 sps:$4 sm:$0xff]  }
  0x6d   :  { %8314 = vmatprep.subr.bf16.mxu1 %v11954_v51  ;;  %v12050_v51 = vld [vmem:[%s18613_s1 + $0xba4] ss:$16 sps:$4 sm:$0xff]  }
  0x6f   :  { %8272 = vmatpush2.bf16.msra.mxu0 %v11949_v52  ;;  %v12045_v52 = vld [vmem:[%s18613_s1 + $0x9a0] ss:$16 sps:$4 sm:$0xff]  }
  0x70   :  { %8315 = vmatpush2.bf16.msra.mxu1 %v11952_v53  ;;  %8273 = vmatprep.subr.bf16.mxu0 %v11957_v54  ;;  %v12048_v53 = vld [vmem:[%s18613_s1 + $0xba0] ss:$16 sps:$4 sm:$0xff]   ;;  %v12053_v54 = vld [vmem:[%s18613_s1 + $0x984] ss:$16 sps:$4 sm:$0xff]  }
  0x71   :  { %8316 = vmatprep.subr.bf16.mxu1 %v11960_v55  ;;  %v12056_v55 = vld [vmem:[%s18613_s1 + $0xb84] ss:$16 sps:$4 sm:$0xff]  }
  0x73   :  { %8274 = vmatpush2.bf16.msra.mxu0 %v11955_v56  ;;  %v12051_v56 = vld [vmem:[%s18613_s1 + $0x980] ss:$16 sps:$4 sm:$0xff]  }
  0x74   :  { %8317 = vmatpush2.bf16.msra.mxu1 %v11958_v57  ;;  %8275 = vmatprep.subr.bf16.mxu0 %v11963_v58  ;;  %v12054_v57 = vld [vmem:[%s18613_s1 + $0xb80] ss:$16 sps:$4 sm:$0xff]   ;;  %v12059_v58 = vld [vmem:[%s18613_s1 + $0x964] ss:$16 sps:$4 sm:$0xff]  }
  0x75   :  { %8318 = vmatprep.subr.bf16.mxu1 %v11966_v59  ;;  %v12062_v59 = vld [vmem:[%s18613_s1 + $0xb64] ss:$16 sps:$4 sm:$0xff]  }
  0x77   :  { %8276 = vmatpush2.bf16.msra.mxu0 %v11961_v60  ;;  %v12057_v60 = vld [vmem:[%s18613_s1 + $0x960] ss:$16 sps:$4 sm:$0xff]  }
  0x78   :  { %8319 = vmatpush2.bf16.msra.mxu1 %v11964_v61  ;;  %8277 = vmatprep.subr.bf16.mxu0 %v11969_v62  ;;  %v12060_v61 = vld [vmem:[%s18613_s1 + $0xb60] ss:$16 sps:$4 sm:$0xff]   ;;  %v12065_v62 = vld [vmem:[%s18613_s1 + $0x944] ss:$16 sps:$4 sm:$0xff]  }
  0x79   :  { %8320 = vmatprep.subr.bf16.mxu1 %v11972_v63  ;;  %v12068_v63 = vld [vmem:[%s18613_s1 + $0xb44] ss:$16 sps:$4 sm:$0xff]  }
  0x7b   :  { %8278 = vmatpush2.bf16.msra.mxu0 %v11967_v0  ;;  %v12063_v0 = vld [vmem:[%s18613_s1 + $0x940] ss:$16 sps:$4 sm:$0xff]  }
  0x7c   :  { %8321 = vmatpush2.bf16.msra.mxu1 %v11970_v1  ;;  %8279 = vmatprep.subr.bf16.mxu0 %v11975_v2  ;;  %v12066_v1 = vld [vmem:[%s18613_s1 + $0xb40] ss:$16 sps:$4 sm:$0xff]   ;;  %v12071_v2 = vld [vmem:[%s18613_s1 + $0x924] ss:$16 sps:$4 sm:$0xff]  }
  0x7d   :  { %8322 = vmatprep.subr.bf16.mxu1 %v11978_v3  ;;  %v12074_v3 = vld [vmem:[%s18613_s1 + $0xb24] ss:$16 sps:$4 sm:$0xff]  }
  0x7f   :  { %8280 = vmatpush2.bf16.msra.mxu0 %v11973_v4  ;;  %v12069_v4 = vld [vmem:[%s18613_s1 + $0x920] ss:$16 sps:$4 sm:$0xff]  }
  0x80   :  { %8323 = vmatpush2.bf16.msra.mxu1 %v11976_v5  ;;  %8335 = vmatprep.subr.bf16.mxu0 %v11987_v6  ;;  %v12072_v5 = vld [vmem:[%s18613_s1 + $0xb20] ss:$16 sps:$4 sm:$0xff]   ;;  %v12077_v6 = vld [vmem:[%s18613_s1 + $0x904] ss:$16 sps:$4 sm:$0xff]  }
  0x81   :  { %8378 = vmatprep.subr.bf16.mxu1 %v11990_v7  ;;  %v12080_v7 = vld [vmem:[%s18613_s1 + $0xb04] ss:$16 sps:$4 sm:$0xff]  }
  0x82   :  { %8282 = vmatmul.mubr.bf16.vlgmr.msra.gmra.mxu0 %v11979_v8  ;;  %v12075_v8 = vld [vmem:[%s18613_s1 + $0x900] ss:$16 sps:$4 sm:$0xff]  }
  0x83   :  { %8325 = vmatmul.mubr.bf16.vlgmr.msra.gmra.mxu1 %v11982_v9  ;;  %8336 = vmatpush1.bf16.msra.mxu0 %v11985_v10  ;;  %v12078_v9 = vld [vmem:[%s18613_s1 + $0xb00] ss:$16 sps:$4 sm:$0xff]   ;;  %v12089_v10 = vld [vmem:[%s18613_s1 + $0xce4] ss:$16 sps:$4 sm:$0xff]  }
  0x84   :  { %8379 = vmatpush1.bf16.msra.mxu1 %v11988_v11  ;;  %8337 = vmatprep.subr.bf16.mxu0 %v11993_v12  ;;  %v12092_v11 = vld [vmem:[%s18613_s1 + $0xee4] ss:$16 sps:$4 sm:$0xff]  }
  0x85   :  { %8380 = vmatprep.subr.bf16.mxu1 %v11996_v13  ;;  %8367 = vmatprep.mubr.bf16.mxu0 %v12083_v19  ;;  %v12081_v12 = vld [vmem:[%s18614_s0 + $0x20] ss:$164 sps:$4 sm:$0xff]   ;;  %v12084_v13 = vld [vmem:[%s18614_s0 + $0x28] ss:$164 sps:$4 sm:$0xff]  }
  0x86   :  { %8410 = vmatprep.mubr.bf16.mxu1 %v12086_v21  ;;  %v12188_v19 = vld [vmem:[%s18614_s0 + $0x3c] ss:$164 sps:$4 sm:$0xff]  }
  0x87   :  { %8338 = vmatpush1.bf16.msra.mxu0 %v11991_v14  ;;  %v12087_v14 = vld [vmem:[%s18613_s1 + $0xce0] ss:$16 sps:$4 sm:$0xff]  }
  0x88   :  { %8381 = vmatpush1.bf16.msra.mxu1 %v11994_v15  ;;  %8339 = vmatprep.subr.bf16.mxu0 %v11999_v16  ;;  %v12090_v15 = vld [vmem:[%s18613_s1 + $0xee0] ss:$16 sps:$4 sm:$0xff]   ;;  %v12095_v16 = vld [vmem:[%s18613_s1 + $0xcc4] ss:$16 sps:$4 sm:$0xff]  }
  0x89   :  { %8382 = vmatprep.subr.bf16.mxu1 %v12002_v17  ;;  %v12098_v17 = vld [vmem:[%s18613_s1 + $0xec4] ss:$16 sps:$4 sm:$0xff]   ;;  %v12096_v21 = vld [vmem:[%s18613_s1 + $0xec0] ss:$16 sps:$4 sm:$0xff]  }
  0x8b   :  { %8340 = vmatpush1.bf16.msra.mxu0 %v11997_v18  ;;  %v12185_v18 = vld [vmem:[%s18614_s0 + $0x34] ss:$164 sps:$4 sm:$0xff]  }
  0x8c   :  { %8383 = vmatpush1.bf16.msra.mxu1 %v12000_v20  ;;  %8341 = vmatprep.subr.bf16.mxu0 %v12005_v22  ;;  %v12093_v20 = vld [vmem:[%s18613_s1 + $0xcc0] ss:$16 sps:$4 sm:$0xff]   ;;  %v12101_v22 = vld [vmem:[%s18613_s1 + $0xca4] ss:$16 sps:$4 sm:$0xff]  }
  0x8d   :  { %8384 = vmatprep.subr.bf16.mxu1 %v12008_v23  ;;  %v12104_v23 = vld [vmem:[%s18613_s1 + $0xea4] ss:$16 sps:$4 sm:$0xff]  }
  0x8f   :  { %8342 = vmatpush1.bf16.msra.mxu0 %v12003_v24  ;;  %v12099_v24 = vld [vmem:[%s18613_s1 + $0xca0] ss:$16 sps:$4 sm:$0xff]  }
  0x90   :  { %8385 = vmatpush1.bf16.msra.mxu1 %v12006_v25  ;;  %8343 = vmatprep.subr.bf16.mxu0 %v12011_v26  ;;  %v12102_v25 = vld [vmem:[%s18613_s1 + $0xea0] ss:$16 sps:$4 sm:$0xff]   ;;  %v12107_v26 = vld [vmem:[%s18613_s1 + $0xc84] ss:$16 sps:$4 sm:$0xff]  }
  0x91   :  { %8386 = vmatprep.subr.bf16.mxu1 %v12014_v27  ;;  %v12110_v27 = vld [vmem:[%s18613_s1 + $0xe84] ss:$16 sps:$4 sm:$0xff]  }
  0x93   :  { %8344 = vmatpush1.bf16.msra.mxu0 %v12009_v28  ;;  %v12105_v28 = vld [vmem:[%s18613_s1 + $0xc80] ss:$16 sps:$4 sm:$0xff]  }
  0x94   :  { %8387 = vmatpush1.bf16.msra.mxu1 %v12012_v29  ;;  %8345 = vmatprep.subr.bf16.mxu0 %v12017_v30  ;;  %v12108_v29 = vld [vmem:[%s18613_s1 + $0xe80] ss:$16 sps:$4 sm:$0xff]   ;;  %v12113_v30 = vld [vmem:[%s18613_s1 + $0xc64] ss:$16 sps:$4 sm:$0xff]  }
  0x95   :  { %8388 = vmatprep.subr.bf16.mxu1 %v12020_v31  ;;  %v12116_v31 = vld [vmem:[%s18613_s1 + $0xe64] ss:$16 sps:$4 sm:$0xff]  }
  0x97   :  { %8346 = vmatpush1.bf16.msra.mxu0 %v12015_v32  ;;  %v12111_v32 = vld [vmem:[%s18613_s1 + $0xc60] ss:$16 sps:$4 sm:$0xff]  }
  0x98   :  { %8389 = vmatpush1.bf16.msra.mxu1 %v12018_v33  ;;  %8347 = vmatprep.subr.bf16.mxu0 %v12023_v34  ;;  %v12114_v33 = vld [vmem:[%s18613_s1 + $0xe60] ss:$16 sps:$4 sm:$0xff]   ;;  %v12119_v34 = vld [vmem:[%s18613_s1 + $0xc44] ss:$16 sps:$4 sm:$0xff]  }
  0x99   :  { %8390 = vmatprep.subr.bf16.mxu1 %v12026_v35  ;;  %v12122_v35 = vld [vmem:[%s18613_s1 + $0xe44] ss:$16 sps:$4 sm:$0xff]  }
  0x9b   :  { %8348 = vmatpush1.bf16.msra.mxu0 %v12021_v36  ;;  %v12117_v36 = vld [vmem:[%s18613_s1 + $0xc40] ss:$16 sps:$4 sm:$0xff]  }
  0x9c   :  { %8391 = vmatpush1.bf16.msra.mxu1 %v12024_v37  ;;  %8349 = vmatprep.subr.bf16.mxu0 %v12029_v38  ;;  %v12120_v37 = vld [vmem:[%s18613_s1 + $0xe40] ss:$16 sps:$4 sm:$0xff]   ;;  %v12125_v38 = vld [vmem:[%s18613_s1 + $0xc24] ss:$16 sps:$4 sm:$0xff]  }
  0x9d   :  { %8392 = vmatprep.subr.bf16.mxu1 %v12032_v39  ;;  %v12128_v39 = vld [vmem:[%s18613_s1 + $0xe24] ss:$16 sps:$4 sm:$0xff]  }
  0x9f   :  { %8350 = vmatpush1.bf16.msra.mxu0 %v12027_v40  ;;  %v12123_v40 = vld [vmem:[%s18613_s1 + $0xc20] ss:$16 sps:$4 sm:$0xff]  }
  0xa0   :  { %8393 = vmatpush1.bf16.msra.mxu1 %v12030_v41  ;;  %8351 = vmatprep.subr.bf16.mxu0 %v12035_v42  ;;  %v12126_v41 = vld [vmem:[%s18613_s1 + $0xe20] ss:$16 sps:$4 sm:$0xff]   ;;  %v12131_v42 = vld [vmem:[%s18613_s1 + $0xc04] ss:$16 sps:$4 sm:$0xff]  }
  0xa1   :  { %8394 = vmatprep.subr.bf16.mxu1 %v12038_v43  ;;  %v12134_v43 = vld [vmem:[%s18613_s1 + $0xe04] ss:$16 sps:$4 sm:$0xff]  }
  0xa3   :  { %8352 = vmatpush2.bf16.msra.mxu0 %v12033_v44  ;;  %v12129_v44 = vld [vmem:[%s18613_s1 + $0xc00] ss:$16 sps:$4 sm:$0xff]  }
  0xa4   :  { %8395 = vmatpush2.bf16.msra.mxu1 %v12036_v45  ;;  %8353 = vmatprep.subr.bf16.mxu0 %v12041_v46  ;;  %v12132_v45 = vld [vmem:[%s18613_s1 + $0xe00] ss:$16 sps:$4 sm:$0xff]   ;;  %v12137_v46 = vld [vmem:[%s18613_s1 + $0xde4] ss:$16 sps:$4 sm:$0xff]  }
  0xa5   :  { %8396 = vmatprep.subr.bf16.mxu1 %v12044_v47  ;;  %v12140_v47 = vld [vmem:[%s18613_s1 + $0xfe4] ss:$16 sps:$4 sm:$0xff]  }
  0xa7   :  { %8354 = vmatpush2.bf16.msra.mxu0 %v12039_v48  ;;  %v12135_v48 = vld [vmem:[%s18613_s1 + $0xde0] ss:$16 sps:$4 sm:$0xff]  }
  0xa8   :  { %8397 = vmatpush2.bf16.msra.mxu1 %v12042_v49  ;;  %8355 = vmatprep.subr.bf16.mxu0 %v12047_v50  ;;  %v12138_v49 = vld [vmem:[%s18613_s1 + $0xfe0] ss:$16 sps:$4 sm:$0xff]   ;;  %v12143_v50 = vld [vmem:[%s18613_s1 + $0xdc4] ss:$16 sps:$4 sm:$0xff]  }
  0xa9   :  { %8398 = vmatprep.subr.bf16.mxu1 %v12050_v51  ;;  %v12146_v51 = vld [vmem:[%s18613_s1 + $0xfc4] ss:$16 sps:$4 sm:$0xff]  }
  0xab   :  { %8356 = vmatpush2.bf16.msra.mxu0 %v12045_v52  ;;  %v12141_v52 = vld [vmem:[%s18613_s1 + $0xdc0] ss:$16 sps:$4 sm:$0xff]  }
  0xac   :  { %8399 = vmatpush2.bf16.msra.mxu1 %v12048_v53  ;;  %8357 = vmatprep.subr.bf16.mxu0 %v12053_v54  ;;  %v12144_v53 = vld [vmem:[%s18613_s1 + $0xfc0] ss:$16 sps:$4 sm:$0xff]   ;;  %v12149_v54 = vld [vmem:[%s18613_s1 + $0xda4] ss:$16 sps:$4 sm:$0xff]  }
  0xad   :  { %8400 = vmatprep.subr.bf16.mxu1 %v12056_v55  ;;  %v12152_v55 = vld [vmem:[%s18613_s1 + $0xfa4] ss:$16 sps:$4 sm:$0xff]  }
  0xaf   :  { %8358 = vmatpush2.bf16.msra.mxu0 %v12051_v56  ;;  %v12147_v56 = vld [vmem:[%s18613_s1 + $0xda0] ss:$16 sps:$4 sm:$0xff]  }
  0xb0   :  { %8401 = vmatpush2.bf16.msra.mxu1 %v12054_v57  ;;  %8359 = vmatprep.subr.bf16.mxu0 %v12059_v58  ;;  %v12150_v57 = vld [vmem:[%s18613_s1 + $0xfa0] ss:$16 sps:$4 sm:$0xff]   ;;  %v12155_v58 = vld [vmem:[%s18613_s1 + $0xd84] ss:$16 sps:$4 sm:$0xff]  }
  0xb1   :  { %8402 = vmatprep.subr.bf16.mxu1 %v12062_v59  ;;  %v12158_v59 = vld [vmem:[%s18613_s1 + $0xf84] ss:$16 sps:$4 sm:$0xff]  }
  0xb3   :  { %8360 = vmatpush2.bf16.msra.mxu0 %v12057_v60  ;;  %v12153_v60 = vld [vmem:[%s18613_s1 + $0xd80] ss:$16 sps:$4 sm:$0xff]  }
  0xb4   :  { %8403 = vmatpush2.bf16.msra.mxu1 %v12060_v61  ;;  %8361 = vmatprep.subr.bf16.mxu0 %v12065_v62  ;;  %v12156_v61 = vld [vmem:[%s18613_s1 + $0xf80] ss:$16 sps:$4 sm:$0xff]   ;;  %v12161_v62 = vld [vmem:[%s18613_s1 + $0xd64] ss:$16 sps:$4 sm:$0xff]  }
  0xb5   :  { %8404 = vmatprep.subr.bf16.mxu1 %v12068_v63  ;;  %v12164_v63 = vld [vmem:[%s18613_s1 + $0xf64] ss:$16 sps:$4 sm:$0xff]  }
  0xb7   :  { %8362 = vmatpush2.bf16.msra.mxu0 %v12063_v0  ;;  %v12159_v0 = vld [vmem:[%s18613_s1 + $0xd60] ss:$16 sps:$4 sm:$0xff]  }
  0xb8   :  { %8405 = vmatpush2.bf16.msra.mxu1 %v12066_v1  ;;  %8363 = vmatprep.subr.bf16.mxu0 %v12071_v2  ;;  %v12162_v1 = vld [vmem:[%s18613_s1 + $0xf60] ss:$16 sps:$4 sm:$0xff]   ;;  %v12167_v2 = vld [vmem:[%s18613_s1 + $0xd44] ss:$16 sps:$4 sm:$0xff]  }
  0xb9   :  { %8406 = vmatprep.subr.bf16.mxu1 %v12074_v3  ;;  %v12170_v3 = vld [vmem:[%s18613_s1 + $0xf44] ss:$16 sps:$4 sm:$0xff]  }
  0xbb   :  { %8364 = vmatpush2.bf16.msra.mxu0 %v12069_v4  ;;  %v12165_v4 = vld [vmem:[%s18613_s1 + $0xd40] ss:$16 sps:$4 sm:$0xff]  }
  0xbc   :  { %8407 = vmatpush2.bf16.msra.mxu1 %v12072_v5  ;;  %8365 = vmatprep.subr.bf16.mxu0 %v12077_v6  ;;  %v12168_v5 = vld [vmem:[%s18613_s1 + $0xf40] ss:$16 sps:$4 sm:$0xff]   ;;  %v1377_v6 = vlaneseq }
  0xbd   :  { %8408 = vmatprep.subr.bf16.mxu1 %v12080_v7  ;;  %v12173_v7 = vld [vmem:[%s18613_s1 + $0xd24] ss:$16 sps:$4 sm:$0xff]  }
  0xbf   :  { %8366 = vmatpush2.bf16.msra.mxu0 %v12075_v8  ;;  %v12176_v8 = vld [vmem:[%s18613_s1 + $0xf24] ss:$16 sps:$4 sm:$0xff]  }
  0xc0   :  { %8409 = vmatpush2.bf16.msra.mxu1 %v12078_v9  ;;  %8421 = vmatprep.subr.bf16.mxu0 %v12089_v10  ;;  %v12171_v9 = vld [vmem:[%s18613_s1 + $0xd20] ss:$16 sps:$4 sm:$0xff]  }
  0xc1   :  { %8464 = vmatprep.subr.bf16.mxu1 %v12092_v11  ;;  %v12174_v10 = vld [vmem:[%s18613_s1 + $0xf20] ss:$16 sps:$4 sm:$0xff]   ;;  %v14721_v11 = vshrl.u32 %v1377_v6, 7  ;;  %v12248_v6 = vld [vmem:[%s18613_s1 + $0x13c4] ss:$16 sps:$4 sm:$0xff]  }
  0xc2   :  { %8368 = vmatmul.mubr.bf16.vlgmr.msra.gmra.mxu0 %v12081_v12  ;;  %v12179_v12 = vld [vmem:[%s18613_s1 + $0xd04] ss:$16 sps:$4 sm:$0xff]  }
  0xc3   :  { %8411 = vmatmul.mubr.bf16.vlgmr.msra.gmra.mxu1 %v12084_v13  ;;  %8422 = vmatpush1.bf16.msra.mxu0 %v12087_v14  ;;  %v12182_v13 = vld [vmem:[%s18613_s1 + $0xf04] ss:$16 sps:$4 sm:$0xff]   ;;  %v12177_v14 = vld [vmem:[%s18613_s1 + $0xd00] ss:$16 sps:$4 sm:$0xff]  }
  0xc4   :  { %8465 = vmatpush1.bf16.msra.mxu1 %v12090_v15  ;;  %8423 = vmatprep.subr.bf16.mxu0 %v12095_v16  ;;  %v12180_v15 = vld [vmem:[%s18613_s1 + $0xf00] ss:$16 sps:$4 sm:$0xff]  }
  0xc5   :  { %8466 = vmatprep.subr.bf16.mxu1 %v12098_v17  ;;  %8453 = vmatprep.mubr.bf16.mxu0 %v12185_v18  ;;  %v1375_v16 = vld [vmem:[%s18615_s2] sm:$0xf]  ;;  %v1379_v17 = vsub.s32 0, %v14721_v11  ;;  %v12191_v18 = vld [vmem:[%s18613_s1 + $0x10e4] ss:$16 sps:$4 sm:$0xff]  }
  0xc6   :  { %8496 = vmatprep.mubr.bf16.mxu1 %v12188_v19  ;;  %v12194_v19 = vld [vmem:[%s18613_s1 + $0x12e4] ss:$16 sps:$4 sm:$0xff]  }
  0xc7   :  { %8424 = vmatpush1.bf16.msra.mxu0 %v12093_v20  ;;  %v12183_v20 = vld [vmem:[%s18614_s0 + $0x30] ss:$164 sps:$4 sm:$0xff]  }
  0xc8   :  { %8467 = vmatpush1.bf16.msra.mxu1 %v12096_v21  ;;  %8425 = vmatprep.subr.bf16.mxu0 %v12101_v22  ;;  %v12186_v21 = vld [vmem:[%s18614_s0 + $0x38] ss:$164 sps:$4 sm:$0xff]   ;;  %v12189_v22 = vld [vmem:[%s18613_s1 + $0x10e0] ss:$16 sps:$4 sm:$0xff]  }
  0xc9   :  { %8468 = vmatprep.subr.bf16.mxu1 %v12104_v23  ;;  %v1380_v23 = vrot.slane %v1375_v16, %v1379_v17  ;;  %v12255_v16 = vld [vmem:[%s18613_s1 + $0x1180] ss:$16 sps:$4 sm:$0xff]  }
  0xca   :  { %v12258_v17 = vld [vmem:[%s18613_s1 + $0x1380] ss:$16 sps:$4 sm:$0xff]  }
  0xcb   :  { %8426 = vmatpush1.bf16.msra.mxu0 %v12099_v24  ;;  %v12192_v24 = vld [vmem:[%s18613_s1 + $0x12e0] ss:$16 sps:$4 sm:$0xff]  }
  0xcc   :  { %8469 = vmatpush1.bf16.msra.mxu1 %v12102_v25  ;;  %8427 = vmatprep.subr.bf16.mxu0 %v12107_v26  ;;  %v12197_v25 = vld [vmem:[%s18613_s1 + $0x10c4] ss:$16 sps:$4 sm:$0xff]  }
  0xcd   :  { %8470 = vmatprep.subr.bf16.mxu1 %v12110_v27  ;;  %v12200_v26 = vld [vmem:[%s18613_s1 + $0x12c4] ss:$16 sps:$4 sm:$0xff]  }
  0xce   :  { %v12287_v27 = vld [vmem:[%s18614_s0 + $0x44] ss:$164 sps:$4 sm:$0xff]  }
  0xcf   :  { %8428 = vmatpush1.bf16.msra.mxu0 %v12105_v28  ;;  %v12290_v28 = vld [vmem:[%s18614_s0 + $0x4c] ss:$164 sps:$4 sm:$0xff]  }
  0xd0   :  { %8471 = vmatpush1.bf16.msra.mxu1 %v12108_v29  ;;  %8429 = vmatprep.subr.bf16.mxu0 %v12113_v30 }
  0xd1   :  { %8472 = vmatprep.subr.bf16.mxu1 %v12116_v31  ;;  %v12195_v31 = vld [vmem:[%s18613_s1 + $0x10c0] ss:$16 sps:$4 sm:$0xff]  }
  0xd3   :  { %8430 = vmatpush1.bf16.msra.mxu0 %v12111_v32 }
  0xd4   :  { %8473 = vmatpush1.bf16.msra.mxu1 %v12114_v33  ;;  %8431 = vmatprep.subr.bf16.mxu0 %v12119_v34  ;;  %v12198_v33 = vld [vmem:[%s18613_s1 + $0x12c0] ss:$16 sps:$4 sm:$0xff]  }
  0xd5   :  { %8474 = vmatprep.subr.bf16.mxu1 %v12122_v35 }
  0xd7   :  { %8432 = vmatpush1.bf16.msra.mxu0 %v12117_v36  ;;  %v12203_v36 = vld [vmem:[%s18613_s1 + $0x10a4] ss:$16 sps:$4 sm:$0xff]  }
  0xd8   :  { %8475 = vmatpush1.bf16.msra.mxu1 %v12120_v37  ;;  %8433 = vmatprep.subr.bf16.mxu0 %v12125_v38  ;;  %v12206_v37 = vld [vmem:[%s18613_s1 + $0x12a4] ss:$16 sps:$4 sm:$0xff]  }
  0xd9   :  { %8476 = vmatprep.subr.bf16.mxu1 %v12128_v39 }
  0xdb   :  { %8434 = vmatpush1.bf16.msra.mxu0 %v12123_v40  ;;  %v12201_v40 = vld [vmem:[%s18613_s1 + $0x10a0] ss:$16 sps:$4 sm:$0xff]  }
  0xdc   :  { %8477 = vmatpush1.bf16.msra.mxu1 %v12126_v41  ;;  %8435 = vmatprep.subr.bf16.mxu0 %v12131_v42  ;;  %v12204_v42 = vld [vmem:[%s18613_s1 + $0x12a0] ss:$16 sps:$4 sm:$0xff]  }
  0xdd   :  { %8478 = vmatprep.subr.bf16.mxu1 %v12134_v43 }
  0xdf   :  { %8436 = vmatpush1.bf16.msra.mxu0 %v12129_v44  ;;  %v12209_v44 = vld [vmem:[%s18613_s1 + $0x1084] ss:$16 sps:$4 sm:$0xff]  }
  0xe0   :  { %8479 = vmatpush1.bf16.msra.mxu1 %v12132_v45  ;;  %8437 = vmatprep.subr.bf16.mxu0 %v12137_v46  ;;  %v12212_v45 = vld [vmem:[%s18613_s1 + $0x1284] ss:$16 sps:$4 sm:$0xff]  }
  0xe1   :  { %8480 = vmatprep.subr.bf16.mxu1 %v12140_v47  ;;  %v12207_v47 = vld [vmem:[%s18613_s1 + $0x1080] ss:$16 sps:$4 sm:$0xff]  }
  0xe3   :  { %8438 = vmatpush2.bf16.msra.mxu0 %v12135_v48  ;;  %v12210_v48 = vld [vmem:[%s18613_s1 + $0x1280] ss:$16 sps:$4 sm:$0xff]  }
  0xe4   :  { %8481 = vmatpush2.bf16.msra.mxu1 %v12138_v49  ;;  %8439 = vmatprep.subr.bf16.mxu0 %v12143_v50  ;;  %v12215_v49 = vld [vmem:[%s18613_s1 + $0x1064] ss:$16 sps:$4 sm:$0xff]  }
  0xe5   :  { %8482 = vmatprep.subr.bf16.mxu1 %v12146_v51  ;;  %v12218_v50 = vld [vmem:[%s18613_s1 + $0x1264] ss:$16 sps:$4 sm:$0xff]   ;;  %v12213_v51 = vld [vmem:[%s18613_s1 + $0x1060] ss:$16 sps:$4 sm:$0xff]  }
  0xe7   :  { %8440 = vmatpush2.bf16.msra.mxu0 %v12141_v52  ;;  %v12216_v52 = vld [vmem:[%s18613_s1 + $0x1260] ss:$16 sps:$4 sm:$0xff]  }
  0xe8   :  { %8483 = vmatpush2.bf16.msra.mxu1 %v12144_v53  ;;  %8441 = vmatprep.subr.bf16.mxu0 %v12149_v54  ;;  %v12221_v53 = vld [vmem:[%s18613_s1 + $0x1044] ss:$16 sps:$4 sm:$0xff]  }
  0xe9   :  { %8484 = vmatprep.subr.bf16.mxu1 %v12152_v55  ;;  %v12224_v54 = vld [vmem:[%s18613_s1 + $0x1244] ss:$16 sps:$4 sm:$0xff]   ;;  %v12219_v55 = vld [vmem:[%s18613_s1 + $0x1040] ss:$16 sps:$4 sm:$0xff]  }
  0xeb   :  { %8442 = vmatpush2.bf16.msra.mxu0 %v12147_v56  ;;  %v12222_v56 = vld [vmem:[%s18613_s1 + $0x1240] ss:$16 sps:$4 sm:$0xff]  }
  0xec   :  { %8485 = vmatpush2.bf16.msra.mxu1 %v12150_v57  ;;  %8443 = vmatprep.subr.bf16.mxu0 %v12155_v58  ;;  %v12227_v57 = vld [vmem:[%s18613_s1 + $0x1024] ss:$16 sps:$4 sm:$0xff]  }
  0xed   :  { %8486 = vmatprep.subr.bf16.mxu1 %v12158_v59  ;;  %v12230_v58 = vld [vmem:[%s18613_s1 + $0x1224] ss:$16 sps:$4 sm:$0xff]   ;;  %v12225_v59 = vld [vmem:[%s18613_s1 + $0x1020] ss:$16 sps:$4 sm:$0xff]  }
  0xef   :  { %8444 = vmatpush2.bf16.msra.mxu0 %v12153_v60  ;;  %v12228_v60 = vld [vmem:[%s18613_s1 + $0x1220] ss:$16 sps:$4 sm:$0xff]  }
  0xf0   :  { %8487 = vmatpush2.bf16.msra.mxu1 %v12156_v61  ;;  %8445 = vmatprep.subr.bf16.mxu0 %v12161_v62  ;;  %v12233_v61 = vld [vmem:[%s18613_s1 + $0x1004] ss:$16 sps:$4 sm:$0xff]  }
  0xf1   :  { %8488 = vmatprep.subr.bf16.mxu1 %v12164_v63  ;;  %v12236_v62 = vld [vmem:[%s18613_s1 + $0x1204] ss:$16 sps:$4 sm:$0xff]   ;;  %v12231_v63 = vld [vmem:[%s18613_s1 + $0x1000] ss:$16 sps:$4 sm:$0xff]  }
  0xf3   :  { %8446 = vmatpush2.bf16.msra.mxu0 %v12159_v0  ;;  %v12234_v0 = vld [vmem:[%s18613_s1 + $0x1200] ss:$16 sps:$4 sm:$0xff]  }
  0xf4   :  { %8489 = vmatpush2.bf16.msra.mxu1 %v12162_v1  ;;  %8447 = vmatprep.subr.bf16.mxu0 %v12167_v2  ;;  %v12239_v1 = vld [vmem:[%s18613_s1 + $0x11e4] ss:$16 sps:$4 sm:$0xff]  }
  0xf5   :  { %8490 = vmatprep.subr.bf16.mxu1 %v12170_v3  ;;  %v12242_v2 = vld [vmem:[%s18613_s1 + $0x13e4] ss:$16 sps:$4 sm:$0xff]   ;;  %v12237_v3 = vld [vmem:[%s18613_s1 + $0x11e0] ss:$16 sps:$4 sm:$0xff]  }
  0xf7   :  { %8448 = vmatpush2.bf16.msra.mxu0 %v12165_v4  ;;  %v12240_v4 = vld [vmem:[%s18613_s1 + $0x13e0] ss:$16 sps:$4 sm:$0xff]  }
  0xf8   :  { %8491 = vmatpush2.bf16.msra.mxu1 %v12168_v5  ;;  %8449 = vmatprep.subr.bf16.mxu0 %v12173_v7  ;;  %v12245_v5 = vld [vmem:[%s18613_s1 + $0x11c4] ss:$16 sps:$4 sm:$0xff]   ;;  %v12243_v7 = vld [vmem:[%s18613_s1 + $0x11c0] ss:$16 sps:$4 sm:$0xff]  }
  0xf9   :  { %8492 = vmatprep.subr.bf16.mxu1 %v12176_v8  ;;  %v12246_v8 = vld [vmem:[%s18613_s1 + $0x13c0] ss:$16 sps:$4 sm:$0xff]  }
  0xfb   :  { %8450 = vmatpush2.bf16.msra.mxu0 %v12171_v9  ;;  %v12251_v9 = vld [vmem:[%s18613_s1 + $0x11a4] ss:$16 sps:$4 sm:$0xff]  }
  0xfc   :  { %8493 = vmatpush2.bf16.msra.mxu1 %v12174_v10  ;;  %8451 = vmatprep.subr.bf16.mxu0 %v12179_v12  ;;  %v12254_v10 = vld [vmem:[%s18613_s1 + $0x13a4] ss:$16 sps:$4 sm:$0xff]   ;;  %v12249_v12 = vld [vmem:[%s18613_s1 + $0x11a0] ss:$16 sps:$4 sm:$0xff]  }
  0xfd   :  { %8494 = vmatprep.subr.bf16.mxu1 %v12182_v13  ;;  %v12252_v13 = vld [vmem:[%s18613_s1 + $0x13a0] ss:$16 sps:$4 sm:$0xff]  }
  0xff   :  { %8452 = vmatpush2.bf16.msra.mxu0 %v12177_v14  ;;  %v12257_v14 = vld [vmem:[%s18613_s1 + $0x1184] ss:$16 sps:$4 sm:$0xff]  }
 0x100   :  { %8495 = vmatpush2.bf16.msra.mxu1 %v12180_v15  ;;  %8507 = vmatprep.subr.bf16.mxu0 %v12191_v18  ;;  %v12260_v15 = vld [vmem:[%s18613_s1 + $0x1384] ss:$16 sps:$4 sm:$0xff]  }
 0x101   :  { %8550 = vmatprep.subr.bf16.mxu1 %v12194_v19  ;;  %v12263_v18 = vld [vmem:[%s18613_s1 + $0x1164] ss:$16 sps:$4 sm:$0xff]  }
 0x102   :  { %v8197_v29 = vpop.f32.mrf.mxu0  ;;  %8454 = vmatmul.mubr.bf16.vlgmr.msra.gmra.mxu0 %v12183_v20  ;;  %v12266_v19 = vld [vmem:[%s18613_s1 + $0x1364] ss:$16 sps:$4 sm:$0xff]   ;;  %v12261_v20 = vld [vmem:[%s18613_s1 + $0x1160] ss:$16 sps:$4 sm:$0xff]  }
 0x103   :  { %v8240_v30 = vpop.f32.mrf.mxu1  ;;  %8497 = vmatmul.mubr.bf16.vlgmr.msra.gmra.mxu1 %v12186_v21  ;;  %v8198_v32 = vadd.f32 %v8197_v29, %v1380_v23  ;;  %8508 = vmatpush1.bf16.msra.mxu0 %v12189_v22  ;;  %v12264_v21 = vld [vmem:[%s18613_s1 + $0x1360] ss:$16 sps:$4 sm:$0xff]   ;;  %v12269_v22 = vld [vmem:[%s18613_s1 + $0x1144] ss:$16 sps:$4 sm:$0xff]  }
 0x104   :  { %8551 = vmatpush1.bf16.msra.mxu1 %v12192_v24  ;;  %v14775_v34 = vpop.f32.mrf.mxu0  ;;  %8509 = vmatprep.subr.bf16.mxu0 %v12197_v25  ;;  %v12267_v24 = vld [vmem:[%s18613_s1 + $0x1140] ss:$16 sps:$4 sm:$0xff]  }
 0x105   :  { %v14777_v35 = vpop.f32.mrf.mxu1  ;;  %8552 = vmatprep.subr.bf16.mxu1 %v12200_v26  ;;  %v14785_v38 = vadd.f32 %v8240_v30, %v8198_v32  ;;  %8539 = vmatprep.mubr.bf16.mxu0 %v12287_v27  ;;  %v12270_v25 = vld [vmem:[%s18613_s1 + $0x1340] ss:$16 sps:$4 sm:$0xff]   ;;  %v12275_v26 = vld [vmem:[%s18613_s1 + $0x1124] ss:$16 sps:$4 sm:$0xff]  }
 0x106   :  { %8582 = vmatprep.mubr.bf16.mxu1 %v12290_v28  ;;  %v8201_v39 = vpop.f32.mrf.mxu0  ;;  %v12278_v27 = vld [vmem:[%s18613_s1 + $0x1324] ss:$16 sps:$4 sm:$0xff]   ;;  %v12273_v28 = vld [vmem:[%s18613_s1 + $0x1120] ss:$16 sps:$4 sm:$0xff]  }
 0x107   :  { %v8202_v41 = vadd.f32 %v8201_v39, %v1380_v23  ;;  %8510 = vmatpush1.bf16.msra.mxu0 %v12195_v31  ;;  %v8244_v43 = vpop.f32.mrf.mxu1  ;;  %v12272_v23 = vld [vmem:[%s18613_s1 + $0x1344] ss:$16 sps:$4 sm:$0xff]   ;;  %v12276_v29 = vld [vmem:[%s18613_s1 + $0x1320] ss:$16 sps:$4 sm:$0xff]  }
 0x108   :  { %8553 = vmatpush1.bf16.msra.mxu1 %v12198_v33  ;;  %8511 = vmatprep.subr.bf16.mxu0 %v12203_v36  ;;  %v12281_v30 = vld [vmem:[%s18613_s1 + $0x1104] ss:$16 sps:$4 sm:$0xff]   ;;  %v12279_v32 = vld [vmem:[%s18613_s1 + $0x1100] ss:$16 sps:$4 sm:$0xff]  }
 0x109   :  { %8554 = vmatprep.subr.bf16.mxu1 %v12206_v37  ;;  %v14799_v46 = vadd.f32 %v8244_v43, %v8202_v41  ;;  %v12284_v31 = vld [vmem:[%s18613_s1 + $0x1304] ss:$16 sps:$4 sm:$0xff]   ;;  %v12282_v33 = vld [vmem:[%s18613_s1 + $0x1300] ss:$16 sps:$4 sm:$0xff]   ;;  %v12288_v37 = vld [vmem:[%s18614_s0 + $0x48] ss:$164 sps:$4 sm:$0xff]   ;;  %v14969_v43 = vpop.f32.mrf.mxu0 }
 0x10a   :  { %v12285_v36 = vld [vmem:[%s18614_s0 + $0x40] ss:$164 sps:$4 sm:$0xff]  }
 0x10b   :  { %8512 = vmatpush1.bf16.msra.mxu0 %v12201_v40  ;;  %v12293_v39 = vld [vmem:[%s18613_s1 + $0x14e4] ss:$16 sps:$4 sm:$0xff]   ;;  %v12291_v41 = vld [vmem:[%s18613_s1 + $0x14e0] ss:$16 sps:$4 sm:$0xff]  }
 0x10c   :  { %8555 = vmatpush1.bf16.msra.mxu1 %v12204_v42  ;;  %8513 = vmatprep.subr.bf16.mxu0 %v12209_v44  ;;  %v12296_v40 = vld [vmem:[%s18613_s1 + $0x16e4] ss:$16 sps:$4 sm:$0xff]   ;;  %v12294_v42 = vld [vmem:[%s18613_s1 + $0x16e0] ss:$16 sps:$4 sm:$0xff]   ;;  %v14971_v44 = vpop.f32.mrf.mxu1 }
 0x10d   :  { %8556 = vmatprep.subr.bf16.mxu1 %v12212_v45  ;;  %v12299_v45 = vld [vmem:[%s18613_s1 + $0x14c4] ss:$16 sps:$4 sm:$0xff]  }
 0x10f   :  { %8514 = vmatpush1.bf16.msra.mxu0 %v12207_v47  ;;  %v12302_v47 = vld [vmem:[%s18613_s1 + $0x16c4] ss:$16 sps:$4 sm:$0xff]  }
 0x110   :  { %8557 = vmatpush1.bf16.msra.mxu1 %v12210_v48  ;;  %8515 = vmatprep.subr.bf16.mxu0 %v12215_v49  ;;  %v12297_v48 = vld [vmem:[%s18613_s1 + $0x14c0] ss:$16 sps:$4 sm:$0xff]  }
 0x111   :  { %8558 = vmatprep.subr.bf16.mxu1 %v12218_v50  ;;  %v12300_v49 = vld [vmem:[%s18613_s1 + $0x16c0] ss:$16 sps:$4 sm:$0xff]   ;;  %v12389_v50 = vld [vmem:[%s18614_s0 + $0x54] ss:$164 sps:$4 sm:$0xff]  }
 0x113   :  { %8516 = vmatpush1.bf16.msra.mxu0 %v12213_v51  ;;  %v12392_v51 = vld [vmem:[%s18614_s0 + $0x5c] ss:$164 sps:$4 sm:$0xff]  }
 0x114   :  { %8559 = vmatpush1.bf16.msra.mxu1 %v12216_v52  ;;  %8517 = vmatprep.subr.bf16.mxu0 %v12221_v53 }
 0x115   :  { %8560 = vmatprep.subr.bf16.mxu1 %v12224_v54 }
 0x117   :  { %8518 = vmatpush1.bf16.msra.mxu0 %v12219_v55 }
 0x118   :  { %8561 = vmatpush1.bf16.msra.mxu1 %v12222_v56  ;;  %8519 = vmatprep.subr.bf16.mxu0 %v12227_v57  ;;  %v12305_v57 = vld [vmem:[%s18613_s1 + $0x14a4] ss:$16 sps:$4 sm:$0xff]  }
 0x119   :  { %8562 = vmatprep.subr.bf16.mxu1 %v12230_v58  ;;  %v12308_v58 = vld [vmem:[%s18613_s1 + $0x16a4] ss:$16 sps:$4 sm:$0xff]  }
 0x11b   :  { %8520 = vmatpush1.bf16.msra.mxu0 %v12225_v59 }
 0x11c   :  { %8563 = vmatpush1.bf16.msra.mxu1 %v12228_v60  ;;  %8521 = vmatprep.subr.bf16.mxu0 %v12233_v61  ;;  %v12306_v60 = vld [vmem:[%s18613_s1 + $0x16a0] ss:$16 sps:$4 sm:$0xff]  }
 0x11d   :  { %8564 = vmatprep.subr.bf16.mxu1 %v12236_v62 }
 0x11f   :  { %8522 = vmatpush1.bf16.msra.mxu0 %v12231_v63 }
 0x120   :  { %8565 = vmatpush1.bf16.msra.mxu1 %v12234_v0  ;;  %8523 = vmatprep.subr.bf16.mxu0 %v12239_v1  ;;  %v12311_v0 = vld [vmem:[%s18613_s1 + $0x1484] ss:$16 sps:$4 sm:$0xff]  }
 0x121   :  { %8566 = vmatprep.subr.bf16.mxu1 %v12242_v2  ;;  %v12314_v1 = vld [vmem:[%s18613_s1 + $0x1684] ss:$16 sps:$4 sm:$0xff]  }
 0x123   :  { %8524 = vmatpush2.bf16.msra.mxu0 %v12237_v3  ;;  %v12312_v3 = vld [vmem:[%s18613_s1 + $0x1680] ss:$16 sps:$4 sm:$0xff]  }
 0x124   :  { %8567 = vmatpush2.bf16.msra.mxu1 %v12240_v4  ;;  %8525 = vmatprep.subr.bf16.mxu0 %v12245_v5  ;;  %v12317_v4 = vld [vmem:[%s18613_s1 + $0x1464] ss:$16 sps:$4 sm:$0xff]  }
 0x125   :  { %8568 = vmatprep.subr.bf16.mxu1 %v12248_v6  ;;  %v12320_v5 = vld [vmem:[%s18613_s1 + $0x1664] ss:$16 sps:$4 sm:$0xff]   ;;  %v12315_v6 = vld [vmem:[%s18613_s1 + $0x1460] ss:$16 sps:$4 sm:$0xff]  }
 0x127   :  { %8526 = vmatpush2.bf16.msra.mxu0 %v12243_v7  ;;  %v12318_v7 = vld [vmem:[%s18613_s1 + $0x1660] ss:$16 sps:$4 sm:$0xff]  }
 0x128   :  { %8569 = vmatpush2.bf16.msra.mxu1 %v12246_v8  ;;  %8527 = vmatprep.subr.bf16.mxu0 %v12251_v9  ;;  %v12323_v8 = vld [vmem:[%s18613_s1 + $0x1444] ss:$16 sps:$4 sm:$0xff]  }
 0x129   :  { %8570 = vmatprep.subr.bf16.mxu1 %v12254_v10  ;;  %v12326_v9 = vld [vmem:[%s18613_s1 + $0x1644] ss:$16 sps:$4 sm:$0xff]   ;;  %v12321_v10 = vld [vmem:[%s18613_s1 + $0x1440] ss:$16 sps:$4 sm:$0xff]  }
 0x12b   :  { %8528 = vmatpush2.bf16.msra.mxu0 %v12249_v12  ;;  %v12324_v12 = vld [vmem:[%s18613_s1 + $0x1640] ss:$16 sps:$4 sm:$0xff]  }
 0x12c   :  { %8571 = vmatpush2.bf16.msra.mxu1 %v12252_v13  ;;  %8529 = vmatprep.subr.bf16.mxu0 %v12257_v14  ;;  %v12329_v13 = vld [vmem:[%s18613_s1 + $0x1424] ss:$16 sps:$4 sm:$0xff]  }
 0x12d   :  { %8572 = vmatprep.subr.bf16.mxu1 %v12260_v15  ;;  %v12332_v14 = vld [vmem:[%s18613_s1 + $0x1624] ss:$16 sps:$4 sm:$0xff]   ;;  %v12327_v15 = vld [vmem:[%s18613_s1 + $0x1420] ss:$16 sps:$4 sm:$0xff]  }
 0x12f   :  { %8530 = vmatpush2.bf16.msra.mxu0 %v12255_v16  ;;  %v12330_v16 = vld [vmem:[%s18613_s1 + $0x1620] ss:$16 sps:$4 sm:$0xff]  }
 0x130   :  { %8573 = vmatpush2.bf16.msra.mxu1 %v12258_v17  ;;  %8531 = vmatprep.subr.bf16.mxu0 %v12263_v18  ;;  %v12335_v17 = vld [vmem:[%s18613_s1 + $0x1404] ss:$16 sps:$4 sm:$0xff]  }
 0x131   :  { %8574 = vmatprep.subr.bf16.mxu1 %v12266_v19  ;;  %v12338_v18 = vld [vmem:[%s18613_s1 + $0x1604] ss:$16 sps:$4 sm:$0xff]   ;;  %v12333_v19 = vld [vmem:[%s18613_s1 + $0x1400] ss:$16 sps:$4 sm:$0xff]  }
 0x133   :  { %8532 = vmatpush2.bf16.msra.mxu0 %v12261_v20  ;;  %v12336_v20 = vld [vmem:[%s18613_s1 + $0x1600] ss:$16 sps:$4 sm:$0xff]  }
 0x134   :  { %8575 = vmatpush2.bf16.msra.mxu1 %v12264_v21  ;;  %8533 = vmatprep.subr.bf16.mxu0 %v12269_v22  ;;  %v12341_v21 = vld [vmem:[%s18613_s1 + $0x15e4] ss:$16 sps:$4 sm:$0xff]  }
 0x135   :  { %8576 = vmatprep.subr.bf16.mxu1 %v12272_v23  ;;  %v12344_v22 = vld [vmem:[%s18613_s1 + $0x17e4] ss:$16 sps:$4 sm:$0xff]   ;;  %v12339_v23 = vld [vmem:[%s18613_s1 + $0x15e0] ss:$16 sps:$4 sm:$0xff]  }
 0x137   :  { %8534 = vmatpush2.bf16.msra.mxu0 %v12267_v24  ;;  %v12342_v24 = vld [vmem:[%s18613_s1 + $0x17e0] ss:$16 sps:$4 sm:$0xff]  }
 0x138   :  { %8577 = vmatpush2.bf16.msra.mxu1 %v12270_v25  ;;  %8535 = vmatprep.subr.bf16.mxu0 %v12275_v26  ;;  %v12347_v25 = vld [vmem:[%s18613_s1 + $0x15c4] ss:$16 sps:$4 sm:$0xff]  }
 0x139   :  { %8578 = vmatprep.subr.bf16.mxu1 %v12278_v27  ;;  %v12350_v26 = vld [vmem:[%s18613_s1 + $0x17c4] ss:$16 sps:$4 sm:$0xff]   ;;  %v12345_v27 = vld [vmem:[%s18613_s1 + $0x15c0] ss:$16 sps:$4 sm:$0xff]  }
 0x13b   :  { %8536 = vmatpush2.bf16.msra.mxu0 %v12273_v28  ;;  %v12348_v28 = vld [vmem:[%s18613_s1 + $0x17c0] ss:$16 sps:$4 sm:$0xff]  }
 0x13c   :  { %8579 = vmatpush2.bf16.msra.mxu1 %v12276_v29  ;;  %8537 = vmatprep.subr.bf16.mxu0 %v12281_v30  ;;  %v12353_v29 = vld [vmem:[%s18613_s1 + $0x15a4] ss:$16 sps:$4 sm:$0xff]  }
 0x13d   :  { %8580 = vmatprep.subr.bf16.mxu1 %v12284_v31  ;;  %v12356_v30 = vld [vmem:[%s18613_s1 + $0x17a4] ss:$16 sps:$4 sm:$0xff]   ;;  %v12351_v31 = vld [vmem:[%s18613_s1 + $0x15a0] ss:$16 sps:$4 sm:$0xff]  }
 0x13f   :  { %8538 = vmatpush2.bf16.msra.mxu0 %v12279_v32  ;;  %v12354_v32 = vld [vmem:[%s18613_s1 + $0x17a0] ss:$16 sps:$4 sm:$0xff]  }
 0x140   :  { %8581 = vmatpush2.bf16.msra.mxu1 %v12282_v33  ;;  %8593 = vmatprep.subr.bf16.mxu0 %v12293_v39  ;;  %v12359_v33 = vld [vmem:[%s18613_s1 + $0x1584] ss:$16 sps:$4 sm:$0xff]   ;;  %v12360_v39 = vld [vmem:[%s18613_s1 + $0x1780] ss:$16 sps:$4 sm:$0xff]  }
 0x141   :  { %8636 = vmatprep.subr.bf16.mxu1 %v12296_v40  ;;  %v12365_v40 = vld [vmem:[%s18613_s1 + $0x1564] ss:$16 sps:$4 sm:$0xff]  }
 0x142   :  { %v8283_v52 = vpop.f32.mrf.mxu0  ;;  %8540 = vmatmul.mubr.bf16.vlgmr.msra.gmra.mxu0 %v12285_v36  ;;  %v12362_v36 = vld [vmem:[%s18613_s1 + $0x1784] ss:$16 sps:$4 sm:$0xff]  }
 0x143   :  { %v8326_v53 = vpop.f32.mrf.mxu1  ;;  %8583 = vmatmul.mubr.bf16.vlgmr.msra.gmra.mxu1 %v12288_v37  ;;  %v8284_v54 = vadd.f32 %v8283_v52, %v14785_v38  ;;  %8594 = vmatpush1.bf16.msra.mxu0 %v12291_v41  ;;  %v12303_v38 = vld [vmem:[%s18613_s1 + $0x14a0] ss:$16 sps:$4 sm:$0xff]   ;;  %v12368_v41 = vld [vmem:[%s18613_s1 + $0x1764] ss:$16 sps:$4 sm:$0xff]  }
 0x144   :  { %8637 = vmatpush1.bf16.msra.mxu1 %v12294_v42  ;;  %v14992_v55 = vpop.f32.mrf.mxu0  ;;  %8595 = vmatprep.subr.bf16.mxu0 %v12299_v45  ;;  %v12357_v37 = vld [vmem:[%s18613_s1 + $0x1580] ss:$16 sps:$4 sm:$0xff]   ;;  %v12380_v52 = vld [vmem:[%s18613_s1 + $0x1724] ss:$16 sps:$4 sm:$0xff]  }
 0x145   :  { %v14994_v56 = vpop.f32.mrf.mxu1  ;;  %8638 = vmatprep.subr.bf16.mxu1 %v12302_v47  ;;  %v15002_v59 = vadd.f32 %v8326_v53, %v8284_v54  ;;  %8625 = vmatprep.mubr.bf16.mxu0 %v12389_v50  ;;  %v12363_v42 = vld [vmem:[%s18613_s1 + $0x1560] ss:$16 sps:$4 sm:$0xff]   ;;  %v12371_v47 = vld [vmem:[%s18613_s1 + $0x1544] ss:$16 sps:$4 sm:$0xff]  }
 0x146   :  { %8668 = vmatprep.mubr.bf16.mxu1 %v12392_v51  ;;  %v8287_v61 = vpop.f32.mrf.mxu0  ;;  %v12366_v45 = vld [vmem:[%s18613_s1 + $0x1760] ss:$16 sps:$4 sm:$0xff]   ;;  %v12377_v51 = vld [vmem:[%s18613_s1 + $0x1524] ss:$16 sps:$4 sm:$0xff]  }
 0x147   :  { %v8288_v62 = vadd.f32 %v8287_v61, %v14799_v46  ;;  %8596 = vmatpush1.bf16.msra.mxu0 %v12297_v48  ;;  %v8330_v63 = vpop.f32.mrf.mxu1  ;;  %v12309_v46 = vld [vmem:[%s18613_s1 + $0x1480] ss:$16 sps:$4 sm:$0xff]   ;;  %v12374_v48 = vld [vmem:[%s18613_s1 + $0x1744] ss:$16 sps:$4 sm:$0xff]  }
 0x148   :  { %8639 = vmatpush1.bf16.msra.mxu1 %v12300_v49  ;;  %8597 = vmatprep.subr.bf16.mxu0 %v12305_v57  ;;  %v12369_v49 = vld [vmem:[%s18613_s1 + $0x1540] ss:$16 sps:$4 sm:$0xff]   ;;  %v12383_v57 = vld [vmem:[%s18613_s1 + $0x1504] ss:$16 sps:$4 sm:$0xff]  }
 0x149   :  { %8640 = vmatprep.subr.bf16.mxu1 %v12308_v58  ;;  %v15017_v2 = vadd.f32 %v8330_v63, %v8288_v62  ;;  %v12372_v50 = vld [vmem:[%s18613_s1 + $0x1740] ss:$16 sps:$4 sm:$0xff]   ;;  %v12386_v58 = vld [vmem:[%s18613_s1 + $0x1704] ss:$16 sps:$4 sm:$0xff]   ;;  %v12390_v62 = vld [vmem:[%s18614_s0 + $0x58] ss:$164 sps:$4 sm:$0xff]  }
 0x14a   :  { %v12375_v53 = vld [vmem:[%s18613_s1 + $0x1520] ss:$16 sps:$4 sm:$0xff]   ;;  %v12395_v63 = vld [vmem:[%s18613_s1 + $0x18e4] ss:$16 sps:$4 sm:$0xff]  }
 0x14b   :  { %8598 = vmatpush1.bf16.msra.mxu0 %v12303_v38  ;;  %v12378_v54 = vld [vmem:[%s18613_s1 + $0x1720] ss:$16 sps:$4 sm:$0xff]  }
 0x14c   :  { %8641 = vmatpush1.bf16.msra.mxu1 %v12306_v60  ;;  %8599 = vmatprep.subr.bf16.mxu0 %v12311_v0  ;;  %v12381_v38 = vld [vmem:[%s18613_s1 + $0x1500] ss:$16 sps:$4 sm:$0xff]   ;;  %v12398_v0 = vld [vmem:[%s18613_s1 + $0x1ae4] ss:$16 sps:$4 sm:$0xff]  }
 0x14d   :  { %8642 = vmatprep.subr.bf16.mxu1 %v12314_v1  ;;  %v12384_v60 = vld [vmem:[%s18613_s1 + $0x1700] ss:$16 sps:$4 sm:$0xff]  }
 0x14e   :  { %v12387_v61 = vld [vmem:[%s18614_s0 + $0x50] ss:$164 sps:$4 sm:$0xff]  }
 0x14f   :  { %8600 = vmatpush1.bf16.msra.mxu0 %v12309_v46  ;;  %v12393_v1 = vld [vmem:[%s18613_s1 + $0x18e0] ss:$16 sps:$4 sm:$0xff]  }
 0x150   :  { %8643 = vmatpush1.bf16.msra.mxu1 %v12312_v3  ;;  %8601 = vmatprep.subr.bf16.mxu0 %v12317_v4  ;;  %v12396_v46 = vld [vmem:[%s18613_s1 + $0x1ae0] ss:$16 sps:$4 sm:$0xff]   ;;  %v15187_v3 = vpop.f32.mrf.mxu0  ;;  %v12401_v4 = vld [vmem:[%s18613_s1 + $0x18c4] ss:$16 sps:$4 sm:$0xff]  }
 0x151   :  { %8644 = vmatprep.subr.bf16.mxu1 %v12320_v5  ;;  %v12404_v5 = vld [vmem:[%s18613_s1 + $0x1ac4] ss:$16 sps:$4 sm:$0xff]  }
 0x153   :  { %8602 = vmatpush1.bf16.msra.mxu0 %v12315_v6  ;;  %v12399_v6 = vld [vmem:[%s18613_s1 + $0x18c0] ss:$16 sps:$4 sm:$0xff]  }
 0x154   :  { %8645 = vmatpush1.bf16.msra.mxu1 %v12318_v7  ;;  %8603 = vmatprep.subr.bf16.mxu0 %v12323_v8  ;;  %v12402_v7 = vld [vmem:[%s18613_s1 + $0x1ac0] ss:$16 sps:$4 sm:$0xff]   ;;  %v12491_v8 = vld [vmem:[%s18614_s0 + $0x64] ss:$164 sps:$4 sm:$0xff]  }
 0x155   :  { %8646 = vmatprep.subr.bf16.mxu1 %v12326_v9  ;;  %v12494_v9 = vld [vmem:[%s18614_s0 + $0x6c] ss:$164 sps:$4 sm:$0xff]  }
 0x157   :  { %8604 = vmatpush1.bf16.msra.mxu0 %v12321_v10  ;;  %v15207_v10 = vpop.f32.mrf.mxu1 }
 0x158   :  { %8647 = vmatpush1.bf16.msra.mxu1 %v12324_v12  ;;  %8605 = vmatprep.subr.bf16.mxu0 %v12329_v13 }
 0x159   :  { %8648 = vmatprep.subr.bf16.mxu1 %v12332_v14 }
 0x15b   :  { %8606 = vmatpush1.bf16.msra.mxu0 %v12327_v15 }
 0x15c   :  { %8649 = vmatpush1.bf16.msra.mxu1 %v12330_v16  ;;  %8607 = vmatprep.subr.bf16.mxu0 %v12335_v17  ;;  %v12407_v16 = vld [vmem:[%s18613_s1 + $0x18a4] ss:$16 sps:$4 sm:$0xff]  }
 0x15d   :  { %8650 = vmatprep.subr.bf16.mxu1 %v12338_v18  ;;  %v12410_v17 = vld [vmem:[%s18613_s1 + $0x1aa4] ss:$16 sps:$4 sm:$0xff]  }
 0x15f   :  { %8608 = vmatpush1.bf16.msra.mxu0 %v12333_v19  ;;  %v12408_v19 = vld [vmem:[%s18613_s1 + $0x1aa0] ss:$16 sps:$4 sm:$0xff]  }
 0x160   :  { %8651 = vmatpush1.bf16.msra.mxu1 %v12336_v20  ;;  %8609 = vmatprep.subr.bf16.mxu0 %v12341_v21 }
 0x161   :  { %8652 = vmatprep.subr.bf16.mxu1 %v12344_v22  ;;  %v12413_v22 = vld [vmem:[%s18613_s1 + $0x1884] ss:$16 sps:$4 sm:$0xff]  }
 0x163   :  { %8610 = vmatpush2.bf16.msra.mxu0 %v12339_v23  ;;  %v12416_v23 = vld [vmem:[%s18613_s1 + $0x1a84] ss:$16 sps:$4 sm:$0xff]  }
 0x164   :  { %8653 = vmatpush2.bf16.msra.mxu1 %v12342_v24  ;;  %8611 = vmatprep.subr.bf16.mxu0 %v12347_v25  ;;  %v12411_v24 = vld [vmem:[%s18613_s1 + $0x1880] ss:$16 sps:$4 sm:$0xff]   ;;  %v12419_v25 = vld [vmem:[%s18613_s1 + $0x1864] ss:$16 sps:$4 sm:$0xff]  }
 0x165   :  { %8654 = vmatprep.subr.bf16.mxu1 %v12350_v26  ;;  %v12422_v26 = vld [vmem:[%s18613_s1 + $0x1a64] ss:$16 sps:$4 sm:$0xff]  }
 0x167   :  { %8612 = vmatpush2.bf16.msra.mxu0 %v12345_v27  ;;  %v12417_v27 = vld [vmem:[%s18613_s1 + $0x1860] ss:$16 sps:$4 sm:$0xff]  }
 0x168   :  { %8655 = vmatpush2.bf16.msra.mxu1 %v12348_v28  ;;  %8613 = vmatprep.subr.bf16.mxu0 %v12353_v29  ;;  %v12420_v28 = vld [vmem:[%s18613_s1 + $0x1a60] ss:$16 sps:$4 sm:$0xff]   ;;  %v12425_v29 = vld [vmem:[%s18613_s1 + $0x1844] ss:$16 sps:$4 sm:$0xff]  }
 0x169   :  { %8656 = vmatprep.subr.bf16.mxu1 %v12356_v30  ;;  %v12428_v30 = vld [vmem:[%s18613_s1 + $0x1a44] ss:$16 sps:$4 sm:$0xff]  }
 0x16b   :  { %8614 = vmatpush2.bf16.msra.mxu0 %v12351_v31  ;;  %v12423_v31 = vld [vmem:[%s18613_s1 + $0x1840] ss:$16 sps:$4 sm:$0xff]  }
 0x16c   :  { %8657 = vmatpush2.bf16.msra.mxu1 %v12354_v32  ;;  %8615 = vmatprep.subr.bf16.mxu0 %v12359_v33  ;;  %v12426_v32 = vld [vmem:[%s18613_s1 + $0x1a40] ss:$16 sps:$4 sm:$0xff]   ;;  %v12431_v33 = vld [vmem:[%s18613_s1 + $0x1824] ss:$16 sps:$4 sm:$0xff]  }
 0x16d   :  { %8658 = vmatprep.subr.bf16.mxu1 %v12362_v36  ;;  %v12434_v36 = vld [vmem:[%s18613_s1 + $0x1a24] ss:$16 sps:$4 sm:$0xff]  }
 0x16f   :  { %8616 = vmatpush2.bf16.msra.mxu0 %v12357_v37  ;;  %v12429_v37 = vld [vmem:[%s18613_s1 + $0x1820] ss:$16 sps:$4 sm:$0xff]  }
 0x170   :  { %8659 = vmatpush2.bf16.msra.mxu1 %v12360_v39  ;;  %8617 = vmatprep.subr.bf16.mxu0 %v12365_v40  ;;  %v12432_v39 = vld [vmem:[%s18613_s1 + $0x1a20] ss:$16 sps:$4 sm:$0xff]   ;;  %v12437_v40 = vld [vmem:[%s18613_s1 + $0x1804] ss:$16 sps:$4 sm:$0xff]  }
 0x171   :  { %8660 = vmatprep.subr.bf16.mxu1 %v12368_v41  ;;  %v12440_v41 = vld [vmem:[%s18613_s1 + $0x1a04] ss:$16 sps:$4 sm:$0xff]  }
 0x173   :  { %8618 = vmatpush2.bf16.msra.mxu0 %v12363_v42  ;;  %v12435_v42 = vld [vmem:[%s18613_s1 + $0x1800] ss:$16 sps:$4 sm:$0xff]  }
 0x174   :  { %8661 = vmatpush2.bf16.msra.mxu1 %v12366_v45  ;;  %8619 = vmatprep.subr.bf16.mxu0 %v12371_v47  ;;  %v12438_v45 = vld [vmem:[%s18613_s1 + $0x1a00] ss:$16 sps:$4 sm:$0xff]   ;;  %v12443_v47 = vld [vmem:[%s18613_s1 + $0x19e4] ss:$16 sps:$4 sm:$0xff]  }
 0x175   :  { %8662 = vmatprep.subr.bf16.mxu1 %v12374_v48  ;;  %v12446_v48 = vld [vmem:[%s18613_s1 + $0x1be4] ss:$16 sps:$4 sm:$0xff]  }
 0x177   :  { %8620 = vmatpush2.bf16.msra.mxu0 %v12369_v49  ;;  %v12441_v49 = vld [vmem:[%s18613_s1 + $0x19e0] ss:$16 sps:$4 sm:$0xff]  }
 0x178   :  { %8663 = vmatpush2.bf16.msra.mxu1 %v12372_v50  ;;  %8621 = vmatprep.subr.bf16.mxu0 %v12377_v51  ;;  %v12444_v50 = vld [vmem:[%s18613_s1 + $0x1be0] ss:$16 sps:$4 sm:$0xff]   ;;  %v12449_v51 = vld [vmem:[%s18613_s1 + $0x19c4] ss:$16 sps:$4 sm:$0xff]  }
 0x179   :  { %8664 = vmatprep.subr.bf16.mxu1 %v12380_v52  ;;  %v12452_v52 = vld [vmem:[%s18613_s1 + $0x1bc4] ss:$16 sps:$4 sm:$0xff]  }
 0x17b   :  { %8622 = vmatpush2.bf16.msra.mxu0 %v12375_v53  ;;  %v12447_v53 = vld [vmem:[%s18613_s1 + $0x19c0] ss:$16 sps:$4 sm:$0xff]  }
 0x17c   :  { %8665 = vmatpush2.bf16.msra.mxu1 %v12378_v54  ;;  %8623 = vmatprep.subr.bf16.mxu0 %v12383_v57  ;;  %v12450_v54 = vld [vmem:[%s18613_s1 + $0x1bc0] ss:$16 sps:$4 sm:$0xff]   ;;  %v12455_v57 = vld [vmem:[%s18613_s1 + $0x19a4] ss:$16 sps:$4 sm:$0xff]  }
 0x17d   :  { %8666 = vmatprep.subr.bf16.mxu1 %v12386_v58  ;;  %v12458_v58 = vld [vmem:[%s18613_s1 + $0x1ba4] ss:$16 sps:$4 sm:$0xff]  }
 0x17f   :  { %8624 = vmatpush2.bf16.msra.mxu0 %v12381_v38  ;;  %v12453_v38 = vld [vmem:[%s18613_s1 + $0x19a0] ss:$16 sps:$4 sm:$0xff]  }
 0x180   :  { %8667 = vmatpush2.bf16.msra.mxu1 %v12384_v60  ;;  %8679 = vmatprep.subr.bf16.mxu0 %v12395_v63  ;;  %v12456_v60 = vld [vmem:[%s18613_s1 + $0x1ba0] ss:$16 sps:$4 sm:$0xff]  }
 0x181   :  { %8722 = vmatprep.subr.bf16.mxu1 %v12398_v0  ;;  %v12459_v63 = vld [vmem:[%s18613_s1 + $0x1980] ss:$16 sps:$4 sm:$0xff]  }
 0x182   :  { %v8369_v12 = vpop.f32.mrf.mxu0  ;;  %8626 = vmatmul.mubr.bf16.vlgmr.msra.gmra.mxu0 %v12387_v61  ;;  %v12461_v61 = vld [vmem:[%s18613_s1 + $0x1984] ss:$16 sps:$4 sm:$0xff]   ;;  %v12462_v0 = vld [vmem:[%s18613_s1 + $0x1b80] ss:$16 sps:$4 sm:$0xff]  }
 0x183   :  { %8669 = vmatmul.mubr.bf16.vlgmr.msra.gmra.mxu1 %v12390_v62  ;;  %v8370_v13 = vadd.f32 %v8369_v12, %v15002_v59  ;;  %8680 = vmatpush1.bf16.msra.mxu0 %v12393_v1  ;;  %v8412_v14 = vpop.f32.mrf.mxu1  ;;  %v12405_v59 = vld [vmem:[%s18613_s1 + $0x18a0] ss:$16 sps:$4 sm:$0xff]   ;;  %v12464_v62 = vld [vmem:[%s18613_s1 + $0x1b84] ss:$16 sps:$4 sm:$0xff]  }
 0x184   :  { %8723 = vmatpush1.bf16.msra.mxu1 %v12396_v46  ;;  %v15210_v15 = vpop.f32.mrf.mxu0  ;;  %8681 = vmatprep.subr.bf16.mxu0 %v12401_v4  ;;  %v12467_v1 = vld [vmem:[%s18613_s1 + $0x1964] ss:$16 sps:$4 sm:$0xff]   ;;  %v12465_v4 = vld [vmem:[%s18613_s1 + $0x1960] ss:$16 sps:$4 sm:$0xff]  }
 0x185   :  { %8724 = vmatprep.subr.bf16.mxu1 %v12404_v5  ;;  %v15218_v18 = vadd.f32 %v8412_v14, %v8370_v13  ;;  %8711 = vmatprep.mubr.bf16.mxu0 %v12491_v8  ;;  %v12470_v46 = vld [vmem:[%s18613_s1 + $0x1b64] ss:$16 sps:$4 sm:$0xff]   ;;  %v12468_v5 = vld [vmem:[%s18613_s1 + $0x1b60] ss:$16 sps:$4 sm:$0xff]  }
 0x186   :  { %8754 = vmatprep.mubr.bf16.mxu1 %v12494_v9  ;;  %v8373_v20 = vpop.f32.mrf.mxu0  ;;  %v12471_v8 = vld [vmem:[%s18613_s1 + $0x1940] ss:$16 sps:$4 sm:$0xff]   ;;  %v12479_v12 = vld [vmem:[%s18613_s1 + $0x1924] ss:$16 sps:$4 sm:$0xff]  }
 0x187   :  { %v15227_v21 = vadd.f32 %v8373_v20, %v15017_v2  ;;  %8682 = vmatpush1.bf16.msra.mxu0 %v12399_v6  ;;  %v12414_v2 = vld [vmem:[%s18613_s1 + $0x1a80] ss:$16 sps:$4 sm:$0xff]   ;;  %v12473_v6 = vld [vmem:[%s18613_s1 + $0x1944] ss:$16 sps:$4 sm:$0xff]  }
 0x188   :  { %8725 = vmatpush1.bf16.msra.mxu1 %v12402_v7  ;;  %8683 = vmatprep.subr.bf16.mxu0 %v12407_v16  ;;  %v12476_v7 = vld [vmem:[%s18613_s1 + $0x1b44] ss:$16 sps:$4 sm:$0xff]   ;;  %v12474_v9 = vld [vmem:[%s18613_s1 + $0x1b40] ss:$16 sps:$4 sm:$0xff]  }
 0x189   :  { %8726 = vmatprep.subr.bf16.mxu1 %v12410_v17  ;;  %v12482_v13 = vld [vmem:[%s18613_s1 + $0x1b24] ss:$16 sps:$4 sm:$0xff]   ;;  %v12477_v14 = vld [vmem:[%s18613_s1 + $0x1920] ss:$16 sps:$4 sm:$0xff]  }
 0x18a   :  { %v12480_v16 = vld [vmem:[%s18613_s1 + $0x1b20] ss:$16 sps:$4 sm:$0xff]   ;;  %v12485_v17 = vld [vmem:[%s18613_s1 + $0x1904] ss:$16 sps:$4 sm:$0xff]  }
 0x18b   :  { %8684 = vmatpush1.bf16.msra.mxu0 %v12405_v59  ;;  %v12488_v59 = vld [vmem:[%s18613_s1 + $0x1b04] ss:$16 sps:$4 sm:$0xff]   ;;  %v12486_v20 = vld [vmem:[%s18613_s1 + $0x1b00] ss:$16 sps:$4 sm:$0xff]  }
 0x18c   :  { %8727 = vmatpush1.bf16.msra.mxu1 %v12408_v19  ;;  %8685 = vmatprep.subr.bf16.mxu0 %v12413_v22  ;;  %v12483_v19 = vld [vmem:[%s18613_s1 + $0x1900] ss:$16 sps:$4 sm:$0xff]  }
 0x18d   :  { %8728 = vmatprep.subr.bf16.mxu1 %v12416_v23  ;;  %v12489_v22 = vld [vmem:[%s18614_s0 + $0x60] ss:$164 sps:$4 sm:$0xff]   ;;  %v12492_v23 = vld [vmem:[%s18614_s0 + $0x68] ss:$164 sps:$4 sm:$0xff]  }
 0x18f   :  { %8686 = vmatpush1.bf16.msra.mxu0 %v12411_v24  ;;  %v12497_v24 = vld [vmem:[%s18613_s1 + $0x1ce4] ss:$16 sps:$4 sm:$0xff]  }
 0x190   :  { %8729 = vmatpush1.bf16.msra.mxu1 %v12414_v2  ;;  %8687 = vmatprep.subr.bf16.mxu0 %v12419_v25  ;;  %v12500_v2 = vld [vmem:[%s18613_s1 + $0x1ee4] ss:$16 sps:$4 sm:$0xff]   ;;  %v12495_v25 = vld [vmem:[%s18613_s1 + $0x1ce0] ss:$16 sps:$4 sm:$0xff]  }
 0x191   :  { %8730 = vmatprep.subr.bf16.mxu1 %v12422_v26  ;;  %v12498_v26 = vld [vmem:[%s18613_s1 + $0x1ee0] ss:$16 sps:$4 sm:$0xff]  }
 0x193   :  { %8688 = vmatpush1.bf16.msra.mxu0 %v12417_v27  ;;  %v15403_v27 = vpop.f32.mrf.mxu0 }
 0x194   :  { %8731 = vmatpush1.bf16.msra.mxu1 %v12420_v28  ;;  %8689 = vmatprep.subr.bf16.mxu0 %v12425_v29  ;;  %v12503_v28 = vld [vmem:[%s18613_s1 + $0x1cc4] ss:$16 sps:$4 sm:$0xff]  }
 0x195   :  { %8732 = vmatprep.subr.bf16.mxu1 %v12428_v30  ;;  %v12506_v29 = vld [vmem:[%s18613_s1 + $0x1ec4] ss:$16 sps:$4 sm:$0xff]   ;;  %v12501_v30 = vld [vmem:[%s18613_s1 + $0x1cc0] ss:$16 sps:$4 sm:$0xff]  }
 0x197   :  { %8690 = vmatpush1.bf16.msra.mxu0 %v12423_v31  ;;  %v12504_v31 = vld [vmem:[%s18613_s1 + $0x1ec0] ss:$16 sps:$4 sm:$0xff]  }
 0x198   :  { %8733 = vmatpush1.bf16.msra.mxu1 %v12426_v32  ;;  %8691 = vmatprep.subr.bf16.mxu0 %v12431_v33  ;;  %v12593_v32 = vld [vmem:[%s18614_s0 + $0x74] ss:$164 sps:$4 sm:$0xff]   ;;  %v12596_v33 = vld [vmem:[%s18614_s0 + $0x7c] ss:$164 sps:$4 sm:$0xff]  }
 0x199   :  { %8734 = vmatprep.subr.bf16.mxu1 %v12434_v36 }
 0x19b   :  { %8692 = vmatpush1.bf16.msra.mxu0 %v12429_v37 }
 0x19c   :  { %8735 = vmatpush1.bf16.msra.mxu1 %v12432_v39  ;;  %8693 = vmatprep.subr.bf16.mxu0 %v12437_v40  ;;  %v12509_v39 = vld [vmem:[%s18613_s1 + $0x1ca4] ss:$16 sps:$4 sm:$0xff]  }
 0x19d   :  { %8736 = vmatprep.subr.bf16.mxu1 %v12440_v41  ;;  %v12512_v40 = vld [vmem:[%s18613_s1 + $0x1ea4] ss:$16 sps:$4 sm:$0xff]   ;;  %v12507_v41 = vld [vmem:[%s18613_s1 + $0x1ca0] ss:$16 sps:$4 sm:$0xff]  }
 0x19f   :  { %8694 = vmatpush1.bf16.msra.mxu0 %v12435_v42  ;;  %v12515_v42 = vld [vmem:[%s18613_s1 + $0x1c84] ss:$16 sps:$4 sm:$0xff]  }
 0x1a0   :  { %8737 = vmatpush1.bf16.msra.mxu1 %v12438_v45  ;;  %8695 = vmatprep.subr.bf16.mxu0 %v12443_v47  ;;  %v12518_v45 = vld [vmem:[%s18613_s1 + $0x1e84] ss:$16 sps:$4 sm:$0xff]   ;;  %v12513_v47 = vld [vmem:[%s18613_s1 + $0x1c80] ss:$16 sps:$4 sm:$0xff]  }
 0x1a1   :  { %8738 = vmatprep.subr.bf16.mxu1 %v12446_v48  ;;  %v12516_v48 = vld [vmem:[%s18613_s1 + $0x1e80] ss:$16 sps:$4 sm:$0xff]  }
 0x1a3   :  { %8696 = vmatpush2.bf16.msra.mxu0 %v12441_v49  ;;  %v12521_v49 = vld [vmem:[%s18613_s1 + $0x1c64] ss:$16 sps:$4 sm:$0xff]  }
 0x1a4   :  { %8739 = vmatpush2.bf16.msra.mxu1 %v12444_v50  ;;  %8697 = vmatprep.subr.bf16.mxu0 %v12449_v51  ;;  %v12524_v50 = vld [vmem:[%s18613_s1 + $0x1e64] ss:$16 sps:$4 sm:$0xff]   ;;  %v12519_v51 = vld [vmem:[%s18613_s1 + $0x1c60] ss:$16 sps:$4 sm:$0xff]  }
 0x1a5   :  { %8740 = vmatprep.subr.bf16.mxu1 %v12452_v52  ;;  %v12522_v52 = vld [vmem:[%s18613_s1 + $0x1e60] ss:$16 sps:$4 sm:$0xff]  }
 0x1a7   :  { %8698 = vmatpush2.bf16.msra.mxu0 %v12447_v53  ;;  %v12527_v53 = vld [vmem:[%s18613_s1 + $0x1c44] ss:$16 sps:$4 sm:$0xff]  }
 0x1a8   :  { %8741 = vmatpush2.bf16.msra.mxu1 %v12450_v54  ;;  %8699 = vmatprep.subr.bf16.mxu0 %v12455_v57  ;;  %v12530_v54 = vld [vmem:[%s18613_s1 + $0x1e44] ss:$16 sps:$4 sm:$0xff]   ;;  %v12525_v57 = vld [vmem:[%s18613_s1 + $0x1c40] ss:$16 sps:$4 sm:$0xff]  }
 0x1a9   :  { %8742 = vmatprep.subr.bf16.mxu1 %v12458_v58  ;;  %v12528_v58 = vld [vmem:[%s18613_s1 + $0x1e40] ss:$16 sps:$4 sm:$0xff]  }
 0x1ab   :  { %8700 = vmatpush2.bf16.msra.mxu0 %v12453_v38  ;;  %v12533_v38 = vld [vmem:[%s18613_s1 + $0x1c24] ss:$16 sps:$4 sm:$0xff]  }
 0x1ac   :  { %8743 = vmatpush2.bf16.msra.mxu1 %v12456_v60  ;;  %8701 = vmatprep.subr.bf16.mxu0 %v12461_v61  ;;  %v12536_v60 = vld [vmem:[%s18613_s1 + $0x1e24] ss:$16 sps:$4 sm:$0xff]   ;;  %v12531_v61 = vld [vmem:[%s18613_s1 + $0x1c20] ss:$16 sps:$4 sm:$0xff]  }
 0x1ad   :  { %8744 = vmatprep.subr.bf16.mxu1 %v12464_v62  ;;  %v12534_v62 = vld [vmem:[%s18613_s1 + $0x1e20] ss:$16 sps:$4 sm:$0xff]  }
 0x1af   :  { %8702 = vmatpush2.bf16.msra.mxu0 %v12459_v63  ;;  %v12539_v63 = vld [vmem:[%s18613_s1 + $0x1c04] ss:$16 sps:$4 sm:$0xff]  }
 0x1b0   :  { %8745 = vmatpush2.bf16.msra.mxu1 %v12462_v0  ;;  %8703 = vmatprep.subr.bf16.mxu0 %v12467_v1  ;;  %v12542_v0 = vld [vmem:[%s18613_s1 + $0x1e04] ss:$16 sps:$4 sm:$0xff]   ;;  %v12537_v1 = vld [vmem:[%s18613_s1 + $0x1c00] ss:$16 sps:$4 sm:$0xff]  }
 0x1b1   :  { %8746 = vmatprep.subr.bf16.mxu1 %v12470_v46  ;;  %v12540_v46 = vld [vmem:[%s18613_s1 + $0x1e00] ss:$16 sps:$4 sm:$0xff]  }
 0x1b3   :  { %8704 = vmatpush2.bf16.msra.mxu0 %v12465_v4  ;;  %v12545_v4 = vld [vmem:[%s18613_s1 + $0x1de4] ss:$16 sps:$4 sm:$0xff]  }
 0x1b4   :  { %8747 = vmatpush2.bf16.msra.mxu1 %v12468_v5  ;;  %8705 = vmatprep.subr.bf16.mxu0 %v12473_v6  ;;  %v12548_v5 = vld [vmem:[%s18613_s1 + $0x1fe4] ss:$16 sps:$4 sm:$0xff]   ;;  %v12543_v6 = vld [vmem:[%s18613_s1 + $0x1de0] ss:$16 sps:$4 sm:$0xff]  }
 0x1b5   :  { %8748 = vmatprep.subr.bf16.mxu1 %v12476_v7  ;;  %v12546_v7 = vld [vmem:[%s18613_s1 + $0x1fe0] ss:$16 sps:$4 sm:$0xff]  }
 0x1b7   :  { %8706 = vmatpush2.bf16.msra.mxu0 %v12471_v8  ;;  %v12551_v8 = vld [vmem:[%s18613_s1 + $0x1dc4] ss:$16 sps:$4 sm:$0xff]  }
 0x1b8   :  { %8749 = vmatpush2.bf16.msra.mxu1 %v12474_v9  ;;  %8707 = vmatprep.subr.bf16.mxu0 %v12479_v12  ;;  %v12554_v9 = vld [vmem:[%s18613_s1 + $0x1fc4] ss:$16 sps:$4 sm:$0xff]   ;;  %v12549_v12 = vld [vmem:[%s18613_s1 + $0x1dc0] ss:$16 sps:$4 sm:$0xff]  }
 0x1b9   :  { %8750 = vmatprep.subr.bf16.mxu1 %v12482_v13  ;;  %v12552_v13 = vld [vmem:[%s18613_s1 + $0x1fc0] ss:$16 sps:$4 sm:$0xff]  }
 0x1bb   :  { %8708 = vmatpush2.bf16.msra.mxu0 %v12477_v14  ;;  %v12557_v14 = vld [vmem:[%s18613_s1 + $0x1da4] ss:$16 sps:$4 sm:$0xff]  }
 0x1bc   :  { %8751 = vmatpush2.bf16.msra.mxu1 %v12480_v16  ;;  %8709 = vmatprep.subr.bf16.mxu0 %v12485_v17  ;;  %v12560_v16 = vld [vmem:[%s18613_s1 + $0x1fa4] ss:$16 sps:$4 sm:$0xff]   ;;  %v12555_v17 = vld [vmem:[%s18613_s1 + $0x1da0] ss:$16 sps:$4 sm:$0xff]  }
 0x1bd   :  { %8752 = vmatprep.subr.bf16.mxu1 %v12488_v59  ;;  %v12558_v59 = vld [vmem:[%s18613_s1 + $0x1fa0] ss:$16 sps:$4 sm:$0xff]  }
 0x1bf   :  { %8710 = vmatpush2.bf16.msra.mxu0 %v12483_v19  ;;  %v12563_v19 = vld [vmem:[%s18613_s1 + $0x1d84] ss:$16 sps:$4 sm:$0xff]  }
 0x1c0   :  { %8753 = vmatpush2.bf16.msra.mxu1 %v12486_v20  ;;  %8765 = vmatprep.subr.bf16.mxu0 %v12497_v24  ;;  %v12566_v20 = vld [vmem:[%s18613_s1 + $0x1f84] ss:$16 sps:$4 sm:$0xff]  }
 0x1c1   :  { %8808 = vmatprep.subr.bf16.mxu1 %v12500_v2  ;;  %v12569_v24 = vld [vmem:[%s18613_s1 + $0x1d64] ss:$16 sps:$4 sm:$0xff]  }
 0x1c2   :  { %v8455_v36 = vpop.f32.mrf.mxu0  ;;  %8712 = vmatmul.mubr.bf16.vlgmr.msra.gmra.mxu0 %v12489_v22  ;;  %v12561_v22 = vld [vmem:[%s18613_s1 + $0x1d80] ss:$16 sps:$4 sm:$0xff]   ;;  %v12572_v2 = vld [vmem:[%s18613_s1 + $0x1f64] ss:$16 sps:$4 sm:$0xff]  }
 0x1c3   :  { %8755 = vmatmul.mubr.bf16.vlgmr.msra.gmra.mxu1 %v12492_v23  ;;  %v15424_v37 = vadd.f32 %v8455_v36, %v15218_v18  ;;  %8766 = vmatpush1.bf16.msra.mxu0 %v12495_v25  ;;  %v12510_v18 = vld [vmem:[%s18613_s1 + $0x1ea0] ss:$16 sps:$4 sm:$0xff]  }
 0x1c4   :  { %8809 = vmatpush1.bf16.msra.mxu1 %v12498_v26  ;;  %8767 = vmatprep.subr.bf16.mxu0 %v12503_v28  ;;  %v12564_v23 = vld [vmem:[%s18613_s1 + $0x1f80] ss:$16 sps:$4 sm:$0xff]   ;;  %v12575_v28 = vld [vmem:[%s18613_s1 + $0x1d44] ss:$16 sps:$4 sm:$0xff]  }
 0x1c5   :  { %8810 = vmatprep.subr.bf16.mxu1 %v12506_v29  ;;  %8797 = vmatprep.mubr.bf16.mxu0 %v12593_v32  ;;  %v12567_v25 = vld [vmem:[%s18613_s1 + $0x1d60] ss:$16 sps:$4 sm:$0xff]   ;;  %v12578_v29 = vld [vmem:[%s18613_s1 + $0x1f44] ss:$16 sps:$4 sm:$0xff]  }
 0x1c6   :  { %8840 = vmatprep.mubr.bf16.mxu1 %v12596_v33  ;;  %v12570_v26 = vld [vmem:[%s18613_s1 + $0x1f60] ss:$16 sps:$4 sm:$0xff]   ;;  %v12581_v32 = vld [vmem:[%s18613_s1 + $0x1d24] ss:$16 sps:$4 sm:$0xff]  }
 0x1c7   :  { %8768 = vmatpush1.bf16.msra.mxu0 %v12501_v30  ;;  %v12573_v30 = vld [vmem:[%s18613_s1 + $0x1d40] ss:$16 sps:$4 sm:$0xff]   ;;  %v12584_v33 = vld [vmem:[%s18613_s1 + $0x1f24] ss:$16 sps:$4 sm:$0xff]  }
 0x1c8   :  { %8811 = vmatpush1.bf16.msra.mxu1 %v12504_v31  ;;  %8769 = vmatprep.subr.bf16.mxu0 %v12509_v39  ;;  %v12576_v31 = vld [vmem:[%s18613_s1 + $0x1f40] ss:$16 sps:$4 sm:$0xff]  }
 0x1c9   :  { %8812 = vmatprep.subr.bf16.mxu1 %v12512_v40  ;;  %v12579_v36 = vld [vmem:[%s18613_s1 + $0x1d20] ss:$16 sps:$4 sm:$0xff]   ;;  %v12587_v40 = vld [vmem:[%s18613_s1 + $0x1d04] ss:$16 sps:$4 sm:$0xff]  }
 0x1ca   :  { %v12582_v39 = vld [vmem:[%s18613_s1 + $0x1f20] ss:$16 sps:$4 sm:$0xff]  }
 0x1cb   :  { %8770 = vmatpush1.bf16.msra.mxu0 %v12507_v41  ;;  %v12590_v41 = vld [vmem:[%s18613_s1 + $0x1f04] ss:$16 sps:$4 sm:$0xff]  }
 0x1cc   :  { %8813 = vmatpush1.bf16.msra.mxu1 %v12510_v18  ;;  %8771 = vmatprep.subr.bf16.mxu0 %v12515_v42  ;;  %v12585_v18 = vld [vmem:[%s18613_s1 + $0x1d00] ss:$16 sps:$4 sm:$0xff]  }
 0x1cd   :  { %8814 = vmatprep.subr.bf16.mxu1 %v12518_v45  ;;  %v12588_v42 = vld [vmem:[%s18613_s1 + $0x1f00] ss:$16 sps:$4 sm:$0xff]  }
 0x1ce   :  { %v12591_v45 = vld [vmem:[%s18614_s0 + $0x70] ss:$164 sps:$4 sm:$0xff]  }
 0x1cf   :  { %8772 = vmatpush1.bf16.msra.mxu0 %v12513_v47  ;;  %v12594_v47 = vld [vmem:[%s18614_s0 + $0x78] ss:$164 sps:$4 sm:$0xff]  }
 0x1d0   :  { %8815 = vmatpush1.bf16.msra.mxu1 %v12516_v48  ;;  %8773 = vmatprep.subr.bf16.mxu0 %v12521_v49  ;;  %v12599_v48 = vld [vmem:[%s18613_s1 + $0x20e4] ss:$16 sps:$4 sm:$0xff]  }
 0x1d1   :  { %8816 = vmatprep.subr.bf16.mxu1 %v12524_v50  ;;  %v12602_v49 = vld [vmem:[%s18613_s1 + $0x22e4] ss:$16 sps:$4 sm:$0xff]   ;;  %v12597_v50 = vld [vmem:[%s18613_s1 + $0x20e0] ss:$16 sps:$4 sm:$0xff]  }
 0x1d3   :  { %8774 = vmatpush1.bf16.msra.mxu0 %v12519_v51  ;;  %v12600_v51 = vld [vmem:[%s18613_s1 + $0x22e0] ss:$16 sps:$4 sm:$0xff]  }
 0x1d4   :  { %8817 = vmatpush1.bf16.msra.mxu1 %v12522_v52  ;;  %8775 = vmatprep.subr.bf16.mxu0 %v12527_v53  ;;  %v12605_v52 = vld [vmem:[%s18613_s1 + $0x20c4] ss:$16 sps:$4 sm:$0xff]  }
 0x1d5   :  { %8818 = vmatprep.subr.bf16.mxu1 %v12530_v54  ;;  %v12608_v53 = vld [vmem:[%s18613_s1 + $0x22c4] ss:$16 sps:$4 sm:$0xff]   ;;  %v12603_v54 = vld [vmem:[%s18613_s1 + $0x20c0] ss:$16 sps:$4 sm:$0xff]  }
 0x1d7   :  { %8776 = vmatpush1.bf16.msra.mxu0 %v12525_v57  ;;  %v12606_v57 = vld [vmem:[%s18613_s1 + $0x22c0] ss:$16 sps:$4 sm:$0xff]  }
 0x1d8   :  { %8819 = vmatpush1.bf16.msra.mxu1 %v12528_v58  ;;  %8777 = vmatprep.subr.bf16.mxu0 %v12533_v38  ;;  %v12695_v58 = vld [vmem:[%s18614_s0 + $0x84] ss:$164 sps:$4 sm:$0xff]   ;;  %v12698_v38 = vld [vmem:[%s18614_s0 + $0x8c] ss:$164 sps:$4 sm:$0xff]  }
 0x1d9   :  { %8820 = vmatprep.subr.bf16.mxu1 %v12536_v60  ;;  %v12611_v60 = vld [vmem:[%s18613_s1 + $0x20a4] ss:$16 sps:$4 sm:$0xff]  }
 0x1db   :  { %8778 = vmatpush1.bf16.msra.mxu0 %v12531_v61  ;;  %v12614_v61 = vld [vmem:[%s18613_s1 + $0x22a4] ss:$16 sps:$4 sm:$0xff]  }
 0x1dc   :  { %8821 = vmatpush1.bf16.msra.mxu1 %v12534_v62  ;;  %8779 = vmatprep.subr.bf16.mxu0 %v12539_v63  ;;  %v12609_v62 = vld [vmem:[%s18613_s1 + $0x20a0] ss:$16 sps:$4 sm:$0xff]  }
 0x1dd   :  { %8822 = vmatprep.subr.bf16.mxu1 %v12542_v0  ;;  %v12612_v63 = vld [vmem:[%s18613_s1 + $0x22a0] ss:$16 sps:$4 sm:$0xff]   ;;  %v12617_v0 = vld [vmem:[%s18613_s1 + $0x2084] ss:$16 sps:$4 sm:$0xff]  }
 0x1df   :  { %8780 = vmatpush1.bf16.msra.mxu0 %v12537_v1  ;;  %v12620_v1 = vld [vmem:[%s18613_s1 + $0x2284] ss:$16 sps:$4 sm:$0xff]  }
 0x1e0   :  { %8823 = vmatpush1.bf16.msra.mxu1 %v12540_v46  ;;  %8781 = vmatprep.subr.bf16.mxu0 %v12545_v4  ;;  %v12615_v46 = vld [vmem:[%s18613_s1 + $0x2080] ss:$16 sps:$4 sm:$0xff]  }
 0x1e1   :  { %8824 = vmatprep.subr.bf16.mxu1 %v12548_v5  ;;  %v12618_v4 = vld [vmem:[%s18613_s1 + $0x2280] ss:$16 sps:$4 sm:$0xff]   ;;  %v12623_v5 = vld [vmem:[%s18613_s1 + $0x2064] ss:$16 sps:$4 sm:$0xff]  }
 0x1e3   :  { %8782 = vmatpush2.bf16.msra.mxu0 %v12543_v6  ;;  %v12626_v6 = vld [vmem:[%s18613_s1 + $0x2264] ss:$16 sps:$4 sm:$0xff]  }
 0x1e4   :  { %8825 = vmatpush2.bf16.msra.mxu1 %v12546_v7  ;;  %8783 = vmatprep.subr.bf16.mxu0 %v12551_v8  ;;  %v12621_v7 = vld [vmem:[%s18613_s1 + $0x2060] ss:$16 sps:$4 sm:$0xff]  }
 0x1e5   :  { %8826 = vmatprep.subr.bf16.mxu1 %v12554_v9  ;;  %v12624_v8 = vld [vmem:[%s18613_s1 + $0x2260] ss:$16 sps:$4 sm:$0xff]   ;;  %v12629_v9 = vld [vmem:[%s18613_s1 + $0x2044] ss:$16 sps:$4 sm:$0xff]  }
 0x1e7   :  { %8784 = vmatpush2.bf16.msra.mxu0 %v12549_v12  ;;  %v12632_v12 = vld [vmem:[%s18613_s1 + $0x2244] ss:$16 sps:$4 sm:$0xff]  }
 0x1e8   :  { %8827 = vmatpush2.bf16.msra.mxu1 %v12552_v13  ;;  %8785 = vmatprep.subr.bf16.mxu0 %v12557_v14  ;;  %v12627_v13 = vld [vmem:[%s18613_s1 + $0x2040] ss:$16 sps:$4 sm:$0xff]  }
 0x1e9   :  { %8828 = vmatprep.subr.bf16.mxu1 %v12560_v16  ;;  %v12630_v14 = vld [vmem:[%s18613_s1 + $0x2240] ss:$16 sps:$4 sm:$0xff]   ;;  %v12635_v16 = vld [vmem:[%s18613_s1 + $0x2024] ss:$16 sps:$4 sm:$0xff]  }
 0x1eb   :  { %8786 = vmatpush2.bf16.msra.mxu0 %v12555_v17  ;;  %v12638_v17 = vld [vmem:[%s18613_s1 + $0x2224] ss:$16 sps:$4 sm:$0xff]  }
 0x1ec   :  { %8829 = vmatpush2.bf16.msra.mxu1 %v12558_v59  ;;  %8787 = vmatprep.subr.bf16.mxu0 %v12563_v19  ;;  %v12633_v59 = vld [vmem:[%s18613_s1 + $0x2020] ss:$16 sps:$4 sm:$0xff]  }
 0x1ed   :  { %8830 = vmatprep.subr.bf16.mxu1 %v12566_v20  ;;  %v12636_v19 = vld [vmem:[%s18613_s1 + $0x2220] ss:$16 sps:$4 sm:$0xff]   ;;  %v12641_v20 = vld [vmem:[%s18613_s1 + $0x2004] ss:$16 sps:$4 sm:$0xff]  }
 0x1ef   :  { %8788 = vmatpush2.bf16.msra.mxu0 %v12561_v22  ;;  %v12644_v22 = vld [vmem:[%s18613_s1 + $0x2204] ss:$16 sps:$4 sm:$0xff]  }
 0x1f0   :  { %8831 = vmatpush2.bf16.msra.mxu1 %v12564_v23  ;;  %8789 = vmatprep.subr.bf16.mxu0 %v12569_v24  ;;  %v12639_v23 = vld [vmem:[%s18613_s1 + $0x2000] ss:$16 sps:$4 sm:$0xff]  }
 0x1f1   :  { %8832 = vmatprep.subr.bf16.mxu1 %v12572_v2  ;;  %v12642_v24 = vld [vmem:[%s18613_s1 + $0x2200] ss:$16 sps:$4 sm:$0xff]   ;;  %v12647_v2 = vld [vmem:[%s18613_s1 + $0x21e4] ss:$16 sps:$4 sm:$0xff]  }
 0x1f3   :  { %8790 = vmatpush2.bf16.msra.mxu0 %v12567_v25  ;;  %v12650_v25 = vld [vmem:[%s18613_s1 + $0x23e4] ss:$16 sps:$4 sm:$0xff]  }
 0x1f4   :  { %8833 = vmatpush2.bf16.msra.mxu1 %v12570_v26  ;;  %8791 = vmatprep.subr.bf16.mxu0 %v12575_v28  ;;  %v12645_v26 = vld [vmem:[%s18613_s1 + $0x21e0] ss:$16 sps:$4 sm:$0xff]  }
 0x1f5   :  { %8834 = vmatprep.subr.bf16.mxu1 %v12578_v29  ;;  %v12648_v28 = vld [vmem:[%s18613_s1 + $0x23e0] ss:$16 sps:$4 sm:$0xff]   ;;  %v12653_v29 = vld [vmem:[%s18613_s1 + $0x21c4] ss:$16 sps:$4 sm:$0xff]  }
 0x1f7   :  { %8792 = vmatpush2.bf16.msra.mxu0 %v12573_v30  ;;  %v12656_v30 = vld [vmem:[%s18613_s1 + $0x23c4] ss:$16 sps:$4 sm:$0xff]  }
 0x1f8   :  { %8835 = vmatpush2.bf16.msra.mxu1 %v12576_v31  ;;  %8793 = vmatprep.subr.bf16.mxu0 %v12581_v32  ;;  %v12651_v31 = vld [vmem:[%s18613_s1 + $0x21c0] ss:$16 sps:$4 sm:$0xff]  }
 0x1f9   :  { %8836 = vmatprep.subr.bf16.mxu1 %v12584_v33  ;;  %v12654_v32 = vld [vmem:[%s18613_s1 + $0x23c0] ss:$16 sps:$4 sm:$0xff]   ;;  %v12659_v33 = vld [vmem:[%s18613_s1 + $0x21a4] ss:$16 sps:$4 sm:$0xff]  }
 0x1fb   :  { %8794 = vmatpush2.bf16.msra.mxu0 %v12579_v36  ;;  %v12662_v36 = vld [vmem:[%s18613_s1 + $0x23a4] ss:$16 sps:$4 sm:$0xff]  }
 0x1fc   :  { %8837 = vmatpush2.bf16.msra.mxu1 %v12582_v39  ;;  %8795 = vmatprep.subr.bf16.mxu0 %v12587_v40  ;;  %v12657_v39 = vld [vmem:[%s18613_s1 + $0x21a0] ss:$16 sps:$4 sm:$0xff]  }
 0x1fd   :  { %8838 = vmatprep.subr.bf16.mxu1 %v12590_v41  ;;  %v12660_v40 = vld [vmem:[%s18613_s1 + $0x23a0] ss:$16 sps:$4 sm:$0xff]   ;;  %v12665_v41 = vld [vmem:[%s18613_s1 + $0x2184] ss:$16 sps:$4 sm:$0xff]  }
 0x1ff   :  { %8796 = vmatpush2.bf16.msra.mxu0 %v12585_v18  ;;  %v12668_v18 = vld [vmem:[%s18613_s1 + $0x2384] ss:$16 sps:$4 sm:$0xff]  }
 0x200   :  { %8839 = vmatpush2.bf16.msra.mxu1 %v12588_v42  ;;  %8851 = vmatprep.subr.bf16.mxu0 %v12599_v48  ;;  %v12663_v42 = vld [vmem:[%s18613_s1 + $0x2180] ss:$16 sps:$4 sm:$0xff]   ;;  %v12674_v48 = vld [vmem:[%s18613_s1 + $0x2364] ss:$16 sps:$4 sm:$0xff]  }
 0x201   :  { %8894 = vmatprep.subr.bf16.mxu1 %v12602_v49  ;;  %v12669_v49 = vld [vmem:[%s18613_s1 + $0x2160] ss:$16 sps:$4 sm:$0xff]  }
 0x202   :  { %8798 = vmatmul.mubr.bf16.vlgmr.msra.gmra.mxu0 %v12591_v45  ;;  %v12666_v45 = vld [vmem:[%s18613_s1 + $0x2380] ss:$16 sps:$4 sm:$0xff]  }
 0x203   :  { %8841 = vmatmul.mubr.bf16.vlgmr.msra.gmra.mxu1 %v12594_v47  ;;  %8852 = vmatpush1.bf16.msra.mxu0 %v12597_v50  ;;  %v12671_v47 = vld [vmem:[%s18613_s1 + $0x2164] ss:$16 sps:$4 sm:$0xff]   ;;  %v12672_v50 = vld [vmem:[%s18613_s1 + $0x2360] ss:$16 sps:$4 sm:$0xff]  }
 0x204   :  { %8895 = vmatpush1.bf16.msra.mxu1 %v12600_v51  ;;  %8853 = vmatprep.subr.bf16.mxu0 %v12605_v52  ;;  %v12677_v51 = vld [vmem:[%s18613_s1 + $0x2144] ss:$16 sps:$4 sm:$0xff]  }
 0x205   :  { %8896 = vmatprep.subr.bf16.mxu1 %v12608_v53  ;;  %8883 = vmatprep.mubr.bf16.mxu0 %v12695_v58  ;;  %v12680_v52 = vld [vmem:[%s18613_s1 + $0x2344] ss:$16 sps:$4 sm:$0xff]   ;;  %v12675_v53 = vld [vmem:[%s18613_s1 + $0x2140] ss:$16 sps:$4 sm:$0xff]  }
 0x206   :  { %8926 = vmatprep.mubr.bf16.mxu1 %v12698_v38  ;;  %v12686_v58 = vld [vmem:[%s18613_s1 + $0x2324] ss:$16 sps:$4 sm:$0xff]   ;;  %v12681_v38 = vld [vmem:[%s18613_s1 + $0x2120] ss:$16 sps:$4 sm:$0xff]  }
 0x207   :  { %8854 = vmatpush1.bf16.msra.mxu0 %v12603_v54  ;;  %v12678_v54 = vld [vmem:[%s18613_s1 + $0x2340] ss:$16 sps:$4 sm:$0xff]  }
 0x208   :  { %8897 = vmatpush1.bf16.msra.mxu1 %v12606_v57  ;;  %8855 = vmatprep.subr.bf16.mxu0 %v12611_v60  ;;  %v12683_v57 = vld [vmem:[%s18613_s1 + $0x2124] ss:$16 sps:$4 sm:$0xff]   ;;  %v12684_v60 = vld [vmem:[%s18613_s1 + $0x2320] ss:$16 sps:$4 sm:$0xff]  }
 0x209   :  { %8898 = vmatprep.subr.bf16.mxu1 %v12614_v61  ;;  %v12689_v61 = vld [vmem:[%s18613_s1 + $0x2104] ss:$16 sps:$4 sm:$0xff]  }
 0x20b   :  { %8856 = vmatpush1.bf16.msra.mxu0 %v12609_v62  ;;  %v12692_v62 = vld [vmem:[%s18613_s1 + $0x2304] ss:$16 sps:$4 sm:$0xff]  }
 0x20c   :  { %8899 = vmatpush1.bf16.msra.mxu1 %v12612_v63  ;;  %8857 = vmatprep.subr.bf16.mxu0 %v12617_v0  ;;  %v12687_v63 = vld [vmem:[%s18613_s1 + $0x2100] ss:$16 sps:$4 sm:$0xff]  }
 0x20d   :  { %8900 = vmatprep.subr.bf16.mxu1 %v12620_v1  ;;  %v12690_v0 = vld [vmem:[%s18613_s1 + $0x2300] ss:$16 sps:$4 sm:$0xff]  }
 0x20e   :  { %v12693_v1 = vld [vmem:[%s18614_s0 + $0x80] ss:$164 sps:$4 sm:$0xff]  }
 0x20f   :  { %8858 = vmatpush1.bf16.msra.mxu0 %v12615_v46  ;;  %v12696_v46 = vld [vmem:[%s18614_s0 + $0x88] ss:$164 sps:$4 sm:$0xff]  }
 0x210   :  { %8901 = vmatpush1.bf16.msra.mxu1 %v12618_v4  ;;  %8859 = vmatprep.subr.bf16.mxu0 %v12623_v5  ;;  %v12701_v4 = vld [vmem:[%s18613_s1 + $0x24e4] ss:$16 sps:$4 sm:$0xff]  }
 0x211   :  { %8902 = vmatprep.subr.bf16.mxu1 %v12626_v6  ;;  %v12704_v5 = vld [vmem:[%s18613_s1 + $0x26e4] ss:$16 sps:$4 sm:$0xff]   ;;  %v12699_v6 = vld [vmem:[%s18613_s1 + $0x24e0] ss:$16 sps:$4 sm:$0xff]  }
 0x213   :  { %8860 = vmatpush1.bf16.msra.mxu0 %v12621_v7  ;;  %v12702_v7 = vld [vmem:[%s18613_s1 + $0x26e0] ss:$16 sps:$4 sm:$0xff]  }
 0x214   :  { %8903 = vmatpush1.bf16.msra.mxu1 %v12624_v8  ;;  %8861 = vmatprep.subr.bf16.mxu0 %v12629_v9  ;;  %v12707_v8 = vld [vmem:[%s18613_s1 + $0x24c4] ss:$16 sps:$4 sm:$0xff]  }
 0x215   :  { %8904 = vmatprep.subr.bf16.mxu1 %v12632_v12  ;;  %v12710_v9 = vld [vmem:[%s18613_s1 + $0x26c4] ss:$16 sps:$4 sm:$0xff]   ;;  %v12705_v12 = vld [vmem:[%s18613_s1 + $0x24c0] ss:$16 sps:$4 sm:$0xff]  }
 0x217   :  { %8862 = vmatpush1.bf16.msra.mxu0 %v12627_v13  ;;  %v12708_v13 = vld [vmem:[%s18613_s1 + $0x26c0] ss:$16 sps:$4 sm:$0xff]  }
 0x218   :  { %8905 = vmatpush1.bf16.msra.mxu1 %v12630_v14  ;;  %8863 = vmatprep.subr.bf16.mxu0 %v12635_v16  ;;  %v12797_v14 = vld [vmem:[%s18614_s0 + $0x94] ss:$164 sps:$4 sm:$0xff]   ;;  %v12800_v16 = vld [vmem:[%s18614_s0 + $0x9c] ss:$164 sps:$4 sm:$0xff]  }
 0x219   :  { %8906 = vmatprep.subr.bf16.mxu1 %v12638_v17  ;;  %v12713_v17 = vld [vmem:[%s18613_s1 + $0x24a4] ss:$16 sps:$4 sm:$0xff]  }
 0x21b   :  { %8864 = vmatpush1.bf16.msra.mxu0 %v12633_v59  ;;  %v12716_v59 = vld [vmem:[%s18613_s1 + $0x26a4] ss:$16 sps:$4 sm:$0xff]  }
 0x21c   :  { %8907 = vmatpush1.bf16.msra.mxu1 %v12636_v19  ;;  %8865 = vmatprep.subr.bf16.mxu0 %v12641_v20  ;;  %v12711_v19 = vld [vmem:[%s18613_s1 + $0x24a0] ss:$16 sps:$4 sm:$0xff]  }
 0x21d   :  { %8908 = vmatprep.subr.bf16.mxu1 %v12644_v22  ;;  %v12714_v20 = vld [vmem:[%s18613_s1 + $0x26a0] ss:$16 sps:$4 sm:$0xff]   ;;  %v12719_v22 = vld [vmem:[%s18613_s1 + $0x2484] ss:$16 sps:$4 sm:$0xff]  }
 0x21f   :  { %8866 = vmatpush1.bf16.msra.mxu0 %v12639_v23  ;;  %v12722_v23 = vld [vmem:[%s18613_s1 + $0x2684] ss:$16 sps:$4 sm:$0xff]  }
 0x220   :  { %8909 = vmatpush1.bf16.msra.mxu1 %v12642_v24  ;;  %8867 = vmatprep.subr.bf16.mxu0 %v12647_v2  ;;  %v12717_v24 = vld [vmem:[%s18613_s1 + $0x2480] ss:$16 sps:$4 sm:$0xff]  }
 0x221   :  { %8910 = vmatprep.subr.bf16.mxu1 %v12650_v25  ;;  %v12720_v2 = vld [vmem:[%s18613_s1 + $0x2680] ss:$16 sps:$4 sm:$0xff]   ;;  %v12725_v25 = vld [vmem:[%s18613_s1 + $0x2464] ss:$16 sps:$4 sm:$0xff]  }
 0x223   :  { %8868 = vmatpush2.bf16.msra.mxu0 %v12645_v26  ;;  %v12728_v26 = vld [vmem:[%s18613_s1 + $0x2664] ss:$16 sps:$4 sm:$0xff]  }
 0x224   :  { %8911 = vmatpush2.bf16.msra.mxu1 %v12648_v28  ;;  %8869 = vmatprep.subr.bf16.mxu0 %v12653_v29  ;;  %v12723_v28 = vld [vmem:[%s18613_s1 + $0x2460] ss:$16 sps:$4 sm:$0xff]  }
 0x225   :  { %8912 = vmatprep.subr.bf16.mxu1 %v12656_v30  ;;  %v12726_v29 = vld [vmem:[%s18613_s1 + $0x2660] ss:$16 sps:$4 sm:$0xff]   ;;  %v12731_v30 = vld [vmem:[%s18613_s1 + $0x2444] ss:$16 sps:$4 sm:$0xff]  }
 0x227   :  { %8870 = vmatpush2.bf16.msra.mxu0 %v12651_v31  ;;  %v12734_v31 = vld [vmem:[%s18613_s1 + $0x2644] ss:$16 sps:$4 sm:$0xff]  }
 0x228   :  { %8913 = vmatpush2.bf16.msra.mxu1 %v12654_v32  ;;  %8871 = vmatprep.subr.bf16.mxu0 %v12659_v33  ;;  %v12729_v32 = vld [vmem:[%s18613_s1 + $0x2440] ss:$16 sps:$4 sm:$0xff]  }
 0x229   :  { %8914 = vmatprep.subr.bf16.mxu1 %v12662_v36  ;;  %v12732_v33 = vld [vmem:[%s18613_s1 + $0x2640] ss:$16 sps:$4 sm:$0xff]   ;;  %v12737_v36 = vld [vmem:[%s18613_s1 + $0x2424] ss:$16 sps:$4 sm:$0xff]  }
 0x22b   :  { %8872 = vmatpush2.bf16.msra.mxu0 %v12657_v39  ;;  %v12740_v39 = vld [vmem:[%s18613_s1 + $0x2624] ss:$16 sps:$4 sm:$0xff]  }
 0x22c   :  { %8915 = vmatpush2.bf16.msra.mxu1 %v12660_v40  ;;  %8873 = vmatprep.subr.bf16.mxu0 %v12665_v41  ;;  %v12735_v40 = vld [vmem:[%s18613_s1 + $0x2420] ss:$16 sps:$4 sm:$0xff]  }
 0x22d   :  { %8916 = vmatprep.subr.bf16.mxu1 %v12668_v18  ;;  %v12738_v41 = vld [vmem:[%s18613_s1 + $0x2620] ss:$16 sps:$4 sm:$0xff]   ;;  %v12743_v18 = vld [vmem:[%s18613_s1 + $0x2404] ss:$16 sps:$4 sm:$0xff]  }
 0x22f   :  { %8874 = vmatpush2.bf16.msra.mxu0 %v12663_v42  ;;  %v12746_v42 = vld [vmem:[%s18613_s1 + $0x2604] ss:$16 sps:$4 sm:$0xff]  }
 0x230   :  { %8917 = vmatpush2.bf16.msra.mxu1 %v12666_v45  ;;  %8875 = vmatprep.subr.bf16.mxu0 %v12671_v47  ;;  %v12741_v45 = vld [vmem:[%s18613_s1 + $0x2400] ss:$16 sps:$4 sm:$0xff]  }
 0x231   :  { %8918 = vmatprep.subr.bf16.mxu1 %v12674_v48  ;;  %v12744_v47 = vld [vmem:[%s18613_s1 + $0x2600] ss:$16 sps:$4 sm:$0xff]   ;;  %v12749_v48 = vld [vmem:[%s18613_s1 + $0x25e4] ss:$16 sps:$4 sm:$0xff]  }
 0x233   :  { %8876 = vmatpush2.bf16.msra.mxu0 %v12669_v49  ;;  %v12752_v49 = vld [vmem:[%s18613_s1 + $0x27e4] ss:$16 sps:$4 sm:$0xff]  }
 0x234   :  { %8919 = vmatpush2.bf16.msra.mxu1 %v12672_v50  ;;  %8877 = vmatprep.subr.bf16.mxu0 %v12677_v51  ;;  %v12747_v50 = vld [vmem:[%s18613_s1 + $0x25e0] ss:$16 sps:$4 sm:$0xff]  }
 0x235   :  { %8920 = vmatprep.subr.bf16.mxu1 %v12680_v52  ;;  %v12750_v51 = vld [vmem:[%s18613_s1 + $0x27e0] ss:$16 sps:$4 sm:$0xff]   ;;  %v12755_v52 = vld [vmem:[%s18613_s1 + $0x25c4] ss:$16 sps:$4 sm:$0xff]  }
 0x237   :  { %8878 = vmatpush2.bf16.msra.mxu0 %v12675_v53  ;;  %v12758_v53 = vld [vmem:[%s18613_s1 + $0x27c4] ss:$16 sps:$4 sm:$0xff]  }
 0x238   :  { %8921 = vmatpush2.bf16.msra.mxu1 %v12678_v54  ;;  %8879 = vmatprep.subr.bf16.mxu0 %v12683_v57  ;;  %v12753_v54 = vld [vmem:[%s18613_s1 + $0x25c0] ss:$16 sps:$4 sm:$0xff]  }
 0x239   :  { %8922 = vmatprep.subr.bf16.mxu1 %v12686_v58  ;;  %v12756_v57 = vld [vmem:[%s18613_s1 + $0x27c0] ss:$16 sps:$4 sm:$0xff]   ;;  %v12761_v58 = vld [vmem:[%s18613_s1 + $0x25a4] ss:$16 sps:$4 sm:$0xff]  }
 0x23b   :  { %8880 = vmatpush2.bf16.msra.mxu0 %v12681_v38  ;;  %v12764_v38 = vld [vmem:[%s18613_s1 + $0x27a4] ss:$16 sps:$4 sm:$0xff]  }
 0x23c   :  { %8923 = vmatpush2.bf16.msra.mxu1 %v12684_v60  ;;  %8881 = vmatprep.subr.bf16.mxu0 %v12689_v61  ;;  %v12759_v60 = vld [vmem:[%s18613_s1 + $0x25a0] ss:$16 sps:$4 sm:$0xff]  }
 0x23d   :  { %8924 = vmatprep.subr.bf16.mxu1 %v12692_v62  ;;  %v12762_v61 = vld [vmem:[%s18613_s1 + $0x27a0] ss:$16 sps:$4 sm:$0xff]   ;;  %v12767_v62 = vld [vmem:[%s18613_s1 + $0x2584] ss:$16 sps:$4 sm:$0xff]  }
 0x23f   :  { %8882 = vmatpush2.bf16.msra.mxu0 %v12687_v63  ;;  %v12770_v63 = vld [vmem:[%s18613_s1 + $0x2784] ss:$16 sps:$4 sm:$0xff]  }
 0x240   :  { %8925 = vmatpush2.bf16.msra.mxu1 %v12690_v0  ;;  %8937 = vmatprep.subr.bf16.mxu0 %v12701_v4  ;;  %v12765_v0 = vld [vmem:[%s18613_s1 + $0x2580] ss:$16 sps:$4 sm:$0xff]   ;;  %v12776_v4 = vld [vmem:[%s18613_s1 + $0x2764] ss:$16 sps:$4 sm:$0xff]  }
 0x241   :  { %8980 = vmatprep.subr.bf16.mxu1 %v12704_v5  ;;  %v12771_v5 = vld [vmem:[%s18613_s1 + $0x2560] ss:$16 sps:$4 sm:$0xff]  }
 0x242   :  { %8884 = vmatmul.mubr.bf16.vlgmr.msra.gmra.mxu0 %v12693_v1  ;;  %v12768_v1 = vld [vmem:[%s18613_s1 + $0x2780] ss:$16 sps:$4 sm:$0xff]  }
 0x243   :  { %8927 = vmatmul.mubr.bf16.vlgmr.msra.gmra.mxu1 %v12696_v46  ;;  %8938 = vmatpush1.bf16.msra.mxu0 %v12699_v6  ;;  %v12773_v46 = vld [vmem:[%s18613_s1 + $0x2564] ss:$16 sps:$4 sm:$0xff]   ;;  %v12774_v6 = vld [vmem:[%s18613_s1 + $0x2760] ss:$16 sps:$4 sm:$0xff]  }
 0x244   :  { %8981 = vmatpush1.bf16.msra.mxu1 %v12702_v7  ;;  %8939 = vmatprep.subr.bf16.mxu0 %v12707_v8  ;;  %v12779_v7 = vld [vmem:[%s18613_s1 + $0x2544] ss:$16 sps:$4 sm:$0xff]  }
 0x245   :  { %8982 = vmatprep.subr.bf16.mxu1 %v12710_v9  ;;  %8969 = vmatprep.mubr.bf16.mxu0 %v12797_v14  ;;  %v12782_v8 = vld [vmem:[%s18613_s1 + $0x2744] ss:$16 sps:$4 sm:$0xff]   ;;  %v12777_v9 = vld [vmem:[%s18613_s1 + $0x2540] ss:$16 sps:$4 sm:$0xff]  }
 0x246   :  { %9012 = vmatprep.mubr.bf16.mxu1 %v12800_v16  ;;  %v12788_v14 = vld [vmem:[%s18613_s1 + $0x2724] ss:$16 sps:$4 sm:$0xff]   ;;  %v12783_v16 = vld [vmem:[%s18613_s1 + $0x2520] ss:$16 sps:$4 sm:$0xff]  }
 0x247   :  { %8940 = vmatpush1.bf16.msra.mxu0 %v12705_v12  ;;  %v12780_v12 = vld [vmem:[%s18613_s1 + $0x2740] ss:$16 sps:$4 sm:$0xff]  }
 0x248   :  { %8983 = vmatpush1.bf16.msra.mxu1 %v12708_v13  ;;  %8941 = vmatprep.subr.bf16.mxu0 %v12713_v17  ;;  %v12785_v13 = vld [vmem:[%s18613_s1 + $0x2524] ss:$16 sps:$4 sm:$0xff]   ;;  %v12786_v17 = vld [vmem:[%s18613_s1 + $0x2720] ss:$16 sps:$4 sm:$0xff]  }
 0x249   :  { %8984 = vmatprep.subr.bf16.mxu1 %v12716_v59  ;;  %v12791_v59 = vld [vmem:[%s18613_s1 + $0x2504] ss:$16 sps:$4 sm:$0xff]  }
 0x24b   :  { %8942 = vmatpush1.bf16.msra.mxu0 %v12711_v19  ;;  %v12794_v19 = vld [vmem:[%s18613_s1 + $0x2704] ss:$16 sps:$4 sm:$0xff]  }
 0x24c   :  { %8985 = vmatpush1.bf16.msra.mxu1 %v12714_v20  ;;  %8943 = vmatprep.subr.bf16.mxu0 %v12719_v22  ;;  %v12789_v20 = vld [vmem:[%s18613_s1 + $0x2500] ss:$16 sps:$4 sm:$0xff]  }
 0x24d   :  { %8986 = vmatprep.subr.bf16.mxu1 %v12722_v23  ;;  %v12792_v22 = vld [vmem:[%s18613_s1 + $0x2700] ss:$16 sps:$4 sm:$0xff]  }
 0x24e   :  { %v12795_v23 = vld [vmem:[%s18614_s0 + $0x90] ss:$164 sps:$4 sm:$0xff]  }
 0x24f   :  { %8944 = vmatpush1.bf16.msra.mxu0 %v12717_v24  ;;  %v12798_v24 = vld [vmem:[%s18614_s0 + $0x98] ss:$164 sps:$4 sm:$0xff]  }
 0x250   :  { %8987 = vmatpush1.bf16.msra.mxu1 %v12720_v2  ;;  %8945 = vmatprep.subr.bf16.mxu0 %v12725_v25  ;;  %v12803_v2 = vld [vmem:[%s18613_s1 + $0x28e4] ss:$16 sps:$4 sm:$0xff]   ;;  %v12806_v25 = vld [vmem:[%s18613_s1 + $0xec] ss:$16 sps:$4 sm:$0xff]  }
 0x251   :  { %8988 = vmatprep.subr.bf16.mxu1 %v12728_v26  ;;  %v12801_v26 = vld [vmem:[%s18613_s1 + $0x28e0] ss:$16 sps:$4 sm:$0xff]  }
 0x253   :  { %8946 = vmatpush1.bf16.msra.mxu0 %v12723_v28  ;;  %v12804_v28 = vld [vmem:[%s18613_s1 + $0xe8] ss:$16 sps:$4 sm:$0xff]  }
 0x254   :  { %8989 = vmatpush1.bf16.msra.mxu1 %v12726_v29  ;;  %8947 = vmatprep.subr.bf16.mxu0 %v12731_v30  ;;  %v12809_v29 = vld [vmem:[%s18613_s1 + $0x28c4] ss:$16 sps:$4 sm:$0xff]   ;;  %v12812_v30 = vld [vmem:[%s18613_s1 + $0xcc] ss:$16 sps:$4 sm:$0xff]  }
 0x255   :  { %8990 = vmatprep.subr.bf16.mxu1 %v12734_v31  ;;  %v12807_v31 = vld [vmem:[%s18613_s1 + $0x28c0] ss:$16 sps:$4 sm:$0xff]  }
 0x257   :  { %8948 = vmatpush1.bf16.msra.mxu0 %v12729_v32  ;;  %v12810_v32 = vld [vmem:[%s18613_s1 + $0xc8] ss:$16 sps:$4 sm:$0xff]  }
 0x258   :  { %8991 = vmatpush1.bf16.msra.mxu1 %v12732_v33  ;;  %8949 = vmatprep.subr.bf16.mxu0 %v12737_v36  ;;  %v12815_v33 = vld [vmem:[%s18613_s1 + $0x28a4] ss:$16 sps:$4 sm:$0xff]   ;;  %v12818_v36 = vld [vmem:[%s18613_s1 + $0xac] ss:$16 sps:$4 sm:$0xff]  }
 0x259   :  { %8992 = vmatprep.subr.bf16.mxu1 %v12740_v39  ;;  %v12813_v39 = vld [vmem:[%s18613_s1 + $0x28a0] ss:$16 sps:$4 sm:$0xff]  }
 0x25b   :  { %8950 = vmatpush1.bf16.msra.mxu0 %v12735_v40  ;;  %v12816_v40 = vld [vmem:[%s18613_s1 + $0xa8] ss:$16 sps:$4 sm:$0xff]  }
 0x25c   :  { %8993 = vmatpush1.bf16.msra.mxu1 %v12738_v41  ;;  %8951 = vmatprep.subr.bf16.mxu0 %v12743_v18  ;;  %v13892_v41 = vmov 0   ;;  %v13850_v18 = vld [vmem:[%s18614_s0 + $0x4] ss:$164 sps:$4 sm:$0xff]  }
 0x25d   :  { %8994 = vmatprep.subr.bf16.mxu1 %v12746_v42  ;;  %v12821_v42 = vld [vmem:[%s18613_s1 + $0x2884] ss:$16 sps:$4 sm:$0xff]  }
 0x25f   :  { %8952 = vmatpush1.bf16.msra.mxu0 %v12741_v45  ;;  %v12824_v45 = vld [vmem:[%s18613_s1 + $0x8c] ss:$16 sps:$4 sm:$0xff]  }
 0x260   :  { %8995 = vmatpush1.bf16.msra.mxu1 %v12744_v47  ;;  %8953 = vmatprep.subr.bf16.mxu0 %v12749_v48  ;;  %v12819_v47 = vld [vmem:[%s18613_s1 + $0x2880] ss:$16 sps:$4 sm:$0xff]   ;;  %v12822_v48 = vld [vmem:[%s18613_s1 + $0x88] ss:$16 sps:$4 sm:$0xff]  }
 0x261   :  { %8996 = vmatprep.subr.bf16.mxu1 %v12752_v49  ;;  %v12827_v49 = vld [vmem:[%s18613_s1 + $0x2864] ss:$16 sps:$4 sm:$0xff]  }
 0x263   :  { %8954 = vmatpush2.bf16.msra.mxu0 %v12747_v50  ;;  %v12830_v50 = vld [vmem:[%s18613_s1 + $0x6c] ss:$16 sps:$4 sm:$0xff]  }
 0x264   :  { %8997 = vmatpush2.bf16.msra.mxu1 %v12750_v51  ;;  %8955 = vmatprep.subr.bf16.mxu0 %v12755_v52  ;;  %v12825_v51 = vld [vmem:[%s18613_s1 + $0x2860] ss:$16 sps:$4 sm:$0xff]   ;;  %v12828_v52 = vld [vmem:[%s18613_s1 + $0x68] ss:$16 sps:$4 sm:$0xff]  }
 0x265   :  { %8998 = vmatprep.subr.bf16.mxu1 %v12758_v53  ;;  %v12833_v53 = vld [vmem:[%s18613_s1 + $0x2844] ss:$16 sps:$4 sm:$0xff]  }
 0x267   :  { %8956 = vmatpush2.bf16.msra.mxu0 %v12753_v54  ;;  %v12836_v54 = vld [vmem:[%s18613_s1 + $0x4c] ss:$16 sps:$4 sm:$0xff]  }
 0x268   :  { %8999 = vmatpush2.bf16.msra.mxu1 %v12756_v57  ;;  %8957 = vmatprep.subr.bf16.mxu0 %v12761_v58  ;;  %v12831_v57 = vld [vmem:[%s18613_s1 + $0x2840] ss:$16 sps:$4 sm:$0xff]   ;;  %v12834_v58 = vld [vmem:[%s18613_s1 + $0x48] ss:$16 sps:$4 sm:$0xff]  }
 0x269   :  { %9000 = vmatprep.subr.bf16.mxu1 %v12764_v38  ;;  %v12839_v38 = vld [vmem:[%s18613_s1 + $0x2824] ss:$16 sps:$4 sm:$0xff]  }
 0x26b   :  { %8958 = vmatpush2.bf16.msra.mxu0 %v12759_v60  ;;  %v12842_v60 = vld [vmem:[%s18613_s1 + $0x2c] ss:$16 sps:$4 sm:$0xff]  }
 0x26c   :  { %9001 = vmatpush2.bf16.msra.mxu1 %v12762_v61  ;;  %8959 = vmatprep.subr.bf16.mxu0 %v12767_v62  ;;  %v12837_v61 = vld [vmem:[%s18613_s1 + $0x2820] ss:$16 sps:$4 sm:$0xff]   ;;  %v12840_v62 = vld [vmem:[%s18613_s1 + $0x28] ss:$16 sps:$4 sm:$0xff]  }
 0x26d   :  { %9002 = vmatprep.subr.bf16.mxu1 %v12770_v63  ;;  %v12845_v63 = vld [vmem:[%s18613_s1 + $0x2804] ss:$16 sps:$4 sm:$0xff]  }
 0x26f   :  { %8960 = vmatpush2.bf16.msra.mxu0 %v12765_v0  ;;  %v12848_v0 = vld [vmem:[%s18613_s1 + $0xc] ss:$16 sps:$4 sm:$0xff]  }
 0x270   :  { %9003 = vmatpush2.bf16.msra.mxu1 %v12768_v1  ;;  %8961 = vmatprep.subr.bf16.mxu0 %v12773_v46  ;;  %v12843_v1 = vld [vmem:[%s18613_s1 + $0x2800] ss:$16 sps:$4 sm:$0xff]   ;;  %v12846_v46 = vld [vmem:[%s18613_s1 + $0x8] ss:$16 sps:$4 sm:$0xff]  }
 0x271   :  { %9004 = vmatprep.subr.bf16.mxu1 %v12776_v4  ;;  %v12849_v4 = vld [vmem:[%s18614_s0 + $0xa0] ss:$164 sps:$4 sm:$0xff]  }
 0x273   :  { %8962 = vmatpush2.bf16.msra.mxu0 %v12771_v5  ;;  %v12852_v5 = vld [vmem:[%s18613_s1 + $0x1ec] ss:$16 sps:$4 sm:$0xff]  }
 0x274   :  { %9005 = vmatpush2.bf16.msra.mxu1 %v12774_v6  ;;  %8963 = vmatprep.subr.bf16.mxu0 %v12779_v7  ;;  %v12855_v6 = vld [vmem:[%s18613_s1 + $0x2ec] ss:$16 sps:$4 sm:$0xff]   ;;  %v12850_v7 = vld [vmem:[%s18613_s1 + $0x1e8] ss:$16 sps:$4 sm:$0xff]  }
 0x275   :  { %9006 = vmatprep.subr.bf16.mxu1 %v12782_v8  ;;  %v12853_v8 = vld [vmem:[%s18613_s1 + $0x2e8] ss:$16 sps:$4 sm:$0xff]  }
 0x277   :  { %8964 = vmatpush2.bf16.msra.mxu0 %v12777_v9  ;;  %v12858_v9 = vld [vmem:[%s18613_s1 + $0x1cc] ss:$16 sps:$4 sm:$0xff]  }
 0x278   :  { %9007 = vmatpush2.bf16.msra.mxu1 %v12780_v12  ;;  %8965 = vmatprep.subr.bf16.mxu0 %v12785_v13  ;;  %v12861_v12 = vld [vmem:[%s18613_s1 + $0x2cc] ss:$16 sps:$4 sm:$0xff]   ;;  %v12856_v13 = vld [vmem:[%s18613_s1 + $0x1c8] ss:$16 sps:$4 sm:$0xff]  }
 0x279   :  { %9008 = vmatprep.subr.bf16.mxu1 %v12788_v14  ;;  %v12859_v14 = vld [vmem:[%s18613_s1 + $0x2c8] ss:$16 sps:$4 sm:$0xff]  }
 0x27b   :  { %8966 = vmatpush2.bf16.msra.mxu0 %v12783_v16  ;;  %v12864_v16 = vld [vmem:[%s18613_s1 + $0x1ac] ss:$16 sps:$4 sm:$0xff]  }
 0x27c   :  { %9009 = vmatpush2.bf16.msra.mxu1 %v12786_v17  ;;  %8967 = vmatprep.subr.bf16.mxu0 %v12791_v59  ;;  %v12867_v17 = vld [vmem:[%s18613_s1 + $0x2ac] ss:$16 sps:$4 sm:$0xff]  }
 0x27d   :  { %9010 = vmatprep.subr.bf16.mxu1 %v12794_v19  ;;  %v13851_v59 = vld [vmem:[%s18614_s0 + $0xc] ss:$164 sps:$4 sm:$0xff]   ;;  %v12862_v19 = vld [vmem:[%s18613_s1 + $0x1a8] ss:$16 sps:$4 sm:$0xff]  }
 0x27f   :  { %8968 = vmatpush2.bf16.msra.mxu0 %v12789_v20  ;;  %v12865_v20 = vld [vmem:[%s18613_s1 + $0x2a8] ss:$16 sps:$4 sm:$0xff]  }
 0x280   :  { %9011 = vmatpush2.bf16.msra.mxu1 %v12792_v22  ;;  %9023 = vmatprep.subr.bf16.mxu0 %v12803_v2  ;;  %v12870_v22 = vld [vmem:[%s18613_s1 + $0x18c] ss:$16 sps:$4 sm:$0xff]   ;;  %v12871_v2 = vld [vmem:[%s18613_s1 + $0x288] ss:$16 sps:$4 sm:$0xff]  }
 0x281   :  { %9066 = vmatprep.subr.bf16.mxu1 %v12806_v25  ;;  %v12876_v25 = vld [vmem:[%s18613_s1 + $0x16c] ss:$16 sps:$4 sm:$0xff]  }
 0x282   :  { %8970 = vmatmul.mubr.bf16.vlgmr.msra.gmra.mxu0 %v12795_v23  ;;  %v12873_v23 = vld [vmem:[%s18613_s1 + $0x28c] ss:$16 sps:$4 sm:$0xff]  }
 0x283   :  { %9013 = vmatmul.mubr.bf16.vlgmr.msra.gmra.mxu1 %v12798_v24  ;;  %9024 = vmatpush1.bf16.msra.mxu0 %v12801_v26  ;;  %v12868_v24 = vld [vmem:[%s18613_s1 + $0x188] ss:$16 sps:$4 sm:$0xff]   ;;  %v12879_v26 = vld [vmem:[%s18613_s1 + $0x26c] ss:$16 sps:$4 sm:$0xff]  }
 0x284   :  { %9067 = vmatpush1.bf16.msra.mxu1 %v12804_v28  ;;  %9025 = vmatprep.subr.bf16.mxu0 %v12809_v29  ;;  %v12874_v28 = vld [vmem:[%s18613_s1 + $0x168] ss:$16 sps:$4 sm:$0xff]  }
 0x285   :  { %9068 = vmatprep.subr.bf16.mxu1 %v12812_v30  ;;  %9055 = vmatprep.mubr.bf16.mxu0 %v13892_v41  ;;  %v12877_v29 = vld [vmem:[%s18613_s1 + $0x268] ss:$16 sps:$4 sm:$0xff]   ;;  %v12882_v30 = vld [vmem:[%s18613_s1 + $0x14c] ss:$16 sps:$4 sm:$0xff]  }
 0x286   :  { %9098 = vmatprep.mubr.bf16.mxu1 %v13850_v18  ;;  %v12889_v18 = vld [vmem:[%s18613_s1 + $0x228] ss:$16 sps:$4 sm:$0xff]  }
 0x287   :  { %9026 = vmatpush1.bf16.msra.mxu0 %v12807_v31  ;;  %v12885_v31 = vld [vmem:[%s18613_s1 + $0x24c] ss:$16 sps:$4 sm:$0xff]  }
 0x288   :  { %9069 = vmatpush1.bf16.msra.mxu1 %v12810_v32  ;;  %9027 = vmatprep.subr.bf16.mxu0 %v12815_v33  ;;  %v12880_v32 = vld [vmem:[%s18613_s1 + $0x148] ss:$16 sps:$4 sm:$0xff]  }
 0x289   :  { %9070 = vmatprep.subr.bf16.mxu1 %v12818_v36  ;;  %v12883_v33 = vld [vmem:[%s18613_s1 + $0x248] ss:$16 sps:$4 sm:$0xff]   ;;  %v12888_v36 = vld [vmem:[%s18613_s1 + $0x12c] ss:$16 sps:$4 sm:$0xff]  }
 0x28b   :  { %9028 = vmatpush1.bf16.msra.mxu0 %v12813_v39  ;;  %v12891_v39 = vld [vmem:[%s18613_s1 + $0x22c] ss:$16 sps:$4 sm:$0xff]  }
 0x28c   :  { %9071 = vmatpush1.bf16.msra.mxu1 %v12816_v40  ;;  %9029 = vmatprep.subr.bf16.mxu0 %v12821_v42  ;;  %v12886_v40 = vld [vmem:[%s18613_s1 + $0x128] ss:$16 sps:$4 sm:$0xff]   ;;  %v12894_v42 = vld [vmem:[%s18613_s1 + $0x10c] ss:$16 sps:$4 sm:$0xff]  }
 0x28d   :  { %9072 = vmatprep.subr.bf16.mxu1 %v12824_v45  ;;  %v12897_v45 = vld [vmem:[%s18613_s1 + $0x20c] ss:$16 sps:$4 sm:$0xff]  }
 0x28f   :  { %9030 = vmatpush1.bf16.msra.mxu0 %v12819_v47  ;;  %v12892_v47 = vld [vmem:[%s18613_s1 + $0x108] ss:$16 sps:$4 sm:$0xff]  }
 0x290   :  { %9073 = vmatpush1.bf16.msra.mxu1 %v12822_v48  ;;  %9031 = vmatprep.subr.bf16.mxu0 %v12827_v49  ;;  %v12895_v48 = vld [vmem:[%s18613_s1 + $0x208] ss:$16 sps:$4 sm:$0xff]   ;;  %v12900_v49 = vld [vmem:[%s18613_s1 + $0x3ec] ss:$16 sps:$4 sm:$0xff]  }
 0x291   :  { %9074 = vmatprep.subr.bf16.mxu1 %v12830_v50  ;;  %v12903_v50 = vld [vmem:[%s18613_s1 + $0x4ec] ss:$16 sps:$4 sm:$0xff]  }
 0x293   :  { %9032 = vmatpush1.bf16.msra.mxu0 %v12825_v51  ;;  %v12898_v51 = vld [vmem:[%s18613_s1 + $0x3e8] ss:$16 sps:$4 sm:$0xff]  }
 0x294   :  { %9075 = vmatpush1.bf16.msra.mxu1 %v12828_v52  ;;  %9033 = vmatprep.subr.bf16.mxu0 %v12833_v53  ;;  %v12901_v52 = vld [vmem:[%s18613_s1 + $0x4e8] ss:$16 sps:$4 sm:$0xff]   ;;  %v12906_v53 = vld [vmem:[%s18613_s1 + $0x3cc] ss:$16 sps:$4 sm:$0xff]  }
 0x295   :  { %9076 = vmatprep.subr.bf16.mxu1 %v12836_v54  ;;  %v12909_v54 = vld [vmem:[%s18613_s1 + $0x4cc] ss:$16 sps:$4 sm:$0xff]  }
 0x297   :  { %9034 = vmatpush1.bf16.msra.mxu0 %v12831_v57  ;;  %v12904_v57 = vld [vmem:[%s18613_s1 + $0x3c8] ss:$16 sps:$4 sm:$0xff]  }
 0x298   :  { %9077 = vmatpush1.bf16.msra.mxu1 %v12834_v58  ;;  %9035 = vmatprep.subr.bf16.mxu0 %v12839_v38  ;;  %v12907_v58 = vld [vmem:[%s18613_s1 + $0x4c8] ss:$16 sps:$4 sm:$0xff]   ;;  %v13852_v38 = vld [vmem:[%s18614_s0] ss:$164 sps:$4 sm:$0xff]  }
 0x299   :  { %9078 = vmatprep.subr.bf16.mxu1 %v12842_v60  ;;  %v12912_v60 = vld [vmem:[%s18613_s1 + $0x3ac] ss:$16 sps:$4 sm:$0xff]  }
 0x29b   :  { %9036 = vmatpush1.bf16.msra.mxu0 %v12837_v61  ;;  %v12915_v61 = vld [vmem:[%s18613_s1 + $0x4ac] ss:$16 sps:$4 sm:$0xff]  }
 0x29c   :  { %9079 = vmatpush1.bf16.msra.mxu1 %v12840_v62  ;;  %9037 = vmatprep.subr.bf16.mxu0 %v12845_v63  ;;  %v12910_v62 = vld [vmem:[%s18613_s1 + $0x3a8] ss:$16 sps:$4 sm:$0xff]  }
 0x29d   :  { %9080 = vmatprep.subr.bf16.mxu1 %v12848_v0  ;;  %v12913_v63 = vld [vmem:[%s18613_s1 + $0x4a8] ss:$16 sps:$4 sm:$0xff]  }
 0x29e   :  { %v13853_v0 = vld [vmem:[%s18614_s0 + $0x14] ss:$164 sps:$4 sm:$0xff]  }
 0x29f   :  { %9038 = vmatpush1.bf16.msra.mxu0 %v12843_v1  ;;  %v12918_v1 = vld [vmem:[%s18613_s1 + $0x38c] ss:$16 sps:$4 sm:$0xff]  }
 0x2a0   :  { %9081 = vmatpush1.bf16.msra.mxu1 %v12846_v46  ;;  %9109 = vmatprep.subr.bf16.mxu0 %v12855_v6  ;;  %v12921_v46 = vld [vmem:[%s18613_s1 + $0x48c] ss:$16 sps:$4 sm:$0xff]  }
 0x2a1   :  { %9082 = vmatprep.subr.bf16.mxu1 %v12852_v5  ;;  %v12919_v5 = vld [vmem:[%s18613_s1 + $0x488] ss:$16 sps:$4 sm:$0xff]   ;;  %v12924_v6 = vld [vmem:[%s18613_s1 + $0x36c] ss:$16 sps:$4 sm:$0xff]  }
 0x2a2   :  { %9056 = vmatmul.mubr.bf16.vlgmr.msra.gmra.mxu0 %v12849_v4  ;;  %v12916_v4 = vld [vmem:[%s18613_s1 + $0x388] ss:$16 sps:$4 sm:$0xff]  }
 0x2a3   :  { %9110 = vmatpush1.bf16.msra.mxu0 %v12853_v8  ;;  %9141 = vmatprep.mubr.bf16.mxu0 %v13851_v59  ;;  %v12922_v8 = vld [vmem:[%s18613_s1 + $0x368] ss:$16 sps:$4 sm:$0xff]   ;;  %v12939_v59 = vld [vmem:[%s18613_s1 + $0x42c] ss:$16 sps:$4 sm:$0xff]  }
 0x2a4   :  { %9083 = vmatpush2.bf16.msra.mxu1 %v12850_v7  ;;  %9111 = vmatprep.subr.bf16.mxu0 %v12861_v12  ;;  %v12927_v7 = vld [vmem:[%s18613_s1 + $0x46c] ss:$16 sps:$4 sm:$0xff]  }
 0x2a5   :  { %9084 = vmatprep.subr.bf16.mxu1 %v12858_v9  ;;  %v12925_v9 = vld [vmem:[%s18613_s1 + $0x468] ss:$16 sps:$4 sm:$0xff]   ;;  %v12930_v12 = vld [vmem:[%s18613_s1 + $0x34c] ss:$16 sps:$4 sm:$0xff]  }
 0x2a7   :  { %9112 = vmatpush1.bf16.msra.mxu0 %v12859_v14  ;;  %v12928_v14 = vld [vmem:[%s18613_s1 + $0x348] ss:$16 sps:$4 sm:$0xff]  }
 0x2a8   :  { %9085 = vmatpush2.bf16.msra.mxu1 %v12856_v13  ;;  %9113 = vmatprep.subr.bf16.mxu0 %v12867_v17  ;;  %v12933_v13 = vld [vmem:[%s18613_s1 + $0x44c] ss:$16 sps:$4 sm:$0xff]  }
 0x2a9   :  { %9086 = vmatprep.subr.bf16.mxu1 %v12864_v16  ;;  %v12931_v16 = vld [vmem:[%s18613_s1 + $0x448] ss:$16 sps:$4 sm:$0xff]   ;;  %v12936_v17 = vld [vmem:[%s18613_s1 + $0x32c] ss:$16 sps:$4 sm:$0xff]  }
 0x2ab   :  { %9114 = vmatpush1.bf16.msra.mxu0 %v12865_v20  ;;  %v12937_v20 = vld [vmem:[%s18613_s1 + $0x428] ss:$16 sps:$4 sm:$0xff]  }
 0x2ac   :  { %9087 = vmatpush2.bf16.msra.mxu1 %v12862_v19  ;;  %9115 = vmatprep.subr.bf16.mxu0 %v12873_v23  ;;  %v12934_v19 = vld [vmem:[%s18613_s1 + $0x328] ss:$16 sps:$4 sm:$0xff]   ;;  %v12945_v23 = vld [vmem:[%s18613_s1 + $0x40c] ss:$16 sps:$4 sm:$0xff]  }
 0x2ad   :  { %9088 = vmatprep.subr.bf16.mxu1 %v12870_v22  ;;  %v12942_v22 = vld [vmem:[%s18613_s1 + $0x30c] ss:$16 sps:$4 sm:$0xff]  }
 0x2af   :  { %9116 = vmatpush1.bf16.msra.mxu0 %v12871_v2  ;;  %v12943_v2 = vld [vmem:[%s18613_s1 + $0x408] ss:$16 sps:$4 sm:$0xff]  }
 0x2b0   :  { %9089 = vmatpush2.bf16.msra.mxu1 %v12868_v24  ;;  %9117 = vmatprep.subr.bf16.mxu0 %v12879_v26  ;;  %v12940_v24 = vld [vmem:[%s18613_s1 + $0x308] ss:$16 sps:$4 sm:$0xff]   ;;  %v12951_v26 = vld [vmem:[%s18613_s1 + $0x6ec] ss:$16 sps:$4 sm:$0xff]  }
 0x2b1   :  { %9090 = vmatprep.subr.bf16.mxu1 %v12876_v25  ;;  %v12948_v25 = vld [vmem:[%s18613_s1 + $0x5ec] ss:$16 sps:$4 sm:$0xff]  }
 0x2b3   :  { %9118 = vmatpush1.bf16.msra.mxu0 %v12877_v29  ;;  %v12949_v29 = vld [vmem:[%s18613_s1 + $0x6e8] ss:$16 sps:$4 sm:$0xff]  }
 0x2b4   :  { %9091 = vmatpush2.bf16.msra.mxu1 %v12874_v28  ;;  %9119 = vmatprep.subr.bf16.mxu0 %v12885_v31  ;;  %v12946_v28 = vld [vmem:[%s18613_s1 + $0x5e8] ss:$16 sps:$4 sm:$0xff]   ;;  %v12957_v31 = vld [vmem:[%s18613_s1 + $0x6cc] ss:$16 sps:$4 sm:$0xff]  }
 0x2b5   :  { %9092 = vmatprep.subr.bf16.mxu1 %v12882_v30  ;;  %v12954_v30 = vld [vmem:[%s18613_s1 + $0x5cc] ss:$16 sps:$4 sm:$0xff]  }
 0x2b7   :  { %9120 = vmatpush1.bf16.msra.mxu0 %v12883_v33  ;;  %v12955_v33 = vld [vmem:[%s18613_s1 + $0x6c8] ss:$16 sps:$4 sm:$0xff]  }
 0x2b8   :  { %9093 = vmatpush2.bf16.msra.mxu1 %v12880_v32  ;;  %9121 = vmatprep.subr.bf16.mxu0 %v12891_v39  ;;  %v12952_v32 = vld [vmem:[%s18613_s1 + $0x5c8] ss:$16 sps:$4 sm:$0xff]   ;;  %v12960_v39 = vld [vmem:[%s18613_s1 + $0x5ac] ss:$16 sps:$4 sm:$0xff]  }
 0x2b9   :  { %9094 = vmatprep.subr.bf16.mxu1 %v12888_v36  ;;  %v13854_v36 = vld [vmem:[%s18614_s0 + $0x8] ss:$164 sps:$4 sm:$0xff]  }
 0x2bb   :  { %9122 = vmatpush1.bf16.msra.mxu0 %v12889_v18  ;;  %v12958_v18 = vld [vmem:[%s18613_s1 + $0x5a8] ss:$16 sps:$4 sm:$0xff]  }
 0x2bc   :  { %9095 = vmatpush2.bf16.msra.mxu1 %v12886_v40  ;;  %9123 = vmatprep.subr.bf16.mxu0 %v12897_v45  ;;  %v12963_v40 = vld [vmem:[%s18613_s1 + $0x6ac] ss:$16 sps:$4 sm:$0xff]  }
 0x2bd   :  { %9096 = vmatprep.subr.bf16.mxu1 %v12894_v42  ;;  %v12961_v42 = vld [vmem:[%s18613_s1 + $0x6a8] ss:$16 sps:$4 sm:$0xff]   ;;  %v13855_v45 = vld [vmem:[%s18614_s0 + $0x1c] ss:$164 sps:$4 sm:$0xff]  }
 0x2bf   :  { %9124 = vmatpush1.bf16.msra.mxu0 %v12895_v48  ;;  %v12969_v48 = vld [vmem:[%s18613_s1 + $0x68c] ss:$16 sps:$4 sm:$0xff]  }
 0x2c0   :  { %9097 = vmatpush2.bf16.msra.mxu1 %v12892_v47  ;;  %9125 = vmatprep.subr.bf16.mxu0 %v12900_v49  ;;  %v12966_v47 = vld [vmem:[%s18613_s1 + $0x58c] ss:$16 sps:$4 sm:$0xff]   ;;  %v12964_v49 = vld [vmem:[%s18613_s1 + $0x588] ss:$16 sps:$4 sm:$0xff]  }
 0x2c1   :  { %9152 = vmatprep.subr.bf16.mxu1 %v12903_v50  ;;  %v12967_v50 = vld [vmem:[%s18613_s1 + $0x688] ss:$16 sps:$4 sm:$0xff]  }
 0x2c3   :  { %9099 = vmatmul.mubr.bf16.vlgmr.msra.gmra.mxu1 %v13852_v38  ;;  %9126 = vmatpush2.bf16.msra.mxu0 %v12898_v51  ;;  %v12972_v51 = vld [vmem:[%s18613_s1 + $0x56c] ss:$16 sps:$4 sm:$0xff]   ;;  %v12976_v38 = vld [vmem:[%s18613_s1 + $0x548] ss:$16 sps:$4 sm:$0xff]  }
 0x2c4   :  { %9153 = vmatpush1.bf16.msra.mxu1 %v12901_v52  ;;  %9127 = vmatprep.subr.bf16.mxu0 %v12906_v53  ;;  %v12975_v52 = vld [vmem:[%s18613_s1 + $0x66c] ss:$16 sps:$4 sm:$0xff]   ;;  %v12970_v53 = vld [vmem:[%s18613_s1 + $0x568] ss:$16 sps:$4 sm:$0xff]  }
 0x2c5   :  { %9154 = vmatprep.subr.bf16.mxu1 %v12909_v54  ;;  %9184 = vmatprep.mubr.bf16.mxu1 %v13853_v0  ;;  %v12973_v54 = vld [vmem:[%s18613_s1 + $0x668] ss:$16 sps:$4 sm:$0xff]  }
 0x2c6   :  { %v12985_v0 = vld [vmem:[%s18613_s1 + $0x628] ss:$16 sps:$4 sm:$0xff]  }
 0x2c7   :  { %9128 = vmatpush2.bf16.msra.mxu0 %v12904_v57  ;;  %v12978_v57 = vld [vmem:[%s18613_s1 + $0x54c] ss:$16 sps:$4 sm:$0xff]  }
 0x2c8   :  { %9155 = vmatpush1.bf16.msra.mxu1 %v12907_v58  ;;  %9129 = vmatprep.subr.bf16.mxu0 %v12912_v60  ;;  %v12981_v58 = vld [vmem:[%s18613_s1 + $0x64c] ss:$16 sps:$4 sm:$0xff]   ;;  %v12979_v60 = vld [vmem:[%s18613_s1 + $0x648] ss:$16 sps:$4 sm:$0xff]  }
 0x2c9   :  { %9156 = vmatprep.subr.bf16.mxu1 %v12915_v61  ;;  %v12984_v61 = vld [vmem:[%s18613_s1 + $0x52c] ss:$16 sps:$4 sm:$0xff]  }
 0x2cb   :  { %9130 = vmatpush2.bf16.msra.mxu0 %v12910_v62  ;;  %v12987_v62 = vld [vmem:[%s18613_s1 + $0x62c] ss:$16 sps:$4 sm:$0xff]  }
 0x2cc   :  { %9157 = vmatpush1.bf16.msra.mxu1 %v12913_v63  ;;  %9131 = vmatprep.subr.bf16.mxu0 %v12918_v1  ;;  %v12982_v63 = vld [vmem:[%s18613_s1 + $0x528] ss:$16 sps:$4 sm:$0xff]   ;;  %v12990_v1 = vld [vmem:[%s18613_s1 + $0x50c] ss:$16 sps:$4 sm:$0xff]  }
 0x2cd   :  { %9158 = vmatprep.subr.bf16.mxu1 %v12921_v46  ;;  %v12993_v46 = vld [vmem:[%s18613_s1 + $0x60c] ss:$16 sps:$4 sm:$0xff]  }
 0x2cf   :  { %9132 = vmatpush2.bf16.msra.mxu0 %v12916_v4  ;;  %v12988_v4 = vld [vmem:[%s18613_s1 + $0x508] ss:$16 sps:$4 sm:$0xff]  }
 0x2d0   :  { %9159 = vmatpush1.bf16.msra.mxu1 %v12919_v5  ;;  %9133 = vmatprep.subr.bf16.mxu0 %v12924_v6  ;;  %v12991_v5 = vld [vmem:[%s18613_s1 + $0x608] ss:$16 sps:$4 sm:$0xff]   ;;  %v12996_v6 = vld [vmem:[%s18613_s1 + $0x7ec] ss:$16 sps:$4 sm:$0xff]  }
 0x2d1   :  { %9160 = vmatprep.subr.bf16.mxu1 %v12927_v7  ;;  %v12999_v7 = vld [vmem:[%s18613_s1 + $0x8ec] ss:$16 sps:$4 sm:$0xff]  }
 0x2d3   :  { %9134 = vmatpush2.bf16.msra.mxu0 %v12922_v8  ;;  %v16420_v8 = vpop.f32.mrf.mxu1 }
 0x2d4   :  { %9161 = vmatpush1.bf16.msra.mxu1 %v12925_v9  ;;  %9135 = vmatprep.subr.bf16.mxu0 %v12930_v12  ;;  %v12994_v9 = vld [vmem:[%s18613_s1 + $0x7e8] ss:$16 sps:$4 sm:$0xff]  }
 0x2d5   :  { %9162 = vmatprep.subr.bf16.mxu1 %v12933_v13  ;;  %v12997_v12 = vld [vmem:[%s18613_s1 + $0x8e8] ss:$16 sps:$4 sm:$0xff]   ;;  %v13002_v13 = vld [vmem:[%s18613_s1 + $0x7cc] ss:$16 sps:$4 sm:$0xff]  }
 0x2d7   :  { %9136 = vmatpush2.bf16.msra.mxu0 %v12928_v14  ;;  %v13005_v14 = vld [vmem:[%s18613_s1 + $0x8cc] ss:$16 sps:$4 sm:$0xff]  }
 0x2d8   :  { %9163 = vmatpush1.bf16.msra.mxu1 %v12931_v16  ;;  %9137 = vmatprep.subr.bf16.mxu0 %v12936_v17  ;;  %v16434_v16 = vpop.f32.mrf.mxu1  ;;  %v13856_v17 = vld [vmem:[%s18614_s0 + $0x10] ss:$164 sps:$4 sm:$0xff]  }
 0x2d9   :  { %9164 = vmatprep.subr.bf16.mxu1 %v12939_v59  ;;  %v13000_v59 = vld [vmem:[%s18613_s1 + $0x7c8] ss:$16 sps:$4 sm:$0xff]  }
 0x2db   :  { %9138 = vmatpush2.bf16.msra.mxu0 %v12934_v19  ;;  %v13003_v19 = vld [vmem:[%s18613_s1 + $0x8c8] ss:$16 sps:$4 sm:$0xff]  }
 0x2dc   :  { %9165 = vmatpush1.bf16.msra.mxu1 %v12937_v20  ;;  %9139 = vmatprep.subr.bf16.mxu0 %v12942_v22  ;;  %v16445_v20 = vpop.f32.mrf.mxu0  ;;  %v13008_v22 = vld [vmem:[%s18613_s1 + $0x7ac] ss:$16 sps:$4 sm:$0xff]  }
 0x2dd   :  { %9166 = vmatprep.subr.bf16.mxu1 %v12945_v23  ;;  %v13011_v23 = vld [vmem:[%s18613_s1 + $0x8ac] ss:$16 sps:$4 sm:$0xff]  }
 0x2df   :  { %9140 = vmatpush2.bf16.msra.mxu0 %v12940_v24  ;;  %v13857_v24 = vld [vmem:[%s18614_s0 + $0x24] ss:$164 sps:$4 sm:$0xff]  }
 0x2e0   :  { %9167 = vmatpush1.bf16.msra.mxu1 %v12943_v2  ;;  %9195 = vmatprep.subr.bf16.mxu0 %v12951_v26  ;;  %v16456_v2 = vpop.f32.mrf.mxu1  ;;  %v13009_v26 = vld [vmem:[%s18613_s1 + $0x8a8] ss:$16 sps:$4 sm:$0xff]  }
 0x2e1   :  { %9168 = vmatprep.subr.bf16.mxu1 %v12948_v25  ;;  %v13006_v25 = vld [vmem:[%s18613_s1 + $0x7a8] ss:$16 sps:$4 sm:$0xff]  }
 0x2e2   :  { %9142 = vmatmul.mubr.bf16.vlgmr.msra.gmra.mxu0 %v13854_v36 }
 0x2e3   :  { %9196 = vmatpush1.bf16.msra.mxu0 %v12949_v29  ;;  %9227 = vmatprep.mubr.bf16.mxu0 %v13855_v45  ;;  %v16466_v29 = vpop.f32.mrf.mxu0  ;;  %v13018_v45 = vld [vmem:[%s18613_s1 + $0x768] ss:$16 sps:$4 sm:$0xff]  }
 0x2e4   :  { %9169 = vmatpush2.bf16.msra.mxu1 %v12946_v28  ;;  %9197 = vmatprep.subr.bf16.mxu0 %v12957_v31  ;;  %v16464_v28 = vpop.f32.mrf.mxu1  ;;  %v13017_v31 = vld [vmem:[%s18613_s1 + $0x88c] ss:$16 sps:$4 sm:$0xff]  }
 0x2e5   :  { %9170 = vmatprep.subr.bf16.mxu1 %v12954_v30  ;;  %v13014_v30 = vld [vmem:[%s18613_s1 + $0x78c] ss:$16 sps:$4 sm:$0xff]  }
 0x2e6   :  { %v16480_v36 = vpop.f32.mrf.mxu1 }
 0x2e7   :  { %9198 = vmatpush1.bf16.msra.mxu0 %v12955_v33  ;;  %v13015_v33 = vld [vmem:[%s18613_s1 + $0x888] ss:$16 sps:$4 sm:$0xff]  }
 0x2e8   :  { %9171 = vmatpush2.bf16.msra.mxu1 %v12952_v32  ;;  %9199 = vmatprep.subr.bf16.mxu0 %v12963_v40  ;;  %v13012_v32 = vld [vmem:[%s18613_s1 + $0x788] ss:$16 sps:$4 sm:$0xff]   ;;  %v13020_v40 = vld [vmem:[%s18613_s1 + $0x76c] ss:$16 sps:$4 sm:$0xff]  }
 0x2e9   :  { %9172 = vmatprep.subr.bf16.mxu1 %v12960_v39  ;;  %v16482_v39 = vpop.f32.mrf.mxu0 }
 0x2eb   :  { %9200 = vmatpush1.bf16.msra.mxu0 %v12961_v42  ;;  %v16490_v42 = vpop.f32.mrf.mxu0 }
 0x2ec   :  { %9173 = vmatpush2.bf16.msra.mxu1 %v12958_v18  ;;  %9201 = vmatprep.subr.bf16.mxu0 %v12969_v48  ;;  %v13023_v18 = vld [vmem:[%s18613_s1 + $0x86c] ss:$16 sps:$4 sm:$0xff]   ;;  %v16498_v48 = vpop.f32.mrf.mxu1 }
 0x2ed   :  { %9174 = vmatprep.subr.bf16.mxu1 %v12966_v47  ;;  %v13021_v47 = vld [vmem:[%s18613_s1 + $0x868] ss:$16 sps:$4 sm:$0xff]  }
 0x2ef   :  { %9202 = vmatpush1.bf16.msra.mxu0 %v12967_v50  ;;  %v13029_v50 = vld [vmem:[%s18613_s1 + $0x84c] ss:$16 sps:$4 sm:$0xff]  }
 0x2f0   :  { %9175 = vmatpush2.bf16.msra.mxu1 %v12964_v49  ;;  %9203 = vmatprep.subr.bf16.mxu0 %v12975_v52  ;;  %v13026_v49 = vld [vmem:[%s18613_s1 + $0x74c] ss:$16 sps:$4 sm:$0xff]   ;;  %v13024_v52 = vld [vmem:[%s18613_s1 + $0x748] ss:$16 sps:$4 sm:$0xff]  }
 0x2f1   :  { %9176 = vmatprep.subr.bf16.mxu1 %v12972_v51  ;;  %v16506_v51 = vpop.f32.mrf.mxu0 }
 0x2f3   :  { %9204 = vmatpush1.bf16.msra.mxu0 %v12973_v54  ;;  %v16514_v54 = vpop.f32.mrf.mxu1 }
 0x2f4   :  { %9177 = vmatpush2.bf16.msra.mxu1 %v12970_v53  ;;  %9205 = vmatprep.subr.bf16.mxu0 %v12981_v58  ;;  %v13027_v53 = vld [vmem:[%s18613_s1 + $0x848] ss:$16 sps:$4 sm:$0xff]   ;;  %v13035_v58 = vld [vmem:[%s18613_s1 + $0x82c] ss:$16 sps:$4 sm:$0xff]  }
 0x2f5   :  { %9178 = vmatprep.subr.bf16.mxu1 %v12978_v57  ;;  %v13032_v57 = vld [vmem:[%s18613_s1 + $0x72c] ss:$16 sps:$4 sm:$0xff]  }
 0x2f7   :  { %9206 = vmatpush1.bf16.msra.mxu0 %v12979_v60  ;;  %v16524_v60 = vpop.f32.mrf.mxu0 }
 0x2f8   :  { %9179 = vmatpush2.bf16.msra.mxu1 %v12976_v38  ;;  %9207 = vmatprep.subr.bf16.mxu0 %v12987_v62  ;;  %v16522_v38 = vpop.f32.mrf.mxu1  ;;  %v13033_v62 = vld [vmem:[%s18613_s1 + $0x828] ss:$16 sps:$4 sm:$0xff]  }
 0x2f9   :  { %9180 = vmatprep.subr.bf16.mxu1 %v12984_v61  ;;  %v13030_v61 = vld [vmem:[%s18613_s1 + $0x728] ss:$16 sps:$4 sm:$0xff]  }
 0x2fb   :  { %9208 = vmatpush1.bf16.msra.mxu0 %v12985_v0  ;;  %v13041_v0 = vld [vmem:[%s18613_s1 + $0x80c] ss:$16 sps:$4 sm:$0xff]  }
 0x2fc   :  { %9181 = vmatpush2.bf16.msra.mxu1 %v12982_v63  ;;  %9209 = vmatprep.subr.bf16.mxu0 %v12993_v46  ;;  %v13038_v63 = vld [vmem:[%s18613_s1 + $0x70c] ss:$16 sps:$4 sm:$0xff]   ;;  %v16540_v46 = vpop.f32.mrf.mxu0 }
 0x2fd   :  { %9182 = vmatprep.subr.bf16.mxu1 %v12990_v1  ;;  %v16538_v1 = vpop.f32.mrf.mxu1 }
 0x2ff   :  { %9210 = vmatpush1.bf16.msra.mxu0 %v12991_v5  ;;  %v13039_v5 = vld [vmem:[%s18613_s1 + $0x808] ss:$16 sps:$4 sm:$0xff]  }
 0x300   :  { %9183 = vmatpush2.bf16.msra.mxu1 %v12988_v4  ;;  %9211 = vmatprep.subr.bf16.mxu0 %v12996_v6  ;;  %v13036_v4 = vld [vmem:[%s18613_s1 + $0x708] ss:$16 sps:$4 sm:$0xff]   ;;  %v16548_v6 = vpop.f32.mrf.mxu0 }
 0x301   :  { %9238 = vmatprep.subr.bf16.mxu1 %v12999_v7  ;;  %v13044_v7 = vld [vmem:[%s18613_s1 + $0x9ec] ss:$16 sps:$4 sm:$0xff]  }
 0x303   :  { %9185 = vmatmul.mubr.bf16.vlgmr.msra.gmra.mxu1 %v13856_v17  ;;  %9212 = vmatpush2.bf16.msra.mxu0 %v12994_v9  ;;  %v13047_v9 = vld [vmem:[%s18613_s1 + $0xaec] ss:$16 sps:$4 sm:$0xff]   ;;  %v16564_v17 = vpop.f32.mrf.mxu0 }
 0x304   :  { %9239 = vmatpush1.bf16.msra.mxu1 %v12997_v12  ;;  %9213 = vmatprep.subr.bf16.mxu0 %v13002_v13  ;;  %v16556_v12 = vpop.f32.mrf.mxu1  ;;  %v13042_v13 = vld [vmem:[%s18613_s1 + $0x9e8] ss:$16 sps:$4 sm:$0xff]  }
 0x305   :  { %9240 = vmatprep.subr.bf16.mxu1 %v13005_v14  ;;  %9270 = vmatprep.mubr.bf16.mxu1 %v13857_v24  ;;  %v13045_v14 = vld [vmem:[%s18613_s1 + $0xae8] ss:$16 sps:$4 sm:$0xff]  }
 0x306   :  { %v13048_v24 = vld [vmem:[%s18613_s1 + $0x9c8] ss:$16 sps:$4 sm:$0xff]  }
 0x307   :  { %9214 = vmatpush2.bf16.msra.mxu0 %v13000_v59  ;;  %v13050_v59 = vld [vmem:[%s18613_s1 + $0x9cc] ss:$16 sps:$4 sm:$0xff]  }
 0x308   :  { %9241 = vmatpush1.bf16.msra.mxu1 %v13003_v19  ;;  %9215 = vmatprep.subr.bf16.mxu0 %v13008_v22  ;;  %v13053_v19 = vld [vmem:[%s18613_s1 + $0xacc] ss:$16 sps:$4 sm:$0xff]   ;;  %v16572_v22 = vpop.f32.mrf.mxu1 }
 0x309   :  { %9242 = vmatprep.subr.bf16.mxu1 %v13011_v23  ;;  %v13858_v23 = vld [vmem:[%s18614_s0 + $0x18] ss:$164 sps:$4 sm:$0xff]  }
 0x30b   :  { %9216 = vmatpush2.bf16.msra.mxu0 %v13006_v25  ;;  %v13051_v25 = vld [vmem:[%s18613_s1 + $0xac8] ss:$16 sps:$4 sm:$0xff]  }
 0x30c   :  { %9243 = vmatpush1.bf16.msra.mxu1 %v13009_v26  ;;  %9217 = vmatprep.subr.bf16.mxu0 %v13014_v30  ;;  %v16583_v26 = vpop.f32.mrf.mxu1  ;;  %v16585_v30 = vpop.f32.mrf.mxu0 }
 0x30d   :  { %9244 = vmatprep.subr.bf16.mxu1 %v13017_v31  ;;  %v13056_v31 = vld [vmem:[%s18613_s1 + $0x9ac] ss:$16 sps:$4 sm:$0xff]  }
 0x30f   :  { %9218 = vmatpush2.bf16.msra.mxu0 %v13012_v32  ;;  %v13059_v32 = vld [vmem:[%s18613_s1 + $0xaac] ss:$16 sps:$4 sm:$0xff]  }
 0x310   :  { %9245 = vmatpush1.bf16.msra.mxu1 %v13015_v33  ;;  %9219 = vmatprep.subr.bf16.mxu0 %v13020_v40  ;;  %v13859_v33 = vld [vmem:[%s18614_s0 + $0x2c] ss:$164 sps:$4 sm:$0xff]   ;;  %v13054_v40 = vld [vmem:[%s18613_s1 + $0x9a8] ss:$16 sps:$4 sm:$0xff]  }
 0x311   :  { %9246 = vmatprep.subr.bf16.mxu1 %v13023_v18  ;;  %v13057_v18 = vld [vmem:[%s18613_s1 + $0xaa8] ss:$16 sps:$4 sm:$0xff]  }
 0x313   :  { %9220 = vmatpush2.bf16.msra.mxu0 %v13018_v45  ;;  %v16602_v45 = vpop.f32.mrf.mxu1 }
 0x314   :  { %9247 = vmatpush1.bf16.msra.mxu1 %v13021_v47  ;;  %9221 = vmatprep.subr.bf16.mxu0 %v13026_v49  ;;  %v16604_v47 = vpop.f32.mrf.mxu0  ;;  %v13062_v49 = vld [vmem:[%s18613_s1 + $0x98c] ss:$16 sps:$4 sm:$0xff]  }
 0x315   :  { %9248 = vmatprep.subr.bf16.mxu1 %v13029_v50  ;;  %v13065_v50 = vld [vmem:[%s18613_s1 + $0xa8c] ss:$16 sps:$4 sm:$0xff]  }
 0x317   :  { %9222 = vmatpush2.bf16.msra.mxu0 %v13024_v52  ;;  %v16612_v52 = vpop.f32.mrf.mxu0 }
 0x318   :  { %9249 = vmatpush1.bf16.msra.mxu1 %v13027_v53  ;;  %9223 = vmatprep.subr.bf16.mxu0 %v13032_v57  ;;  %v13060_v53 = vld [vmem:[%s18613_s1 + $0x988] ss:$16 sps:$4 sm:$0xff]  }
 0x319   :  { %9250 = vmatprep.subr.bf16.mxu1 %v13035_v58  ;;  %v13063_v57 = vld [vmem:[%s18613_s1 + $0xa88] ss:$16 sps:$4 sm:$0xff]   ;;  %v16620_v58 = vpop.f32.mrf.mxu1 }
 0x31b   :  { %9224 = vmatpush2.bf16.msra.mxu0 %v13030_v61  ;;  %v13068_v61 = vld [vmem:[%s18613_s1 + $0x96c] ss:$16 sps:$4 sm:$0xff]  }
 0x31c   :  { %9251 = vmatpush1.bf16.msra.mxu1 %v13033_v62  ;;  %9225 = vmatprep.subr.bf16.mxu0 %v13038_v63  ;;  %v13071_v62 = vld [vmem:[%s18613_s1 + $0xa6c] ss:$16 sps:$4 sm:$0xff]   ;;  %v16628_v63 = vpop.f32.mrf.mxu0 }
 0x31d   :  { %9252 = vmatprep.subr.bf16.mxu1 %v13041_v0  ;;  %v13066_v0 = vld [vmem:[%s18613_s1 + $0x968] ss:$16 sps:$4 sm:$0xff]  }
 0x31f   :  { %9226 = vmatpush2.bf16.msra.mxu0 %v13036_v4  ;;  %v13069_v4 = vld [vmem:[%s18613_s1 + $0xa68] ss:$16 sps:$4 sm:$0xff]  }
 0x320   :  { %9253 = vmatpush1.bf16.msra.mxu1 %v13039_v5  ;;  %9281 = vmatprep.subr.bf16.mxu0 %v13047_v9  ;;  %v16636_v5 = vpop.f32.mrf.mxu1  ;;  %v13077_v9 = vld [vmem:[%s18613_s1 + $0xa4c] ss:$16 sps:$4 sm:$0xff]  }
 0x321   :  { %9254 = vmatprep.subr.bf16.mxu1 %v13044_v7  ;;  %v13074_v7 = vld [vmem:[%s18613_s1 + $0x94c] ss:$16 sps:$4 sm:$0xff]  }
 0x322   :  { %9228 = vmatmul.mubr.bf16.vlgmr.msra.gmra.mxu0 %v13858_v23  ;;  %v13080_v23 = vld [vmem:[%s18613_s1 + $0x92c] ss:$16 sps:$4 sm:$0xff]  }
 0x323   :  { %9282 = vmatpush1.bf16.msra.mxu0 %v13045_v14  ;;  %9313 = vmatprep.mubr.bf16.mxu0 %v13859_v33  ;;  %v16646_v14 = vpop.f32.mrf.mxu0  ;;  %v13081_v33 = vld [vmem:[%s18613_s1 + $0xa28] ss:$16 sps:$4 sm:$0xff]  }
 0x324   :  { %9255 = vmatpush2.bf16.msra.mxu1 %v13042_v13  ;;  %9283 = vmatprep.subr.bf16.mxu0 %v13053_v19  ;;  %v16644_v13 = vpop.f32.mrf.mxu1  ;;  %v13075_v19 = vld [vmem:[%s18613_s1 + $0xa48] ss:$16 sps:$4 sm:$0xff]  }
 0x325   :  { %9256 = vmatprep.subr.bf16.mxu1 %v13050_v59  ;;  %v13072_v59 = vld [vmem:[%s18613_s1 + $0x948] ss:$16 sps:$4 sm:$0xff]  }
 0x327   :  { %9284 = vmatpush1.bf16.msra.mxu0 %v13051_v25  ;;  %v16660_v25 = vpop.f32.mrf.mxu1 }
 0x328   :  { %9257 = vmatpush2.bf16.msra.mxu1 %v13048_v24  ;;  %9285 = vmatprep.subr.bf16.mxu0 %v13059_v32  ;;  %v13083_v24 = vld [vmem:[%s18613_s1 + $0xa2c] ss:$16 sps:$4 sm:$0xff]   ;;  %v13078_v32 = vld [vmem:[%s18613_s1 + $0x928] ss:$16 sps:$4 sm:$0xff]  }
 0x329   :  { %9258 = vmatprep.subr.bf16.mxu1 %v13056_v31  ;;  %v16662_v31 = vpop.f32.mrf.mxu0 }
 0x32b   :  { %9286 = vmatpush1.bf16.msra.mxu0 %v13057_v18  ;;  %v13086_v18 = vld [vmem:[%s18613_s1 + $0x90c] ss:$16 sps:$4 sm:$0xff]  }
 0x32c   :  { %9259 = vmatpush2.bf16.msra.mxu1 %v13054_v40  ;;  %9287 = vmatprep.subr.bf16.mxu0 %v13065_v50  ;;  %v16670_v40 = vpop.f32.mrf.mxu0  ;;  %v16678_v50 = vpop.f32.mrf.mxu1 }
 0x32d   :  { %9260 = vmatprep.subr.bf16.mxu1 %v13062_v49  ;;  %v13089_v49 = vld [vmem:[%s18613_s1 + $0xa0c] ss:$16 sps:$4 sm:$0xff]  }
 0x32f   :  { %9288 = vmatpush1.bf16.msra.mxu0 %v13063_v57  ;;  %v13084_v57 = vld [vmem:[%s18613_s1 + $0x908] ss:$16 sps:$4 sm:$0xff]  }
 0x330   :  { %9261 = vmatpush2.bf16.msra.mxu1 %v13060_v53  ;;  %9289 = vmatprep.subr.bf16.mxu0 %v13071_v62  ;;  %v8417_v53 = vadd.f32 %v16434_v16, %v15227_v21  ;;  %v16688_v62 = vpop.f32.mrf.mxu0  ;;  %v13095_v21 = vld [vmem:[%s18613_s1 + $0xcec] ss:$16 sps:$4 sm:$0xff]  }
 0x331   :  { %9262 = vmatprep.subr.bf16.mxu1 %v13068_v61  ;;  %v13087_v61 = vld [vmem:[%s18613_s1 + $0xa08] ss:$16 sps:$4 sm:$0xff]  }
 0x332   :  { %v8460_v16 = vadd.f32 %v16466_v29, %v8417_v53  ;;  %v13107_v53 = vld [vmem:[%s18613_s1 + $0xcac] ss:$16 sps:$4 sm:$0xff]  }
 0x333   :  { %9290 = vmatpush1.bf16.msra.mxu0 %v13069_v4  ;;  %v16697_v4 = vpop.f32.mrf.mxu1 }
 0x334   :  { %9263 = vmatpush2.bf16.msra.mxu1 %v13066_v0  ;;  %9291 = vmatprep.subr.bf16.mxu0 %v13077_v9  ;;  %v13092_v0 = vld [vmem:[%s18613_s1 + $0xbec] ss:$16 sps:$4 sm:$0xff]   ;;  %v13090_v9 = vld [vmem:[%s18613_s1 + $0xbe8] ss:$16 sps:$4 sm:$0xff]   ;;  %v8503_v29 = vadd.f32 %v16498_v48, %v8460_v16 }
 0x335   :  { %9264 = vmatprep.subr.bf16.mxu1 %v13074_v7  ;;  %v8499_v7 = vadd.f32 %v16464_v28, %v15424_v37  ;;  %v13098_v37 = vld [vmem:[%s18613_s1 + $0xbcc] ss:$16 sps:$4 sm:$0xff]  }
 0x336   :  { %v13101_v28 = vld [vmem:[%s18613_s1 + $0xccc] ss:$16 sps:$4 sm:$0xff]  }
 0x337   :  { %9292 = vmatpush1.bf16.msra.mxu0 %v13075_v19  ;;  %v16707_v19 = vpop.f32.mrf.mxu1 }
 0x338   :  { %9265 = vmatpush2.bf16.msra.mxu1 %v13072_v59  ;;  %9293 = vmatprep.subr.bf16.mxu0 %v13083_v24  ;;  %v13093_v59 = vld [vmem:[%s18613_s1 + $0xce8] ss:$16 sps:$4 sm:$0xff]   ;;  %v8542_v24 = vadd.f32 %v16490_v42, %v8499_v7 }
 0x339   :  { %9266 = vmatprep.subr.bf16.mxu1 %v13080_v23  ;;  %v16709_v23 = vpop.f32.mrf.mxu0  ;;  %v16729_v48 = vpop.f32.mrf.mxu1  ;;  %v13102_v7 = vld [vmem:[%s18613_s1 + $0xba8] ss:$16 sps:$4 sm:$0xff]  }
 0x33b   :  { %9294 = vmatpush1.bf16.msra.mxu0 %v13081_v33  ;;  %v8546_v33 = vadd.f32 %v16524_v60, %v8503_v29  ;;  %v16731_v42 = vpop.f32.mrf.mxu0  ;;  %v13104_v60 = vld [vmem:[%s18613_s1 + $0xbac] ss:$16 sps:$4 sm:$0xff]   ;;  %v13108_v29 = vld [vmem:[%s18613_s1 + $0xb88] ss:$16 sps:$4 sm:$0xff]  }
 0x33c   :  { %9267 = vmatpush2.bf16.msra.mxu1 %v13078_v32  ;;  %9295 = vmatprep.subr.bf16.mxu0 %v13089_v49  ;;  %v13860_v32 = vld [vmem:[%s18614_s0 + $0x20] ss:$164 sps:$4 sm:$0xff]   ;;  %v13099_v49 = vld [vmem:[%s18613_s1 + $0xcc8] ss:$16 sps:$4 sm:$0xff]  }
 0x33d   :  { %9268 = vmatprep.subr.bf16.mxu1 %v13086_v18  ;;  %v13096_v18 = vld [vmem:[%s18613_s1 + $0xbc8] ss:$16 sps:$4 sm:$0xff]  }
 0x33f   :  { %9296 = vmatpush1.bf16.msra.mxu0 %v13087_v61  ;;  %v13861_v61 = vld [vmem:[%s18614_s0 + $0x34] ss:$164 sps:$4 sm:$0xff]  }
 0x340   :  { %9269 = vmatpush2.bf16.msra.mxu1 %v13084_v57  ;;  %9297 = vmatprep.subr.bf16.mxu0 %v13092_v0  ;;  %v8585_v57 = vadd.f32 %v16522_v38, %v8542_v24  ;;  %v16743_v0 = vpop.f32.mrf.mxu0  ;;  %v13105_v38 = vld [vmem:[%s18613_s1 + $0xca8] ss:$16 sps:$4 sm:$0xff]  }
 0x341   :  { %9324 = vmatprep.subr.bf16.mxu1 %v13095_v21  ;;  %v8589_v21 = vadd.f32 %v16556_v12, %v8546_v33  ;;  %v13111_v24 = vld [vmem:[%s18613_s1 + $0xc88] ss:$16 sps:$4 sm:$0xff]  }
 0x342   :  { %v8628_v16 = vadd.f32 %v16548_v6, %v8585_v57  ;;  %v13113_v6 = vld [vmem:[%s18613_s1 + $0xc8c] ss:$16 sps:$4 sm:$0xff]   ;;  %v13114_v57 = vld [vmem:[%s18613_s1 + $0xb68] ss:$16 sps:$4 sm:$0xff]  }
 0x343   :  { %9271 = vmatmul.mubr.bf16.vlgmr.msra.gmra.mxu1 %v13860_v32  ;;  %9298 = vmatpush2.bf16.msra.mxu0 %v13090_v9  ;;  %v8846_v9 = vpop.f32.mrf.mxu1  ;;  %v8632_v12 = vadd.f32 %v16585_v30, %v8589_v21  ;;  %v13116_v30 = vld [vmem:[%s18613_s1 + $0xb6c] ss:$16 sps:$4 sm:$0xff]  }
 0x344   :  { %9325 = vmatpush1.bf16.msra.mxu1 %v13093_v59  ;;  %9299 = vmatprep.subr.bf16.mxu0 %v13098_v37  ;;  %v13110_v59 = vld [vmem:[%s18613_s1 + $0xb8c] ss:$16 sps:$4 sm:$0xff]   ;;  %v16760_v37 = vpop.f32.mrf.mxu0 }
 0x345   :  { %9326 = vmatprep.subr.bf16.mxu1 %v13101_v28  ;;  %9356 = vmatprep.mubr.bf16.mxu1 %v13861_v61  ;;  %v8671_v28 = vadd.f32 %v16583_v26, %v8628_v16  ;;  %v16769_v32 = vpop.f32.mrf.mxu1  ;;  %v13119_v26 = vld [vmem:[%s18613_s1 + $0xc6c] ss:$16 sps:$4 sm:$0xff]   ;;  %v8675_v33 = vadd.f32 %v16620_v58, %v8632_v12  ;;  %v13117_v61 = vld [vmem:[%s18613_s1 + $0xc68] ss:$16 sps:$4 sm:$0xff]  }
 0x346   :  { %v13125_v58 = vld [vmem:[%s18613_s1 + $0xc4c] ss:$16 sps:$4 sm:$0xff]  }
 0x347   :  { %9300 = vmatpush2.bf16.msra.mxu0 %v13096_v18  ;;  %v8714_v18 = vadd.f32 %v16612_v52, %v8671_v28  ;;  %v13122_v52 = vld [vmem:[%s18613_s1 + $0xb4c] ss:$16 sps:$4 sm:$0xff]  }
 0x348   :  { %9327 = vmatpush1.bf16.msra.mxu1 %v13099_v49  ;;  %9301 = vmatprep.subr.bf16.mxu0 %v13104_v60  ;;  %v8928_v49 = vpop.f32.mrf.mxu1  ;;  %v8889_v60 = vpop.f32.mrf.mxu0 }
 0x349   :  { %9328 = vmatprep.subr.bf16.mxu1 %v13107_v53  ;;  %v8718_v53 = vadd.f32 %v16646_v14, %v8675_v33  ;;  %v8757_v14 = vadd.f32 %v16644_v13, %v8714_v18  ;;  %v13128_v13 = vld [vmem:[%s18613_s1 + $0xb2c] ss:$16 sps:$4 sm:$0xff]  }
 0x34a   :  { %v16793_v21 = vpop.f32.mrf.mxu1  ;;  %v16795_v16 = vpop.f32.mrf.mxu0 }
 0x34b   :  { %9302 = vmatpush2.bf16.msra.mxu0 %v13102_v7  ;;  %v8761_v7 = vadd.f32 %v16678_v50, %v8718_v53 }
 0x34c   :  { %9329 = vmatpush1.bf16.msra.mxu1 %v13105_v38  ;;  %9303 = vmatprep.subr.bf16.mxu0 %v13110_v59  ;;  %v8800_v38 = vadd.f32 %v16670_v40, %v8757_v14  ;;  %v13120_v59 = vld [vmem:[%s18613_s1 + $0xb48] ss:$16 sps:$4 sm:$0xff]   ;;  %v8971_v12 = vpop.f32.mrf.mxu0  ;;  %v13131_v40 = vld [vmem:[%s18613_s1 + $0xc2c] ss:$16 sps:$4 sm:$0xff]   ;;  %v8932_v28 = vpop.f32.mrf.mxu1 }
 0x34d   :  { %9330 = vmatprep.subr.bf16.mxu1 %v13113_v6  ;;  %v13123_v6 = vld [vmem:[%s18613_s1 + $0xc48] ss:$16 sps:$4 sm:$0xff]   ;;  %v8804_v50 = vadd.f32 %v16709_v23, %v8761_v7  ;;  %v13134_v23 = vld [vmem:[%s18613_s1 + $0xb0c] ss:$16 sps:$4 sm:$0xff]  }
 0x34e   :  { %v16828_v53 = vpop.f32.mrf.mxu1 }
 0x34f   :  { %9304 = vmatpush2.bf16.msra.mxu0 %v13108_v29  ;;  %v8843_v29 = vadd.f32 %v16707_v19, %v8800_v38  ;;  %v13137_v19 = vld [vmem:[%s18613_s1 + $0xc0c] ss:$16 sps:$4 sm:$0xff]   ;;  %v8847_v33 = vadd.f32 %v8846_v9, %v8804_v50 }
 0x350   :  { %9331 = vmatpush1.bf16.msra.mxu1 %v13111_v24  ;;  %9305 = vmatprep.subr.bf16.mxu0 %v13116_v30  ;;  %v13126_v24 = vld [vmem:[%s18613_s1 + $0xb28] ss:$16 sps:$4 sm:$0xff]   ;;  %v13143_v9 = vld [vmem:[%s18613_s1 + $0xeec] ss:$16 sps:$4 sm:$0xff]  }
 0x351   :  { %9332 = vmatprep.subr.bf16.mxu1 %v13119_v26  ;;  %v13129_v30 = vld [vmem:[%s18613_s1 + $0xc28] ss:$16 sps:$4 sm:$0xff]   ;;  %v16819_v26 = vpop.f32.mrf.mxu0  ;;  %v8886_v18 = vadd.f32 %v16743_v0, %v8843_v29  ;;  %v13140_v0 = vld [vmem:[%s18613_s1 + $0xdec] ss:$16 sps:$4 sm:$0xff]  }
 0x352   :  { %v13862_v29 = vld [vmem:[%s18614_s0 + $0x28] ss:$164 sps:$4 sm:$0xff]  }
 0x353   :  { %9306 = vmatpush2.bf16.msra.mxu0 %v13114_v57  ;;  %v8890_v57 = vadd.f32 %v8889_v60, %v8847_v33  ;;  %v8975_v14 = vpop.f32.mrf.mxu0  ;;  %v8929_v60 = vadd.f32 %v8928_v49, %v8886_v18  ;;  %v13146_v49 = vld [vmem:[%s18613_s1 + $0xdcc] ss:$16 sps:$4 sm:$0xff]  }
 0x354   :  { %9333 = vmatpush1.bf16.msra.mxu1 %v13117_v61  ;;  %9307 = vmatprep.subr.bf16.mxu0 %v13122_v52  ;;  %v13132_v61 = vld [vmem:[%s18613_s1 + $0xb08] ss:$16 sps:$4 sm:$0xff]   ;;  %v13152_v18 = vld [vmem:[%s18613_s1 + $0xdac] ss:$16 sps:$4 sm:$0xff]  }
 0x355   :  { %9334 = vmatprep.subr.bf16.mxu1 %v13125_v58  ;;  %v13135_v52 = vld [vmem:[%s18613_s1 + $0xc08] ss:$16 sps:$4 sm:$0xff]   ;;  %v9014_v58 = vpop.f32.mrf.mxu1  ;;  %v8933_v7 = vadd.f32 %v8932_v28, %v8890_v57  ;;  %v8972_v38 = vadd.f32 %v8971_v12, %v8929_v60  ;;  %v13149_v12 = vld [vmem:[%s18613_s1 + $0xecc] ss:$16 sps:$4 sm:$0xff]  }
 0x356   :  { %v13155_v57 = vld [vmem:[%s18613_s1 + $0xeac] ss:$16 sps:$4 sm:$0xff]   ;;  %v13153_v60 = vld [vmem:[%s18613_s1 + $0xea8] ss:$16 sps:$4 sm:$0xff]  }
 0x357   :  { %9308 = vmatpush2.bf16.msra.mxu0 %v13120_v59  ;;  %v13138_v59 = vld [vmem:[%s18613_s1 + $0xde8] ss:$16 sps:$4 sm:$0xff]   ;;  %v8976_v50 = vadd.f32 %v8975_v14, %v8933_v7  ;;  %v13158_v7 = vld [vmem:[%s18613_s1 + $0xd8c] ss:$16 sps:$4 sm:$0xff]  }
 0x358   :  { %9335 = vmatpush1.bf16.msra.mxu1 %v13123_v6  ;;  %9309 = vmatprep.subr.bf16.mxu0 %v13128_v13  ;;  %v13141_v6 = vld [vmem:[%s18613_s1 + $0xee8] ss:$16 sps:$4 sm:$0xff]   ;;  %v16848_v13 = vpop.f32.mrf.mxu1 }
 0x359   :  { %9336 = vmatprep.subr.bf16.mxu1 %v13131_v40  ;;  %v16850_v40 = vpop.f32.mrf.mxu0 }
 0x35b   :  { %9310 = vmatpush2.bf16.msra.mxu0 %v13126_v24  ;;  %v9015_v24 = vadd.f32 %v9014_v58, %v8972_v38  ;;  %v13863_v58 = vld [vmem:[%s18614_s0 + $0x3c] ss:$164 sps:$4 sm:$0xff]  }
 0x35c   :  { %9337 = vmatpush1.bf16.msra.mxu1 %v13129_v30  ;;  %9311 = vmatprep.subr.bf16.mxu0 %v13134_v23  ;;  %v13144_v30 = vld [vmem:[%s18613_s1 + $0xdc8] ss:$16 sps:$4 sm:$0xff]   ;;  %v13161_v38 = vld [vmem:[%s18613_s1 + $0xe8c] ss:$16 sps:$4 sm:$0xff]  }
 0x35d   :  { %9338 = vmatprep.subr.bf16.mxu1 %v13137_v19  ;;  %v13147_v23 = vld [vmem:[%s18613_s1 + $0xec8] ss:$16 sps:$4 sm:$0xff]   ;;  %v9018_v19 = vpop.f32.mrf.mxu1 }
 0x35f   :  { %9312 = vmatpush2.bf16.msra.mxu0 %v13132_v61  ;;  %v9019_v61 = vadd.f32 %v9018_v19, %v8976_v50  ;;  %v13159_v50 = vld [vmem:[%s18613_s1 + $0xe88] ss:$16 sps:$4 sm:$0xff]   ;;  %v13173_v19 = vld [vmem:[%s18613_s1 + $0xe4c] ss:$16 sps:$4 sm:$0xff]  }
 0x360   :  { %9339 = vmatpush1.bf16.msra.mxu1 %v13135_v52  ;;  %9367 = vmatprep.subr.bf16.mxu0 %v13143_v9  ;;  %v13150_v9 = vld [vmem:[%s18613_s1 + $0xda8] ss:$16 sps:$4 sm:$0xff]  }
 0x361   :  { %9340 = vmatprep.subr.bf16.mxu1 %v13140_v0 }
 0x362   :  { %v9057_v28 = vpop.f32.mrf.mxu0  ;;  %9314 = vmatmul.mubr.bf16.vlgmr.msra.gmra.mxu0 %v13862_v29  ;;  %v13167_v29 = vld [vmem:[%s18613_s1 + $0xe6c] ss:$16 sps:$4 sm:$0xff]  }
 0x363   :  { %9368 = vmatpush1.bf16.msra.mxu0 %v13141_v6  ;;  %v9058_v52 = vadd.f32 %v9057_v28, %v9015_v24  ;;  %9399 = vmatprep.mubr.bf16.mxu0 %v13863_v58  ;;  %v13164_v28 = vld [vmem:[%s18613_s1 + $0xd6c] ss:$16 sps:$4 sm:$0xff]   ;;  %v13162_v24 = vld [vmem:[%s18613_s1 + $0xd68] ss:$16 sps:$4 sm:$0xff]  }
 0x364   :  { %9341 = vmatpush2.bf16.msra.mxu1 %v13138_v59  ;;  %v16867_v33 = vpop.f32.mrf.mxu0  ;;  %9369 = vmatprep.subr.bf16.mxu0 %v13149_v12  ;;  %v13156_v12 = vld [vmem:[%s18613_s1 + $0xd88] ss:$16 sps:$4 sm:$0xff]  }
 0x365   :  { %9342 = vmatprep.subr.bf16.mxu1 %v13146_v49  ;;  %v9969_v59 = vmax.f32 %v9058_v52, 0.0  ;;  %v13179_v52 = vld [vmem:[%s18613_s1 + $0xe2c] ss:$16 sps:$4 sm:$0xff]   ;;  %v13174_v58 = vld [vmem:[%s18613_s1 + $0xd28] ss:$16 sps:$4 sm:$0xff]  }
 0x366   :  { %v9061_v14 = vpop.f32.mrf.mxu0 }
 0x367   :  { %v9062_v0 = vadd.f32 %v9061_v14, %v9019_v61  ;;  %9370 = vmatpush1.bf16.msra.mxu0 %v13147_v23  ;;  %v13170_v23 = vld [vmem:[%s18613_s1 + $0xd4c] ss:$16 sps:$4 sm:$0xff]   ;;  %v13177_v14 = vld [vmem:[%s18613_s1 + $0xe28] ss:$16 sps:$4 sm:$0xff]  }
 0x368   :  { %9343 = vmatpush2.bf16.msra.mxu1 %v13144_v30  ;;  %9371 = vmatprep.subr.bf16.mxu0 %v13155_v57  ;;  %v13165_v30 = vld [vmem:[%s18613_s1 + $0xe68] ss:$16 sps:$4 sm:$0xff]   ;;  %v13176_v61 = vld [vmem:[%s18613_s1 + $0xd2c] ss:$16 sps:$4 sm:$0xff]  }
 0x369   :  { %9344 = vmatprep.subr.bf16.mxu1 %v13152_v18  ;;  %v9973_v6 = vmax.f32 %v9062_v0, 0.0  ;;  %v13168_v18 = vld [vmem:[%s18613_s1 + $0xd48] ss:$16 sps:$4 sm:$0xff]   ;;  %v13182_v0 = vld [vmem:[%s18613_s1 + $0xd0c] ss:$16 sps:$4 sm:$0xff]  }
 0x36a   :  { %v13171_v57 = vld [vmem:[%s18613_s1 + $0xe48] ss:$16 sps:$4 sm:$0xff]  }
 0x36b   :  { %v16890_v49 = vpack.c.bf16 %v9973_v6, %v9969_v59  ;;  %9372 = vmatpush1.bf16.msra.mxu0 %v13153_v60  ;;  %v13180_v60 = vld [vmem:[%s18613_s1 + $0xd08] ss:$16 sps:$4 sm:$0xff]   ;;  %v13191_v59 = vld [vmem:[%s18613_s1 + $0x10ec] ss:$16 sps:$4 sm:$0xff]  }
 0x36c   :  { %9345 = vmatpush2.bf16.msra.mxu1 %v13150_v9  ;;  %9373 = vmatprep.subr.bf16.mxu0 %v13161_v38  ;;  %v13185_v9 = vld [vmem:[%s18613_s1 + $0xe0c] ss:$16 sps:$4 sm:$0xff]   ;;  %v13186_v6 = vld [vmem:[%s18613_s1 + $0xfe8] ss:$16 sps:$4 sm:$0xff]  }
 0x36d   :  { %9346 = vmatprep.subr.bf16.mxu1 %v13158_v7  ;;  %v13183_v7 = vld [vmem:[%s18613_s1 + $0xe08] ss:$16 sps:$4 sm:$0xff]   ;;  %v13188_v38 = vld [vmem:[%s18613_s1 + $0xfec] ss:$16 sps:$4 sm:$0xff]  }
 0x36f   :  { %9374 = vmatpush1.bf16.msra.mxu0 %v13159_v50  ;;  %v13194_v50 = vld [vmem:[%s18613_s1 + $0xfcc] ss:$16 sps:$4 sm:$0xff]  }
 0x370   :  { %9347 = vmatpush2.bf16.msra.mxu1 %v13156_v12  ;;  %9375 = vmatprep.subr.bf16.mxu0 %v13167_v29  ;;  %v13189_v12 = vld [vmem:[%s18613_s1 + $0x10e8] ss:$16 sps:$4 sm:$0xff]   ;;  %v13864_v29 = vld [vmem:[%s18614_s0 + $0x30] ss:$164 sps:$4 sm:$0xff]  }
 0x371   :  { %9348 = vmatprep.subr.bf16.mxu1 %v13164_v28  ;;  %v13197_v28 = vld [vmem:[%s18613_s1 + $0x10cc] ss:$16 sps:$4 sm:$0xff]  }
 0x373   :  { %9376 = vmatpush1.bf16.msra.mxu0 %v13165_v30  ;;  %v13195_v30 = vld [vmem:[%s18613_s1 + $0x10c8] ss:$16 sps:$4 sm:$0xff]  }
 0x374   :  { %9349 = vmatpush2.bf16.msra.mxu1 %v13162_v24  ;;  %9377 = vmatprep.subr.bf16.mxu0 %v13173_v19  ;;  %v13192_v24 = vld [vmem:[%s18613_s1 + $0xfc8] ss:$16 sps:$4 sm:$0xff]   ;;  %v13203_v19 = vld [vmem:[%s18613_s1 + $0x10ac] ss:$16 sps:$4 sm:$0xff]  }
 0x375   :  { %9350 = vmatprep.subr.bf16.mxu1 %v13170_v23  ;;  %v13200_v23 = vld [vmem:[%s18613_s1 + $0xfac] ss:$16 sps:$4 sm:$0xff]  }
 0x377   :  { %9378 = vmatpush1.bf16.msra.mxu0 %v13171_v57  ;;  %v13198_v57 = vld [vmem:[%s18613_s1 + $0xfa8] ss:$16 sps:$4 sm:$0xff]  }
 0x378   :  { %9351 = vmatpush2.bf16.msra.mxu1 %v13168_v18  ;;  %9379 = vmatprep.subr.bf16.mxu0 %v13179_v52  ;;  %v13865_v18 = vld [vmem:[%s18614_s0 + $0x44] ss:$164 sps:$4 sm:$0xff]   ;;  %v13206_v52 = vld [vmem:[%s18613_s1 + $0xf8c] ss:$16 sps:$4 sm:$0xff]  }
 0x379   :  { %9352 = vmatprep.subr.bf16.mxu1 %v13176_v61  ;;  %v13201_v61 = vld [vmem:[%s18613_s1 + $0x10a8] ss:$16 sps:$4 sm:$0xff]  }
 0x37b   :  { %9380 = vmatpush1.bf16.msra.mxu0 %v13177_v14  ;;  %v13204_v14 = vld [vmem:[%s18613_s1 + $0xf88] ss:$16 sps:$4 sm:$0xff]  }
 0x37c   :  { %9353 = vmatpush2.bf16.msra.mxu1 %v13174_v58  ;;  %9381 = vmatprep.subr.bf16.mxu0 %v13185_v9  ;;  %v13209_v58 = vld [vmem:[%s18613_s1 + $0x108c] ss:$16 sps:$4 sm:$0xff]  }
 0x37d   :  { %9354 = vmatprep.subr.bf16.mxu1 %v13182_v0  ;;  %v13207_v0 = vld [vmem:[%s18613_s1 + $0x1088] ss:$16 sps:$4 sm:$0xff]   ;;  %v13212_v9 = vld [vmem:[%s18613_s1 + $0xf6c] ss:$16 sps:$4 sm:$0xff]  }
 0x37f   :  { %9382 = vmatpush1.bf16.msra.mxu0 %v13183_v7  ;;  %v13210_v7 = vld [vmem:[%s18613_s1 + $0xf68] ss:$16 sps:$4 sm:$0xff]  }
 0x380   :  { %9355 = vmatpush2.bf16.msra.mxu1 %v13180_v60  ;;  %9383 = vmatprep.subr.bf16.mxu0 %v13188_v38  ;;  %v13215_v60 = vld [vmem:[%s18613_s1 + $0x106c] ss:$16 sps:$4 sm:$0xff]   ;;  %v13213_v38 = vld [vmem:[%s18613_s1 + $0x1068] ss:$16 sps:$4 sm:$0xff]  }
 0x381   :  { %9410 = vmatprep.subr.bf16.mxu1 %v13191_v59  ;;  %v13218_v59 = vld [vmem:[%s18613_s1 + $0xf4c] ss:$16 sps:$4 sm:$0xff]  }
 0x383   :  { %9357 = vmatmul.mubr.bf16.vlgmr.msra.gmra.mxu1 %v13864_v29  ;;  %9384 = vmatpush2.bf16.msra.mxu0 %v13186_v6  ;;  %v13221_v6 = vld [vmem:[%s18613_s1 + $0x104c] ss:$16 sps:$4 sm:$0xff]  }
 0x384   :  { %9411 = vmatpush1.bf16.msra.mxu1 %v13189_v12  ;;  %9385 = vmatprep.subr.bf16.mxu0 %v13194_v50  ;;  %v13216_v12 = vld [vmem:[%s18613_s1 + $0xf48] ss:$16 sps:$4 sm:$0xff]   ;;  %v13227_v29 = vld [vmem:[%s18613_s1 + $0x102c] ss:$16 sps:$4 sm:$0xff]  }
 0x385   :  { %9412 = vmatprep.subr.bf16.mxu1 %v13197_v28  ;;  %9442 = vmatprep.mubr.bf16.mxu1 %v13865_v18  ;;  %v13219_v50 = vld [vmem:[%s18613_s1 + $0x1048] ss:$16 sps:$4 sm:$0xff]   ;;  %v13224_v28 = vld [vmem:[%s18613_s1 + $0xf2c] ss:$16 sps:$4 sm:$0xff]  }
 0x386   :  { %v13228_v18 = vld [vmem:[%s18613_s1 + $0xf08] ss:$16 sps:$4 sm:$0xff]  }
 0x387   :  { %9386 = vmatpush2.bf16.msra.mxu0 %v13192_v24  ;;  %v13222_v24 = vld [vmem:[%s18613_s1 + $0xf28] ss:$16 sps:$4 sm:$0xff]  }
 0x388   :  { %9413 = vmatpush1.bf16.msra.mxu1 %v13195_v30  ;;  %9387 = vmatprep.subr.bf16.mxu0 %v13200_v23  ;;  %v13225_v30 = vld [vmem:[%s18613_s1 + $0x1028] ss:$16 sps:$4 sm:$0xff]   ;;  %v13230_v23 = vld [vmem:[%s18613_s1 + $0xf0c] ss:$16 sps:$4 sm:$0xff]  }
 0x389   :  { %9414 = vmatprep.subr.bf16.mxu1 %v13203_v19  ;;  %v13233_v19 = vld [vmem:[%s18613_s1 + $0x100c] ss:$16 sps:$4 sm:$0xff]  }
 0x38b   :  { %9388 = vmatpush2.bf16.msra.mxu0 %v13198_v57  ;;  %v13231_v57 = vld [vmem:[%s18613_s1 + $0x1008] ss:$16 sps:$4 sm:$0xff]  }
 0x38c   :  { %9415 = vmatpush1.bf16.msra.mxu1 %v13201_v61  ;;  %9389 = vmatprep.subr.bf16.mxu0 %v13206_v52  ;;  %v13236_v61 = vld [vmem:[%s18613_s1 + $0x11ec] ss:$16 sps:$4 sm:$0xff]  }
 0x38d   :  { %9416 = vmatprep.subr.bf16.mxu1 %v13209_v58  ;;  %v13239_v52 = vld [vmem:[%s18613_s1 + $0x12ec] ss:$16 sps:$4 sm:$0xff]   ;;  %v13234_v58 = vld [vmem:[%s18613_s1 + $0x11e8] ss:$16 sps:$4 sm:$0xff]  }
 0x38f   :  { %9390 = vmatpush2.bf16.msra.mxu0 %v13204_v14  ;;  %v13237_v14 = vld [vmem:[%s18613_s1 + $0x12e8] ss:$16 sps:$4 sm:$0xff]  }
 0x390   :  { %9417 = vmatpush1.bf16.msra.mxu1 %v13207_v0  ;;  %9391 = vmatprep.subr.bf16.mxu0 %v13212_v9  ;;  %v13242_v0 = vld [vmem:[%s18613_s1 + $0x11cc] ss:$16 sps:$4 sm:$0xff]  }
 0x391   :  { %9418 = vmatprep.subr.bf16.mxu1 %v13215_v60  ;;  %v13245_v9 = vld [vmem:[%s18613_s1 + $0x12cc] ss:$16 sps:$4 sm:$0xff]  }
 0x392   :  { %v13866_v60 = vld [vmem:[%s18614_s0 + $0x38] ss:$164 sps:$4 sm:$0xff]  }
 0x393   :  { %9392 = vmatpush2.bf16.msra.mxu0 %v13210_v7  ;;  %v13240_v7 = vld [vmem:[%s18613_s1 + $0x11c8] ss:$16 sps:$4 sm:$0xff]  }
 0x394   :  { %9419 = vmatpush1.bf16.msra.mxu1 %v13213_v38  ;;  %9393 = vmatprep.subr.bf16.mxu0 %v13218_v59  ;;  %v13243_v38 = vld [vmem:[%s18613_s1 + $0x12c8] ss:$16 sps:$4 sm:$0xff]   ;;  %v13248_v59 = vld [vmem:[%s18613_s1 + $0x11ac] ss:$16 sps:$4 sm:$0xff]  }
 0x395   :  { %9420 = vmatprep.subr.bf16.mxu1 %v13221_v6  ;;  %v13251_v6 = vld [vmem:[%s18613_s1 + $0x12ac] ss:$16 sps:$4 sm:$0xff]  }
 0x397   :  { %9394 = vmatpush2.bf16.msra.mxu0 %v13216_v12  ;;  %v13867_v12 = vld [vmem:[%s18614_s0 + $0x4c] ss:$164 sps:$4 sm:$0xff]  }
 0x398   :  { %9421 = vmatpush1.bf16.msra.mxu1 %v13219_v50  ;;  %9395 = vmatprep.subr.bf16.mxu0 %v13224_v28  ;;  %v13246_v50 = vld [vmem:[%s18613_s1 + $0x11a8] ss:$16 sps:$4 sm:$0xff]  }
 0x399   :  { %9422 = vmatprep.subr.bf16.mxu1 %v13227_v29  ;;  %v13249_v28 = vld [vmem:[%s18613_s1 + $0x12a8] ss:$16 sps:$4 sm:$0xff]   ;;  %v13254_v29 = vld [vmem:[%s18613_s1 + $0x118c] ss:$16 sps:$4 sm:$0xff]  }
 0x39b   :  { %9396 = vmatpush2.bf16.msra.mxu0 %v13222_v24  ;;  %v13257_v24 = vld [vmem:[%s18613_s1 + $0x128c] ss:$16 sps:$4 sm:$0xff]  }
 0x39c   :  { %9423 = vmatpush1.bf16.msra.mxu1 %v13225_v30  ;;  %9397 = vmatprep.subr.bf16.mxu0 %v13230_v23  ;;  %v13252_v30 = vld [vmem:[%s18613_s1 + $0x1188] ss:$16 sps:$4 sm:$0xff]  }
 0x39d   :  { %9424 = vmatprep.subr.bf16.mxu1 %v13233_v19  ;;  %v13255_v23 = vld [vmem:[%s18613_s1 + $0x1288] ss:$16 sps:$4 sm:$0xff]   ;;  %v13260_v19 = vld [vmem:[%s18613_s1 + $0x116c] ss:$16 sps:$4 sm:$0xff]  }
 0x39f   :  { %9398 = vmatpush2.bf16.msra.mxu0 %v13228_v18  ;;  %v13263_v18 = vld [vmem:[%s18613_s1 + $0x126c] ss:$16 sps:$4 sm:$0xff]  }
 0x3a0   :  { %9425 = vmatpush1.bf16.msra.mxu1 %v13231_v57  ;;  %9453 = vmatprep.subr.bf16.mxu0 %v13239_v52  ;;  %v13258_v57 = vld [vmem:[%s18613_s1 + $0x1168] ss:$16 sps:$4 sm:$0xff]   ;;  %v13266_v52 = vld [vmem:[%s18613_s1 + $0x114c] ss:$16 sps:$4 sm:$0xff]  }
 0x3a1   :  { %9426 = vmatprep.subr.bf16.mxu1 %v13236_v61  ;;  %v13261_v61 = vld [vmem:[%s18613_s1 + $0x1268] ss:$16 sps:$4 sm:$0xff]  }
 0x3a2   :  { %9400 = vmatmul.mubr.bf16.vlgmr.msra.gmra.mxu0 %v13866_v60  ;;  %v13275_v60 = vld [vmem:[%s18613_s1 + $0x122c] ss:$16 sps:$4 sm:$0xff]  }
 0x3a3   :  { %9454 = vmatpush1.bf16.msra.mxu0 %v13237_v14  ;;  %9485 = vmatprep.mubr.bf16.mxu0 %v13867_v12  ;;  %v13264_v14 = vld [vmem:[%s18613_s1 + $0x1148] ss:$16 sps:$4 sm:$0xff]  }
 0x3a4   :  { %9427 = vmatpush2.bf16.msra.mxu1 %v13234_v58  ;;  %9455 = vmatprep.subr.bf16.mxu0 %v13245_v9  ;;  %v13269_v58 = vld [vmem:[%s18613_s1 + $0x124c] ss:$16 sps:$4 sm:$0xff]   ;;  %v13276_v12 = vld [vmem:[%s18613_s1 + $0x1108] ss:$16 sps:$4 sm:$0xff]  }
 0x3a5   :  { %9428 = vmatprep.subr.bf16.mxu1 %v13242_v0  ;;  %v13267_v0 = vld [vmem:[%s18613_s1 + $0x1248] ss:$16 sps:$4 sm:$0xff]   ;;  %v13272_v9 = vld [vmem:[%s18613_s1 + $0x112c] ss:$16 sps:$4 sm:$0xff]  }
 0x3a7   :  { %9456 = vmatpush1.bf16.msra.mxu0 %v13243_v38  ;;  %v13273_v38 = vld [vmem:[%s18613_s1 + $0x1228] ss:$16 sps:$4 sm:$0xff]  }
 0x3a8   :  { %9429 = vmatpush2.bf16.msra.mxu1 %v13240_v7  ;;  %9457 = vmatprep.subr.bf16.mxu0 %v13251_v6  ;;  %v13270_v7 = vld [vmem:[%s18613_s1 + $0x1128] ss:$16 sps:$4 sm:$0xff]   ;;  %v13281_v6 = vld [vmem:[%s18613_s1 + $0x120c] ss:$16 sps:$4 sm:$0xff]  }
 0x3a9   :  { %9430 = vmatprep.subr.bf16.mxu1 %v13248_v59  ;;  %v13278_v59 = vld [vmem:[%s18613_s1 + $0x110c] ss:$16 sps:$4 sm:$0xff]  }
 0x3ab   :  { %9458 = vmatpush1.bf16.msra.mxu0 %v13249_v28  ;;  %v13284_v28 = vld [vmem:[%s18613_s1 + $0x13ec] ss:$16 sps:$4 sm:$0xff]  }
 0x3ac   :  { %9431 = vmatpush2.bf16.msra.mxu1 %v13246_v50  ;;  %9459 = vmatprep.subr.bf16.mxu0 %v13257_v24  ;;  %v13279_v50 = vld [vmem:[%s18613_s1 + $0x1208] ss:$16 sps:$4 sm:$0xff]  }
 0x3ad   :  { %9432 = vmatprep.subr.bf16.mxu1 %v13254_v29  ;;  %v13287_v29 = vld [vmem:[%s18613_s1 + $0x14ec] ss:$16 sps:$4 sm:$0xff]   ;;  %v13282_v24 = vld [vmem:[%s18613_s1 + $0x13e8] ss:$16 sps:$4 sm:$0xff]  }
 0x3af   :  { %9460 = vmatpush1.bf16.msra.mxu0 %v13255_v23  ;;  %v13290_v23 = vld [vmem:[%s18613_s1 + $0x13cc] ss:$16 sps:$4 sm:$0xff]  }
 0x3b0   :  { %9433 = vmatpush2.bf16.msra.mxu1 %v13252_v30  ;;  %9461 = vmatprep.subr.bf16.mxu0 %v13263_v18  ;;  %v13285_v30 = vld [vmem:[%s18613_s1 + $0x14e8] ss:$16 sps:$4 sm:$0xff]   ;;  %v13868_v18 = vld [vmem:[%s18614_s0 + $0x40] ss:$164 sps:$4 sm:$0xff]  }
 0x3b1   :  { %9434 = vmatprep.subr.bf16.mxu1 %v13260_v19  ;;  %v13293_v19 = vld [vmem:[%s18613_s1 + $0x14cc] ss:$16 sps:$4 sm:$0xff]  }
 0x3b3   :  { %9462 = vmatpush1.bf16.msra.mxu0 %v13261_v61  ;;  %v13291_v61 = vld [vmem:[%s18613_s1 + $0x14c8] ss:$16 sps:$4 sm:$0xff]  }
 0x3b4   :  { %9435 = vmatpush2.bf16.msra.mxu1 %v13258_v57  ;;  %9463 = vmatprep.subr.bf16.mxu0 %v13269_v58  ;;  %v13288_v57 = vld [vmem:[%s18613_s1 + $0x13c8] ss:$16 sps:$4 sm:$0xff]   ;;  %v13299_v58 = vld [vmem:[%s18613_s1 + $0x14ac] ss:$16 sps:$4 sm:$0xff]  }
 0x3b5   :  { %9436 = vmatprep.subr.bf16.mxu1 %v13266_v52  ;;  %v13296_v52 = vld [vmem:[%s18613_s1 + $0x13ac] ss:$16 sps:$4 sm:$0xff]  }
 0x3b7   :  { %9464 = vmatpush1.bf16.msra.mxu0 %v13267_v0  ;;  %v13294_v0 = vld [vmem:[%s18613_s1 + $0x13a8] ss:$16 sps:$4 sm:$0xff]  }
 0x3b8   :  { %9437 = vmatpush2.bf16.msra.mxu1 %v13264_v14  ;;  %9465 = vmatprep.subr.bf16.mxu0 %v13275_v60  ;;  %v13869_v14 = vld [vmem:[%s18614_s0 + $0x54] ss:$164 sps:$4 sm:$0xff]   ;;  %v13302_v60 = vld [vmem:[%s18613_s1 + $0x138c] ss:$16 sps:$4 sm:$0xff]  }
 0x3b9   :  { %9438 = vmatprep.subr.bf16.mxu1 %v13272_v9  ;;  %v13297_v9 = vld [vmem:[%s18613_s1 + $0x14a8] ss:$16 sps:$4 sm:$0xff]  }
 0x3bb   :  { %9466 = vmatpush1.bf16.msra.mxu0 %v13273_v38  ;;  %v13300_v38 = vld [vmem:[%s18613_s1 + $0x1388] ss:$16 sps:$4 sm:$0xff]  }
 0x3bc   :  { %9439 = vmatpush2.bf16.msra.mxu1 %v13270_v7  ;;  %9467 = vmatprep.subr.bf16.mxu0 %v13281_v6  ;;  %v13305_v7 = vld [vmem:[%s18613_s1 + $0x148c] ss:$16 sps:$4 sm:$0xff]  }
 0x3bd   :  { %9440 = vmatprep.subr.bf16.mxu1 %v13278_v59  ;;  %v13303_v59 = vld [vmem:[%s18613_s1 + $0x1488] ss:$16 sps:$4 sm:$0xff]   ;;  %v13308_v6 = vld [vmem:[%s18613_s1 + $0x136c] ss:$16 sps:$4 sm:$0xff]  }
 0x3bf   :  { %9468 = vmatpush1.bf16.msra.mxu0 %v13279_v50  ;;  %v13306_v50 = vld [vmem:[%s18613_s1 + $0x1368] ss:$16 sps:$4 sm:$0xff]  }
 0x3c0   :  { %9441 = vmatpush2.bf16.msra.mxu1 %v13276_v12  ;;  %9469 = vmatprep.subr.bf16.mxu0 %v13284_v28  ;;  %v13311_v12 = vld [vmem:[%s18613_s1 + $0x146c] ss:$16 sps:$4 sm:$0xff]   ;;  %v13309_v28 = vld [vmem:[%s18613_s1 + $0x1468] ss:$16 sps:$4 sm:$0xff]  }
 0x3c1   :  { %9496 = vmatprep.subr.bf16.mxu1 %v13287_v29  ;;  %v13314_v29 = vld [vmem:[%s18613_s1 + $0x134c] ss:$16 sps:$4 sm:$0xff]  }
 0x3c3   :  { %9443 = vmatmul.mubr.bf16.vlgmr.msra.gmra.mxu1 %v13868_v18  ;;  %9470 = vmatpush2.bf16.msra.mxu0 %v13282_v24  ;;  %v13317_v24 = vld [vmem:[%s18613_s1 + $0x144c] ss:$16 sps:$4 sm:$0xff]  }
 0x3c4   :  { %9497 = vmatpush1.bf16.msra.mxu1 %v13285_v30  ;;  %9471 = vmatprep.subr.bf16.mxu0 %v13290_v23  ;;  %v13312_v30 = vld [vmem:[%s18613_s1 + $0x1348] ss:$16 sps:$4 sm:$0xff]   ;;  %v13323_v18 = vld [vmem:[%s18613_s1 + $0x142c] ss:$16 sps:$4 sm:$0xff]  }
 0x3c5   :  { %9498 = vmatprep.subr.bf16.mxu1 %v13293_v19  ;;  %9528 = vmatprep.mubr.bf16.mxu1 %v13869_v14  ;;  %v13315_v23 = vld [vmem:[%s18613_s1 + $0x1448] ss:$16 sps:$4 sm:$0xff]   ;;  %v13320_v19 = vld [vmem:[%s18613_s1 + $0x132c] ss:$16 sps:$4 sm:$0xff]  }
 0x3c6   :  { %v13324_v14 = vld [vmem:[%s18613_s1 + $0x1308] ss:$16 sps:$4 sm:$0xff]  }
 0x3c7   :  { %9472 = vmatpush2.bf16.msra.mxu0 %v13288_v57  ;;  %v13318_v57 = vld [vmem:[%s18613_s1 + $0x1328] ss:$16 sps:$4 sm:$0xff]  }
 0x3c8   :  { %9499 = vmatpush1.bf16.msra.mxu1 %v13291_v61  ;;  %9473 = vmatprep.subr.bf16.mxu0 %v13296_v52  ;;  %v13321_v61 = vld [vmem:[%s18613_s1 + $0x1428] ss:$16 sps:$4 sm:$0xff]   ;;  %v13326_v52 = vld [vmem:[%s18613_s1 + $0x130c] ss:$16 sps:$4 sm:$0xff]  }
 0x3c9   :  { %9500 = vmatprep.subr.bf16.mxu1 %v13299_v58  ;;  %v13329_v58 = vld [vmem:[%s18613_s1 + $0x140c] ss:$16 sps:$4 sm:$0xff]  }
 0x3cb   :  { %9474 = vmatpush2.bf16.msra.mxu0 %v13294_v0  ;;  %v13327_v0 = vld [vmem:[%s18613_s1 + $0x1408] ss:$16 sps:$4 sm:$0xff]  }
 0x3cc   :  { %9501 = vmatpush1.bf16.msra.mxu1 %v13297_v9  ;;  %9475 = vmatprep.subr.bf16.mxu0 %v13302_v60  ;;  %v13332_v9 = vld [vmem:[%s18613_s1 + $0x15ec] ss:$16 sps:$4 sm:$0xff]  }
 0x3cd   :  { %9502 = vmatprep.subr.bf16.mxu1 %v13305_v7  ;;  %v13335_v60 = vld [vmem:[%s18613_s1 + $0x16ec] ss:$16 sps:$4 sm:$0xff]   ;;  %v13330_v7 = vld [vmem:[%s18613_s1 + $0x15e8] ss:$16 sps:$4 sm:$0xff]  }
 0x3cf   :  { %9476 = vmatpush2.bf16.msra.mxu0 %v13300_v38  ;;  %v13333_v38 = vld [vmem:[%s18613_s1 + $0x16e8] ss:$16 sps:$4 sm:$0xff]  }
 0x3d0   :  { %9503 = vmatpush1.bf16.msra.mxu1 %v13303_v59  ;;  %9477 = vmatprep.subr.bf16.mxu0 %v13308_v6  ;;  %v13338_v59 = vld [vmem:[%s18613_s1 + $0x15cc] ss:$16 sps:$4 sm:$0xff]  }
 0x3d1   :  { %9504 = vmatprep.subr.bf16.mxu1 %v13311_v12  ;;  %v13341_v6 = vld [vmem:[%s18613_s1 + $0x16cc] ss:$16 sps:$4 sm:$0xff]  }
 0x3d2   :  { %v13870_v12 = vld [vmem:[%s18614_s0 + $0x48] ss:$164 sps:$4 sm:$0xff]  }
 0x3d3   :  { %9478 = vmatpush2.bf16.msra.mxu0 %v13306_v50  ;;  %v13336_v50 = vld [vmem:[%s18613_s1 + $0x15c8] ss:$16 sps:$4 sm:$0xff]  }
 0x3d4   :  { %9505 = vmatpush1.bf16.msra.mxu1 %v13309_v28  ;;  %9479 = vmatprep.subr.bf16.mxu0 %v13314_v29  ;;  %v13339_v28 = vld [vmem:[%s18613_s1 + $0x16c8] ss:$16 sps:$4 sm:$0xff]   ;;  %v13344_v29 = vld [vmem:[%s18613_s1 + $0x15ac] ss:$16 sps:$4 sm:$0xff]  }
 0x3d5   :  { %9506 = vmatprep.subr.bf16.mxu1 %v13317_v24  ;;  %v13347_v24 = vld [vmem:[%s18613_s1 + $0x16ac] ss:$16 sps:$4 sm:$0xff]  }
 0x3d7   :  { %9480 = vmatpush2.bf16.msra.mxu0 %v13312_v30  ;;  %v13871_v30 = vld [vmem:[%s18614_s0 + $0x5c] ss:$164 sps:$4 sm:$0xff]  }
 0x3d8   :  { %9507 = vmatpush1.bf16.msra.mxu1 %v13315_v23  ;;  %9481 = vmatprep.subr.bf16.mxu0 %v13320_v19  ;;  %v13342_v23 = vld [vmem:[%s18613_s1 + $0x15a8] ss:$16 sps:$4 sm:$0xff]  }
 0x3d9   :  { %9508 = vmatprep.subr.bf16.mxu1 %v13323_v18  ;;  %v13345_v19 = vld [vmem:[%s18613_s1 + $0x16a8] ss:$16 sps:$4 sm:$0xff]   ;;  %v13350_v18 = vld [vmem:[%s18613_s1 + $0x158c] ss:$16 sps:$4 sm:$0xff]  }
 0x3db   :  { %9482 = vmatpush2.bf16.msra.mxu0 %v13318_v57  ;;  %v13353_v57 = vld [vmem:[%s18613_s1 + $0x168c] ss:$16 sps:$4 sm:$0xff]  }
 0x3dc   :  { %9509 = vmatpush1.bf16.msra.mxu1 %v13321_v61  ;;  %9483 = vmatprep.subr.bf16.mxu0 %v13326_v52  ;;  %v13348_v61 = vld [vmem:[%s18613_s1 + $0x1588] ss:$16 sps:$4 sm:$0xff]  }
 0x3dd   :  { %9510 = vmatprep.subr.bf16.mxu1 %v13329_v58  ;;  %v13351_v52 = vld [vmem:[%s18613_s1 + $0x1688] ss:$16 sps:$4 sm:$0xff]   ;;  %v13356_v58 = vld [vmem:[%s18613_s1 + $0x156c] ss:$16 sps:$4 sm:$0xff]  }
 0x3df   :  { %9484 = vmatpush2.bf16.msra.mxu0 %v13324_v14  ;;  %v13359_v14 = vld [vmem:[%s18613_s1 + $0x166c] ss:$16 sps:$4 sm:$0xff]  }
 0x3e0   :  { %9511 = vmatpush1.bf16.msra.mxu1 %v13327_v0  ;;  %9539 = vmatprep.subr.bf16.mxu0 %v13335_v60  ;;  %v13354_v0 = vld [vmem:[%s18613_s1 + $0x1568] ss:$16 sps:$4 sm:$0xff]   ;;  %v13362_v60 = vld [vmem:[%s18613_s1 + $0x154c] ss:$16 sps:$4 sm:$0xff]  }
 0x3e1   :  { %9512 = vmatprep.subr.bf16.mxu1 %v13332_v9  ;;  %v13357_v9 = vld [vmem:[%s18613_s1 + $0x1668] ss:$16 sps:$4 sm:$0xff]  }
 0x3e2   :  { %9486 = vmatmul.mubr.bf16.vlgmr.msra.gmra.mxu0 %v13870_v12  ;;  %v13371_v12 = vld [vmem:[%s18613_s1 + $0x162c] ss:$16 sps:$4 sm:$0xff]  }
 0x3e3   :  { %9540 = vmatpush1.bf16.msra.mxu0 %v13333_v38  ;;  %9571 = vmatprep.mubr.bf16.mxu0 %v13871_v30  ;;  %v13360_v38 = vld [vmem:[%s18613_s1 + $0x1548] ss:$16 sps:$4 sm:$0xff]  }
 0x3e4   :  { %9513 = vmatpush2.bf16.msra.mxu1 %v13330_v7  ;;  %9541 = vmatprep.subr.bf16.mxu0 %v13341_v6  ;;  %v13365_v7 = vld [vmem:[%s18613_s1 + $0x164c] ss:$16 sps:$4 sm:$0xff]   ;;  %v13372_v30 = vld [vmem:[%s18613_s1 + $0x1508] ss:$16 sps:$4 sm:$0xff]  }
 0x3e5   :  { %9514 = vmatprep.subr.bf16.mxu1 %v13338_v59  ;;  %v13363_v59 = vld [vmem:[%s18613_s1 + $0x1648] ss:$16 sps:$4 sm:$0xff]   ;;  %v13368_v6 = vld [vmem:[%s18613_s1 + $0x152c] ss:$16 sps:$4 sm:$0xff]  }
 0x3e7   :  { %9542 = vmatpush1.bf16.msra.mxu0 %v13339_v28  ;;  %v13369_v28 = vld [vmem:[%s18613_s1 + $0x1628] ss:$16 sps:$4 sm:$0xff]  }
 0x3e8   :  { %9515 = vmatpush2.bf16.msra.mxu1 %v13336_v50  ;;  %9543 = vmatprep.subr.bf16.mxu0 %v13347_v24  ;;  %v13366_v50 = vld [vmem:[%s18613_s1 + $0x1528] ss:$16 sps:$4 sm:$0xff]   ;;  %v13377_v24 = vld [vmem:[%s18613_s1 + $0x160c] ss:$16 sps:$4 sm:$0xff]  }
 0x3e9   :  { %9516 = vmatprep.subr.bf16.mxu1 %v13344_v29  ;;  %v13374_v29 = vld [vmem:[%s18613_s1 + $0x150c] ss:$16 sps:$4 sm:$0xff]  }
 0x3eb   :  { %9544 = vmatpush1.bf16.msra.mxu0 %v13345_v19  ;;  %v13380_v19 = vld [vmem:[%s18613_s1 + $0x17ec] ss:$16 sps:$4 sm:$0xff]  }
 0x3ec   :  { %9517 = vmatpush2.bf16.msra.mxu1 %v13342_v23  ;;  %9545 = vmatprep.subr.bf16.mxu0 %v13353_v57  ;;  %v13375_v23 = vld [vmem:[%s18613_s1 + $0x1608] ss:$16 sps:$4 sm:$0xff]  }
 0x3ed   :  { %9518 = vmatprep.subr.bf16.mxu1 %v13350_v18  ;;  %v13383_v18 = vld [vmem:[%s18613_s1 + $0x18ec] ss:$16 sps:$4 sm:$0xff]   ;;  %v13378_v57 = vld [vmem:[%s18613_s1 + $0x17e8] ss:$16 sps:$4 sm:$0xff]  }
 0x3ef   :  { %9546 = vmatpush1.bf16.msra.mxu0 %v13351_v52  ;;  %v13386_v52 = vld [vmem:[%s18613_s1 + $0x17cc] ss:$16 sps:$4 sm:$0xff]  }
 0x3f0   :  { %9519 = vmatpush2.bf16.msra.mxu1 %v13348_v61  ;;  %9547 = vmatprep.subr.bf16.mxu0 %v13359_v14  ;;  %v13381_v61 = vld [vmem:[%s18613_s1 + $0x18e8] ss:$16 sps:$4 sm:$0xff]   ;;  %v13872_v14 = vld [vmem:[%s18614_s0 + $0x50] ss:$164 sps:$4 sm:$0xff]  }
 0x3f1   :  { %9520 = vmatprep.subr.bf16.mxu1 %v13356_v58  ;;  %v13389_v58 = vld [vmem:[%s18613_s1 + $0x18cc] ss:$16 sps:$4 sm:$0xff]  }
 0x3f3   :  { %9548 = vmatpush1.bf16.msra.mxu0 %v13357_v9  ;;  %v13387_v9 = vld [vmem:[%s18613_s1 + $0x18c8] ss:$16 sps:$4 sm:$0xff]  }
 0x3f4   :  { %9521 = vmatpush2.bf16.msra.mxu1 %v13354_v0  ;;  %9549 = vmatprep.subr.bf16.mxu0 %v13365_v7  ;;  %v13384_v0 = vld [vmem:[%s18613_s1 + $0x17c8] ss:$16 sps:$4 sm:$0xff]   ;;  %v13395_v7 = vld [vmem:[%s18613_s1 + $0x18ac] ss:$16 sps:$4 sm:$0xff]  }
 0x3f5   :  { %9522 = vmatprep.subr.bf16.mxu1 %v13362_v60  ;;  %v13392_v60 = vld [vmem:[%s18613_s1 + $0x17ac] ss:$16 sps:$4 sm:$0xff]  }
 0x3f7   :  { %9550 = vmatpush1.bf16.msra.mxu0 %v13363_v59  ;;  %v13390_v59 = vld [vmem:[%s18613_s1 + $0x17a8] ss:$16 sps:$4 sm:$0xff]  }
 0x3f8   :  { %9523 = vmatpush2.bf16.msra.mxu1 %v13360_v38  ;;  %9551 = vmatprep.subr.bf16.mxu0 %v13371_v12  ;;  %v13873_v38 = vld [vmem:[%s18614_s0 + $0x64] ss:$164 sps:$4 sm:$0xff]   ;;  %v13398_v12 = vld [vmem:[%s18613_s1 + $0x178c] ss:$16 sps:$4 sm:$0xff]  }
 0x3f9   :  { %9524 = vmatprep.subr.bf16.mxu1 %v13368_v6  ;;  %v13393_v6 = vld [vmem:[%s18613_s1 + $0x18a8] ss:$16 sps:$4 sm:$0xff]  }
 0x3fb   :  { %9552 = vmatpush1.bf16.msra.mxu0 %v13369_v28  ;;  %v13396_v28 = vld [vmem:[%s18613_s1 + $0x1788] ss:$16 sps:$4 sm:$0xff]  }
 0x3fc   :  { %9525 = vmatpush2.bf16.msra.mxu1 %v13366_v50  ;;  %9553 = vmatprep.subr.bf16.mxu0 %v13377_v24  ;;  %v13401_v50 = vld [vmem:[%s18613_s1 + $0x188c] ss:$16 sps:$4 sm:$0xff]  }
 0x3fd   :  { %9526 = vmatprep.subr.bf16.mxu1 %v13374_v29  ;;  %v13399_v29 = vld [vmem:[%s18613_s1 + $0x1888] ss:$16 sps:$4 sm:$0xff]   ;;  %v13404_v24 = vld [vmem:[%s18613_s1 + $0x176c] ss:$16 sps:$4 sm:$0xff]  }
 0x3ff   :  { %9554 = vmatpush1.bf16.msra.mxu0 %v13375_v23  ;;  %v13402_v23 = vld [vmem:[%s18613_s1 + $0x1768] ss:$16 sps:$4 sm:$0xff]  }
 0x400   :  { %9527 = vmatpush2.bf16.msra.mxu1 %v13372_v30  ;;  %9555 = vmatprep.subr.bf16.mxu0 %v13380_v19  ;;  %v13407_v30 = vld [vmem:[%s18613_s1 + $0x186c] ss:$16 sps:$4 sm:$0xff]   ;;  %v13405_v19 = vld [vmem:[%s18613_s1 + $0x1868] ss:$16 sps:$4 sm:$0xff]  }
 0x401   :  { %9582 = vmatprep.subr.bf16.mxu1 %v13383_v18  ;;  %v13410_v18 = vld [vmem:[%s18613_s1 + $0x174c] ss:$16 sps:$4 sm:$0xff]  }
 0x403   :  { %9529 = vmatmul.mubr.bf16.vlgmr.msra.gmra.mxu1 %v13872_v14  ;;  %9556 = vmatpush2.bf16.msra.mxu0 %v13378_v57  ;;  %v13413_v57 = vld [vmem:[%s18613_s1 + $0x184c] ss:$16 sps:$4 sm:$0xff]  }
 0x404   :  { %9583 = vmatpush1.bf16.msra.mxu1 %v13381_v61  ;;  %9557 = vmatprep.subr.bf16.mxu0 %v13386_v52  ;;  %v13408_v61 = vld [vmem:[%s18613_s1 + $0x1748] ss:$16 sps:$4 sm:$0xff]   ;;  %v13419_v14 = vld [vmem:[%s18613_s1 + $0x182c] ss:$16 sps:$4 sm:$0xff]  }
 0x405   :  { %9584 = vmatprep.subr.bf16.mxu1 %v13389_v58  ;;  %9614 = vmatprep.mubr.bf16.mxu1 %v13873_v38  ;;  %v13411_v52 = vld [vmem:[%s18613_s1 + $0x1848] ss:$16 sps:$4 sm:$0xff]   ;;  %v13416_v58 = vld [vmem:[%s18613_s1 + $0x172c] ss:$16 sps:$4 sm:$0xff]  }
 0x406   :  { %v13420_v38 = vld [vmem:[%s18613_s1 + $0x1708] ss:$16 sps:$4 sm:$0xff]  }
 0x407   :  { %9558 = vmatpush2.bf16.msra.mxu0 %v13384_v0  ;;  %v13414_v0 = vld [vmem:[%s18613_s1 + $0x1728] ss:$16 sps:$4 sm:$0xff]  }
 0x408   :  { %9585 = vmatpush1.bf16.msra.mxu1 %v13387_v9  ;;  %9559 = vmatprep.subr.bf16.mxu0 %v13392_v60  ;;  %v13417_v9 = vld [vmem:[%s18613_s1 + $0x1828] ss:$16 sps:$4 sm:$0xff]   ;;  %v13422_v60 = vld [vmem:[%s18613_s1 + $0x170c] ss:$16 sps:$4 sm:$0xff]  }
 0x409   :  { %9586 = vmatprep.subr.bf16.mxu1 %v13395_v7  ;;  %v13425_v7 = vld [vmem:[%s18613_s1 + $0x180c] ss:$16 sps:$4 sm:$0xff]  }
 0x40b   :  { %9560 = vmatpush2.bf16.msra.mxu0 %v13390_v59  ;;  %v13423_v59 = vld [vmem:[%s18613_s1 + $0x1808] ss:$16 sps:$4 sm:$0xff]  }
 0x40c   :  { %9587 = vmatpush1.bf16.msra.mxu1 %v13393_v6  ;;  %9561 = vmatprep.subr.bf16.mxu0 %v13398_v12  ;;  %v13428_v6 = vld [vmem:[%s18613_s1 + $0x19ec] ss:$16 sps:$4 sm:$0xff]  }
 0x40d   :  { %9588 = vmatprep.subr.bf16.mxu1 %v13401_v50  ;;  %v13431_v12 = vld [vmem:[%s18613_s1 + $0x1aec] ss:$16 sps:$4 sm:$0xff]   ;;  %v13426_v50 = vld [vmem:[%s18613_s1 + $0x19e8] ss:$16 sps:$4 sm:$0xff]  }
 0x40f   :  { %9562 = vmatpush2.bf16.msra.mxu0 %v13396_v28  ;;  %v13429_v28 = vld [vmem:[%s18613_s1 + $0x1ae8] ss:$16 sps:$4 sm:$0xff]  }
 0x410   :  { %9589 = vmatpush1.bf16.msra.mxu1 %v13399_v29  ;;  %9563 = vmatprep.subr.bf16.mxu0 %v13404_v24  ;;  %v13434_v29 = vld [vmem:[%s18613_s1 + $0x19cc] ss:$16 sps:$4 sm:$0xff]  }
 0x411   :  { %9590 = vmatprep.subr.bf16.mxu1 %v13407_v30  ;;  %v13437_v24 = vld [vmem:[%s18613_s1 + $0x1acc] ss:$16 sps:$4 sm:$0xff]  }
 0x412   :  { %v13874_v30 = vld [vmem:[%s18614_s0 + $0x58] ss:$164 sps:$4 sm:$0xff]  }
 0x413   :  { %9564 = vmatpush2.bf16.msra.mxu0 %v13402_v23  ;;  %v13432_v23 = vld [vmem:[%s18613_s1 + $0x19c8] ss:$16 sps:$4 sm:$0xff]  }
 0x414   :  { %9591 = vmatpush1.bf16.msra.mxu1 %v13405_v19  ;;  %9565 = vmatprep.subr.bf16.mxu0 %v13410_v18  ;;  %v13435_v19 = vld [vmem:[%s18613_s1 + $0x1ac8] ss:$16 sps:$4 sm:$0xff]   ;;  %v13440_v18 = vld [vmem:[%s18613_s1 + $0x19ac] ss:$16 sps:$4 sm:$0xff]  }
 0x415   :  { %9592 = vmatprep.subr.bf16.mxu1 %v13413_v57  ;;  %v13443_v57 = vld [vmem:[%s18613_s1 + $0x1aac] ss:$16 sps:$4 sm:$0xff]  }
 0x417   :  { %9566 = vmatpush2.bf16.msra.mxu0 %v13408_v61  ;;  %v13875_v61 = vld [vmem:[%s18614_s0 + $0x6c] ss:$164 sps:$4 sm:$0xff]  }
 0x418   :  { %9593 = vmatpush1.bf16.msra.mxu1 %v13411_v52  ;;  %9567 = vmatprep.subr.bf16.mxu0 %v13416_v58  ;;  %v13438_v52 = vld [vmem:[%s18613_s1 + $0x19a8] ss:$16 sps:$4 sm:$0xff]  }
 0x419   :  { %9594 = vmatprep.subr.bf16.mxu1 %v13419_v14  ;;  %v13441_v58 = vld [vmem:[%s18613_s1 + $0x1aa8] ss:$16 sps:$4 sm:$0xff]   ;;  %v13446_v14 = vld [vmem:[%s18613_s1 + $0x198c] ss:$16 sps:$4 sm:$0xff]  }
 0x41b   :  { %9568 = vmatpush2.bf16.msra.mxu0 %v13414_v0  ;;  %v13449_v0 = vld [vmem:[%s18613_s1 + $0x1a8c] ss:$16 sps:$4 sm:$0xff]  }
 0x41c   :  { %9595 = vmatpush1.bf16.msra.mxu1 %v13417_v9  ;;  %9569 = vmatprep.subr.bf16.mxu0 %v13422_v60  ;;  %v13444_v9 = vld [vmem:[%s18613_s1 + $0x1988] ss:$16 sps:$4 sm:$0xff]  }
 0x41d   :  { %9596 = vmatprep.subr.bf16.mxu1 %v13425_v7  ;;  %v13447_v60 = vld [vmem:[%s18613_s1 + $0x1a88] ss:$16 sps:$4 sm:$0xff]   ;;  %v13452_v7 = vld [vmem:[%s18613_s1 + $0x196c] ss:$16 sps:$4 sm:$0xff]  }
 0x41f   :  { %9570 = vmatpush2.bf16.msra.mxu0 %v13420_v38  ;;  %v13455_v38 = vld [vmem:[%s18613_s1 + $0x1a6c] ss:$16 sps:$4 sm:$0xff]  }
 0x420   :  { %9597 = vmatpush1.bf16.msra.mxu1 %v13423_v59  ;;  %9625 = vmatprep.subr.bf16.mxu0 %v13431_v12  ;;  %v13450_v59 = vld [vmem:[%s18613_s1 + $0x1968] ss:$16 sps:$4 sm:$0xff]   ;;  %v13458_v12 = vld [vmem:[%s18613_s1 + $0x194c] ss:$16 sps:$4 sm:$0xff]  }
 0x421   :  { %9598 = vmatprep.subr.bf16.mxu1 %v13428_v6  ;;  %v13453_v6 = vld [vmem:[%s18613_s1 + $0x1a68] ss:$16 sps:$4 sm:$0xff]  }
 0x422   :  { %9572 = vmatmul.mubr.bf16.vlgmr.msra.gmra.mxu0 %v13874_v30  ;;  %v13467_v30 = vld [vmem:[%s18613_s1 + $0x1a2c] ss:$16 sps:$4 sm:$0xff]  }
 0x423   :  { %9626 = vmatpush1.bf16.msra.mxu0 %v13429_v28  ;;  %9657 = vmatprep.mubr.bf16.mxu0 %v13875_v61  ;;  %v13456_v28 = vld [vmem:[%s18613_s1 + $0x1948] ss:$16 sps:$4 sm:$0xff]  }
 0x424   :  { %9599 = vmatpush2.bf16.msra.mxu1 %v13426_v50  ;;  %9627 = vmatprep.subr.bf16.mxu0 %v13437_v24  ;;  %v13461_v50 = vld [vmem:[%s18613_s1 + $0x1a4c] ss:$16 sps:$4 sm:$0xff]   ;;  %v13468_v61 = vld [vmem:[%s18613_s1 + $0x1908] ss:$16 sps:$4 sm:$0xff]  }
 0x425   :  { %9600 = vmatprep.subr.bf16.mxu1 %v13434_v29  ;;  %v13459_v29 = vld [vmem:[%s18613_s1 + $0x1a48] ss:$16 sps:$4 sm:$0xff]   ;;  %v13464_v24 = vld [vmem:[%s18613_s1 + $0x192c] ss:$16 sps:$4 sm:$0xff]  }
 0x427   :  { %9628 = vmatpush1.bf16.msra.mxu0 %v13435_v19  ;;  %v13465_v19 = vld [vmem:[%s18613_s1 + $0x1a28] ss:$16 sps:$4 sm:$0xff]  }
 0x428   :  { %9601 = vmatpush2.bf16.msra.mxu1 %v13432_v23  ;;  %9629 = vmatprep.subr.bf16.mxu0 %v13443_v57  ;;  %v13462_v23 = vld [vmem:[%s18613_s1 + $0x1928] ss:$16 sps:$4 sm:$0xff]   ;;  %v13473_v57 = vld [vmem:[%s18613_s1 + $0x1a0c] ss:$16 sps:$4 sm:$0xff]  }
 0x429   :  { %9602 = vmatprep.subr.bf16.mxu1 %v13440_v18  ;;  %v13470_v18 = vld [vmem:[%s18613_s1 + $0x190c] ss:$16 sps:$4 sm:$0xff]  }
 0x42b   :  { %9630 = vmatpush1.bf16.msra.mxu0 %v13441_v58  ;;  %v13476_v58 = vld [vmem:[%s18613_s1 + $0x1bec] ss:$16 sps:$4 sm:$0xff]  }
 0x42c   :  { %9603 = vmatpush2.bf16.msra.mxu1 %v13438_v52  ;;  %9631 = vmatprep.subr.bf16.mxu0 %v13449_v0  ;;  %v13471_v52 = vld [vmem:[%s18613_s1 + $0x1a08] ss:$16 sps:$4 sm:$0xff]  }
 0x42d   :  { %9604 = vmatprep.subr.bf16.mxu1 %v13446_v14  ;;  %v13479_v14 = vld [vmem:[%s18613_s1 + $0x1cec] ss:$16 sps:$4 sm:$0xff]   ;;  %v13474_v0 = vld [vmem:[%s18613_s1 + $0x1be8] ss:$16 sps:$4 sm:$0xff]  }
 0x42f   :  { %9632 = vmatpush1.bf16.msra.mxu0 %v13447_v60  ;;  %v13482_v60 = vld [vmem:[%s18613_s1 + $0x1bcc] ss:$16 sps:$4 sm:$0xff]  }
 0x430   :  { %9605 = vmatpush2.bf16.msra.mxu1 %v13444_v9  ;;  %9633 = vmatprep.subr.bf16.mxu0 %v13455_v38  ;;  %v13477_v9 = vld [vmem:[%s18613_s1 + $0x1ce8] ss:$16 sps:$4 sm:$0xff]   ;;  %v13876_v38 = vld [vmem:[%s18614_s0 + $0x60] ss:$164 sps:$4 sm:$0xff]  }
 0x431   :  { %9606 = vmatprep.subr.bf16.mxu1 %v13452_v7  ;;  %v13485_v7 = vld [vmem:[%s18613_s1 + $0x1ccc] ss:$16 sps:$4 sm:$0xff]  }
 0x433   :  { %9634 = vmatpush1.bf16.msra.mxu0 %v13453_v6  ;;  %v13483_v6 = vld [vmem:[%s18613_s1 + $0x1cc8] ss:$16 sps:$4 sm:$0xff]  }
 0x434   :  { %9607 = vmatpush2.bf16.msra.mxu1 %v13450_v59  ;;  %9635 = vmatprep.subr.bf16.mxu0 %v13461_v50  ;;  %v13480_v59 = vld [vmem:[%s18613_s1 + $0x1bc8] ss:$16 sps:$4 sm:$0xff]   ;;  %v13491_v50 = vld [vmem:[%s18613_s1 + $0x1cac] ss:$16 sps:$4 sm:$0xff]  }
 0x435   :  { %9608 = vmatprep.subr.bf16.mxu1 %v13458_v12  ;;  %v13488_v12 = vld [vmem:[%s18613_s1 + $0x1bac] ss:$16 sps:$4 sm:$0xff]  }
 0x437   :  { %9636 = vmatpush1.bf16.msra.mxu0 %v13459_v29  ;;  %v13486_v29 = vld [vmem:[%s18613_s1 + $0x1ba8] ss:$16 sps:$4 sm:$0xff]  }
 0x438   :  { %9609 = vmatpush2.bf16.msra.mxu1 %v13456_v28  ;;  %9637 = vmatprep.subr.bf16.mxu0 %v13467_v30  ;;  %v13877_v28 = vld [vmem:[%s18614_s0 + $0x74] ss:$164 sps:$4 sm:$0xff]   ;;  %v13494_v30 = vld [vmem:[%s18613_s1 + $0x1b8c] ss:$16 sps:$4 sm:$0xff]  }
 0x439   :  { %9610 = vmatprep.subr.bf16.mxu1 %v13464_v24  ;;  %v13489_v24 = vld [vmem:[%s18613_s1 + $0x1ca8] ss:$16 sps:$4 sm:$0xff]  }
 0x43b   :  { %9638 = vmatpush1.bf16.msra.mxu0 %v13465_v19  ;;  %v13492_v19 = vld [vmem:[%s18613_s1 + $0x1b88] ss:$16 sps:$4 sm:$0xff]  }
 0x43c   :  { %9611 = vmatpush2.bf16.msra.mxu1 %v13462_v23  ;;  %9639 = vmatprep.subr.bf16.mxu0 %v13473_v57  ;;  %v13497_v23 = vld [vmem:[%s18613_s1 + $0x1c8c] ss:$16 sps:$4 sm:$0xff]  }
 0x43d   :  { %9612 = vmatprep.subr.bf16.mxu1 %v13470_v18  ;;  %v13495_v18 = vld [vmem:[%s18613_s1 + $0x1c88] ss:$16 sps:$4 sm:$0xff]   ;;  %v13500_v57 = vld [vmem:[%s18613_s1 + $0x1b6c] ss:$16 sps:$4 sm:$0xff]  }
 0x43f   :  { %9640 = vmatpush1.bf16.msra.mxu0 %v13471_v52  ;;  %v13498_v52 = vld [vmem:[%s18613_s1 + $0x1b68] ss:$16 sps:$4 sm:$0xff]  }
 0x440   :  { %9613 = vmatpush2.bf16.msra.mxu1 %v13468_v61  ;;  %9641 = vmatprep.subr.bf16.mxu0 %v13476_v58  ;;  %v13503_v61 = vld [vmem:[%s18613_s1 + $0x1c6c] ss:$16 sps:$4 sm:$0xff]   ;;  %v13501_v58 = vld [vmem:[%s18613_s1 + $0x1c68] ss:$16 sps:$4 sm:$0xff]  }
 0x441   :  { %9668 = vmatprep.subr.bf16.mxu1 %v13479_v14  ;;  %v13506_v14 = vld [vmem:[%s18613_s1 + $0x1b4c] ss:$16 sps:$4 sm:$0xff]  }
 0x443   :  { %9615 = vmatmul.mubr.bf16.vlgmr.msra.gmra.mxu1 %v13876_v38  ;;  %9642 = vmatpush2.bf16.msra.mxu0 %v13474_v0  ;;  %v13509_v0 = vld [vmem:[%s18613_s1 + $0x1c4c] ss:$16 sps:$4 sm:$0xff]  }
 0x444   :  { %9669 = vmatpush1.bf16.msra.mxu1 %v13477_v9  ;;  %9643 = vmatprep.subr.bf16.mxu0 %v13482_v60  ;;  %v13504_v9 = vld [vmem:[%s18613_s1 + $0x1b48] ss:$16 sps:$4 sm:$0xff]   ;;  %v13515_v38 = vld [vmem:[%s18613_s1 + $0x1c2c] ss:$16 sps:$4 sm:$0xff]  }
 0x445   :  { %9670 = vmatprep.subr.bf16.mxu1 %v13485_v7  ;;  %9700 = vmatprep.mubr.bf16.mxu1 %v13877_v28  ;;  %v13507_v60 = vld [vmem:[%s18613_s1 + $0x1c48] ss:$16 sps:$4 sm:$0xff]   ;;  %v13512_v7 = vld [vmem:[%s18613_s1 + $0x1b2c] ss:$16 sps:$4 sm:$0xff]  }
 0x446   :  { %v13516_v28 = vld [vmem:[%s18613_s1 + $0x1b08] ss:$16 sps:$4 sm:$0xff]  }
 0x447   :  { %9644 = vmatpush2.bf16.msra.mxu0 %v13480_v59  ;;  %v13510_v59 = vld [vmem:[%s18613_s1 + $0x1b28] ss:$16 sps:$4 sm:$0xff]  }
 0x448   :  { %9671 = vmatpush1.bf16.msra.mxu1 %v13483_v6  ;;  %9645 = vmatprep.subr.bf16.mxu0 %v13488_v12  ;;  %v13513_v6 = vld [vmem:[%s18613_s1 + $0x1c28] ss:$16 sps:$4 sm:$0xff]   ;;  %v13518_v12 = vld [vmem:[%s18613_s1 + $0x1b0c] ss:$16 sps:$4 sm:$0xff]  }
 0x449   :  { %9672 = vmatprep.subr.bf16.mxu1 %v13491_v50  ;;  %v13521_v50 = vld [vmem:[%s18613_s1 + $0x1c0c] ss:$16 sps:$4 sm:$0xff]  }
 0x44b   :  { %9646 = vmatpush2.bf16.msra.mxu0 %v13486_v29  ;;  %v13519_v29 = vld [vmem:[%s18613_s1 + $0x1c08] ss:$16 sps:$4 sm:$0xff]  }
 0x44c   :  { %9673 = vmatpush1.bf16.msra.mxu1 %v13489_v24  ;;  %9647 = vmatprep.subr.bf16.mxu0 %v13494_v30  ;;  %v13524_v24 = vld [vmem:[%s18613_s1 + $0x1dec] ss:$16 sps:$4 sm:$0xff]  }
 0x44d   :  { %9674 = vmatprep.subr.bf16.mxu1 %v13497_v23  ;;  %v13527_v30 = vld [vmem:[%s18613_s1 + $0x1eec] ss:$16 sps:$4 sm:$0xff]   ;;  %v13522_v23 = vld [vmem:[%s18613_s1 + $0x1de8] ss:$16 sps:$4 sm:$0xff]  }
 0x44f   :  { %9648 = vmatpush2.bf16.msra.mxu0 %v13492_v19  ;;  %v13525_v19 = vld [vmem:[%s18613_s1 + $0x1ee8] ss:$16 sps:$4 sm:$0xff]  }
 0x450   :  { %9675 = vmatpush1.bf16.msra.mxu1 %v13495_v18  ;;  %9649 = vmatprep.subr.bf16.mxu0 %v13500_v57  ;;  %v13530_v18 = vld [vmem:[%s18613_s1 + $0x1dcc] ss:$16 sps:$4 sm:$0xff]  }
 0x451   :  { %9676 = vmatprep.subr.bf16.mxu1 %v13503_v61  ;;  %v13533_v57 = vld [vmem:[%s18613_s1 + $0x1ecc] ss:$16 sps:$4 sm:$0xff]  }
 0x452   :  { %v13878_v61 = vld [vmem:[%s18614_s0 + $0x68] ss:$164 sps:$4 sm:$0xff]  }
 0x453   :  { %9650 = vmatpush2.bf16.msra.mxu0 %v13498_v52  ;;  %v13528_v52 = vld [vmem:[%s18613_s1 + $0x1dc8] ss:$16 sps:$4 sm:$0xff]  }
 0x454   :  { %9677 = vmatpush1.bf16.msra.mxu1 %v13501_v58  ;;  %9651 = vmatprep.subr.bf16.mxu0 %v13506_v14  ;;  %v13531_v58 = vld [vmem:[%s18613_s1 + $0x1ec8] ss:$16 sps:$4 sm:$0xff]   ;;  %v13536_v14 = vld [vmem:[%s18613_s1 + $0x1dac] ss:$16 sps:$4 sm:$0xff]  }
 0x455   :  { %9678 = vmatprep.subr.bf16.mxu1 %v13509_v0  ;;  %v13539_v0 = vld [vmem:[%s18613_s1 + $0x1eac] ss:$16 sps:$4 sm:$0xff]  }
 0x457   :  { %9652 = vmatpush2.bf16.msra.mxu0 %v13504_v9  ;;  %v13879_v9 = vld [vmem:[%s18614_s0 + $0x7c] ss:$164 sps:$4 sm:$0xff]  }
 0x458   :  { %9679 = vmatpush1.bf16.msra.mxu1 %v13507_v60  ;;  %9653 = vmatprep.subr.bf16.mxu0 %v13512_v7  ;;  %v13534_v60 = vld [vmem:[%s18613_s1 + $0x1da8] ss:$16 sps:$4 sm:$0xff]  }
 0x459   :  { %9680 = vmatprep.subr.bf16.mxu1 %v13515_v38  ;;  %v13537_v7 = vld [vmem:[%s18613_s1 + $0x1ea8] ss:$16 sps:$4 sm:$0xff]   ;;  %v13542_v38 = vld [vmem:[%s18613_s1 + $0x1d8c] ss:$16 sps:$4 sm:$0xff]  }
 0x45b   :  { %9654 = vmatpush2.bf16.msra.mxu0 %v13510_v59  ;;  %v13545_v59 = vld [vmem:[%s18613_s1 + $0x1e8c] ss:$16 sps:$4 sm:$0xff]  }
 0x45c   :  { %9681 = vmatpush1.bf16.msra.mxu1 %v13513_v6  ;;  %9655 = vmatprep.subr.bf16.mxu0 %v13518_v12  ;;  %v13540_v6 = vld [vmem:[%s18613_s1 + $0x1d88] ss:$16 sps:$4 sm:$0xff]  }
 0x45d   :  { %9682 = vmatprep.subr.bf16.mxu1 %v13521_v50  ;;  %v13543_v12 = vld [vmem:[%s18613_s1 + $0x1e88] ss:$16 sps:$4 sm:$0xff]   ;;  %v13548_v50 = vld [vmem:[%s18613_s1 + $0x1d6c] ss:$16 sps:$4 sm:$0xff]  }
 0x45f   :  { %9656 = vmatpush2.bf16.msra.mxu0 %v13516_v28  ;;  %v13551_v28 = vld [vmem:[%s18613_s1 + $0x1e6c] ss:$16 sps:$4 sm:$0xff]  }
 0x460   :  { %9683 = vmatpush1.bf16.msra.mxu1 %v13519_v29  ;;  %9711 = vmatprep.subr.bf16.mxu0 %v13527_v30  ;;  %v13546_v29 = vld [vmem:[%s18613_s1 + $0x1d68] ss:$16 sps:$4 sm:$0xff]   ;;  %v13554_v30 = vld [vmem:[%s18613_s1 + $0x1d4c] ss:$16 sps:$4 sm:$0xff]  }
 0x461   :  { %9684 = vmatprep.subr.bf16.mxu1 %v13524_v24  ;;  %v13549_v24 = vld [vmem:[%s18613_s1 + $0x1e68] ss:$16 sps:$4 sm:$0xff]  }
 0x462   :  { %9658 = vmatmul.mubr.bf16.vlgmr.msra.gmra.mxu0 %v13878_v61  ;;  %v13563_v61 = vld [vmem:[%s18613_s1 + $0x1e2c] ss:$16 sps:$4 sm:$0xff]  }
 0x463   :  { %9712 = vmatpush1.bf16.msra.mxu0 %v13525_v19  ;;  %9743 = vmatprep.mubr.bf16.mxu0 %v13879_v9  ;;  %v13552_v19 = vld [vmem:[%s18613_s1 + $0x1d48] ss:$16 sps:$4 sm:$0xff]  }
 0x464   :  { %9685 = vmatpush2.bf16.msra.mxu1 %v13522_v23  ;;  %9713 = vmatprep.subr.bf16.mxu0 %v13533_v57  ;;  %v13557_v23 = vld [vmem:[%s18613_s1 + $0x1e4c] ss:$16 sps:$4 sm:$0xff]   ;;  %v13564_v9 = vld [vmem:[%s18613_s1 + $0x1d08] ss:$16 sps:$4 sm:$0xff]  }
 0x465   :  { %9686 = vmatprep.subr.bf16.mxu1 %v13530_v18  ;;  %v13555_v18 = vld [vmem:[%s18613_s1 + $0x1e48] ss:$16 sps:$4 sm:$0xff]   ;;  %v13560_v57 = vld [vmem:[%s18613_s1 + $0x1d2c] ss:$16 sps:$4 sm:$0xff]  }
 0x467   :  { %9714 = vmatpush1.bf16.msra.mxu0 %v13531_v58  ;;  %v13561_v58 = vld [vmem:[%s18613_s1 + $0x1e28] ss:$16 sps:$4 sm:$0xff]  }
 0x468   :  { %9687 = vmatpush2.bf16.msra.mxu1 %v13528_v52  ;;  %9715 = vmatprep.subr.bf16.mxu0 %v13539_v0  ;;  %v13558_v52 = vld [vmem:[%s18613_s1 + $0x1d28] ss:$16 sps:$4 sm:$0xff]   ;;  %v13569_v0 = vld [vmem:[%s18613_s1 + $0x1e0c] ss:$16 sps:$4 sm:$0xff]  }
 0x469   :  { %9688 = vmatprep.subr.bf16.mxu1 %v13536_v14  ;;  %v13566_v14 = vld [vmem:[%s18613_s1 + $0x1d0c] ss:$16 sps:$4 sm:$0xff]  }
 0x46b   :  { %9716 = vmatpush1.bf16.msra.mxu0 %v13537_v7  ;;  %v13572_v7 = vld [vmem:[%s18613_s1 + $0x1fec] ss:$16 sps:$4 sm:$0xff]  }
 0x46c   :  { %9689 = vmatpush2.bf16.msra.mxu1 %v13534_v60  ;;  %9717 = vmatprep.subr.bf16.mxu0 %v13545_v59  ;;  %v13567_v60 = vld [vmem:[%s18613_s1 + $0x1e08] ss:$16 sps:$4 sm:$0xff]  }
 0x46d   :  { %9690 = vmatprep.subr.bf16.mxu1 %v13542_v38  ;;  %v13575_v38 = vld [vmem:[%s18613_s1 + $0x20ec] ss:$16 sps:$4 sm:$0xff]   ;;  %v13570_v59 = vld [vmem:[%s18613_s1 + $0x1fe8] ss:$16 sps:$4 sm:$0xff]  }
 0x46f   :  { %9718 = vmatpush1.bf16.msra.mxu0 %v13543_v12  ;;  %v13578_v12 = vld [vmem:[%s18613_s1 + $0x1fcc] ss:$16 sps:$4 sm:$0xff]  }
 0x470   :  { %9691 = vmatpush2.bf16.msra.mxu1 %v13540_v6  ;;  %9719 = vmatprep.subr.bf16.mxu0 %v13551_v28  ;;  %v13573_v6 = vld [vmem:[%s18613_s1 + $0x20e8] ss:$16 sps:$4 sm:$0xff]   ;;  %v13880_v28 = vld [vmem:[%s18614_s0 + $0x70] ss:$164 sps:$4 sm:$0xff]  }
 0x471   :  { %9692 = vmatprep.subr.bf16.mxu1 %v13548_v50  ;;  %v13581_v50 = vld [vmem:[%s18613_s1 + $0x20cc] ss:$16 sps:$4 sm:$0xff]  }
 0x473   :  { %9720 = vmatpush1.bf16.msra.mxu0 %v13549_v24  ;;  %v13579_v24 = vld [vmem:[%s18613_s1 + $0x20c8] ss:$16 sps:$4 sm:$0xff]  }
 0x474   :  { %9693 = vmatpush2.bf16.msra.mxu1 %v13546_v29  ;;  %9721 = vmatprep.subr.bf16.mxu0 %v13557_v23  ;;  %v13576_v29 = vld [vmem:[%s18613_s1 + $0x1fc8] ss:$16 sps:$4 sm:$0xff]   ;;  %v13587_v23 = vld [vmem:[%s18613_s1 + $0x20ac] ss:$16 sps:$4 sm:$0xff]  }
 0x475   :  { %9694 = vmatprep.subr.bf16.mxu1 %v13554_v30  ;;  %v13584_v30 = vld [vmem:[%s18613_s1 + $0x1fac] ss:$16 sps:$4 sm:$0xff]  }
 0x477   :  { %9722 = vmatpush1.bf16.msra.mxu0 %v13555_v18  ;;  %v13582_v18 = vld [vmem:[%s18613_s1 + $0x1fa8] ss:$16 sps:$4 sm:$0xff]  }
 0x478   :  { %9695 = vmatpush2.bf16.msra.mxu1 %v13552_v19  ;;  %9723 = vmatprep.subr.bf16.mxu0 %v13563_v61  ;;  %v13881_v19 = vld [vmem:[%s18614_s0 + $0x84] ss:$164 sps:$4 sm:$0xff]   ;;  %v13590_v61 = vld [vmem:[%s18613_s1 + $0x1f8c] ss:$16 sps:$4 sm:$0xff]  }
 0x479   :  { %9696 = vmatprep.subr.bf16.mxu1 %v13560_v57  ;;  %v13585_v57 = vld [vmem:[%s18613_s1 + $0x20a8] ss:$16 sps:$4 sm:$0xff]  }
 0x47b   :  { %9724 = vmatpush1.bf16.msra.mxu0 %v13561_v58  ;;  %v13588_v58 = vld [vmem:[%s18613_s1 + $0x1f88] ss:$16 sps:$4 sm:$0xff]  }
 0x47c   :  { %9697 = vmatpush2.bf16.msra.mxu1 %v13558_v52  ;;  %9725 = vmatprep.subr.bf16.mxu0 %v13569_v0  ;;  %v13593_v52 = vld [vmem:[%s18613_s1 + $0x208c] ss:$16 sps:$4 sm:$0xff]  }
 0x47d   :  { %9698 = vmatprep.subr.bf16.mxu1 %v13566_v14  ;;  %v13591_v14 = vld [vmem:[%s18613_s1 + $0x2088] ss:$16 sps:$4 sm:$0xff]   ;;  %v13596_v0 = vld [vmem:[%s18613_s1 + $0x1f6c] ss:$16 sps:$4 sm:$0xff]  }
 0x47f   :  { %9726 = vmatpush1.bf16.msra.mxu0 %v13567_v60  ;;  %v13594_v60 = vld [vmem:[%s18613_s1 + $0x1f68] ss:$16 sps:$4 sm:$0xff]  }
 0x480   :  { %9699 = vmatpush2.bf16.msra.mxu1 %v13564_v9  ;;  %9727 = vmatprep.subr.bf16.mxu0 %v13572_v7  ;;  %v13599_v9 = vld [vmem:[%s18613_s1 + $0x206c] ss:$16 sps:$4 sm:$0xff]   ;;  %v13597_v7 = vld [vmem:[%s18613_s1 + $0x2068] ss:$16 sps:$4 sm:$0xff]  }
 0x481   :  { %9754 = vmatprep.subr.bf16.mxu1 %v13575_v38  ;;  %v13602_v38 = vld [vmem:[%s18613_s1 + $0x1f4c] ss:$16 sps:$4 sm:$0xff]  }
 0x483   :  { %9701 = vmatmul.mubr.bf16.vlgmr.msra.gmra.mxu1 %v13880_v28  ;;  %9728 = vmatpush2.bf16.msra.mxu0 %v13570_v59  ;;  %v13605_v59 = vld [vmem:[%s18613_s1 + $0x204c] ss:$16 sps:$4 sm:$0xff]  }
 0x484   :  { %9755 = vmatpush1.bf16.msra.mxu1 %v13573_v6  ;;  %9729 = vmatprep.subr.bf16.mxu0 %v13578_v12  ;;  %v13600_v6 = vld [vmem:[%s18613_s1 + $0x1f48] ss:$16 sps:$4 sm:$0xff]   ;;  %v13611_v28 = vld [vmem:[%s18613_s1 + $0x202c] ss:$16 sps:$4 sm:$0xff]  }
 0x485   :  { %9756 = vmatprep.subr.bf16.mxu1 %v13581_v50  ;;  %9786 = vmatprep.mubr.bf16.mxu1 %v13881_v19  ;;  %v13603_v12 = vld [vmem:[%s18613_s1 + $0x2048] ss:$16 sps:$4 sm:$0xff]   ;;  %v13608_v50 = vld [vmem:[%s18613_s1 + $0x1f2c] ss:$16 sps:$4 sm:$0xff]  }
 0x486   :  { %v13612_v19 = vld [vmem:[%s18613_s1 + $0x1f08] ss:$16 sps:$4 sm:$0xff]  }
 0x487   :  { %9730 = vmatpush2.bf16.msra.mxu0 %v13576_v29  ;;  %v13606_v29 = vld [vmem:[%s18613_s1 + $0x1f28] ss:$16 sps:$4 sm:$0xff]  }
 0x488   :  { %9757 = vmatpush1.bf16.msra.mxu1 %v13579_v24  ;;  %9731 = vmatprep.subr.bf16.mxu0 %v13584_v30  ;;  %v13609_v24 = vld [vmem:[%s18613_s1 + $0x2028] ss:$16 sps:$4 sm:$0xff]   ;;  %v13614_v30 = vld [vmem:[%s18613_s1 + $0x1f0c] ss:$16 sps:$4 sm:$0xff]  }
 0x489   :  { %9758 = vmatprep.subr.bf16.mxu1 %v13587_v23  ;;  %v13617_v23 = vld [vmem:[%s18613_s1 + $0x200c] ss:$16 sps:$4 sm:$0xff]  }
 0x48b   :  { %9732 = vmatpush2.bf16.msra.mxu0 %v13582_v18  ;;  %v13615_v18 = vld [vmem:[%s18613_s1 + $0x2008] ss:$16 sps:$4 sm:$0xff]  }
 0x48c   :  { %9759 = vmatpush1.bf16.msra.mxu1 %v13585_v57  ;;  %9733 = vmatprep.subr.bf16.mxu0 %v13590_v61  ;;  %v13620_v57 = vld [vmem:[%s18613_s1 + $0x21ec] ss:$16 sps:$4 sm:$0xff]  }
 0x48d   :  { %9760 = vmatprep.subr.bf16.mxu1 %v13593_v52  ;;  %v13623_v61 = vld [vmem:[%s18613_s1 + $0x22ec] ss:$16 sps:$4 sm:$0xff]   ;;  %v13618_v52 = vld [vmem:[%s18613_s1 + $0x21e8] ss:$16 sps:$4 sm:$0xff]  }
 0x48f   :  { %9734 = vmatpush2.bf16.msra.mxu0 %v13588_v58  ;;  %v13621_v58 = vld [vmem:[%s18613_s1 + $0x22e8] ss:$16 sps:$4 sm:$0xff]  }
 0x490   :  { %9761 = vmatpush1.bf16.msra.mxu1 %v13591_v14  ;;  %9735 = vmatprep.subr.bf16.mxu0 %v13596_v0  ;;  %v13626_v14 = vld [vmem:[%s18613_s1 + $0x21cc] ss:$16 sps:$4 sm:$0xff]  }
 0x491   :  { %9762 = vmatprep.subr.bf16.mxu1 %v13599_v9  ;;  %v13629_v0 = vld [vmem:[%s18613_s1 + $0x22cc] ss:$16 sps:$4 sm:$0xff]   ;;  %v13624_v9 = vld [vmem:[%s18613_s1 + $0x21c8] ss:$16 sps:$4 sm:$0xff]  }
 0x493   :  { %9736 = vmatpush2.bf16.msra.mxu0 %v13594_v60  ;;  %v13627_v60 = vld [vmem:[%s18613_s1 + $0x22c8] ss:$16 sps:$4 sm:$0xff]  }
 0x494   :  { %9763 = vmatpush1.bf16.msra.mxu1 %v13597_v7  ;;  %9737 = vmatprep.subr.bf16.mxu0 %v13602_v38  ;;  %v13882_v7 = vld [vmem:[%s18614_s0 + $0x78] ss:$164 sps:$4 sm:$0xff]  }
 0x495   :  { %9764 = vmatprep.subr.bf16.mxu1 %v13605_v59  ;;  %v13632_v38 = vld [vmem:[%s18613_s1 + $0x21ac] ss:$16 sps:$4 sm:$0xff]  }
 0x496   :  { %v13635_v59 = vld [vmem:[%s18613_s1 + $0x22ac] ss:$16 sps:$4 sm:$0xff]  }
 0x497   :  { %9738 = vmatpush2.bf16.msra.mxu0 %v13600_v6  ;;  %v13630_v6 = vld [vmem:[%s18613_s1 + $0x21a8] ss:$16 sps:$4 sm:$0xff]  }
 0x498   :  { %9765 = vmatpush1.bf16.msra.mxu1 %v13603_v12  ;;  %9739 = vmatprep.subr.bf16.mxu0 %v13608_v50  ;;  %v13633_v12 = vld [vmem:[%s18613_s1 + $0x22a8] ss:$16 sps:$4 sm:$0xff]   ;;  %v13883_v50 = vld [vmem:[%s18614_s0 + $0x8c] ss:$164 sps:$4 sm:$0xff]  }
 0x499   :  { %9766 = vmatprep.subr.bf16.mxu1 %v13611_v28  ;;  %v13638_v28 = vld [vmem:[%s18613_s1 + $0x218c] ss:$16 sps:$4 sm:$0xff]  }
 0x49b   :  { %9740 = vmatpush2.bf16.msra.mxu0 %v13606_v29  ;;  %v13641_v29 = vld [vmem:[%s18613_s1 + $0x228c] ss:$16 sps:$4 sm:$0xff]  }
 0x49c   :  { %9767 = vmatpush1.bf16.msra.mxu1 %v13609_v24  ;;  %9741 = vmatprep.subr.bf16.mxu0 %v13614_v30  ;;  %v13636_v24 = vld [vmem:[%s18613_s1 + $0x2188] ss:$16 sps:$4 sm:$0xff]  }
 0x49d   :  { %9768 = vmatprep.subr.bf16.mxu1 %v13617_v23  ;;  %v13639_v30 = vld [vmem:[%s18613_s1 + $0x2288] ss:$16 sps:$4 sm:$0xff]   ;;  %v13644_v23 = vld [vmem:[%s18613_s1 + $0x216c] ss:$16 sps:$4 sm:$0xff]  }
 0x49f   :  { %9742 = vmatpush2.bf16.msra.mxu0 %v13612_v19  ;;  %v13647_v19 = vld [vmem:[%s18613_s1 + $0x226c] ss:$16 sps:$4 sm:$0xff]  }
 0x4a0   :  { %9769 = vmatpush1.bf16.msra.mxu1 %v13615_v18  ;;  %9797 = vmatprep.subr.bf16.mxu0 %v13623_v61  ;;  %v13642_v18 = vld [vmem:[%s18613_s1 + $0x2168] ss:$16 sps:$4 sm:$0xff]   ;;  %v13650_v61 = vld [vmem:[%s18613_s1 + $0x214c] ss:$16 sps:$4 sm:$0xff]  }
 0x4a1   :  { %9770 = vmatprep.subr.bf16.mxu1 %v13620_v57  ;;  %v13645_v57 = vld [vmem:[%s18613_s1 + $0x2268] ss:$16 sps:$4 sm:$0xff]  }
 0x4a2   :  { %9744 = vmatmul.mubr.bf16.vlgmr.msra.gmra.mxu0 %v13882_v7  ;;  %v13657_v7 = vld [vmem:[%s18613_s1 + $0x2228] ss:$16 sps:$4 sm:$0xff]  }
 0x4a3   :  { %9798 = vmatpush1.bf16.msra.mxu0 %v13621_v58  ;;  %9829 = vmatprep.mubr.bf16.mxu0 %v13883_v50  ;;  %v13648_v58 = vld [vmem:[%s18613_s1 + $0x2148] ss:$16 sps:$4 sm:$0xff]   ;;  %v13668_v50 = vld [vmem:[%s18613_s1 + $0x23ec] ss:$16 sps:$4 sm:$0xff]  }
 0x4a4   :  { %9771 = vmatpush2.bf16.msra.mxu1 %v13618_v52  ;;  %9799 = vmatprep.subr.bf16.mxu0 %v13629_v0  ;;  %v13653_v52 = vld [vmem:[%s18613_s1 + $0x224c] ss:$16 sps:$4 sm:$0xff]  }
 0x4a5   :  { %9772 = vmatprep.subr.bf16.mxu1 %v13626_v14  ;;  %v13651_v14 = vld [vmem:[%s18613_s1 + $0x2248] ss:$16 sps:$4 sm:$0xff]   ;;  %v13656_v0 = vld [vmem:[%s18613_s1 + $0x212c] ss:$16 sps:$4 sm:$0xff]  }
 0x4a7   :  { %9800 = vmatpush1.bf16.msra.mxu0 %v13627_v60  ;;  %v13654_v60 = vld [vmem:[%s18613_s1 + $0x2128] ss:$16 sps:$4 sm:$0xff]  }
 0x4a8   :  { %9773 = vmatpush2.bf16.msra.mxu1 %v13624_v9  ;;  %9801 = vmatprep.subr.bf16.mxu0 %v13635_v59  ;;  %v13659_v9 = vld [vmem:[%s18613_s1 + $0x222c] ss:$16 sps:$4 sm:$0xff]  }
 0x4a9   :  { %9774 = vmatprep.subr.bf16.mxu1 %v13632_v38  ;;  %v13662_v38 = vld [vmem:[%s18613_s1 + $0x210c] ss:$16 sps:$4 sm:$0xff]  }
 0x4aa   :  { %v13665_v59 = vld [vmem:[%s18613_s1 + $0x220c] ss:$16 sps:$4 sm:$0xff]  }
 0x4ab   :  { %9802 = vmatpush1.bf16.msra.mxu0 %v13633_v12  ;;  %v13663_v12 = vld [vmem:[%s18613_s1 + $0x2208] ss:$16 sps:$4 sm:$0xff]  }
 0x4ac   :  { %9775 = vmatpush2.bf16.msra.mxu1 %v13630_v6  ;;  %9803 = vmatprep.subr.bf16.mxu0 %v13641_v29  ;;  %v13660_v6 = vld [vmem:[%s18613_s1 + $0x2108] ss:$16 sps:$4 sm:$0xff]  }
 0x4ad   :  { %9776 = vmatprep.subr.bf16.mxu1 %v13638_v28  ;;  %v13671_v28 = vld [vmem:[%s18613_s1 + $0x24ec] ss:$16 sps:$4 sm:$0xff]   ;;  %v13666_v29 = vld [vmem:[%s18613_s1 + $0x23e8] ss:$16 sps:$4 sm:$0xff]  }
 0x4af   :  { %9804 = vmatpush1.bf16.msra.mxu0 %v13639_v30  ;;  %v13674_v30 = vld [vmem:[%s18613_s1 + $0x23cc] ss:$16 sps:$4 sm:$0xff]  }
 0x4b0   :  { %9777 = vmatpush2.bf16.msra.mxu1 %v13636_v24  ;;  %9805 = vmatprep.subr.bf16.mxu0 %v13647_v19  ;;  %v13669_v24 = vld [vmem:[%s18613_s1 + $0x24e8] ss:$16 sps:$4 sm:$0xff]   ;;  %v13884_v19 = vld [vmem:[%s18614_s0 + $0x80] ss:$164 sps:$4 sm:$0xff]  }
 0x4b1   :  { %9778 = vmatprep.subr.bf16.mxu1 %v13644_v23  ;;  %v13677_v23 = vld [vmem:[%s18613_s1 + $0x24cc] ss:$16 sps:$4 sm:$0xff]  }
 0x4b3   :  { %9806 = vmatpush1.bf16.msra.mxu0 %v13645_v57  ;;  %v13675_v57 = vld [vmem:[%s18613_s1 + $0x24c8] ss:$16 sps:$4 sm:$0xff]  }
 0x4b4   :  { %9779 = vmatpush2.bf16.msra.mxu1 %v13642_v18  ;;  %9807 = vmatprep.subr.bf16.mxu0 %v13653_v52  ;;  %v13672_v18 = vld [vmem:[%s18613_s1 + $0x23c8] ss:$16 sps:$4 sm:$0xff]   ;;  %v13683_v52 = vld [vmem:[%s18613_s1 + $0x24ac] ss:$16 sps:$4 sm:$0xff]  }
 0x4b5   :  { %9780 = vmatprep.subr.bf16.mxu1 %v13650_v61  ;;  %v13680_v61 = vld [vmem:[%s18613_s1 + $0x23ac] ss:$16 sps:$4 sm:$0xff]  }
 0x4b7   :  { %9808 = vmatpush1.bf16.msra.mxu0 %v13651_v14  ;;  %v13678_v14 = vld [vmem:[%s18613_s1 + $0x23a8] ss:$16 sps:$4 sm:$0xff]  }
 0x4b8   :  { %9781 = vmatpush2.bf16.msra.mxu1 %v13648_v58  ;;  %9809 = vmatprep.subr.bf16.mxu0 %v13659_v9  ;;  %v13885_v58 = vld [vmem:[%s18614_s0 + $0x94] ss:$164 sps:$4 sm:$0xff]   ;;  %v13686_v9 = vld [vmem:[%s18613_s1 + $0x238c] ss:$16 sps:$4 sm:$0xff]  }
 0x4b9   :  { %9782 = vmatprep.subr.bf16.mxu1 %v13656_v0  ;;  %v13681_v0 = vld [vmem:[%s18613_s1 + $0x24a8] ss:$16 sps:$4 sm:$0xff]  }
 0x4bb   :  { %9810 = vmatpush1.bf16.msra.mxu0 %v13657_v7  ;;  %v13684_v7 = vld [vmem:[%s18613_s1 + $0x2388] ss:$16 sps:$4 sm:$0xff]  }
 0x4bc   :  { %9783 = vmatpush2.bf16.msra.mxu1 %v13654_v60  ;;  %9811 = vmatprep.subr.bf16.mxu0 %v13665_v59  ;;  %v13689_v60 = vld [vmem:[%s18613_s1 + $0x248c] ss:$16 sps:$4 sm:$0xff]  }
 0x4bd   :  { %9784 = vmatprep.subr.bf16.mxu1 %v13662_v38  ;;  %v13687_v38 = vld [vmem:[%s18613_s1 + $0x2488] ss:$16 sps:$4 sm:$0xff]   ;;  %v13692_v59 = vld [vmem:[%s18613_s1 + $0x236c] ss:$16 sps:$4 sm:$0xff]  }
 0x4bf   :  { %9812 = vmatpush1.bf16.msra.mxu0 %v13663_v12  ;;  %v13690_v12 = vld [vmem:[%s18613_s1 + $0x2368] ss:$16 sps:$4 sm:$0xff]  }
 0x4c0   :  { %9785 = vmatpush2.bf16.msra.mxu1 %v13660_v6  ;;  %9813 = vmatprep.subr.bf16.mxu0 %v13668_v50  ;;  %v13695_v6 = vld [vmem:[%s18613_s1 + $0x246c] ss:$16 sps:$4 sm:$0xff]   ;;  %v13693_v50 = vld [vmem:[%s18613_s1 + $0x2468] ss:$16 sps:$4 sm:$0xff]  }
 0x4c1   :  { %9840 = vmatprep.subr.bf16.mxu1 %v13671_v28  ;;  %v13698_v28 = vld [vmem:[%s18613_s1 + $0x234c] ss:$16 sps:$4 sm:$0xff]  }
 0x4c3   :  { %9787 = vmatmul.mubr.bf16.vlgmr.msra.gmra.mxu1 %v13884_v19  ;;  %9814 = vmatpush2.bf16.msra.mxu0 %v13666_v29  ;;  %v13701_v29 = vld [vmem:[%s18613_s1 + $0x244c] ss:$16 sps:$4 sm:$0xff]  }
 0x4c4   :  { %9841 = vmatpush1.bf16.msra.mxu1 %v13669_v24  ;;  %9815 = vmatprep.subr.bf16.mxu0 %v13674_v30  ;;  %v13696_v24 = vld [vmem:[%s18613_s1 + $0x2348] ss:$16 sps:$4 sm:$0xff]   ;;  %v13707_v19 = vld [vmem:[%s18613_s1 + $0x242c] ss:$16 sps:$4 sm:$0xff]  }
 0x4c5   :  { %9842 = vmatprep.subr.bf16.mxu1 %v13677_v23  ;;  %9872 = vmatprep.mubr.bf16.mxu1 %v13885_v58  ;;  %v13699_v30 = vld [vmem:[%s18613_s1 + $0x2448] ss:$16 sps:$4 sm:$0xff]   ;;  %v13704_v23 = vld [vmem:[%s18613_s1 + $0x232c] ss:$16 sps:$4 sm:$0xff]  }
 0x4c6   :  { %v13713_v58 = vld [vmem:[%s18613_s1 + $0x240c] ss:$16 sps:$4 sm:$0xff]  }
 0x4c7   :  { %9816 = vmatpush2.bf16.msra.mxu0 %v13672_v18  ;;  %v1383_v18 = vsub.s32 1, %v14721_v11 }
 0x4c8   :  { %9843 = vmatpush1.bf16.msra.mxu1 %v13675_v57  ;;  %9817 = vmatprep.subr.bf16.mxu0 %v13680_v61  ;;  %v13702_v57 = vld [vmem:[%s18613_s1 + $0x2328] ss:$16 sps:$4 sm:$0xff]  }
 0x4c9   :  { %9844 = vmatprep.subr.bf16.mxu1 %v13683_v52  ;;  %v13705_v61 = vld [vmem:[%s18613_s1 + $0x2428] ss:$16 sps:$4 sm:$0xff]   ;;  %v13710_v52 = vld [vmem:[%s18613_s1 + $0x230c] ss:$16 sps:$4 sm:$0xff]  }
 0x4cb   :  { %9818 = vmatpush2.bf16.msra.mxu0 %v13678_v14  ;;  %v18066_v14 = vld [vmem:[%s18615_s2] sm:$0xf] }
 0x4cc   :  { %9845 = vmatpush1.bf16.msra.mxu1 %v13681_v0  ;;  %9819 = vmatprep.subr.bf16.mxu0 %v13686_v9  ;;  %v1384_v0 = vrot.slane %v18066_v14, %v1383_v18  ;;  %v13708_v9 = vld [vmem:[%s18613_s1 + $0x2308] ss:$16 sps:$4 sm:$0xff]   ;;  %v13888_v18 = vld [vmem:[%s18614_s0 + $0x9c] ss:$164 sps:$4 sm:$0xff]  }
 0x4cd   :  { %9846 = vmatprep.subr.bf16.mxu1 %v13689_v60  ;;  %v13711_v60 = vld [vmem:[%s18613_s1 + $0x2408] ss:$16 sps:$4 sm:$0xff]  }
 0x4cf   :  { %9820 = vmatpush2.bf16.msra.mxu0 %v13684_v7  ;;  %v13716_v7 = vld [vmem:[%s18613_s1 + $0x25ec] ss:$16 sps:$4 sm:$0xff]  }
 0x4d0   :  { %9847 = vmatpush1.bf16.msra.mxu1 %v13687_v38  ;;  %9821 = vmatprep.subr.bf16.mxu0 %v13692_v59  ;;  %v13719_v38 = vld [vmem:[%s18613_s1 + $0x26ec] ss:$16 sps:$4 sm:$0xff]   ;;  %v8204_v59 = vadd.f32 %v14969_v43, %v1384_v0 }
 0x4d1   :  { %9848 = vmatprep.subr.bf16.mxu1 %v13695_v6  ;;  %v8200_v6 = vadd.f32 %v14775_v34, %v1384_v0  ;;  %v13725_v34 = vld [vmem:[%s18613_s1 + $0x26cc] ss:$16 sps:$4 sm:$0xff]  }
 0x4d2   :  { %v8247_v43 = vadd.f32 %v14971_v44, %v8204_v59  ;;  %v13728_v44 = vld [vmem:[%s18613_s1 + $0x25ac] ss:$16 sps:$4 sm:$0xff]  }
 0x4d3   :  { %9822 = vmatpush2.bf16.msra.mxu0 %v13690_v12  ;;  %v13714_v12 = vld [vmem:[%s18613_s1 + $0x25e8] ss:$16 sps:$4 sm:$0xff]  }
 0x4d4   :  { %9849 = vmatpush1.bf16.msra.mxu1 %v13693_v50  ;;  %9823 = vmatprep.subr.bf16.mxu0 %v13698_v28  ;;  %v13717_v50 = vld [vmem:[%s18613_s1 + $0x26e8] ss:$16 sps:$4 sm:$0xff]   ;;  %v13722_v28 = vld [vmem:[%s18613_s1 + $0x25cc] ss:$16 sps:$4 sm:$0xff]  }
 0x4d5   :  { %9850 = vmatprep.subr.bf16.mxu1 %v13701_v29  ;;  %v13887_v29 = vld [vmem:[%s18614_s0 + $0x88] ss:$164 sps:$4 sm:$0xff]  }
 0x4d7   :  { %9824 = vmatpush2.bf16.msra.mxu0 %v13696_v24  ;;  %v8243_v24 = vadd.f32 %v14777_v35, %v8200_v6  ;;  %v13731_v35 = vld [vmem:[%s18613_s1 + $0x26ac] ss:$16 sps:$4 sm:$0xff]   ;;  %v13738_v6 = vld [vmem:[%s18613_s1 + $0x2568] ss:$16 sps:$4 sm:$0xff]  }
 0x4d8   :  { %9851 = vmatpush1.bf16.msra.mxu1 %v13699_v30  ;;  %9825 = vmatprep.subr.bf16.mxu0 %v13704_v23  ;;  %v8290_v30 = vadd.f32 %v15187_v3, %v8247_v43  ;;  %v13720_v23 = vld [vmem:[%s18613_s1 + $0x25c8] ss:$16 sps:$4 sm:$0xff]   ;;  %v13752_v43 = vld [vmem:[%s18613_s1 + $0x252c] ss:$16 sps:$4 sm:$0xff]  }
 0x4d9   :  { %9852 = vmatprep.subr.bf16.mxu1 %v13707_v19  ;;  %v13723_v19 = vld [vmem:[%s18613_s1 + $0x26c8] ss:$16 sps:$4 sm:$0xff]   ;;  %v8286_v3 = vadd.f32 %v14992_v55, %v8243_v24  ;;  %v13734_v55 = vld [vmem:[%s18613_s1 + $0x258c] ss:$16 sps:$4 sm:$0xff]  }
 0x4db   :  { %9826 = vmatpush2.bf16.msra.mxu0 %v13702_v57  ;;  %v8333_v57 = vadd.f32 %v15207_v10, %v8290_v30  ;;  %v13737_v10 = vld [vmem:[%s18613_s1 + $0x268c] ss:$16 sps:$4 sm:$0xff]   ;;  %v13750_v30 = vld [vmem:[%s18613_s1 + $0x2528] ss:$16 sps:$4 sm:$0xff]  }
 0x4dc   :  { %9853 = vmatpush1.bf16.msra.mxu1 %v13705_v61  ;;  %9827 = vmatprep.subr.bf16.mxu0 %v13710_v52  ;;  %v13726_v61 = vld [vmem:[%s18613_s1 + $0x25a8] ss:$16 sps:$4 sm:$0xff]  }
 0x4dd   :  { %9854 = vmatprep.subr.bf16.mxu1 %v13713_v58  ;;  %v13729_v52 = vld [vmem:[%s18613_s1 + $0x26a8] ss:$16 sps:$4 sm:$0xff]   ;;  %v8329_v58 = vadd.f32 %v14994_v56, %v8286_v3  ;;  %v8376_v0 = vadd.f32 %v15403_v27, %v8333_v57  ;;  %v13740_v56 = vld [vmem:[%s18613_s1 + $0x256c] ss:$16 sps:$4 sm:$0xff]  }
 0x4de   :  { %v13759_v3 = vld [vmem:[%s18613_s1 + $0x2608] ss:$16 sps:$4 sm:$0xff]  }
 0x4df   :  { %9828 = vmatpush2.bf16.msra.mxu0 %v13708_v9  ;;  %v8372_v9 = vadd.f32 %v15210_v15, %v8329_v58  ;;  %v13743_v15 = vld [vmem:[%s18613_s1 + $0x266c] ss:$16 sps:$4 sm:$0xff]   ;;  %v8419_v27 = vadd.f32 %v16456_v2, %v8376_v0  ;;  %v13762_v57 = vld [vmem:[%s18613_s1 + $0x27e8] ss:$16 sps:$4 sm:$0xff]  }
 0x4e0   :  { %9855 = vmatpush1.bf16.msra.mxu1 %v13711_v60  ;;  %9883 = vmatprep.subr.bf16.mxu0 %v13719_v38  ;;  %v13732_v60 = vld [vmem:[%s18613_s1 + $0x2588] ss:$16 sps:$4 sm:$0xff]   ;;  %v13746_v2 = vld [vmem:[%s18613_s1 + $0x254c] ss:$16 sps:$4 sm:$0xff]  }
 0x4e1   :  { %9856 = vmatprep.subr.bf16.mxu1 %v13716_v7  ;;  %v13735_v7 = vld [vmem:[%s18613_s1 + $0x2688] ss:$16 sps:$4 sm:$0xff]   ;;  %v8415_v38 = vadd.f32 %v16420_v8, %v8372_v9  ;;  %v8462_v59 = vadd.f32 %v16482_v39, %v8419_v27  ;;  %v13749_v8 = vld [vmem:[%s18613_s1 + $0x264c] ss:$16 sps:$4 sm:$0xff]  }
 0x4e2   :  { %9830 = vmatmul.mubr.bf16.vlgmr.msra.gmra.mxu0 %v13887_v29  ;;  %v13768_v0 = vld [vmem:[%s18613_s1 + $0x27c8] ss:$16 sps:$4 sm:$0xff]  }
 0x4e3   :  { %9884 = vmatpush1.bf16.msra.mxu0 %v13717_v50  ;;  %9915 = vmatprep.mubr.bf16.mxu0 %v13888_v18  ;;  %v8458_v39 = vadd.f32 %v16445_v20, %v8415_v38  ;;  %v8505_v50 = vadd.f32 %v16514_v54, %v8462_v59  ;;  %v13755_v20 = vld [vmem:[%s18613_s1 + $0x262c] ss:$16 sps:$4 sm:$0xff]   ;;  %v13771_v9 = vld [vmem:[%s18613_s1 + $0x28c8] ss:$16 sps:$4 sm:$0xff]  }
 0x4e4   :  { %9857 = vmatpush2.bf16.msra.mxu1 %v13714_v12  ;;  %9885 = vmatprep.subr.bf16.mxu0 %v13725_v34  ;;  %v13741_v12 = vld [vmem:[%s18613_s1 + $0x2668] ss:$16 sps:$4 sm:$0xff]   ;;  %v13788_v59 = vld [vmem:[%s18613_s1 + $0x276c] ss:$16 sps:$4 sm:$0xff]  }
 0x4e5   :  { %9858 = vmatprep.subr.bf16.mxu1 %v13722_v28  ;;  %v13744_v28 = vld [vmem:[%s18613_s1 + $0x2548] ss:$16 sps:$4 sm:$0xff]   ;;  %v8501_v54 = vadd.f32 %v16480_v36, %v8458_v39  ;;  %v8548_v29 = vadd.f32 %v16540_v46, %v8505_v50  ;;  %v13758_v36 = vld [vmem:[%s18613_s1 + $0x250c] ss:$16 sps:$4 sm:$0xff]  }
 0x4e6   :  { %v13747_v34 = vld [vmem:[%s18613_s1 + $0x2648] ss:$16 sps:$4 sm:$0xff]  }
 0x4e7   :  { %9886 = vmatpush1.bf16.msra.mxu0 %v13723_v19  ;;  %v8544_v24 = vadd.f32 %v16506_v51, %v8501_v54  ;;  %v13761_v51 = vld [vmem:[%s18613_s1 + $0x260c] ss:$16 sps:$4 sm:$0xff]   ;;  %v8591_v46 = vadd.f32 %v16572_v22, %v8548_v29  ;;  %v13780_v27 = vld [vmem:[%s18613_s1 + $0x2788] ss:$16 sps:$4 sm:$0xff]  }
 0x4e8   :  { %9859 = vmatpush2.bf16.msra.mxu1 %v13720_v23  ;;  %9887 = vmatprep.subr.bf16.mxu0 %v13731_v35  ;;  %v13753_v23 = vld [vmem:[%s18613_s1 + $0x2628] ss:$16 sps:$4 sm:$0xff]   ;;  %v13764_v22 = vld [vmem:[%s18613_s1 + $0x27ec] ss:$16 sps:$4 sm:$0xff]  }
 0x4e9   :  { %9860 = vmatprep.subr.bf16.mxu1 %v13728_v44  ;;  %v8587_v19 = vadd.f32 %v16538_v1, %v8544_v24  ;;  %v8634_v44 = vadd.f32 %v16604_v47, %v8591_v46  ;;  %v13756_v35 = vld [vmem:[%s18613_s1 + $0x2508] ss:$16 sps:$4 sm:$0xff]   ;;  %v13767_v1 = vld [vmem:[%s18613_s1 + $0x28ec] ss:$16 sps:$4 sm:$0xff]  }
 0x4ea   :  { %v13783_v38 = vld [vmem:[%s18613_s1 + $0x2888] ss:$16 sps:$4 sm:$0xff]  }
 0x4eb   :  { %9888 = vmatpush1.bf16.msra.mxu0 %v13729_v52  ;;  %v8630_v47 = vadd.f32 %v16564_v17, %v8587_v19  ;;  %v8677_v18 = vadd.f32 %v16636_v5, %v8634_v44  ;;  %v13770_v52 = vld [vmem:[%s18613_s1 + $0x27cc] ss:$16 sps:$4 sm:$0xff]   ;;  %v13798_v29 = vld [vmem:[%s18613_s1 + $0x2728] ss:$16 sps:$4 sm:$0xff]  }
 0x4ec   :  { %9861 = vmatpush2.bf16.msra.mxu1 %v13726_v61  ;;  %9889 = vmatprep.subr.bf16.mxu0 %v13737_v10  ;;  %v13765_v61 = vld [vmem:[%s18613_s1 + $0x28e8] ss:$16 sps:$4 sm:$0xff]   ;;  %v13773_v17 = vld [vmem:[%s18613_s1 + $0x28cc] ss:$16 sps:$4 sm:$0xff]   ;;  %v13889_v10 = vld [vmem:[%s18614_s0 + $0x90] ss:$164 sps:$4 sm:$0xff]  }
 0x4ed   :  { %9862 = vmatprep.subr.bf16.mxu1 %v13734_v55  ;;  %v8673_v5 = vadd.f32 %v16602_v45, %v8630_v47  ;;  %v8720_v55 = vadd.f32 %v16662_v31, %v8677_v18  ;;  %v13776_v45 = vld [vmem:[%s18613_s1 + $0x27ac] ss:$16 sps:$4 sm:$0xff]   ;;  %v13801_v24 = vld [vmem:[%s18613_s1 + $0x2828] ss:$16 sps:$4 sm:$0xff]   ;;  %v13891_v47 = vld [vmem:[%s18614_s0 + $0xa0] ss:$164 sps:$4 sm:$0xff]  }
 0x4ee   :  { %v13804_v46 = vld [vmem:[%s18613_s1 + $0x2708] ss:$16 sps:$4 sm:$0xff]   ;;  %v13813_v18 = vld [vmem:[%s18616_s3 + $0x30] sm:$0xff]  }
 0x4ef   :  { %9890 = vmatpush1.bf16.msra.mxu0 %v13735_v7  ;;  %v8716_v58 = vadd.f32 %v16628_v63, %v8673_v5  ;;  %v13779_v63 = vld [vmem:[%s18613_s1 + $0x28ac] ss:$16 sps:$4 sm:$0xff]   ;;  %v8763_v31 = vadd.f32 %v16697_v4, %v8720_v55  ;;  %v13807_v19 = vld [vmem:[%s18613_s1 + $0x2808] ss:$16 sps:$4 sm:$0xff]  }
 0x4f0   :  { %9863 = vmatpush2.bf16.msra.mxu1 %v13732_v60  ;;  %9891 = vmatprep.subr.bf16.mxu0 %v13743_v15  ;;  %v13777_v15 = vld [vmem:[%s18613_s1 + $0x28a8] ss:$16 sps:$4 sm:$0xff]  }
 0x4f1   :  { %9864 = vmatprep.subr.bf16.mxu1 %v13740_v56  ;;  %v8759_v60 = vadd.f32 %v16660_v25, %v8716_v58  ;;  %v8806_v7 = vadd.f32 %v16731_v42, %v8763_v31  ;;  %v13774_v56 = vld [vmem:[%s18613_s1 + $0x27a8] ss:$16 sps:$4 sm:$0xff]   ;;  %v13785_v25 = vld [vmem:[%s18613_s1 + $0x288c] ss:$16 sps:$4 sm:$0xff]   ;;  %v13821_v58 = vld [vmem:[%s18616_s3 + $0x10] sm:$0xff]  }
 0x4f2   :  { %v13810_v44 = vld [vmem:[%s18616_s3 + $0x78] sm:$0xff]  }
 0x4f3   :  { %9892 = vmatpush1.bf16.msra.mxu0 %v13741_v12  ;;  %v8802_v4 = vadd.f32 %v16688_v62, %v8759_v60  ;;  %v8849_v42 = vadd.f32 %v16769_v32, %v8806_v7  ;;  %v13791_v62 = vld [vmem:[%s18613_s1 + $0x286c] ss:$16 sps:$4 sm:$0xff]   ;;  %v13828_v7 = vld [vmem:[%s18616_s3 + $0xf0] sm:$0xff]  }
 0x4f4   :  { %9865 = vmatpush2.bf16.msra.mxu1 %v13738_v6  ;;  %9893 = vmatprep.subr.bf16.mxu0 %v13749_v8  ;;  %v13789_v8 = vld [vmem:[%s18613_s1 + $0x2868] ss:$16 sps:$4 sm:$0xff]  }
 0x4f5   :  { %9866 = vmatprep.subr.bf16.mxu1 %v13746_v2  ;;  %v8845_v32 = vadd.f32 %v16729_v48, %v8802_v4  ;;  %v8892_v6 = vadd.f32 %v16795_v16, %v8849_v42  ;;  %v13786_v2 = vld [vmem:[%s18613_s1 + $0x2768] ss:$16 sps:$4 sm:$0xff]   ;;  %v13794_v48 = vld [vmem:[%s18613_s1 + $0x274c] ss:$16 sps:$4 sm:$0xff]  }
 0x4f6   :  { %v13818_v5 = vld [vmem:[%s18616_s3 + $0x58] sm:$0xff]  }
 0x4f7   :  { %9894 = vmatpush1.bf16.msra.mxu0 %v13747_v34  ;;  %v8888_v12 = vadd.f32 %v16760_v37, %v8845_v32  ;;  %v13797_v37 = vld [vmem:[%s18613_s1 + $0x284c] ss:$16 sps:$4 sm:$0xff]   ;;  %v8935_v16 = vadd.f32 %v16828_v53, %v8892_v6  ;;  %v13795_v34 = vld [vmem:[%s18613_s1 + $0x2848] ss:$16 sps:$4 sm:$0xff]  }
 0x4f8   :  { %9867 = vmatpush2.bf16.msra.mxu1 %v13744_v28  ;;  %9895 = vmatprep.subr.bf16.mxu0 %v13755_v20  ;;  %v13792_v28 = vld [vmem:[%s18613_s1 + $0x2748] ss:$16 sps:$4 sm:$0xff]   ;;  %v13800_v53 = vld [vmem:[%s18613_s1 + $0x272c] ss:$16 sps:$4 sm:$0xff]   ;;  %v9063_v20 = vpop.f32.mrf.mxu0 }
 0x4f9   :  { %9868 = vmatprep.subr.bf16.mxu1 %v13752_v43  ;;  %v8931_v39 = vadd.f32 %v16793_v21, %v8888_v12  ;;  %v8978_v50 = vadd.f32 %v16850_v40, %v8935_v16  ;;  %v13803_v21 = vld [vmem:[%s18613_s1 + $0x282c] ss:$16 sps:$4 sm:$0xff]   ;;  %v9020_v43 = vpop.f32.mrf.mxu1  ;;  %v13836_v12 = vld [vmem:[%s18616_s3 + $0xd0] sm:$0xff]  }
 0x4fa   :  { %v13819_v55 = vld [vmem:[%s18616_s3 + $0x18] sm:$0xff]   ;;  %v18410_v32 = vpop.f32.mrf.mxu0  ;;  %v13839_v16 = vld [vmem:[%s18616_s3 + $0x88] sm:$0xff]  }
 0x4fb   :  { %9896 = vmatpush1.bf16.msra.mxu0 %v13753_v23  ;;  %v8974_v40 = vadd.f32 %v16819_v26, %v8931_v39  ;;  %v9021_v54 = vadd.f32 %v9020_v43, %v8978_v50  ;;  %v13809_v26 = vld [vmem:[%s18613_s1 + $0x280c] ss:$16 sps:$4 sm:$0xff]   ;;  %v18396_v4 = vpop.f32.mrf.mxu1 }
 0x4fc   :  { %9869 = vmatpush2.bf16.msra.mxu1 %v13750_v30  ;;  %9897 = vmatprep.subr.bf16.mxu0 %v13761_v51  ;;  %v13806_v30 = vld [vmem:[%s18613_s1 + $0x270c] ss:$16 sps:$4 sm:$0xff]  }
 0x4fd   :  { %9870 = vmatprep.subr.bf16.mxu1 %v13758_v36  ;;  %v9017_v23 = vadd.f32 %v16848_v13, %v8974_v40  ;;  %v9064_v36 = vadd.f32 %v9063_v20, %v9021_v54  ;;  %v13826_v31 = vld [vmem:[%s18616_s3 + $0xf8] sm:$0xff]   ;;  %v18398_v42 = vpop.f32.mrf.mxu1 }
 0x4fe   :  { %v13827_v60 = vld [vmem:[%s18616_s3 + $0xb8] sm:$0xff]  }
 0x4ff   :  { %9898 = vmatpush1.bf16.msra.mxu0 %v13759_v3  ;;  %v9060_v51 = vadd.f32 %v16867_v33, %v9017_v23  ;;  %v9974_v13 = vmax.f32 %v9064_v36, 0.0  ;;  %v13811_v33 = vld [vmem:[%s18616_s3 + $0x38] sm:$0xff]   ;;  %v13812_v3 = vld [vmem:[%s18616_s3 + $0x70] sm:$0xff]  }
 0x500   :  { %9871 = vmatpush2.bf16.msra.mxu1 %v13756_v35  ;;  %9899 = vmatprep.subr.bf16.mxu0 %v13764_v22 }
 0x501   :  { %9926 = vmatprep.subr.bf16.mxu1 %v13767_v1  ;;  %v9970_v35 = vmax.f32 %v9060_v51, 0.0  ;;  %v13890_v1 = vld [vmem:[%s18614_s0 + $0x98] ss:$164 sps:$4 sm:$0xff]  }
 0x503   :  { %9873 = vmatmul.mubr.bf16.vlgmr.msra.gmra.mxu1 %v13889_v10  ;;  %9900 = vmatpush2.bf16.msra.mxu0 %v13762_v57  ;;  %v9978_v22 = vpack.c.bf16 %v9974_v13, %v9970_v35  ;;  %v13814_v57 = vld [vmem:[%s18616_s3 + $0x68] sm:$0xff]   ;;  %v13820_v10 = vld [vmem:[%s18616_s3 + $0x50] sm:$0xff]  }
 0x504   :  { %9927 = vmatpush1.bf16.msra.mxu1 %v13765_v61  ;;  %9901 = vmatprep.subr.bf16.mxu0 %v13770_v52  ;;  %v13815_v61 = vld [vmem:[%s18616_s3 + $0x28] sm:$0xff]   ;;  %v13816_v52 = vld [vmem:[%s18616_s3 + $0x60] sm:$0xff]  }
 0x505   :  { %9928 = vmatprep.subr.bf16.mxu1 %v13773_v17  ;;  %9958 = vmatprep.mubr.bf16.mxu1 %v13892_v41  ;;  %v13782_v41 = vld [vmem:[%s18613_s1 + $0x278c] ss:$16 sps:$4 sm:$0xff]   ;;  %v13817_v17 = vld [vmem:[%s18616_s3 + $0x20] sm:$0xff]  }
 0x507   :  { %9902 = vmatpush2.bf16.msra.mxu0 %v13768_v0  ;;  %v13822_v0 = vld [vmem:[%s18616_s3 + $0x48] sm:$0xff]  }
 0x508   :  { %9929 = vmatpush1.bf16.msra.mxu1 %v13771_v9  ;;  %9903 = vmatprep.subr.bf16.mxu0 %v13776_v45  ;;  %v13823_v9 = vld [vmem:[%s18616_s3 + $0x8] sm:$0xff]   ;;  %v13824_v45 = vld [vmem:[%s18616_s3 + $0x40] sm:$0xff]  }
 0x509   :  { %9930 = vmatprep.subr.bf16.mxu1 %v13779_v63  ;;  %v13825_v63 = vld [vmem:[%s18616_s3] sm:$0xff]  }
 0x50b   :  { %9904 = vmatpush2.bf16.msra.mxu0 %v13774_v56  ;;  %v13829_v56 = vld [vmem:[%s18616_s3 + $0xb0] sm:$0xff]  }
 0x50c   :  { %9931 = vmatpush1.bf16.msra.mxu1 %v13777_v15  ;;  %9905 = vmatprep.subr.bf16.mxu0 %v13782_v41  ;;  %v13831_v15 = vld [vmem:[%s18616_s3 + $0xa8] sm:$0xff]   ;;  %v13832_v41 = vld [vmem:[%s18616_s3 + $0xe0] sm:$0xff]  }
 0x50d   :  { %9932 = vmatprep.subr.bf16.mxu1 %v13785_v25  ;;  %v13833_v25 = vld [vmem:[%s18616_s3 + $0xa0] sm:$0xff]  }
 0x50f   :  { %9906 = vmatpush2.bf16.msra.mxu0 %v13780_v27  ;;  %v18400_v27 = vpop.f32.mrf.mxu1 }
 0x510   :  { %9933 = vmatpush1.bf16.msra.mxu1 %v13783_v38  ;;  %9907 = vmatprep.subr.bf16.mxu0 %v13788_v59  ;;  %v13834_v38 = vld [vmem:[%s18616_s3 + $0xd8] sm:$0xff]  }
 0x511   :  { %9934 = vmatprep.subr.bf16.mxu1 %v13791_v62  ;;  %v13835_v59 = vld [vmem:[%s18616_s3 + $0x98] sm:$0xff]   ;;  %v18408_v62 = vpop.f32.mrf.mxu1 }
 0x513   :  { %9908 = vmatpush2.bf16.msra.mxu0 %v13786_v2  ;;  %v18412_v6 = vpop.f32.mrf.mxu1  ;;  %v13837_v2 = vld [vmem:[%s18616_s3 + $0x90] sm:$0xff]  }
 0x514   :  { %9935 = vmatpush1.bf16.msra.mxu1 %v13789_v8  ;;  %9909 = vmatprep.subr.bf16.mxu0 %v13794_v48  ;;  %v18420_v8 = vpop.f32.mrf.mxu0 }
 0x515   :  { %9936 = vmatprep.subr.bf16.mxu1 %v13797_v37  ;;  %v18422_v48 = vpop.f32.mrf.mxu1  ;;  %v13838_v37 = vld [vmem:[%s18616_s3 + $0xc8] sm:$0xff]  }
 0x516   :  { %v18430_v39 = vpop.f32.mrf.mxu0 }
 0x517   :  { %9910 = vmatpush2.bf16.msra.mxu0 %v13792_v28  ;;  %v18432_v50 = vpop.f32.mrf.mxu1  ;;  %v13840_v28 = vld [vmem:[%s18616_s3 + $0xc0] sm:$0xff]  }
 0x518   :  { %9937 = vmatpush1.bf16.msra.mxu1 %v13795_v34  ;;  %9911 = vmatprep.subr.bf16.mxu0 %v13800_v53  ;;  %v13841_v34 = vld [vmem:[%s18616_s3 + $0x80] sm:$0xff]   ;;  %v18440_v53 = vpop.f32.mrf.mxu0 }
 0x519   :  { %9938 = vmatprep.subr.bf16.mxu1 %v13803_v21  ;;  %v18442_v21 = vpop.f32.mrf.mxu1 }
 0x51a   :  { %v18444_v40 = vpop.f32.mrf.mxu0 }
 0x51b   :  { %9912 = vmatpush2.bf16.msra.mxu0 %v13798_v29  ;;  %v18446_v43 = vpop.f32.mrf.mxu1 }
 0x51c   :  { %9939 = vmatpush1.bf16.msra.mxu1 %v13801_v24  ;;  %9913 = vmatprep.subr.bf16.mxu0 %v13806_v30  ;;  %v9231_v20 = vpop.f32.mrf.mxu0 }
 0x51d   :  { %9940 = vmatprep.subr.bf16.mxu1 %v13809_v26  ;;  %v18448_v54 = vpop.f32.mrf.mxu1 }
 0x51e   :  { %v18450_v29 = vpop.f32.mrf.mxu0 }
 0x51f   :  { %9914 = vmatpush2.bf16.msra.mxu0 %v13804_v46  ;;  %v18452_v24 = vpop.f32.mrf.mxu1 }
 0x520   :  { %9941 = vmatpush1.bf16.msra.mxu1 %v13807_v19  ;;  %11736 = vmatprep.subr.bf16.mxu0 %v13810_v44  ;;  %v18454_v30 = vpop.f32.mrf.mxu0 }
 0x521   :  { %11758 = vmatprep.subr.bf16.mxu1 %v13826_v31  ;;  %v18456_v26 = vpop.f32.mrf.mxu1 }
 0x522   :  { %9916 = vmatmul.mubr.bf16.vlgmr.msra.gmra.mxu0 %v13890_v1  ;;  %v18458_v23 = vpop.f32.mrf.mxu0 }
 0x523   :  { %9959 = vmatmul.mubr.bf16.vlgmr.msra.gmra.mxu1 %v13891_v47  ;;  %11737 = vmatpush3.bf16.msra.mxu0 %v13811_v33  ;;  %v18460_v36 = vpop.f32.mrf.mxu1 }
 0x524   :  { %10276 = vmatprep.mubr.bf16.mxu0 %v9978_v22  ;;  %11738 = vmatprep.subr.bf16.mxu0 %v13812_v3  ;;  %v18462_v51 = vpop.f32.mrf.mxu0 }
 0x525   :  { %11759 = vmatpush3.bf16.msra.mxu1 %v13827_v60  ;;  %v18464_v46 = vpop.f32.mrf.mxu1 }
 0x526   :  { %11760 = vmatprep.subr.bf16.mxu1 %v13828_v7  ;;  %v18466_v19 = vpop.f32.mrf.mxu0 }
 0x527   :  { %11739 = vmatpush3.bf16.msra.mxu0 %v13813_v18  ;;  %v18468_v44 = vpop.f32.mrf.mxu1 }
 0x528   :  { %11740 = vmatprep.subr.bf16.mxu0 %v13814_v57  ;;  %v18470_v13 = vpop.f32.mrf.mxu0 }
 0x529   :  { %11761 = vmatpush3.bf16.msra.mxu1 %v13829_v56  ;;  %v18472_v35 = vpop.f32.mrf.mxu1 }
 0x52a   :  { %v18474_v33 = vpop.f32.mrf.mxu0 }
 0x52b   :  { %11741 = vmatpush3.bf16.msra.mxu0 %v13815_v61  ;;  %v18476_v3 = vpop.f32.mrf.mxu1 }
 0x52c   :  { %11742 = vmatprep.subr.bf16.mxu0 %v13816_v52  ;;  %v18478_v22 = vpop.f32.mrf.mxu0 }
 0x52d   :  { %v18480_v1 = vpop.f32.mrf.mxu1 }
 0x52e   :  { %v18482_v47 = vpop.f32.mrf.mxu0 }
 0x52f   :  { %11743 = vmatpush3.bf16.msra.mxu0 %v13817_v17  ;;  %v18484_v18 = vpop.f32.mrf.mxu1 }
 0x530   :  { %11744 = vmatprep.subr.bf16.mxu0 %v13818_v5  ;;  %v18486_v57 = vpop.f32.mrf.mxu0 }
 0x531   :  { %v18488_v61 = vpop.f32.mrf.mxu1 }
 0x532   :  { %v18490_v52 = vpop.f32.mrf.mxu0 }
 0x533   :  { %11745 = vmatpush3.bf16.msra.mxu0 %v13819_v55  ;;  %v18492_v17 = vpop.f32.mrf.mxu1 }
 0x534   :  { %11746 = vmatprep.subr.bf16.mxu0 %v13820_v10  ;;  %v18494_v5 = vpop.f32.mrf.mxu0 }
 0x535   :  { %v18496_v55 = vpop.f32.mrf.mxu1 }
 0x536   :  { %v18498_v10 = vpop.f32.mrf.mxu0 }
 0x537   :  { %11747 = vmatpush3.bf16.msra.mxu0 %v13821_v58  ;;  %v18500_v58 = vpop.f32.mrf.mxu1 }
 0x538   :  { %11748 = vmatprep.subr.bf16.mxu0 %v13822_v0  ;;  %v18502_v0 = vpop.f32.mrf.mxu0 }
 0x53b   :  { %11749 = vmatpush3.bf16.msra.mxu0 %v13823_v9  ;;  %v18504_v9 = vpop.f32.mrf.mxu1 }
 0x53c   :  { %11750 = vmatprep.subr.bf16.mxu0 %v13824_v45  ;;  %v18506_v45 = vpop.f32.mrf.mxu0 }
 0x53e   :  { %v18510_v31 = vpop.f32.mrf.mxu0 }
 0x53f   :  { %11751 = vmatpush3.bf16.msra.mxu0 %v13825_v63  ;;  %v18508_v63 = vpop.f32.mrf.mxu1 }
 0x540   :  { %v18514_v7 = vpop.f32.mrf.mxu0 }
 0x541   :  { %v18512_v60 = vpop.f32.mrf.mxu1 }
 0x542   :  { %10277 = vmatmul.mubr.bf16.vlgmr.msra.gmra.mxu0 %v16890_v49  ;;  %v13830_v49 = vld [vmem:[%s18616_s3 + $0xe8] sm:$0xff]  }
 0x543   :  { %11762 = vmatprep.subr.bf16.mxu1 %v13830_v49  ;;  %v18516_v56 = vpop.f32.mrf.mxu1  ;;  %v18518_v49 = vpop.f32.mrf.mxu0 }
 0x544   :  { %11763 = vmatpush3.bf16.msra.mxu1 %v13831_v15  ;;  %18619 = vst [vmem:[#allocation2_spill] sm:$0xff] %v18516_v56 }
 0x545   :  { %11764 = vmatprep.subr.bf16.mxu1 %v13832_v41  ;;  %v18520_v15 = vpop.f32.mrf.mxu1  ;;  %v1391_v41 = vsub.s32 3, %v14721_v11 }
 0x546   :  { %18620 = vst [vmem:[#allocation3_spill] sm:$0xff] %v18520_v15 }
 0x548   :  { %11765 = vmatpush3.bf16.msra.mxu1 %v13833_v25  ;;  %v1387_v25 = vsub.s32 2, %v14721_v11 }
 0x549   :  { %11766 = vmatprep.subr.bf16.mxu1 %v13834_v38  ;;  %v18524_v38 = vpop.f32.mrf.mxu0 }
 0x54a   :  { %18621 = vst [vmem:[#allocation4_spill] sm:$0xff] %v18524_v38 }
 0x54c   :  { %11767 = vmatpush3.bf16.msra.mxu1 %v13835_v59  ;;  %v18526_v59 = vpop.f32.mrf.mxu1 }
 0x54d   :  { %11768 = vmatprep.subr.bf16.mxu1 %v13836_v12  ;;  %18622 = vst [vmem:[#allocation5_spill] sm:$0xff] %v18526_v59  ;;  %v1392_v12 = vrot.slane %v18066_v14, %v1391_v41 }
 0x550   :  { %11769 = vmatpush3.bf16.msra.mxu1 %v13837_v2  ;;  %v1388_v2 = vrot.slane %v18066_v14, %v1387_v25  ;;  %v9107_v14 = vadd.f32 %v18408_v62, %v1392_v12 }
 0x551   :  { %11770 = vmatprep.subr.bf16.mxu1 %v13838_v37  ;;  %v18530_v37 = vpop.f32.mrf.mxu0 }
 0x552   :  { %v9105_v11 = vadd.f32 %v18400_v27, %v1388_v2 }
 0x553   :  { %v18536_v15 = vpop.f32.mrf.mxu0 }
 0x554   :  { %11771 = vmatpush3.bf16.msra.mxu1 %v13839_v16  ;;  %v18532_v16 = vpop.f32.mrf.mxu1  ;;  %v9148_v25 = vadd.f32 %v18430_v39, %v9105_v11 }
 0x555   :  { %11772 = vmatprep.subr.bf16.mxu1 %v13840_v28  ;;  %18623 = vst [vmem:[#allocation6_spill] sm:$0xff] %v18532_v16  ;;  %v9103_v28 = vadd.f32 %v18398_v42, %v1392_v12  ;;  %v18547_v38 = vpop.f32.mrf.mxu0 }
 0x556   :  { %v18538_v56 = vpop.f32.mrf.mxu1  ;;  %v9191_v27 = vadd.f32 %v18432_v50, %v9148_v25 }
 0x557   :  { %18624 = vst [vmem:[#allocation7_spill] sm:$0xff] %v18538_v56  ;;  %v9146_v59 = vadd.f32 %v18420_v8, %v9103_v28  ;;  %v9150_v56 = vadd.f32 %v18440_v53, %v9107_v14 }
 0x558   :  { %11773 = vmatpush3.bf16.msra.mxu1 %v13841_v34  ;;  %v9101_v34 = vadd.f32 %v18396_v4, %v1388_v2  ;;  %v18549_v4 = vpop.f32.mrf.mxu1 }
 0x559   :  { %v9189_v16 = vadd.f32 %v18422_v48, %v9146_v59  ;;  %v9193_v62 = vadd.f32 %v18442_v21, %v9150_v56  ;;  %v9234_v48 = vadd.f32 %v18450_v29, %v9191_v27 }
 0x55a   :  { %v9144_v41 = vadd.f32 %v18410_v32, %v9101_v34 }
 0x55b   :  { %v9232_v2 = vadd.f32 %v9231_v20, %v9189_v16  ;;  %v9236_v59 = vadd.f32 %v18454_v30, %v9193_v62  ;;  %v9277_v53 = vadd.f32 %v18452_v24, %v9234_v48  ;;  %v18627_v62 = vld [vmem:[#allocation3_spill] sm:$0xff] }
 0x55c   :  { %v9187_v42 = vadd.f32 %v18412_v6, %v9144_v41  ;;  %v18628_v48 = vld [vmem:[#allocation6_spill] sm:$0xff] }
 0x55d   :  { %v9275_v6 = vadd.f32 %v18448_v54, %v9232_v2  ;;  %v9279_v16 = vadd.f32 %v18456_v26, %v9236_v59  ;;  %v9320_v21 = vadd.f32 %v18466_v19, %v9277_v53  ;;  %v18625_v2 = vld [vmem:[#allocation2_spill] sm:$0xff] }
 0x55e   :  { %v9230_v8 = vadd.f32 %v18444_v40, %v9187_v42  ;;  %v18630_v53 = vld [vmem:[#allocation7_spill] sm:$0xff] }
 0x55f   :  { %v9318_v50 = vadd.f32 %v18462_v51, %v9275_v6  ;;  %v9363_v30 = vadd.f32 %v18468_v44, %v9320_v21  ;;  %v18629_v6 = vld [vmem:[#allocation5_spill] sm:$0xff] }
 0x560   :  { %v9273_v39 = vadd.f32 %v18446_v43, %v9230_v8  ;;  %v9322_v43 = vadd.f32 %v18470_v13, %v9279_v16  ;;  %v18626_v8 = vld [vmem:[#allocation4_spill] sm:$0xff] }
 0x561   :  { %v9361_v29 = vadd.f32 %v18464_v46, %v9318_v50  ;;  %v9406_v26 = vadd.f32 %v18482_v47, %v9363_v30 }
 0x562   :  { %v9745_v32 = vpop.f32.mrf.mxu0  ;;  %v9316_v20 = vadd.f32 %v18458_v23, %v9273_v39  ;;  %v9365_v34 = vadd.f32 %v18472_v35, %v9322_v43 }
 0x563   :  { %v9404_v24 = vadd.f32 %v18478_v22, %v9361_v29  ;;  %v9449_v13 = vadd.f32 %v18484_v18, %v9406_v26 }
 0x564   :  { %v9747_v40 = vpop.f32.mrf.mxu0  ;;  %v9359_v54 = vadd.f32 %v18460_v36, %v9316_v20  ;;  %v9408_v36 = vadd.f32 %v18486_v57, %v9365_v34 }
 0x565   :  { %v9447_v19 = vadd.f32 %v18480_v1, %v9404_v24  ;;  %v9492_v35 = vadd.f32 %v18498_v10, %v9449_v13 }
 0x566   :  { %v9402_v51 = vadd.f32 %v18474_v33, %v9359_v54  ;;  %v9749_v56 = vpop.f32.mrf.mxu0  ;;  %v9451_v41 = vadd.f32 %v18488_v61, %v9408_v36 }
 0x567   :  { %v9490_v44 = vadd.f32 %v18494_v5, %v9447_v19  ;;  %v9535_v18 = vadd.f32 %v18500_v58, %v9492_v35 }
 0x568   :  { %v9445_v46 = vadd.f32 %v18476_v3, %v9402_v51  ;;  %v9751_v11 = vpop.f32.mrf.mxu0  ;;  %v9494_v57 = vadd.f32 %v18502_v0, %v9451_v41 }
 0x569   :  { %v9533_v47 = vadd.f32 %v18496_v55, %v9490_v44  ;;  %v9578_v61 = vadd.f32 %v18514_v7, %v9535_v18 }
 0x56a   :  { %v9488_v22 = vadd.f32 %v18490_v52, %v9445_v46  ;;  %v9537_v25 = vadd.f32 %v18504_v9, %v9494_v57 }
 0x56b   :  { %v9576_v5 = vadd.f32 %v18510_v31, %v9533_v47  ;;  %v9621_v0 = vadd.f32 %v18625_v2, %v9578_v61 }
 0x56c   :  { %v9531_v1 = vadd.f32 %v18492_v17, %v9488_v22  ;;  %v9580_v27 = vadd.f32 %v18518_v49, %v9537_v25 }
 0x56d   :  { %v9619_v10 = vadd.f32 %v18512_v60, %v9576_v5  ;;  %v9664_v9 = vadd.f32 %v18536_v15, %v9621_v0 }
 0x56e   :  { %v9574_v52 = vadd.f32 %v18506_v45, %v9531_v1  ;;  %v9623_v45 = vadd.f32 %v18627_v62, %v9580_v27 }
 0x56f   :  { %v9662_v58 = vadd.f32 %v18530_v37, %v9619_v10  ;;  %v9707_v49 = vadd.f32 %v18630_v53, %v9664_v9 }
 0x570   :  { %v9617_v55 = vadd.f32 %v18508_v63, %v9574_v52  ;;  %v9666_v59 = vadd.f32 %v18547_v38, %v9623_v45 }
 0x571   :  { %v9705_v7 = vadd.f32 %v18628_v48, %v9662_v58  ;;  %v9750_v16 = vadd.f32 %v9749_v56, %v9707_v49 }
 0x572   :  { %v9660_v31 = vadd.f32 %v18626_v8, %v9617_v55  ;;  %v9709_v37 = vadd.f32 %v18549_v4, %v9666_v59 }
 0x573   :  { %v9748_v50 = vadd.f32 %v9747_v40, %v9705_v7 }
 0x574   :  { %v9703_v60 = vadd.f32 %v18629_v6, %v9660_v31  ;;  %v9752_v43 = vadd.f32 %v9751_v11, %v9709_v37 }
 0x576   :  { %v9746_v20 = vadd.f32 %v9745_v32, %v9703_v60 }
 0x583   :  { %v18554_v28 = vpop.f32.mrf.mxu1 }
 0x584   :  { %v9789_v29 = vadd.f32 %v18554_v28, %v9746_v20 }
 0x585   :  { %v9790_v12 = vpop.f32.mrf.mxu1 }
 0x586   :  { %v9791_v21 = vadd.f32 %v9790_v12, %v9748_v50 }
 0x587   :  { %v9792_v23 = vpop.f32.mrf.mxu1 }
 0x588   :  { %v9793_v30 = vadd.f32 %v9792_v23, %v9750_v16 }
 0x589   :  { %v9794_v33 = vpop.f32.mrf.mxu1 }
 0x58a   :  { %v9795_v19 = vadd.f32 %v9794_v33, %v9752_v43 }
 0x5a2   :  { %v9831_v14 = vpop.f32.mrf.mxu0 }
 0x5a3   :  { %v9832_v51 = vadd.f32 %v9831_v14, %v9789_v29 }
 0x5a4   :  { %v9833_v42 = vpop.f32.mrf.mxu0 }
 0x5a5   :  { %v9834_v24 = vadd.f32 %v9833_v42, %v9791_v21 }
 0x5a6   :  { %v9835_v39 = vpop.f32.mrf.mxu0 }
 0x5a7   :  { %v9836_v38 = vadd.f32 %v9835_v39, %v9793_v30 }
 0x5a8   :  { %v9837_v54 = vpop.f32.mrf.mxu0 }
 0x5a9   :  { %v9838_v13 = vadd.f32 %v9837_v54, %v9795_v19 }
 0x5c3   :  { %v9874_v3 = vpop.f32.mrf.mxu1 }
 0x5c4   :  { %v9875_v36 = vadd.f32 %v9874_v3, %v9832_v51 }
 0x5c5   :  { %v9876_v17 = vpop.f32.mrf.mxu1 }
 0x5c6   :  { %v9877_v46 = vadd.f32 %v9876_v17, %v9834_v24  ;;  %v11703_v17 = vld [vmem:[%s18617_s4] ss:$0 sm:$0xff] }
 0x5c7   :  { %v9878_v63 = vpop.f32.mrf.mxu1 }
 0x5c8   :  { %v9879_v4 = vadd.f32 %v9878_v63, %v9836_v38 }
 0x5c9   :  { %v9880_v15 = vpop.f32.mrf.mxu1 }
 0x5ca   :  { %v9881_v22 = vadd.f32 %v9880_v15, %v9838_v13 }
 0x5e2   :  { %v9917_v34 = vpop.f32.mrf.mxu0 }
 0x5e3   :  { %v9960_v26 = vpop.f32.mrf.mxu1  ;;  %v9918_v12 = vadd.f32 %v9917_v34, %v9875_v36 }
 0x5e4   :  { %v9919_v40 = vpop.f32.mrf.mxu0 }
 0x5e5   :  { %v9962_v32 = vpop.f32.mrf.mxu1  ;;  %v9920_v56 = vadd.f32 %v9919_v40, %v9877_v46  ;;  %v9961_v1 = vadd.f32 %v9960_v26, %v9918_v12 }
 0x5e6   :  { %v9921_v44 = vpop.f32.mrf.mxu0 }
 0x5e7   :  { %v9964_v28 = vpop.f32.mrf.mxu1  ;;  %v9922_v41 = vadd.f32 %v9921_v44, %v9879_v4  ;;  %v9963_v23 = vadd.f32 %v9962_v32, %v9920_v56  ;;  %v9971_v5 = vmax.f32 %v9961_v1, 0.0 }
 0x5e8   :  { %v9923_v11 = vpop.f32.mrf.mxu0 }
 0x5e9   :  { %v9965_v35 = vadd.f32 %v9964_v28, %v9922_v41  ;;  %v9924_v47 = vadd.f32 %v9923_v11, %v9881_v22  ;;  %v9966_v14 = vpop.f32.mrf.mxu1  ;;  %v9972_v18 = vmax.f32 %v9963_v23, 0.0 }
 0x5eb   :  { %v9967_v33 = vadd.f32 %v9966_v14, %v9924_v47  ;;  %v9975_v57 = vmax.f32 %v9965_v35, 0.0 }
 0x5ed   :  { %v9976_v3 = vmax.f32 %v9967_v33, 0.0  ;;  %v9979_v25 = vpack.c.bf16 %v9975_v57, %v9971_v5 }
 0x5ef   :  { %v9980_v52 = vpack.c.bf16 %v9976_v3, %v9972_v18 }
 0x5f1   :  { %10317 = vmatprep.mubr.bf16.mxu1 %v9980_v52 }
 0x5f2   :  { %10318 = vmatmul.mubr.bf16.vlgmr.msra.gmra.mxu1 %v9979_v25 }
 0x602   :  { %v11752_v61 = vpop.f32.mrf.mxu0 }
 0x604   :  { %v11753_v10 = vpop.f32.mrf.mxu0 }
 0x605   :  { %v11754_v42 = vadd.f32 %v11753_v10, %v11752_v61 }
 0x606   :  { %v11755_v55 = vpop.f32.mrf.mxu0 }
 0x607   :  { %v10279_v58 = vadd.f32 %v11754_v42, %v11703_v17 }
 0x608   :  { %v11756_v27 = vpop.f32.mrf.mxu0 }
 0x609   :  { %v11757_v8 = vadd.f32 %v11756_v27, %v11755_v55 }
 0x60b   :  { %v10282_v48 = vadd.f32 %v11757_v8, %v11703_v17 }
 0x6b2   :  { %v11774_v2 = vpop.f32.mrf.mxu1 }
 0x6b4   :  { %v11775_v0 = vpop.f32.mrf.mxu1 }
 0x6b5   :  { %v11776_v31 = vadd.f32 %v11775_v0, %v11774_v2 }
 0x6b6   :  { %v11777_v62 = vpop.f32.mrf.mxu1 }
 0x6b7   :  { %v10320_v45 = vadd.f32 %v11776_v31, %v10279_v58 }
 0x6b8   :  { %v11778_v9 = vpop.f32.mrf.mxu1 }
 0x6b9   :  { %v11779_v7 = vadd.f32 %v11778_v9, %v11777_v62  ;;  %10326 = vmax.xlane.f32.xlu0 %v10320_v45 }
 0x6bb   :  { %v10323_v6 = vadd.f32 %v11779_v7, %v10282_v48 }
 0x6bd   :  { %10328 = vmax.xlane.f32.xlu0 %v10323_v6 }
 0x742   :  { %v10327_v60 = vpop.xlane.xlu0 %10326 }
 0x743   :  { %v10330_v39 = vsub.f32 %v10320_v45, %v10327_v60 }
 0x745   :  { %v10332_v63 = vmul.f32 1.442695, %v10330_v39 }
 0x746   :  { %v10329_v59 = vpop.xlane.xlu0 %10328 }
 0x747   :  { %13842 = vpow2.f32 %v10332_v63  ;;  %v10331_v53 = vsub.f32 %v10323_v6, %v10329_v59 }
 0x749   :  { %v10334_v49 = vmul.f32 1.442695, %v10331_v53 }
 0x74b   :  { %13844 = vpow2.f32 %v10334_v49 }
 0x754   :  { %v13843_v50 = vpop.eup %13842 }
 0x755   :  { %10336 = vadd.xlane.f32.xlu1 %v13843_v50 }
 0x758   :  { %v13845_v20 = vpop.eup %13844 }
 0x759   :  { %10338 = vadd.xlane.f32.xlu1 %v13845_v20 }
 0x7de   :  { %v10337_v37 = vpop.xlane.xlu1 %10336 }
 0x7df   :  { %13846 = vrcp.f32 %v10337_v37 }
 0x7e2   :  { %v10339_v16 = vpop.xlane.xlu1 %10338 }
 0x7e3   :  { %13848 = vrcp.f32 %v10339_v16 }
 0x7ec   :  { %v13847_v21 = vpop.eup %13846 }
 0x7ed   :  { %v10341_v29 = vmul.f32 %v13847_v21, %v13843_v50 }
 0x7ef   :  { %10344 = vst [vmem:[%s18618_s5] sm:$0xff] %v10341_v29 }
 0x7f0   :  { %v13849_v54 = vpop.eup %13848 }
 0x7f1   :  { %v10343_v15 = vmul.f32 %v13849_v54, %v13845_v20 }
 0x7f3   :  { %10345 = vst [vmem:[%s18618_s5 + $0x8] sm:$0xff] %v10343_v15 }

</bundles_post_ra>
